<compile_context>
chip_gen: v6e
topology: v6e:2x2x1
jax: 0.10.0
libtpu: 0.0.40
codegen_flags: <defaults>
</compile_context>

<pallas_src>
import jax
import jax.numpy as jnp
from jax.experimental import pallas as pl
from jax.experimental.pallas import tpu as pltpu


# ---------------------------------------------------------------------------
# Parameter packing: one (8,128)-aligned f32 slab, sliced statically in-kernel.
# ---------------------------------------------------------------------------
def _pack_params(params):
    """Pack all weights/biases into a single (rows, 128)-aligned f32 buffer.

    Order: [W_h, b_h] * num_hidden, W_out^T (1, H_last), b_out (1, 1), W_t, b_t.
    Returns (packed, slots) where slots[i] = (row_offset, rows, cols) (Python ints).
    """
    arrays = []
    for w, b in params["hidden"]:
        arrays += [w, b]
    w_out, b_out = params["out"]
    arrays += [w_out.T, b_out]            # scorer output weight stored as a row vector
    arrays += list(params["transform"])

    lane = 128
    max_c = max(((a.shape[1] + lane - 1) // lane) * lane for a in arrays)

    slots, chunks, row = [], [], 0
    for a in arrays:
        r, c = int(a.shape[0]), int(a.shape[1])
        rp = ((r + 7) // 8) * 8
        buf = jnp.zeros((rp, max_c), jnp.float32).at[:r, :c].set(a.astype(jnp.float32))
        slots.append((row, r, c))
        chunks.append(buf)
        row += rp
    return jnp.concatenate(chunks, axis=0), tuple(slots)


# ---------------------------------------------------------------------------
# Kernel
# ---------------------------------------------------------------------------
def _make_kernel(num_hidden: int, slots, mxu_dtype):
    """Kernel for a scorer MLP with `num_hidden` (Linear+ReLU) layers; params in one slab."""

    def kernel(f_ref, p_ref, out_ref):
        f3 = f_ref[...]                                    # (BB, N, F) f32
        bb, n, feat = f3.shape
        f2d = f3.reshape(bb * n, feat)

        # ---- feature_transform, reassociated: g = f @ W_t (bias added after the mix).
        # Independent of the scorer MLP, so the scheduler can overlap it with the
        # hidden-layer dots below.
        wt_off, wt_r, wt_c = slots[-2]
        bt_off, _, bt_c = slots[-1]
        w_t = p_ref[wt_off:wt_off + wt_r, :wt_c]
        b_t = p_ref[bt_off:bt_off + 1, :bt_c]
        g = jnp.dot(f2d.astype(mxu_dtype), w_t.astype(mxu_dtype),
                    preferred_element_type=jnp.float32)    # (BB*N, T)
        g3 = g.reshape(bb, n, wt_c)

        # ---- pairwise |f_i - f_j| rows as two flat (BB*N*N, F) operands.
        fi = jnp.repeat(f3, n, axis=1).reshape(bb * n * n, feat)   # row (b,i,j) -> f[b,i]
        fj = jnp.tile(f3, (1, n, 1)).reshape(bb * n * n, feat)     # row (b,i,j) -> f[b,j]
        h = jnp.abs(fi - fj)
        # TODO(synk): for very large block_batch, build h / feed the first dot in 128-row
        # chunks to cut live vreg/VMEM pressure; unnecessary at the pair-row cap below.

        # ---- relationship_scorer hidden (Linear + ReLU) layers (MXU).
        idx = 0
        for _ in range(num_hidden):
            w_off, w_r, w_c = slots[idx]
            b_off, _, b_c = slots[idx + 1]
            idx += 2
            w = p_ref[w_off:w_off + w_r, :w_c]
            b = p_ref[b_off:b_off + 1, :b_c]
            h = jnp.maximum(
                jnp.dot(h.astype(mxu_dtype), w.astype(mxu_dtype),
                        preferred_element_type=jnp.float32) + b, 0.0)

        # ---- scorer output layer (H_last -> 1): VPU multiply + lane reduction
        # (avoids a 1-column MXU matmul).
        wo_off, _, wo_c = slots[idx]
        bo_off, _, _ = slots[idx + 1]
        w_out_row = p_ref[wo_off:wo_off + 1, :wo_c]        # (1, H_last)
        b_out = p_ref[bo_off:bo_off + 1, 0:1]              # (1, 1)
        scores = jnp.sum(h * w_out_row, axis=-1, keepdims=True) + b_out   # (BB*N*N, 1)

        # ---- row-wise softmax over each instance's (N, N) score matrix.
        s = scores.reshape(bb, n, n)
        s = s - jnp.max(s, axis=-1, keepdims=True)
        e = jnp.exp(s)
        denom = jnp.sum(e, axis=-1, keepdims=True)
        r0 = pl.reciprocal(denom, approx=True)             # EUP vrcp (free bundle slot)
        r1 = r0 * (2.0 - denom * r0)                       # one NR step -> f32-accurate
        t_mat = e * r1                                     # (BB, N, N)

        # ---- mix: out = t_mat @ g + b_t via N unrolled VPU FMAs (no batched,
        # badly-filled MXU round trips).
        mixed = t_mat[:, :, 0:1] * g3[:, 0:1, :]
        for j in range(1, n):
            mixed = mixed + t_mat[:, :, j:j + 1] * g3[:, j:j + 1, :]
        out3 = mixed + b_t                                 # (BB, N, T)

        # Lane-dense store: fold (N, T) into N*T lanes (128 for the demo config).
        out_ref[...] = out3.reshape(bb, n * wt_c)

    return kernel


# ---------------------------------------------------------------------------
# Wrapper
# ---------------------------------------------------------------------------
def explicit_feature_relationship_forward(features, params, *, block_batch=None,
                                          mxu_dtype=jnp.float32):
    """
    Args:
      features: (batch, num_objects, input_shape) f32 -- `batch` independent ROI sets.
                A 2-D (num_objects, input_shape) input (original module API) also works.
      params: dict with keys
        'hidden':    list of (W (in,out), b (1,out)) per hidden layer
        'out':       (W (last_hidden, 1), b (1, 1))        -- scorer fc_output
        'transform': (W (input_shape, T), b (1, T))        -- feature_transform
      mxu_dtype: dtype of MXU operands. f32 (default, required on v5e) or bf16 (v6e/v7x).
    Returns:
      (batch, num_objects, T) f32  (or (num_objects, T) for 2-D input).
    """
    squeeze = features.ndim == 2
    if squeeze:
        features = features[None]
    features = features.astype(jnp.float32)
    b, n, f = features.shape
    t_size = int(params["transform"][0].shape[1])

    if block_batch is None:
        # Single step for small batches; otherwise >= 512 pair-rows per grid step
        # (two full 256-row MXU pushes on v6e/v7x), capped at 4096 pair-rows so the
        # 128-lane-padded f32 intermediates stay comfortably within VMEM (v7x: 64 MiB).
        target = -(-512 // (n * n))
        cap = max(1, 4096 // (n * n))
        block_batch = max(1, min(b, min(target, cap)))

    # Pad the batch up to a multiple of block_batch (zero ROI sets are numerically benign:
    # uniform softmax of equal scores) instead of shrinking block_batch toward 1.
    b_pad = -(-b // block_batch) * block_batch
    if b_pad != b:
        features = jnp.concatenate(
            [features, jnp.zeros((b_pad - b, n, f), features.dtype)], axis=0)

    packed, slots = _pack_params(params)
    kernel = _make_kernel(len(params["hidden"]), slots, mxu_dtype)

    out2d = pl.pallas_call(
        kernel,
        out_shape=jax.ShapeDtypeStruct((b_pad, n * t_size), jnp.float32),
        grid_spec=pltpu.PrefetchScalarGridSpec(
            num_scalar_prefetch=0,
            grid=(b_pad // block_batch,),
            in_specs=[
                pl.BlockSpec((block_batch, n, f), lambda i: (i, 0, 0)),
                # Packed parameter slab: constant block index -> stays resident, one DMA.
                pl.BlockSpec(packed.shape, lambda i: (0, 0)),
            ],
            # Lane-dense output block: N*T lanes instead of T.
            out_specs=pl.BlockSpec((block_batch, n * t_size), lambda i: (i, 0)),
        ),
        compiler_params=pltpu.CompilerParams(
            dimension_semantics=("parallel",)),
    )(features, packed)

    out = out2d.reshape(b_pad, n, t_size)[:b]
    return out[0] if squeeze else out


# ---------------------------------------------------------------------------
# Init + pure-JAX reference
# ---------------------------------------------------------------------------
def _init_params(key, input_shape, layer_sizes, transformed_feature_size):
    """Deterministic PyTorch-style (uniform +/- 1/sqrt(fan_in)) initialization."""
    params = {"hidden": []}
    dims = [input_shape] + list(layer_sizes)
    keys = jax.random.split(key, 2 * (len(layer_sizes) + 2))
    k = 0
    for i in range(1, len(dims)):
        bound = 1.0 / jnp.sqrt(dims[i - 1])
        w = jax.random.uniform(keys[k], (dims[i - 1], dims[i]), jnp.float32, -bound, bound)
        b = jax.random.uniform(keys[k + 1], (1, dims[i]), jnp.float32, -bound, bound)
        k += 2
        params["hidden"].append((w, b))
    bound = 1.0 / jnp.sqrt(dims[-1])
    w_out = jax.random.uniform(keys[k], (dims[-1], 1), jnp.float32, -bound, bound)
    b_out = jax.random.uniform(keys[k + 1], (1, 1), jnp.float32, -bound, bound)
    k += 2
    params["out"] = (w_out, b_out)
    bound = 1.0 / jnp.sqrt(input_shape)
    w_t = jax.random.uniform(
        keys[k], (input_shape, transformed_feature_size), jnp.float32, -bound, bound)
    b_t = jax.random.uniform(
        keys[k + 1], (1, transformed_feature_size), jnp.float32, -bound, bound)
    params["transform"] = (w_t, b_t)
    return params


def _reference_forward(features, params):
    """Pure-JAX reference mirroring the PyTorch forward (single instance, inference)."""
    n, f = features.shape
    dist = jnp.abs(features[:, None, :] - features[None, :, :]).reshape(n * n, f)
    h = dist
    for w, b in params["hidden"]:
        h = jnp.maximum(h @ w + b, 0.0)
    scores = (h @ params["out"][0] + params["out"][1]).reshape(n, n)
    t_mat = jax.nn.softmax(scores, axis=-1)
    mixed = t_mat @ features
    return mixed @ params["transform"][0] + params["transform"][1]


if __name__ == "__main__":
    # Module config: input_shape=32, num_layers=2, layer_sizes=[32, 16],
    # transformed_feature_size=16. Input: 8 ROI sets x 8 objects x 32 features.
    input_shape = 32
    layer_sizes = [32, 16]
    transformed_feature_size = 16
    num_objects = 8
    batch = 8

    key = jax.random.PRNGKey(0)
    k_feat, k_param = jax.random.split(key)
    features = jax.random.normal(k_feat, (batch, num_objects, input_shape), jnp.float32)
    params = _init_params(k_param, input_shape, layer_sizes, transformed_feature_size)

    ref = jax.vmap(lambda x: _reference_forward(x, params))(features)

    # 1) Batched call: single grid step (block_batch == batch == 8).
    out = explicit_feature_relationship_forward(features, params)
    out = jax.block_until_ready(out)
    assert out.shape == (batch, num_objects, transformed_feature_size)
    assert jnp.allclose(out, ref, atol=1e-3, rtol=1e-3), float(jnp.max(jnp.abs(out - ref)))

    # 2) Non-multiple batch: exercises batch padding + multi-step "parallel" grid.
    batch2 = 11
    feats2 = jax.random.normal(jax.random.PRNGKey(7),
                               (batch2, num_objects, input_shape), jnp.float32)
    ref2 = jax.vmap(lambda x: _reference_forward(x, params))(feats2)
    out2 = explicit_feature_relationship_forward(feats2, params)
    out2 = jax.block_until_ready(out2)
    assert out2.shape == (batch2, num_objects, transformed_feature_size)
    assert jnp.allclose(out2, ref2, atol=1e-3, rtol=1e-3), \
        float(jnp.max(jnp.abs(out2 - ref2)))

    # 3) Original-module 2-D entry point (single ROI set).
    out1 = explicit_feature_relationship_forward(features[0], params)
    out1 = jax.block_until_ready(out1)
    assert out1.shape == (num_objects, transformed_feature_size)
    assert jnp.allclose(out1, ref[0], atol=1e-3, rtol=1e-3)

    print("KERNEL_OK")
</pallas_src>

<mosaic_0001>
module attributes {stable_mosaic.version = 11 : i64} {
  func.func @kernel(%arg0: i32, %arg1: memref<8x8x32xf32, #tpu.memory_space<vmem>>, %arg2: memref<136x128xf32, #tpu.memory_space<vmem>>, %arg3: memref<8x128xf32, #tpu.memory_space<vmem>>) attributes {dimension_semantics = [#tpu.dimension_semantics<parallel>], iteration_bounds = array<i64: 1>, scalar_prefetch = 0 : i64, scratch_operands = 0 : i64, tpu.core_type = #tpu.core_type<tc>, window_params = [{transform_indices = @transform_0, window_bounds = array<i64: 8, 8, 32>}, {pipeline_mode = #tpu.pipeline_mode<synchronous>, transform_indices = @transform_1, window_bounds = array<i64: 136, 128>}, {transform_indices = @transform_2, window_bounds = array<i64: 8, 128>}]} {
    %c0 = arith.constant 0 : index
    %c0_0 = arith.constant 0 : index
    %c0_1 = arith.constant 0 : index
    %0 = vector.load %arg1[%c0, %c0_0, %c0_1] : memref<8x8x32xf32, #tpu.memory_space<vmem>>, vector<8x8x32xf32>
    %1 = vector.shape_cast %0 : vector<8x8x32xf32> to vector<64x32xf32>
    %c96 = arith.constant 96 : index
    %c0_2 = arith.constant 0 : index
    %2 = vector.load %arg2[%c96, %c0_2] : memref<136x128xf32, #tpu.memory_space<vmem>>, vector<32x16xf32>
    %c128 = arith.constant 128 : index
    %c0_3 = arith.constant 0 : index
    %3 = vector.load %arg2[%c128, %c0_3] : memref<136x128xf32, #tpu.memory_space<vmem>>, vector<1x16xf32>
    %cst = arith.constant dense<0.000000e+00> : vector<64x16xf32>
    %4 = tpu.matmul %1, %2, %cst {dimension_numbers = #tpu.dot_dimension_numbers<[1], [0], [0], [1], [0, 0, 1, 1], [], []>} : vector<64x32xf32>, vector<32x16xf32>, vector<64x16xf32> -> vector<64x16xf32>
    %5 = vector.shape_cast %4 : vector<64x16xf32> to vector<8x8x16xf32>
    %6 = vector.shape_cast %0 : vector<8x8x32xf32> to vector<8x8x1x32xf32>
    %7 = vector.broadcast %6 : vector<8x8x1x32xf32> to vector<8x8x8x32xf32>
    %8 = vector.shape_cast %7 : vector<8x8x8x32xf32> to vector<8x64x32xf32>
    %9 = vector.shape_cast %8 : vector<8x64x32xf32> to vector<512x32xf32>
    %10 = tpu.concatenate %0, %0, %0, %0, %0, %0, %0, %0 in 1 : vector<8x8x32xf32>, vector<8x8x32xf32>, vector<8x8x32xf32>, vector<8x8x32xf32>, vector<8x8x32xf32>, vector<8x8x32xf32>, vector<8x8x32xf32>, vector<8x8x32xf32> -> vector<8x64x32xf32>
    %11 = vector.shape_cast %10 : vector<8x64x32xf32> to vector<512x32xf32>
    %12 = arith.subf %9, %11 : vector<512x32xf32>
    %13 = math.absf %12 : vector<512x32xf32>
    %c0_4 = arith.constant 0 : index
    %c0_5 = arith.constant 0 : index
    %14 = vector.load %arg2[%c0_4, %c0_5] : memref<136x128xf32, #tpu.memory_space<vmem>>, vector<32x32xf32>
    %c32 = arith.constant 32 : index
    %c0_6 = arith.constant 0 : index
    %15 = vector.load %arg2[%c32, %c0_6] : memref<136x128xf32, #tpu.memory_space<vmem>>, vector<1x32xf32>
    %cst_7 = arith.constant dense<0.000000e+00> : vector<512x32xf32>
    %16 = tpu.matmul %13, %14, %cst_7 {dimension_numbers = #tpu.dot_dimension_numbers<[1], [0], [0], [1], [0, 0, 1, 1], [], []>} : vector<512x32xf32>, vector<32x32xf32>, vector<512x32xf32> -> vector<512x32xf32>
    %17 = vector.broadcast %15 : vector<1x32xf32> to vector<512x32xf32>
    %18 = arith.addf %16, %17 : vector<512x32xf32>
    %cst_8 = arith.constant 0.000000e+00 : f32
    %19 = vector.broadcast %cst_8 : f32 to vector<512x32xf32>
    %20 = arith.maximumf %18, %19 : vector<512x32xf32>
    %c40 = arith.constant 40 : index
    %c0_9 = arith.constant 0 : index
    %21 = vector.load %arg2[%c40, %c0_9] : memref<136x128xf32, #tpu.memory_space<vmem>>, vector<32x16xf32>
    %c72 = arith.constant 72 : index
    %c0_10 = arith.constant 0 : index
    %22 = vector.load %arg2[%c72, %c0_10] : memref<136x128xf32, #tpu.memory_space<vmem>>, vector<1x16xf32>
    %cst_11 = arith.constant dense<0.000000e+00> : vector<512x16xf32>
    %23 = tpu.matmul %20, %21, %cst_11 {dimension_numbers = #tpu.dot_dimension_numbers<[1], [0], [0], [1], [0, 0, 1, 1], [], []>} : vector<512x32xf32>, vector<32x16xf32>, vector<512x16xf32> -> vector<512x16xf32>
    %24 = vector.broadcast %22 : vector<1x16xf32> to vector<512x16xf32>
    %25 = arith.addf %23, %24 : vector<512x16xf32>
    %cst_12 = arith.constant 0.000000e+00 : f32
    %26 = vector.broadcast %cst_12 : f32 to vector<512x16xf32>
    %27 = arith.maximumf %25, %26 : vector<512x16xf32>
    %c80 = arith.constant 80 : index
    %c0_13 = arith.constant 0 : index
    %28 = vector.load %arg2[%c80, %c0_13] : memref<136x128xf32, #tpu.memory_space<vmem>>, vector<1x16xf32>
    %c88 = arith.constant 88 : index
    %c0_14 = arith.constant 0 : index
    %29 = vector.load %arg2[%c88, %c0_14] : memref<136x128xf32, #tpu.memory_space<vmem>>, vector<1x1xf32>
    %30 = vector.broadcast %28 : vector<1x16xf32> to vector<512x16xf32>
    %31 = arith.mulf %27, %30 : vector<512x16xf32>
    %cst_15 = arith.constant dense<0.000000e+00> : vector<512xf32>
    %32 = vector.multi_reduction <add>, %31, %cst_15 [1] : vector<512x16xf32> to vector<512xf32>
    %33 = vector.shape_cast %32 : vector<512xf32> to vector<512x1xf32>
    %34 = vector.broadcast %29 : vector<1x1xf32> to vector<512x1xf32>
    %35 = arith.addf %33, %34 : vector<512x1xf32>
    %36 = vector.shape_cast %35 : vector<512x1xf32> to vector<8x8x8xf32>
    %cst_16 = arith.constant dense<0xFF800000> : vector<8x8xf32>
    %37 = vector.multi_reduction <maximumf>, %36, %cst_16 [2] : vector<8x8x8xf32> to vector<8x8xf32>
    %38 = vector.shape_cast %37 : vector<8x8xf32> to vector<8x8x1xf32>
    %39 = vector.broadcast %38 : vector<8x8x1xf32> to vector<8x8x8xf32>
    %40 = arith.subf %36, %39 : vector<8x8x8xf32>
    %41 = math.exp %40 : vector<8x8x8xf32>
    %cst_17 = arith.constant dense<0.000000e+00> : vector<8x8xf32>
    %42 = vector.multi_reduction <add>, %41, %cst_17 [2] : vector<8x8x8xf32> to vector<8x8xf32>
    %43 = vector.shape_cast %42 : vector<8x8xf32> to vector<8x8x1xf32>
    %44 = tpu.reciprocal %43 {approx = true} : vector<8x8x1xf32> -> vector<8x8x1xf32>
    %45 = arith.mulf %43, %44 : vector<8x8x1xf32>
    %cst_18 = arith.constant 2.000000e+00 : f32
    %46 = vector.broadcast %cst_18 : f32 to vector<8x8x1xf32>
    %47 = arith.subf %46, %45 : vector<8x8x1xf32>
    %48 = arith.mulf %44, %47 : vector<8x8x1xf32>
    %49 = vector.broadcast %48 : vector<8x8x1xf32> to vector<8x8x8xf32>
    %50 = arith.mulf %41, %49 : vector<8x8x8xf32>
    %51 = vector.extract_strided_slice %50 {offsets = [0, 0, 0], sizes = [8, 8, 1], strides = [1, 1, 1]} : vector<8x8x8xf32> to vector<8x8x1xf32>
    %52 = vector.extract_strided_slice %5 {offsets = [0, 0, 0], sizes = [8, 1, 16], strides = [1, 1, 1]} : vector<8x8x16xf32> to vector<8x1x16xf32>
    %53 = vector.broadcast %51 : vector<8x8x1xf32> to vector<8x8x16xf32>
    %54 = vector.broadcast %52 : vector<8x1x16xf32> to vector<8x8x16xf32>
    %55 = arith.mulf %53, %54 : vector<8x8x16xf32>
    %56 = vector.extract_strided_slice %50 {offsets = [0, 0, 1], sizes = [8, 8, 1], strides = [1, 1, 1]} : vector<8x8x8xf32> to vector<8x8x1xf32>
    %57 = vector.extract_strided_slice %5 {offsets = [0, 1, 0], sizes = [8, 1, 16], strides = [1, 1, 1]} : vector<8x8x16xf32> to vector<8x1x16xf32>
    %58 = vector.broadcast %56 : vector<8x8x1xf32> to vector<8x8x16xf32>
    %59 = vector.broadcast %57 : vector<8x1x16xf32> to vector<8x8x16xf32>
    %60 = arith.mulf %58, %59 : vector<8x8x16xf32>
    %61 = arith.addf %55, %60 : vector<8x8x16xf32>
    %62 = vector.extract_strided_slice %50 {offsets = [0, 0, 2], sizes = [8, 8, 1], strides = [1, 1, 1]} : vector<8x8x8xf32> to vector<8x8x1xf32>
    %63 = vector.extract_strided_slice %5 {offsets = [0, 2, 0], sizes = [8, 1, 16], strides = [1, 1, 1]} : vector<8x8x16xf32> to vector<8x1x16xf32>
    %64 = vector.broadcast %62 : vector<8x8x1xf32> to vector<8x8x16xf32>
    %65 = vector.broadcast %63 : vector<8x1x16xf32> to vector<8x8x16xf32>
    %66 = arith.mulf %64, %65 : vector<8x8x16xf32>
    %67 = arith.addf %61, %66 : vector<8x8x16xf32>
    %68 = vector.extract_strided_slice %50 {offsets = [0, 0, 3], sizes = [8, 8, 1], strides = [1, 1, 1]} : vector<8x8x8xf32> to vector<8x8x1xf32>
    %69 = vector.extract_strided_slice %5 {offsets = [0, 3, 0], sizes = [8, 1, 16], strides = [1, 1, 1]} : vector<8x8x16xf32> to vector<8x1x16xf32>
    %70 = vector.broadcast %68 : vector<8x8x1xf32> to vector<8x8x16xf32>
    %71 = vector.broadcast %69 : vector<8x1x16xf32> to vector<8x8x16xf32>
    %72 = arith.mulf %70, %71 : vector<8x8x16xf32>
    %73 = arith.addf %67, %72 : vector<8x8x16xf32>
    %74 = vector.extract_strided_slice %50 {offsets = [0, 0, 4], sizes = [8, 8, 1], strides = [1, 1, 1]} : vector<8x8x8xf32> to vector<8x8x1xf32>
    %75 = vector.extract_strided_slice %5 {offsets = [0, 4, 0], sizes = [8, 1, 16], strides = [1, 1, 1]} : vector<8x8x16xf32> to vector<8x1x16xf32>
    %76 = vector.broadcast %74 : vector<8x8x1xf32> to vector<8x8x16xf32>
    %77 = vector.broadcast %75 : vector<8x1x16xf32> to vector<8x8x16xf32>
    %78 = arith.mulf %76, %77 : vector<8x8x16xf32>
    %79 = arith.addf %73, %78 : vector<8x8x16xf32>
    %80 = vector.extract_strided_slice %50 {offsets = [0, 0, 5], sizes = [8, 8, 1], strides = [1, 1, 1]} : vector<8x8x8xf32> to vector<8x8x1xf32>
    %81 = vector.extract_strided_slice %5 {offsets = [0, 5, 0], sizes = [8, 1, 16], strides = [1, 1, 1]} : vector<8x8x16xf32> to vector<8x1x16xf32>
    %82 = vector.broadcast %80 : vector<8x8x1xf32> to vector<8x8x16xf32>
    %83 = vector.broadcast %81 : vector<8x1x16xf32> to vector<8x8x16xf32>
    %84 = arith.mulf %82, %83 : vector<8x8x16xf32>
    %85 = arith.addf %79, %84 : vector<8x8x16xf32>
    %86 = vector.extract_strided_slice %50 {offsets = [0, 0, 6], sizes = [8, 8, 1], strides = [1, 1, 1]} : vector<8x8x8xf32> to vector<8x8x1xf32>
    %87 = vector.extract_strided_slice %5 {offsets = [0, 6, 0], sizes = [8, 1, 16], strides = [1, 1, 1]} : vector<8x8x16xf32> to vector<8x1x16xf32>
    %88 = vector.broadcast %86 : vector<8x8x1xf32> to vector<8x8x16xf32>
    %89 = vector.broadcast %87 : vector<8x1x16xf32> to vector<8x8x16xf32>
    %90 = arith.mulf %88, %89 : vector<8x8x16xf32>
    %91 = arith.addf %85, %90 : vector<8x8x16xf32>
    %92 = vector.extract_strided_slice %50 {offsets = [0, 0, 7], sizes = [8, 8, 1], strides = [1, 1, 1]} : vector<8x8x8xf32> to vector<8x8x1xf32>
    %93 = vector.extract_strided_slice %5 {offsets = [0, 7, 0], sizes = [8, 1, 16], strides = [1, 1, 1]} : vector<8x8x16xf32> to vector<8x1x16xf32>
    %94 = vector.broadcast %92 : vector<8x8x1xf32> to vector<8x8x16xf32>
    %95 = vector.broadcast %93 : vector<8x1x16xf32> to vector<8x8x16xf32>
    %96 = arith.mulf %94, %95 : vector<8x8x16xf32>
    %97 = arith.addf %91, %96 : vector<8x8x16xf32>
    %98 = vector.shape_cast %3 : vector<1x16xf32> to vector<1x1x16xf32>
    %99 = vector.broadcast %98 : vector<1x1x16xf32> to vector<8x8x16xf32>
    %100 = arith.addf %97, %99 : vector<8x8x16xf32>
    %101 = vector.shape_cast %100 : vector<8x8x16xf32> to vector<8x128xf32>
    %c0_19 = arith.constant 0 : index
    %c0_20 = arith.constant 0 : index
    %102 = vector.load %arg3[%c0_19, %c0_20] : memref<8x128xf32, #tpu.memory_space<vmem>>, vector<8x128xf32>
    tpu.vector_store %arg3[%c0_19, %c0_20], %101 {strides = array<i32>} : memref<8x128xf32, #tpu.memory_space<vmem>>, vector<8x128xf32>,
    return
  }
  func.func @transform_0(%arg0: i32) -> (i32, i32, i32) {
    %c0_i32 = arith.constant 0 : i32
    %c0_i32_0 = arith.constant 0 : i32
    %c0_i32_1 = arith.constant 0 : i32
    return %arg0, %c0_i32, %c0_i32_0 : i32, i32, i32
  }
  func.func @transform_1(%arg0: i32) -> (i32, i32) {
    %c0_i32 = arith.constant 0 : i32
    %c0_i32_0 = arith.constant 0 : i32
    %c0_i32_1 = arith.constant 0 : i32
    return %c0_i32, %c0_i32_0 : i32, i32
  }
  func.func @transform_2(%arg0: i32) -> (i32, i32) {
    %c0_i32 = arith.constant 0 : i32
    %c0_i32_0 = arith.constant 0 : i32
    return %arg0, %c0_i32 : i32, i32
  }
}

</mosaic_0001>

<bundles_post_ra>
// kernel: tpu_custom_call.1
= control target key start
LH: loop header
LB: loop body
LE: loop exit
PB: predicated region body
PF: predicated region fallthrough
CT: control target
= control target key end

     0   :  { %7 = vsyncpa [#allocation3], 0  ;;  %s17135_s0 = inlined_call_operand.hbm [shape: f32[8,8,32], index: 0, kind: input, shape index: {}]   ;;  %s17136_s1 = inlined_call_operand.hbm [shape: f32[136,128], index: 1, kind: input, shape index: {}]   ;;  %s17137_s2 = inlined_call_operand.hbm [shape: f32[8,128], index: 2, kind: output, shape index: {}]  }
   0x1   :  { %8 = vsyncpa [#allocation6], 0 }
   0x2   :  { %9 = vsyncpa [#allocation4], 0  ;;  %s11922_s9 = smov [#allocation2]  }
   0x3   :  { %s15_s10 = sshll.u32 %s11922_s9, 4  ;;  %s16_s10 = int_to_ptr.vmem [resolvable:$true] %s15_s10 }
   0x4   :  { %s11864_s11 = scalar_lea.vmem %s16_s10, 1024  ;;  %p11869_p1 = scmp.lt.s32.totalorder %s16_s10, %s16_s10 }
   0x5   :  { %p11865_p0 = scmp.ne.s32.totalorder %s16_s10, %s11864_s11  ;;  %p11870_p2 = scmp.lt.s32.totalorder %s11864_s11, %s11864_s11 }
   0x7   :  { %p11871_p3 = por %p11870_p2, %p11869_p1 }
   0x9   :  { %p11872_p4 = pnand %p11871_p3, %p11865_p0 }
   0xb   :  { %11875 = shalt.err (!%p11872_p4)
}
   0xc   :  { %s11923_s12 = smov 128   ;;  %s11924_s13 = smov 8  }
   0xd   :  { %21 = dma.hbm_to_vmem [thread:$0]  %s17135_s0, 1024, %s16_s10, [#allocation3], %s11923_s12, %s11923_s12, %s11924_s13  }
   0xe   :  { %s11925_s16 = smov [#allocation5]  }
   0xf   :  { %s27_s17 = sshll.u32 %s11925_s16, 4  ;;  %s28_s17 = int_to_ptr.vmem [resolvable:$true] %s27_s17 }
  0x10   :  { %s11884_s18 = scalar_lea.vmem %s28_s17, 2176  ;;  %p11889_p6 = scmp.lt.s32.totalorder %s28_s17, %s28_s17 }
  0x11   :  { %p11885_p5 = scmp.ne.s32.totalorder %s28_s17, %s11884_s18  ;;  %p11890_p7 = scmp.lt.s32.totalorder %s11884_s18, %s11884_s18 }
  0x13   :  { %p11891_p8 = por %p11890_p7, %p11889_p6 }
  0x15   :  { %p11892_p9 = pnand %p11891_p8, %p11885_p5 }
  0x17   :  { %11895 = shalt.err (!%p11892_p9)
}
  0x18   :  { %33 = dma.hbm_to_vmem [thread:$0]  %s17136_s1, 2176, %s28_s17, [#allocation6], %s11923_s12, %s11923_s12, %s11924_s13  }
  0x19   :  { %11916 = dma.done.wait [#allocation3], 1024  }
  0x1a   :  { %11917 = vsyncadd [#allocation3], 4294966272 }
  0x1b   :  { %11918 = dma.done.wait [#allocation6], 2176  }
  0x1c   :  { %11919 = vsyncadd [#allocation6], 4294965120  ;;  %v17138_v0 = vlaneseq  ;;  %v11926_v1 = vmov 1966171168   ;;  %v51_v6 = vld [vmem:[#allocation5 + $0x78] sm:$0xff]  ;;  %v50_v7 = vld [vmem:[#allocation5 + $0x70] sm:$0xff] }
  0x1d   :  { %v185_v2 = vunpack.c.l.s4 %v11926_v1  ;;  %11450 = vmatprep.subr.mxu0 %v51_v6  ;;  %11678 = vmatprep.subr.mxu1 %v51_v6  ;;  %v11965_v8 = vld [vmem:[#allocation2] sm:$0xff]  ;;  %v49_v9 = vld [vmem:[#allocation5 + $0x68] sm:$0xff]  ;;  %vm53_vm0 = vcmask 261120   ;;  %v1026_v22 = vld [vmem:[#allocation5 + $0x18] sm:$0xff]  ;;  %vm2393_vm1 = vcmask 130048   ;;  %vm3168_vm2 = vcmask 1041409  }
  0x1e   :  { %v11960_v3 = vshrl.u32 %v17138_v0, 7  ;;  %11451 = vmatpush3.msra.mxu0 %v51_v6  ;;  %11682 = vmatpush3.msra.mxu1 %v51_v6  ;;  %v183_v12 = vcombine.high %v11965_v8, %v11965_v8  ;;  %v48_v13 = vld [vmem:[#allocation5 + $0x60] sm:$0xff]  ;;  %v11976_v17 = vld [vmem:[#allocation2 + $0x8] sm:$0xff]  ;;  %v11992_v29 = vld [vmem:[#allocation2 + $0x30] sm:$0xff]  ;;  %vm3170_vm3 = vcmask 1042434   ;;  %vm3172_vm4 = vcmask 1043459  }
  0x1f   :  { %v186_v4 = vunpack.c.0.s8 %v185_v2  ;;  %11452 = vmatprep.subr.mxu0 %v50_v7  ;;  %11679 = vmatprep.subr.mxu1 %v50_v7  ;;  %v11982_v21 = vld [vmem:[#allocation2 + $0x20] sm:$0xff]  ;;  %v11985_v25 = vld [vmem:[#allocation2 + $0x28] sm:$0xff]  ;;  %v1025_v31 = vld [vmem:[#allocation5 + $0x10] sm:$0xff]  ;;  %v232_v46 = vcombine.high %v11976_v17, %v11976_v17  ;;  %vm3174_vm5 = vcmask 1044484   ;;  %vm3176_vm6 = vcmask 1045509   ;;  %s11930_s0 = smov 32  }
  0x20   :  { %17379 = vst [vmem:[#allocation11_spill] sm:$0xff] %v11960_v3  ;;  %v11970_v11 = vsub.s32 0, %v11960_v3  ;;  %11453 = vmatpush3.msra.mxu0 %v50_v7  ;;  %11683 = vmatpush3.msra.mxu1 %v50_v7  ;;  %v11998_v33 = vld [vmem:[#allocation2 + $0x10] sm:$0xff]  ;;  %v12005_v37 = vld [vmem:[#allocation2 + $0x18] sm:$0xff]  ;;  %v1024_v39 = vld [vmem:[#allocation5 + $0x8] sm:$0xff]  ;;  %vm3178_vm7 = vcmask 1046534  }
  0x21   :  { %v11963_v5 = vsub.s32 %v186_v4, %v11960_v3  ;;  %11454 = vmatprep.subr.mxu0 %v49_v9  ;;  %11680 = vmatprep.subr.mxu1 %v49_v9  ;;  %v12009_v38 = vld [vmem:[#allocation2 + $0x38] sm:$0xff]  ;;  %v1023_v44 = vld [vmem:[#allocation5] sm:$0xff]  ;;  %vm3180_vm8 = vcmask 1047559   ;;  %vm3239_vm9 = vcmask 64512   ;;  %vm10335_vm10 = vcmask 130112   ;;  %s11931_s1 = smov 16  }
  0x22   :  { %11455 = vmatpush3.msra.mxu0 %v49_v9  ;;  %11684 = vmatpush3.msra.mxu1 %v49_v9  ;;  %s11932_s21 = smov 64   ;;  %s11933_s22 = smov 48   ;;  %vm11134_vm11 = vcmask 392192   ;;  %vm11136_vm12 = vcmask 523264   ;;  %vm11138_vm13 = vcmask 654336   ;;  %vm11140_vm14 = vcmask 785408  }
  0x23   :  { %v190_v10 = vrot.slane %v11965_v8, %v11963_v5  ;;  %v197_v16 = vrot.slane %v183_v12, %v11963_v5  ;;  %11456 = vmatprep.subr.mxu0 %v48_v13  ;;  %11458 = vmatprep.mubr.msk.f32.mxu0 %vm53_vm0, %v11965_v8  ;;  %v239_v32 = vrot.slane %v11976_v17, %v11963_v5  ;;  %s11934_s23 = smov 96   ;;  %s11935_s24 = smov 80   ;;  %vm11142_vm15 = vcmask 916480  }
  0x24   :  { %11457 = vmatpush3.msra.mxu0 %v48_v13  ;;  %11681 = vmatprep.subr.mxu1 %v48_v13  ;;  %v246_v59 = vrot.slane %v232_v46, %v11963_v5  ;;  %s11936_s25 = smov 112   ;;  %s11937_s26 = smov [#allocation7]  }
  0x25   :  { %v198_v14 = vcombine.high %v190_v10, %v190_v10  ;;  %v206_v15 = vrot.slane %v190_v10, %v11963_v5  ;;  %v213_v23 = vrot.slane %v197_v16, %v11963_v5  ;;  %v199_v24 = vcombine.high %v197_v16, %v197_v16  ;;  %11459 = vmatmul.mubr.msk.f32.vlgmr.msra.gmra.mxu0 %vm53_vm0, %v11976_v17  ;;  %s11151_s27 = sshll.u32 %s11937_s26, 4  ;;  %s11152_s27 = int_to_ptr.vmem [resolvable:$true] %s11151_s27 }
  0x26   :  { %11685 = vmatpush3.msra.mxu1 %v48_v13  ;;  %11464 = vmatprep.mubr.msk.f32.mxu1 %vm53_vm0, %v11982_v21  ;;  %v247_v45 = vcombine.high %v239_v32, %v239_v32  ;;  %v255_v54 = vrot.slane %v239_v32, %v11963_v5  ;;  %v248_v7 = vcombine.high %v246_v59, %v246_v59  ;;  %s11896_s28 = scalar_lea.vmem %s11152_s27, 128  ;;  %p11901_p11 = scmp.lt.s32.totalorder %s11152_s27, %s11152_s27 }
  0x27   :  { %v220_v18 = vrot.slane %v198_v14, %v11963_v5  ;;  %v578_v19 = vrot.slane %v206_v15, %v11970_v11  ;;  %v228_v20 = vcombine.high %v206_v15, %v206_v15  ;;  %11470 = vmatprep.subr.mxu1 %v1026_v22  ;;  %11465 = vmatmul.mubr.msk.f32.vlgmr.msra.gmra.mxu1 %vm53_vm0, %v11985_v25  ;;  %p11897_p10 = scmp.ne.s32.totalorder %s11152_s27, %s11896_s28  ;;  %p11902_p12 = scmp.lt.s32.totalorder %s11896_s28, %s11896_s28 }
  0x28   :  { %v227_v36 = vrot.slane %v199_v24, %v11963_v5  ;;  %11471 = vmatpush3.msra.mxu1 %v1026_v22  ;;  %11467 = vmatprep.mubr.msk.f32.mxu1 %vm53_vm0, %v11992_v29  ;;  %v594_v42 = vrot.slane %v213_v23, %v11970_v11  ;;  %v229_v43 = vcombine.high %v213_v23, %v213_v23 }
  0x29   :  { %v895_v26 = vsub.f32 %v578_v19, %v11965_v8  ;;  %v582_v27 = vrot.slane %v220_v18, %v11970_v11  ;;  %v586_v28 = vrot.slane %v228_v20, %v11970_v11  ;;  %v230_v30 = vcombine.high %v220_v18, %v220_v18  ;;  %11472 = vmatprep.subr.mxu1 %v1025_v31  ;;  %p11903_p13 = por %p11902_p12, %p11901_p11 }
  0x2a   :  { %11461 = vmatprep.mubr.msk.f32.mxu0 %vm53_vm0, %v11998_v33  ;;  %11473 = vmatpush3.msra.mxu1 %v1025_v31  ;;  %v598_v49 = vrot.slane %v227_v36, %v11970_v11  ;;  %v231_v50 = vcombine.high %v227_v36, %v227_v36  ;;  %v899_v52 = vsub.f32 %v594_v42, %v11965_v8 }
  0x2b   :  { %v896_v34 = vsub.f32 %v582_v27, %v11965_v8  ;;  %v590_v35 = vrot.slane %v230_v30, %v11970_v11  ;;  %v959_v40 = vand.u32 2147483647, %v895_v26  ;;  %v897_v41 = vsub.f32 %v586_v28, %v11965_v8  ;;  %11462 = vmatmul.mubr.msk.f32.gmra.mxu0 %vm53_vm0, %v12005_v37  ;;  %11468 = vmatmul.mubr.msk.f32.gmra.mxu1 %vm53_vm0, %v12009_v38  ;;  %p11904_p0 = pnand %p11903_p13, %p11897_p10 }
  0x2c   :  { %11474 = vmatprep.subr.mxu1 %v1024_v39  ;;  %v602_v53 = vrot.slane %v229_v43, %v11970_v11  ;;  %v269_v55 = vrot.slane %v247_v45, %v11963_v5  ;;  %v900_v57 = vsub.f32 %v598_v49, %v11965_v8  ;;  %v606_v58 = vrot.slane %v231_v50, %v11970_v11 }
  0x2d   :  { %v960_v47 = vand.u32 2147483647, %v896_v34  ;;  %v898_v48 = vsub.f32 %v590_v35, %v11965_v8  ;;  %11475 = vmatpush3.msra.mxu1 %v1024_v39  ;;  %11478 = vmatprep.mubr.msk.f32.mxu1 %vm53_vm0, %v959_v40  ;;  %v961_v51 = vand.u32 2147483647, %v897_v41  ;;  %v963_v60 = vand.u32 2147483647, %v899_v52 }
  0x2e   :  { %11476 = vmatprep.subr.mxu1 %v1023_v44  ;;  %v901_v61 = vsub.f32 %v602_v53, %v11965_v8  ;;  %v610_v62 = vrot.slane %v255_v54, %v11970_v11  ;;  %v277_v63 = vcombine.high %v255_v54, %v255_v54  ;;  %v614_v1 = vrot.slane %v269_v55, %v11970_v11 }
  0x2f   :  { %11477 = vmatpush3.msra.mxu1 %v1023_v44  ;;  %v962_v56 = vand.u32 2147483647, %v898_v48  ;;  %v964_v2 = vand.u32 2147483647, %v900_v57  ;;  %v902_v4 = vsub.f32 %v606_v58, %v11965_v8  ;;  %v279_v6 = vcombine.high %v269_v55, %v269_v55 }
  0x30   :  { %11479 = vmatmul.mubr.msk.f32.vlgmr.msra.gmra.mxu1 %vm53_vm0, %v960_v47  ;;  %v965_v9 = vand.u32 2147483647, %v901_v61  ;;  %v903_v10 = vsub.f32 %v610_v62, %v11976_v17  ;;  %v618_v12 = vrot.slane %v277_v63, %v11970_v11  ;;  %v262_v13 = vrot.slane %v246_v59, %v11963_v5 }
  0x31   :  { %11481 = vmatprep.mubr.msk.f32.mxu1 %vm53_vm0, %v961_v51  ;;  %v904_v14 = vsub.f32 %v614_v1, %v11976_v17  ;;  %v966_v15 = vand.u32 2147483647, %v902_v4  ;;  %v622_v16 = vrot.slane %v279_v6, %v11970_v11  ;;  %v276_v8 = vrot.slane %v248_v7, %v11963_v5 }
  0x32   :  { %v288_v18 = vrot.slane %v11998_v33, %v11963_v5  ;;  %v967_v19 = vand.u32 2147483647, %v903_v10  ;;  %v905_v20 = vsub.f32 %v618_v12, %v11976_v17  ;;  %v626_v22 = vrot.slane %v262_v13, %v11970_v11 }
  0x33   :  { %v278_v23 = vcombine.high %v262_v13, %v262_v13  ;;  %v968_v24 = vand.u32 2147483647, %v904_v14  ;;  %v281_v26 = vcombine.high %v11998_v33, %v11998_v33  ;;  %v906_v27 = vsub.f32 %v622_v16, %v11976_v17 }
  0x34   :  { %11482 = vmatmul.mubr.msk.f32.gmra.mxu1 %vm53_vm0, %v962_v56  ;;  %v630_v28 = vrot.slane %v276_v8, %v11970_v11  ;;  %v280_v30 = vcombine.high %v276_v8, %v276_v8  ;;  %v296_v31 = vcombine.high %v288_v18, %v288_v18  ;;  %v969_v32 = vand.u32 2147483647, %v905_v20 }
  0x35   :  { %11484 = vmatprep.mubr.msk.f32.mxu1 %vm53_vm0, %v963_v60  ;;  %v907_v34 = vsub.f32 %v626_v22, %v11976_v17  ;;  %v634_v35 = vrot.slane %v278_v23, %v11970_v11  ;;  %v304_v36 = vrot.slane %v288_v18, %v11963_v5  ;;  %v295_v39 = vrot.slane %v281_v26, %v11963_v5 }
  0x36   :  { %v970_v40 = vand.u32 2147483647, %v906_v27  ;;  %v908_v41 = vsub.f32 %v630_v28, %v11976_v17  ;;  %v638_v42 = vrot.slane %v280_v30, %v11970_v11  ;;  %v318_v43 = vrot.slane %v296_v31, %v11963_v5 }
  0x37   :  { %v971_v44 = vand.u32 2147483647, %v907_v34  ;;  %v909_v45 = vsub.f32 %v634_v35, %v11976_v17  ;;  %v642_v46 = vrot.slane %v304_v36, %v11970_v11  ;;  %v326_v47 = vcombine.high %v304_v36, %v304_v36 }
  0x38   :  { %11485 = vmatmul.mubr.msk.f32.gmra.mxu1 %vm53_vm0, %v964_v2  ;;  %v297_v48 = vcombine.high %v295_v39, %v295_v39  ;;  %v972_v49 = vand.u32 2147483647, %v908_v41  ;;  %v910_v50 = vsub.f32 %v638_v42, %v11976_v17  ;;  %v646_v51 = vrot.slane %v318_v43, %v11970_v11 }
  0x39   :  { %11487 = vmatprep.mubr.msk.f32.mxu1 %vm53_vm0, %v965_v9  ;;  %v328_v52 = vcombine.high %v318_v43, %v318_v43  ;;  %v973_v53 = vand.u32 2147483647, %v909_v45  ;;  %v911_v54 = vsub.f32 %v642_v46, %v11998_v33  ;;  %v650_v55 = vrot.slane %v326_v47, %v11970_v11 }
  0x3a   :  { %v311_v56 = vrot.slane %v295_v39, %v11963_v5  ;;  %v325_v57 = vrot.slane %v297_v48, %v11963_v5  ;;  %v974_v58 = vand.u32 2147483647, %v910_v50  ;;  %v912_v59 = vsub.f32 %v646_v51, %v11998_v33 }
  0x3b   :  { %v654_v17 = vrot.slane %v328_v52, %v11970_v11  ;;  %v337_v60 = vrot.slane %v12005_v37, %v11963_v5  ;;  %v975_v61 = vand.u32 2147483647, %v911_v54  ;;  %v913_v62 = vsub.f32 %v650_v55, %v11998_v33 }
  0x3c   :  { %11488 = vmatmul.mubr.msk.f32.gmra.mxu1 %vm53_vm0, %v966_v15  ;;  %v658_v63 = vrot.slane %v311_v56, %v11970_v11  ;;  %v327_v1 = vcombine.high %v311_v56, %v311_v56  ;;  %v662_v2 = vrot.slane %v325_v57, %v11970_v11  ;;  %v329_v4 = vcombine.high %v325_v57, %v325_v57 }
  0x3d   :  { %11490 = vmatprep.mubr.msk.f32.mxu1 %vm53_vm0, %v967_v19  ;;  %v976_v6 = vand.u32 2147483647, %v912_v59  ;;  %v914_v7 = vsub.f32 %v654_v17, %v11998_v33  ;;  %v345_v9 = vcombine.high %v337_v60, %v337_v60  ;;  %v330_v10 = vcombine.high %v12005_v37, %v12005_v37 }
  0x3e   :  { %v977_v12 = vand.u32 2147483647, %v913_v62  ;;  %v915_v13 = vsub.f32 %v658_v63, %v11998_v33  ;;  %v666_v14 = vrot.slane %v327_v1, %v11970_v11  ;;  %v353_v15 = vrot.slane %v337_v60, %v11963_v5 }
  0x3f   :  { %v916_v16 = vsub.f32 %v662_v2, %v11998_v33  ;;  %v978_v8 = vand.u32 2147483647, %v914_v7  ;;  %v670_v18 = vrot.slane %v329_v4, %v11970_v11  ;;  %v367_v19 = vrot.slane %v345_v9, %v11963_v5 }
  0x40   :  { %11491 = vmatmul.mubr.msk.f32.gmra.mxu1 %vm53_vm0, %v968_v24  ;;  %v344_v20 = vrot.slane %v330_v10, %v11963_v5  ;;  %v979_v22 = vand.u32 2147483647, %v915_v13  ;;  %v917_v23 = vsub.f32 %v666_v14, %v11998_v33  ;;  %v674_v24 = vrot.slane %v353_v15, %v11970_v11 }
  0x41   :  { %11493 = vmatprep.mubr.msk.f32.mxu1 %vm53_vm0, %v969_v32  ;;  %v375_v26 = vcombine.high %v353_v15, %v353_v15  ;;  %v980_v27 = vand.u32 2147483647, %v916_v16  ;;  %v918_v28 = vsub.f32 %v670_v18, %v11998_v33  ;;  %v678_v30 = vrot.slane %v367_v19, %v11970_v11 }
  0x42   :  { %v377_v31 = vcombine.high %v367_v19, %v367_v19  ;;  %v346_v32 = vcombine.high %v344_v20, %v344_v20  ;;  %v981_v34 = vand.u32 2147483647, %v917_v23  ;;  %v919_v35 = vsub.f32 %v674_v24, %v12005_v37 }
  0x43   :  { %v682_v36 = vrot.slane %v375_v26, %v11970_v11  ;;  %v360_v39 = vrot.slane %v344_v20, %v11963_v5  ;;  %v982_v41 = vand.u32 2147483647, %v918_v28  ;;  %v920_v33 = vsub.f32 %v678_v30, %v12005_v37 }
  0x44   :  { %11494 = vmatmul.mubr.msk.f32.gmra.mxu1 %vm53_vm0, %v970_v40  ;;  %v386_v40 = vrot.slane %v11982_v21, %v11963_v5  ;;  %v686_v42 = vrot.slane %v377_v31, %v11970_v11  ;;  %v374_v43 = vrot.slane %v346_v32, %v11963_v5  ;;  %v428_v32 = vcombine.high %v11985_v25, %v11985_v25 }
  0x45   :  { %11496 = vmatprep.mubr.msk.f32.mxu1 %vm53_vm0, %v971_v44  ;;  %v983_v44 = vand.u32 2147483647, %v919_v35  ;;  %v921_v45 = vsub.f32 %v682_v36, %v12005_v37  ;;  %v690_v46 = vrot.slane %v360_v39, %v11970_v11  ;;  %v376_v47 = vcombine.high %v360_v39, %v360_v39 }
  0x46   :  { %v394_v48 = vcombine.high %v386_v40, %v386_v40  ;;  %v984_v50 = vand.u32 2147483647, %v920_v33  ;;  %v922_v51 = vsub.f32 %v686_v42, %v12005_v37  ;;  %v694_v52 = vrot.slane %v374_v43, %v11970_v11 }
  0x47   :  { %v985_v54 = vand.u32 2147483647, %v921_v45  ;;  %v923_v55 = vsub.f32 %v690_v46, %v12005_v37  ;;  %v698_v56 = vrot.slane %v376_v47, %v11970_v11  ;;  %v402_v57 = vrot.slane %v386_v40, %v11963_v5 }
  0x48   :  { %11497 = vmatmul.mubr.msk.f32.gmra.mxu1 %vm53_vm0, %v972_v49  ;;  %v379_v49 = vcombine.high %v11982_v21, %v11982_v21  ;;  %v986_v59 = vand.u32 2147483647, %v922_v51  ;;  %v924_v17 = vsub.f32 %v694_v52, %v12005_v37 }
  0x49   :  { %11499 = vmatprep.mubr.msk.f32.mxu1 %vm53_vm0, %v973_v53  ;;  %v378_v53 = vcombine.high %v374_v43, %v374_v43  ;;  %v987_v62 = vand.u32 2147483647, %v923_v55  ;;  %v925_v63 = vsub.f32 %v698_v56, %v12005_v37  ;;  %v706_v1 = vrot.slane %v402_v57, %v11970_v11 }
  0x4a   :  { %v424_v2 = vcombine.high %v402_v57, %v402_v57  ;;  %v442_v43 = vrot.slane %v428_v32, %v11963_v5 }
  0x4b   :  { %v702_v60 = vrot.slane %v378_v53, %v11970_v11  ;;  %v927_v13 = vsub.f32 %v706_v1, %v11982_v21 }
  0x4c   :  { %11500 = vmatmul.mubr.msk.f32.gmra.mxu1 %vm53_vm0, %v974_v58  ;;  %v416_v58 = vrot.slane %v394_v48, %v11963_v5  ;;  %v714_v14 = vrot.slane %v424_v2, %v11970_v11  ;;  %v444_v52 = vcombine.high %v442_v43, %v442_v43  ;;  %v458_v56 = vrot.slane %v442_v43, %v11963_v5 }
  0x4d   :  { %11502 = vmatprep.mubr.msk.f32.mxu1 %vm53_vm0, %v975_v61  ;;  %v393_v61 = vrot.slane %v379_v49, %v11963_v5  ;;  %v926_v7 = vsub.f32 %v702_v60, %v12005_v37  ;;  %v991_v20 = vand.u32 2147483647, %v927_v13 }
  0x4e   :  { %v710_v4 = vrot.slane %v416_v58, %v11970_v11  ;;  %v426_v9 = vcombine.high %v416_v58, %v416_v58  ;;  %v484_v58 = vrot.slane %v11992_v29, %v11963_v5 }
  0x4f   :  { %v395_v10 = vcombine.high %v393_v61, %v393_v61  ;;  %v409_v15 = vrot.slane %v393_v61, %v11963_v5  ;;  %v990_v18 = vand.u32 2147483647, %v926_v7 }
  0x50   :  { %11503 = vmatmul.mubr.msk.f32.gmra.mxu1 %vm53_vm0, %v976_v6  ;;  %v988_v6 = vand.u32 2147483647, %v924_v17  ;;  %v928_v16 = vsub.f32 %v710_v4, %v11982_v21  ;;  %v718_v37 = vrot.slane %v426_v9, %v11970_v11  ;;  %v472_v17 = vrot.slane %v444_v52, %v11963_v5 }
  0x51   :  { %11505 = vmatprep.mubr.msk.f32.mxu1 %vm53_vm0, %v977_v12  ;;  %v989_v12 = vand.u32 2147483647, %v925_v63  ;;  %v423_v19 = vrot.slane %v395_v10, %v11963_v5  ;;  %v722_v23 = vrot.slane %v409_v15, %v11970_v11  ;;  %v425_v24 = vcombine.high %v409_v15, %v409_v15 }
  0x52   :  { %v992_v26 = vand.u32 2147483647, %v928_v16  ;;  %v930_v28 = vsub.f32 %v718_v37, %v11982_v21  ;;  %v474_v63 = vcombine.high %v458_v56, %v458_v56  ;;  %v492_v2 = vcombine.high %v484_v58, %v484_v58 }
  0x53   :  { %v726_v30 = vrot.slane %v423_v19, %v11970_v11  ;;  %v427_v31 = vcombine.high %v423_v19, %v423_v19  ;;  %v931_v35 = vsub.f32 %v722_v23, %v11982_v21  ;;  %v730_v36 = vrot.slane %v425_v24, %v11970_v11 }
  0x54   :  { %11506 = vmatmul.mubr.msk.f32.gmra.mxu1 %vm53_vm0, %v978_v8  ;;  %v435_v8 = vrot.slane %v11985_v25, %v11963_v5  ;;  %v476_v7 = vcombine.high %v472_v17, %v472_v17  ;;  %v477_v9 = vcombine.high %v11992_v29, %v11992_v29  ;;  %v762_v13 = vrot.slane %v474_v63, %v11970_v11 }
  0x55   :  { %11508 = vmatprep.mubr.msk.f32.mxu1 %vm53_vm0, %v979_v22  ;;  %v929_v22 = vsub.f32 %v714_v14, %v11982_v21  ;;  %v932_v33 = vsub.f32 %v726_v30, %v11982_v21  ;;  %v734_v42 = vrot.slane %v427_v31, %v11970_v11  ;;  %v933_v45 = vsub.f32 %v730_v36, %v11982_v21 }
  0x56   :  { %v451_v39 = vrot.slane %v435_v8, %v11963_v5  ;;  %v500_v14 = vrot.slane %v484_v58, %v11963_v5  ;;  %v514_v15 = vrot.slane %v492_v2, %v11963_v5  ;;  %v491_v37 = vrot.slane %v477_v9, %v11963_v5 }
  0x57   :  { %v996_v49 = vand.u32 2147483647, %v932_v33  ;;  %v997_v53 = vand.u32 2147483647, %v933_v45 }
  0x58   :  { %11509 = vmatmul.mubr.msk.f32.gmra.mxu1 %vm53_vm0, %v980_v27  ;;  %v443_v27 = vcombine.high %v435_v8, %v435_v8  ;;  %v738_v46 = vrot.slane %v451_v39, %v11970_v11  ;;  %v473_v47 = vcombine.high %v451_v39, %v451_v39  ;;  %v522_v23 = vcombine.high %v500_v14, %v500_v14 }
  0x59   :  { %11511 = vmatprep.mubr.msk.f32.mxu1 %vm53_vm0, %v981_v34  ;;  %v993_v34 = vand.u32 2147483647, %v929_v22  ;;  %v770_v22 = vrot.slane %v500_v14, %v11970_v11  ;;  %v774_v24 = vrot.slane %v514_v15, %v11970_v11  ;;  %v493_v30 = vcombine.high %v491_v37, %v491_v37 }
  0x5a   :  { %v465_v40 = vrot.slane %v443_v27, %v11963_v5  ;;  %v746_v55 = vrot.slane %v473_v47, %v11970_v11  ;;  %v533_v39 = vrot.slane %v12009_v38, %v11963_v5 }
  0x5b   :  { %v943_v32 = vsub.f32 %v770_v22, %v11992_v29  ;;  %v944_v36 = vsub.f32 %v774_v24, %v11992_v29 }
  0x5c   :  { %11512 = vmatmul.mubr.msk.f32.gmra.mxu1 %vm53_vm0, %v982_v41  ;;  %v994_v41 = vand.u32 2147483647, %v930_v28  ;;  %v742_v48 = vrot.slane %v465_v40, %v11970_v11  ;;  %v475_v51 = vcombine.high %v465_v40, %v465_v40  ;;  %v937_v61 = vsub.f32 %v746_v55, %v11985_v25 }
  0x5d   :  { %11514 = vmatprep.mubr.msk.f32.mxu1 %vm53_vm0, %v983_v44  ;;  %v995_v44 = vand.u32 2147483647, %v931_v35  ;;  %v524_v28 = vcombine.high %v514_v15, %v514_v15  ;;  %v507_v35 = vrot.slane %v491_v37, %v11963_v5  ;;  %v1007_v33 = vand.u32 2147483647, %v943_v32 }
  0x5e   :  { %v936_v57 = vsub.f32 %v742_v48, %v11985_v25  ;;  %v1001_v10 = vand.u32 2147483647, %v937_v61  ;;  %v1008_v45 = vand.u32 2147483647, %v944_v36 }
  0x5f   :  { %v786_v43 = vrot.slane %v507_v35, %v11970_v11 }
  0x60   :  { %11515 = vmatmul.mubr.msk.f32.gmra.mxu1 %vm53_vm0, %v984_v50  ;;  %v934_v50 = vsub.f32 %v734_v42, %v11982_v21  ;;  %v750_v21 = vrot.slane %v475_v51, %v11970_v11  ;;  %v1000_v1 = vand.u32 2147483647, %v936_v57 }
  0x61   :  { %11517 = vmatprep.mubr.msk.f32.mxu1 %vm53_vm0, %v985_v54  ;;  %v935_v54 = vsub.f32 %v738_v46, %v11985_v25  ;;  %v541_v46 = vcombine.high %v533_v39, %v533_v39  ;;  %v947_v52 = vsub.f32 %v786_v43, %v11992_v29 }
  0x62   :  { %v938_v4 = vsub.f32 %v750_v21, %v11985_v25 }
  0x63   :  { %v999_v60 = vand.u32 2147483647, %v935_v54  ;;  %v549_v54 = vrot.slane %v533_v39, %v11963_v5  ;;  %v563_v55 = vrot.slane %v541_v46, %v11963_v5  ;;  %v1011_v21 = vand.u32 2147483647, %v947_v52  ;;  %v1676_v39 = vld [vmem:[#allocation5 + $0x40] sm:$0xff] }
  0x64   :  { %11518 = vmatmul.mubr.msk.f32.gmra.mxu1 %vm53_vm0, %v986_v59  ;;  %v998_v59 = vand.u32 2147483647, %v934_v50  ;;  %v1002_v16 = vand.u32 2147483647, %v938_v4  ;;  %v526_v50 = vcombine.high %v12009_v38, %v12009_v38  ;;  %11574 = vmatprep.subr.mxu0 %v1676_v39 }
  0x65   :  { %11520 = vmatprep.mubr.msk.f32.mxu1 %vm53_vm0, %v987_v62  ;;  %v754_v62 = vrot.slane %v458_v56, %v11970_v11  ;;  %v571_v61 = vcombine.high %v549_v54, %v549_v54  ;;  %v573_v2 = vcombine.high %v563_v55, %v563_v55  ;;  %11575 = vmatpush3.msra.mxu0 %v1676_v39 }
  0x67   :  { %v810_v9 = vrot.slane %v571_v61, %v11970_v11  ;;  %v814_v14 = vrot.slane %v573_v2, %v11970_v11 }
  0x68   :  { %11521 = vmatmul.mubr.msk.f32.gmra.mxu1 %vm53_vm0, %v988_v6  ;;  %v758_v6 = vrot.slane %v472_v17, %v11970_v11 }
  0x69   :  { %11523 = vmatprep.mubr.msk.f32.mxu1 %vm53_vm0, %v989_v12  ;;  %v939_v12 = vsub.f32 %v754_v62, %v11985_v25  ;;  %v806_v62 = vrot.slane %v563_v55, %v11970_v11 }
  0x6a   :  { %v940_v8 = vsub.f32 %v758_v6, %v11985_v25 }
  0x6b   :  { %v1003_v19 = vand.u32 2147483647, %v939_v12 }
  0x6c   :  { %11524 = vmatmul.mubr.msk.f32.gmra.mxu1 %vm53_vm0, %v990_v18  ;;  %v766_v18 = vrot.slane %v476_v7, %v11970_v11 }
  0x6d   :  { %11526 = vmatprep.mubr.msk.f32.mxu1 %vm53_vm0, %v991_v20  ;;  %v941_v20 = vsub.f32 %v762_v13, %v11985_v25  ;;  %v952_v13 = vsub.f32 %v806_v62, %v12009_v38 }
  0x6e   :  { %v942_v27 = vsub.f32 %v766_v18, %v11985_v25  ;;  %v782_v25 = vrot.slane %v524_v28, %v11970_v11 }
  0x6f   :  { %v1005_v31 = vand.u32 2147483647, %v941_v20  ;;  %v1016_v37 = vand.u32 2147483647, %v952_v13 }
  0x70   :  { %11527 = vmatmul.mubr.msk.f32.gmra.mxu1 %vm53_vm0, %v992_v26  ;;  %v1004_v26 = vand.u32 2147483647, %v940_v8  ;;  %v1006_v40 = vand.u32 2147483647, %v942_v27  ;;  %v946_v47 = vsub.f32 %v782_v25, %v11992_v29  ;;  %v1674_v25 = vld [vmem:[#allocation5 + $0x30] sm:$0xff] }
  0x71   :  { %11529 = vmatprep.mubr.msk.f32.mxu1 %vm53_vm0, %v993_v34  ;;  %v778_v34 = vrot.slane %v522_v23, %v11970_v11 }
  0x72   :  { %v1010_v56 = vand.u32 2147483647, %v946_v47 }
  0x73   :  { %v945_v42 = vsub.f32 %v778_v34, %v11992_v29 }
  0x74   :  { %11530 = vmatmul.mubr.msk.f32.gmra.mxu1 %vm53_vm0, %v994_v41  ;;  %v521_v41 = vrot.slane %v493_v30, %v11963_v5 }
  0x75   :  { %11532 = vmatprep.mubr.msk.f32.mxu1 %vm53_vm0, %v995_v44  ;;  %v523_v44 = vcombine.high %v507_v35, %v507_v35  ;;  %v1009_v51 = vand.u32 2147483647, %v945_v42 }
  0x76   :  { %v790_v48 = vrot.slane %v521_v41, %v11970_v11 }
  0x78   :  { %11533 = vmatmul.mubr.msk.f32.gmra.mxu1 %vm53_vm0, %v996_v49  ;;  %v525_v49 = vcombine.high %v521_v41, %v521_v41  ;;  %v948_v57 = vsub.f32 %v790_v48, %v11992_v29  ;;  %v12281_v48 = vld [vmem:[#allocation5 + $0x20] ss:$0 sm:$0xff] }
  0x79   :  { %11535 = vmatprep.mubr.msk.f32.mxu1 %vm53_vm0, %v997_v53  ;;  %v794_v53 = vrot.slane %v523_v44, %v11970_v11 }
  0x7a   :  { %v798_v58 = vrot.slane %v525_v49, %v11970_v11  ;;  %v1012_v63 = vand.u32 2147483647, %v948_v57 }
  0x7b   :  { %v949_v17 = vsub.f32 %v794_v53, %v11992_v29  ;;  %v12287_v53 = vsub.s32 2, %v11960_v3 }
  0x7c   :  { %11536 = vmatmul.mubr.msk.f32.gmra.mxu1 %vm53_vm0, %v998_v59  ;;  %v540_v59 = vrot.slane %v526_v50, %v11963_v5 }
  0x7d   :  { %11538 = vmatprep.mubr.msk.f32.mxu1 %vm53_vm0, %v999_v60  ;;  %v802_v60 = vrot.slane %v549_v54, %v11970_v11  ;;  %v1013_v6 = vand.u32 2147483647, %v949_v17 }
  0x7e   :  { %v542_v4 = vcombine.high %v540_v59, %v540_v59 }
  0x7f   :  { %v951_v7 = vsub.f32 %v802_v60, %v12009_v38 }
  0x80   :  { %11539 = vmatmul.mubr.msk.f32.gmra.mxu1 %vm53_vm0, %v1000_v1  ;;  %v950_v1 = vsub.f32 %v798_v58, %v11992_v29  ;;  %v570_v29 = vrot.slane %v542_v4, %v11963_v5  ;;  %v12300_v4 = vsub.s32 3, %v11960_v3 }
  0x81   :  { %11541 = vmatprep.mubr.msk.f32.mxu1 %vm53_vm0, %v1001_v10  ;;  %v556_v10 = vrot.slane %v540_v59, %v11963_v5  ;;  %v1015_v15 = vand.u32 2147483647, %v951_v7 }
  0x82   :  { %v1014_v12 = vand.u32 2147483647, %v950_v1  ;;  %v822_v20 = vrot.slane %v570_v29, %v11970_v11  ;;  %v574_v22 = vcombine.high %v570_v29, %v570_v29 }
  0x83   :  { %v818_v8 = vrot.slane %v556_v10, %v11970_v11  ;;  %v572_v18 = vcombine.high %v556_v10, %v556_v10 }
  0x84   :  { %11542 = vmatmul.mubr.msk.f32.gmra.mxu1 %vm53_vm0, %v1002_v16  ;;  %v953_v16 = vsub.f32 %v810_v9, %v12009_v38  ;;  %v956_v27 = vsub.f32 %v822_v20, %v12009_v38  ;;  %v830_v28 = vrot.slane %v574_v22, %v11970_v11  ;;  %v12315_v20 = vsub.s32 4, %v11960_v3 }
  0x85   :  { %11544 = vmatprep.mubr.msk.f32.mxu1 %vm53_vm0, %v1003_v19  ;;  %v954_v19 = vsub.f32 %v814_v14, %v12009_v38  ;;  %v955_v5 = vsub.f32 %v818_v8, %v12009_v38  ;;  %v826_v24 = vrot.slane %v572_v18, %v11970_v11 }
  0x86   :  { %v1017_v23 = vand.u32 2147483647, %v953_v16  ;;  %v1020_v32 = vand.u32 2147483647, %v956_v27  ;;  %v958_v34 = vsub.f32 %v830_v28, %v12009_v38 }
  0x87   :  { %v1019_v30 = vand.u32 2147483647, %v955_v5 }
  0x88   :  { %11545 = vmatmul.mubr.msk.f32.gmra.mxu1 %vm53_vm0, %v1004_v26  ;;  %v1018_v26 = vand.u32 2147483647, %v954_v19  ;;  %v1022_v36 = vand.u32 2147483647, %v958_v34 }
  0x89   :  { %11547 = vmatprep.mubr.msk.f32.mxu1 %vm53_vm0, %v1005_v31  ;;  %v957_v31 = vsub.f32 %v826_v24, %v12009_v38  ;;  %v1673_v38 = vld [vmem:[#allocation5 + $0x28] sm:$0xff] }
  0x8b   :  { %v1021_v35 = vand.u32 2147483647, %v957_v31 }
  0x8c   :  { %11548 = vmatmul.mubr.msk.f32.gmra.mxu1 %vm53_vm0, %v1006_v40  ;;  %v1675_v40 = vld [vmem:[#allocation5 + $0x38] sm:$0xff] }
  0x8d   :  { %11550 = vmatprep.mubr.msk.f32.mxu1 %vm53_vm0, %v1007_v33  ;;  %11576 = vmatprep.subr.mxu0 %v1675_v40 }
  0x8e   :  { %11577 = vmatpush3.msra.mxu0 %v1675_v40  ;;  %v12330_v40 = vsub.s32 5, %v11960_v3 }
  0x8f   :  { %11578 = vmatprep.subr.mxu0 %v1674_v25 }
  0x90   :  { %11551 = vmatmul.mubr.msk.f32.gmra.mxu1 %vm53_vm0, %v1008_v45  ;;  %11579 = vmatpush3.msra.mxu0 %v1674_v25  ;;  %v12275_v45 = vsub.s32 1, %v11960_v3 }
  0x91   :  { %11553 = vmatprep.mubr.msk.f32.mxu1 %vm53_vm0, %v1009_v51  ;;  %11580 = vmatprep.subr.mxu0 %v1673_v38 }
  0x92   :  { %11581 = vmatpush3.msra.mxu0 %v1673_v38 }
  0x94   :  { %11554 = vmatmul.mubr.msk.f32.gmra.mxu1 %vm53_vm0, %v1010_v56 }
  0x95   :  { %11556 = vmatprep.mubr.msk.f32.mxu1 %vm53_vm0, %v1011_v21 }
  0x98   :  { %11557 = vmatmul.mubr.msk.f32.gmra.mxu1 %vm53_vm0, %v1012_v63 }
  0x99   :  { %11559 = vmatprep.mubr.msk.f32.mxu1 %vm53_vm0, %v1013_v6 }
  0x9c   :  { %11560 = vmatmul.mubr.msk.f32.gmra.mxu1 %vm53_vm0, %v1014_v12 }
  0x9d   :  { %11562 = vmatprep.mubr.msk.f32.mxu1 %vm53_vm0, %v1015_v15 }
  0xa0   :  { %11563 = vmatmul.mubr.msk.f32.gmra.mxu1 %vm53_vm0, %v1016_v37 }
  0xa1   :  { %11565 = vmatprep.mubr.msk.f32.mxu1 %vm53_vm0, %v1017_v23 }
  0xa4   :  { %11566 = vmatmul.mubr.msk.f32.gmra.mxu1 %vm53_vm0, %v1018_v26 }
  0xa5   :  { %11568 = vmatprep.mubr.msk.f32.mxu1 %vm53_vm0, %v1019_v30 }
  0xa8   :  { %11569 = vmatmul.mubr.msk.f32.gmra.mxu1 %vm53_vm0, %v1020_v32 }
  0xa9   :  { %11571 = vmatprep.mubr.msk.f32.mxu1 %vm53_vm0, %v1021_v35 }
  0xac   :  { %11572 = vmatmul.mubr.msk.f32.gmra.mxu1 %vm53_vm0, %v1022_v36 }
  0xe5   :  { %v12264_v41 = vpop.f32.mrf.mxu0 }
  0xe6   :  { %v5071_v33 = vrot.slane %v12264_v41, %v11970_v11  ;;  %v5567_v49 = vrot.slane %v12264_v41, %v12275_v45  ;;  %v6191_v17 = vrot.slane %v12264_v41, %v12287_v53  ;;  %v6815_v29 = vrot.slane %v12264_v41, %v12300_v4 }
  0xe7   :  { %v12268_v42 = vpop.f32.mrf.mxu1  ;;  %v7439_v30 = vrot.slane %v12264_v41, %v12315_v20 }
  0xe8   :  { %5116 = vbcast.lane.b32.xlu0 %v5071_v33, 264  ;;  %5112 = vbcast.lane.b32.xlu1 %v5071_v33, 256  ;;  %v5087_v43 = vrot.slane %v12268_v42, %v11970_v11  ;;  %v5583_v54 = vrot.slane %v12268_v42, %v12275_v45  ;;  %v6207_v6 = vrot.slane %v12268_v42, %v12287_v53 }
  0xe9   :  { %v12272_v44 = vpop.f32.mrf.mxu1  ;;  %v6831_v22 = vrot.slane %v12268_v42, %v12300_v4  ;;  %v7455_v25 = vrot.slane %v12268_v42, %v12315_v20 }
  0xeb   :  { %v12277_v46 = vpop.f32.mrf.mxu1 }
  0xec   :  { %5144 = vbcast.lane.b32.xlu0 %v5087_v43, 264  ;;  %5140 = vbcast.lane.b32.xlu1 %v5087_v43, 256 }
  0xed   :  { %v12279_v47 = vpop.f32.mrf.mxu1 }
  0xf0   :  { %v11480_v50 = vpop.f32.mrf.mxu1  ;;  %5612 = vbcast.lane.b32.xlu0 %v5567_v49, 264  ;;  %5608 = vbcast.lane.b32.xlu1 %v5567_v49, 256 }
  0xf1   :  { %v1296_v51 = vadd.f32 %v11480_v50, %v12281_v48 }
  0xf2   :  { %v1290_v52 = vpop.f32.mrf.mxu1 }
  0xf3   :  { %v1291_v55 = vadd.f32 %v12281_v48, %v1290_v52  ;;  %v1610_v56 = vmax.f32 %v1296_v51, 0.0  ;;  %v8063_v52 = vrot.slane %v12264_v41, %v12330_v40 }
  0xf4   :  { %v11483_v57 = vpop.f32.mrf.mxu1  ;;  %5640 = vbcast.lane.b32.xlu0 %v5583_v54, 264  ;;  %5636 = vbcast.lane.b32.xlu1 %v5583_v54, 256 }
  0xf5   :  { %v1609_v58 = vmax.f32 %v1291_v55, 0.0  ;;  %v1306_v59 = vadd.f32 %v11483_v57, %v12281_v48 }
  0xf6   :  { %v1300_v21 = vpop.f32.mrf.mxu1 }
  0xf7   :  { %v1301_v60 = vadd.f32 %v12281_v48, %v1300_v21  ;;  %11582 = vmatprep.mubr.msk.f32.mxu0 %vm53_vm0, %v1609_v58  ;;  %v1612_v61 = vmax.f32 %v1306_v59, 0.0  ;;  %v12345_v21 = vsub.s32 6, %v11960_v3 }
  0xf8   :  { %11583 = vmatmul.mubr.msk.f32.vlgmr.msra.gmra.mxu0 %vm53_vm0, %v1610_v56  ;;  %v11486_v62 = vpop.f32.mrf.mxu1  ;;  %6236 = vbcast.lane.b32.xlu0 %v6191_v17, 264 }
  0xf9   :  { %6232 = vbcast.lane.b32.xlu1 %v6191_v17, 256  ;;  %v1611_v63 = vmax.f32 %v1301_v60, 0.0  ;;  %v1316_v1 = vadd.f32 %v11486_v62, %v12281_v48  ;;  %v8079_v17 = vrot.slane %v12268_v42, %v12330_v40 }
  0xfa   :  { %v1310_v2 = vpop.f32.mrf.mxu1 }
  0xfb   :  { %11585 = vmatprep.mubr.msk.f32.mxu0 %vm53_vm0, %v1611_v63  ;;  %v1311_v7 = vadd.f32 %v12281_v48, %v1310_v2  ;;  %v1614_v9 = vmax.f32 %v1316_v1, 0.0 }
  0xfc   :  { %11586 = vmatmul.mubr.msk.f32.gmra.mxu0 %vm53_vm0, %v1612_v61  ;;  %v11489_v10 = vpop.f32.mrf.mxu1  ;;  %6264 = vbcast.lane.b32.xlu0 %v6207_v6, 264  ;;  %v12351_v61 = vpop.f32.mrf.mxu0 }
  0xfd   :  { %6260 = vbcast.lane.b32.xlu1 %v6207_v6, 256  ;;  %v1613_v12 = vmax.f32 %v1311_v7, 0.0  ;;  %v1326_v13 = vadd.f32 %v11489_v10, %v12281_v48  ;;  %v12357_v7 = vrot.slane %v12264_v41, %v12345_v21 }
  0xfe   :  { %v1320_v14 = vpop.f32.mrf.mxu1 }
  0xff   :  { %v1321_v15 = vadd.f32 %v12281_v48, %v1320_v14  ;;  %11588 = vmatprep.mubr.msk.f32.mxu0 %vm53_vm0, %v1613_v12  ;;  %v1616_v16 = vmax.f32 %v1326_v13, 0.0 }
 0x100   :  { %v11492_v8 = vpop.f32.mrf.mxu1  ;;  %11589 = vmatmul.mubr.msk.f32.gmra.mxu0 %vm53_vm0, %v1614_v9  ;;  %6860 = vbcast.lane.b32.xlu0 %v6815_v29, 264  ;;  %v5067_v9 = vrot.slane %v12351_v61, %v11970_v11 }
 0x101   :  { %6856 = vbcast.lane.b32.xlu1 %v6815_v29, 256  ;;  %v1615_v18 = vmax.f32 %v1321_v15, 0.0  ;;  %v1336_v37 = vadd.f32 %v11492_v8, %v12281_v48 }
 0x102   :  { %v1330_v19 = vpop.f32.mrf.mxu1 }
 0x103   :  { %v1331_v23 = vadd.f32 %v12281_v48, %v1330_v19  ;;  %11591 = vmatprep.mubr.msk.f32.mxu0 %vm53_vm0, %v1615_v18  ;;  %v1618_v5 = vmax.f32 %v1336_v37, 0.0 }
 0x104   :  { %v11495_v24 = vpop.f32.mrf.mxu1  ;;  %11592 = vmatmul.mubr.msk.f32.gmra.mxu0 %vm53_vm0, %v1616_v16  ;;  %6888 = vbcast.lane.b32.xlu0 %v6831_v22, 264  ;;  %v5083_v16 = vrot.slane %v12272_v44, %v11970_v11 }
 0x105   :  { %6884 = vbcast.lane.b32.xlu1 %v6831_v22, 256  ;;  %v1617_v26 = vmax.f32 %v1331_v23, 0.0  ;;  %v1346_v27 = vadd.f32 %v11495_v24, %v12281_v48 }
 0x106   :  { %v1340_v28 = vpop.f32.mrf.mxu1 }
 0x107   :  { %v1341_v31 = vadd.f32 %v12281_v48, %v1340_v28  ;;  %11594 = vmatprep.mubr.msk.f32.mxu0 %vm53_vm0, %v1617_v26  ;;  %v1620_v32 = vmax.f32 %v1346_v27, 0.0 }
 0x108   :  { %v11498_v34 = vpop.f32.mrf.mxu1  ;;  %11595 = vmatmul.mubr.msk.f32.gmra.mxu0 %vm53_vm0, %v1618_v5  ;;  %7484 = vbcast.lane.b32.xlu0 %v7439_v30, 264  ;;  %v5563_v5 = vrot.slane %v12351_v61, %v12275_v45 }
 0x109   :  { %7480 = vbcast.lane.b32.xlu1 %v7439_v30, 256  ;;  %v1619_v35 = vmax.f32 %v1341_v31, 0.0  ;;  %v1356_v36 = vadd.f32 %v11498_v34, %v12281_v48 }
 0x10a   :  { %v1350_v39 = vpop.f32.mrf.mxu1 }
 0x10b   :  { %v1351_v38 = vadd.f32 %v12281_v48, %v1350_v39  ;;  %11597 = vmatprep.mubr.msk.f32.mxu0 %vm53_vm0, %v1619_v35  ;;  %v1622_v33 = vmax.f32 %v1356_v36, 0.0 }
 0x10c   :  { %v11501_v43 = vpop.f32.mrf.mxu1  ;;  %11598 = vmatmul.mubr.msk.f32.gmra.mxu0 %vm53_vm0, %v1620_v32  ;;  %7512 = vbcast.lane.b32.xlu0 %v7455_v25, 264  ;;  %v5579_v32 = vrot.slane %v12272_v44, %v12275_v45 }
 0x10d   :  { %7508 = vbcast.lane.b32.xlu1 %v7455_v25, 256  ;;  %v1621_v49 = vmax.f32 %v1351_v38, 0.0  ;;  %v1366_v50 = vadd.f32 %v11501_v43, %v12281_v48 }
 0x10e   :  { %v1360_v51 = vpop.f32.mrf.mxu1 }
 0x10f   :  { %v1361_v54 = vadd.f32 %v12281_v48, %v1360_v51  ;;  %11600 = vmatprep.mubr.msk.f32.mxu0 %vm53_vm0, %v1621_v49  ;;  %v1624_v55 = vmax.f32 %v1366_v50, 0.0 }
 0x110   :  { %v11504_v56 = vpop.f32.mrf.mxu1  ;;  %11601 = vmatmul.mubr.msk.f32.gmra.mxu0 %vm53_vm0, %v1622_v33  ;;  %8108 = vbcast.lane.b32.xlu0 %v8063_v52, 264  ;;  %v6187_v33 = vrot.slane %v12351_v61, %v12287_v53 }
 0x111   :  { %8104 = vbcast.lane.b32.xlu1 %v8063_v52, 256  ;;  %v1623_v57 = vmax.f32 %v1361_v54, 0.0  ;;  %v1376_v58 = vadd.f32 %v11504_v56, %v12281_v48 }
 0x112   :  { %v1370_v59 = vpop.f32.mrf.mxu1 }
 0x113   :  { %v1371_v60 = vadd.f32 %v12281_v48, %v1370_v59  ;;  %11603 = vmatprep.mubr.msk.f32.mxu0 %vm53_vm0, %v1623_v57  ;;  %v1626_v62 = vmax.f32 %v1376_v58, 0.0 }
 0x114   :  { %v11507_v63 = vpop.f32.mrf.mxu1  ;;  %11604 = vmatmul.mubr.msk.f32.gmra.mxu0 %vm53_vm0, %v1624_v55  ;;  %8136 = vbcast.lane.b32.xlu0 %v8079_v17, 264  ;;  %v6203_v55 = vrot.slane %v12272_v44, %v12287_v53 }
 0x115   :  { %8132 = vbcast.lane.b32.xlu1 %v8079_v17, 256  ;;  %v1625_v1 = vmax.f32 %v1371_v60, 0.0  ;;  %v1386_v2 = vadd.f32 %v11507_v63, %v12281_v48 }
 0x116   :  { %v1380_v6 = vpop.f32.mrf.mxu1 }
 0x117   :  { %v1381_v10 = vadd.f32 %v12281_v48, %v1380_v6  ;;  %11606 = vmatprep.mubr.msk.f32.mxu0 %vm53_vm0, %v1625_v1  ;;  %v1628_v12 = vmax.f32 %v1386_v2, 0.0 }
 0x118   :  { %v11510_v13 = vpop.f32.mrf.mxu1  ;;  %11607 = vmatmul.mubr.msk.f32.gmra.mxu0 %vm53_vm0, %v1626_v62  ;;  %5105 = vbcast.lane.b32.xlu0 %v5067_v9, 256  ;;  %v6811_v62 = vrot.slane %v12351_v61, %v12300_v4 }
 0x119   :  { %8728 = vbcast.lane.b32.xlu1 %v12357_v7, 256  ;;  %v1627_v14 = vmax.f32 %v1381_v10, 0.0  ;;  %v1396_v29 = vadd.f32 %v11510_v13, %v12281_v48 }
 0x11a   :  { %v1390_v15 = vpop.f32.mrf.mxu1 }
 0x11b   :  { %v1391_v8 = vadd.f32 %v12281_v48, %v1390_v15  ;;  %11609 = vmatprep.mubr.msk.f32.mxu0 %vm53_vm0, %v1627_v14  ;;  %v1630_v18 = vmax.f32 %v1396_v29, 0.0 }
 0x11c   :  { %v11513_v37 = vpop.f32.mrf.mxu1  ;;  %11610 = vmatmul.mubr.msk.f32.gmra.mxu0 %vm53_vm0, %v1628_v12  ;;  %5137 = vbcast.lane.b32.xlu0 %v5083_v16, 264  ;;  %v6827_v12 = vrot.slane %v12272_v44, %v12300_v4 }
 0x11d   :  { %5109 = vbcast.lane.b32.xlu1 %v5067_v9, 264  ;;  %v1629_v19 = vmax.f32 %v1391_v8, 0.0  ;;  %v1406_v22 = vadd.f32 %v11513_v37, %v12281_v48 }
 0x11e   :  { %v1400_v23 = vpop.f32.mrf.mxu1 }
 0x11f   :  { %v1401_v24 = vadd.f32 %v12281_v48, %v1400_v23  ;;  %11612 = vmatprep.mubr.msk.f32.mxu0 %vm53_vm0, %v1629_v19  ;;  %v1632_v26 = vmax.f32 %v1406_v22, 0.0 }
 0x120   :  { %v11516_v27 = vpop.f32.mrf.mxu1  ;;  %11613 = vmatmul.mubr.msk.f32.gmra.mxu0 %vm53_vm0, %v1630_v18  ;;  %5605 = vbcast.lane.b32.xlu0 %v5563_v5, 264  ;;  %v7435_v18 = vrot.slane %v12351_v61, %v12315_v20 }
 0x121   :  { %5133 = vbcast.lane.b32.xlu1 %v5083_v16, 256  ;;  %v1631_v28 = vmax.f32 %v1401_v24, 0.0  ;;  %v1416_v30 = vadd.f32 %v11516_v27, %v12281_v48 }
 0x122   :  { %v1410_v31 = vpop.f32.mrf.mxu1 }
 0x123   :  { %v1411_v34 = vadd.f32 %v12281_v48, %v1410_v31  ;;  %11615 = vmatprep.mubr.msk.f32.mxu0 %vm53_vm0, %v1631_v28  ;;  %v1634_v35 = vmax.f32 %v1416_v30, 0.0 }
 0x124   :  { %v11519_v36 = vpop.f32.mrf.mxu1  ;;  %11616 = vmatmul.mubr.msk.f32.gmra.mxu0 %vm53_vm0, %v1632_v26  ;;  %5633 = vbcast.lane.b32.xlu0 %v5579_v32, 264  ;;  %v7451_v26 = vrot.slane %v12272_v44, %v12315_v20 }
 0x125   :  { %5601 = vbcast.lane.b32.xlu1 %v5563_v5, 256  ;;  %v1633_v39 = vmax.f32 %v1411_v34, 0.0  ;;  %v1426_v25 = vadd.f32 %v11519_v36, %v12281_v48 }
 0x126   :  { %v1420_v38 = vpop.f32.mrf.mxu1 }
 0x127   :  { %v1421_v43 = vadd.f32 %v12281_v48, %v1420_v38  ;;  %11618 = vmatprep.mubr.msk.f32.mxu0 %vm53_vm0, %v1633_v39  ;;  %v1636_v49 = vmax.f32 %v1426_v25, 0.0 }
 0x128   :  { %v11522_v50 = vpop.f32.mrf.mxu1  ;;  %11619 = vmatmul.mubr.msk.f32.gmra.mxu0 %vm53_vm0, %v1634_v35  ;;  %6229 = vbcast.lane.b32.xlu0 %v6187_v33, 264  ;;  %v8059_v35 = vrot.slane %v12351_v61, %v12330_v40 }
 0x129   :  { %5629 = vbcast.lane.b32.xlu1 %v5579_v32, 256  ;;  %v1635_v51 = vmax.f32 %v1421_v43, 0.0  ;;  %v1436_v52 = vadd.f32 %v11522_v50, %v12281_v48 }
 0x12a   :  { %v1430_v54 = vpop.f32.mrf.mxu1 }
 0x12b   :  { %v1431_v56 = vadd.f32 %v12281_v48, %v1430_v54  ;;  %11621 = vmatprep.mubr.msk.f32.mxu0 %vm53_vm0, %v1635_v51  ;;  %v1638_v57 = vmax.f32 %v1436_v52, 0.0 }
 0x12c   :  { %v11525_v58 = vpop.f32.mrf.mxu1  ;;  %11622 = vmatmul.mubr.msk.f32.gmra.mxu0 %vm53_vm0, %v1636_v49  ;;  %6257 = vbcast.lane.b32.xlu0 %v6203_v55, 264  ;;  %v8075_v49 = vrot.slane %v12272_v44, %v12330_v40 }
 0x12d   :  { %6225 = vbcast.lane.b32.xlu1 %v6187_v33, 256  ;;  %v1637_v59 = vmax.f32 %v1431_v56, 0.0  ;;  %v1446_v17 = vadd.f32 %v11525_v58, %v12281_v48  ;;  %v12432_v56 = vpop.f32.mrf.mxu0  ;;  %v8683_v58 = vrot.slane %v12351_v61, %v12345_v21 }
 0x12e   :  { %v1440_v60 = vpop.f32.mrf.mxu1 }
 0x12f   :  { %v1441_v63 = vadd.f32 %v12281_v48, %v1440_v60  ;;  %11624 = vmatprep.mubr.msk.f32.mxu0 %vm53_vm0, %v1637_v59  ;;  %v1640_v1 = vmax.f32 %v1446_v17, 0.0 }
 0x130   :  { %v11528_v2 = vpop.f32.mrf.mxu1  ;;  %11625 = vmatmul.mubr.msk.f32.gmra.mxu0 %vm53_vm0, %v1638_v57  ;;  %6853 = vbcast.lane.b32.xlu0 %v6811_v62, 264 }
 0x131   :  { %6253 = vbcast.lane.b32.xlu1 %v6203_v55, 256  ;;  %v1639_v6 = vmax.f32 %v1441_v63, 0.0  ;;  %v1456_v9 = vadd.f32 %v11528_v2, %v12281_v48 }
 0x132   :  { %v1450_v10 = vpop.f32.mrf.mxu1 }
 0x133   :  { %v1451_v13 = vadd.f32 %v12281_v48, %v1450_v10  ;;  %11627 = vmatprep.mubr.msk.f32.mxu0 %vm53_vm0, %v1639_v6  ;;  %v1642_v14 = vmax.f32 %v1456_v9, 0.0 }
 0x134   :  { %v11531_v29 = vpop.f32.mrf.mxu1  ;;  %11628 = vmatmul.mubr.msk.f32.gmra.mxu0 %vm53_vm0, %v1640_v1  ;;  %6881 = vbcast.lane.b32.xlu0 %v6827_v12, 264 }
 0x135   :  { %6849 = vbcast.lane.b32.xlu1 %v6811_v62, 256  ;;  %v1641_v15 = vmax.f32 %v1451_v13, 0.0  ;;  %v1466_v16 = vadd.f32 %v11531_v29, %v12281_v48  ;;  %v5079_v62 = vrot.slane %v12432_v56, %v11970_v11  ;;  %v5095_v29 = vrot.slane %v12277_v46, %v11970_v11 }
 0x136   :  { %v1460_v8 = vpop.f32.mrf.mxu1 }
 0x137   :  { %v1461_v37 = vadd.f32 %v12281_v48, %v1460_v8  ;;  %11630 = vmatprep.mubr.msk.f32.mxu0 %vm53_vm0, %v1641_v15  ;;  %v1644_v19 = vmax.f32 %v1466_v16, 0.0 }
 0x138   :  { %v11534_v22 = vpop.f32.mrf.mxu1  ;;  %11631 = vmatmul.mubr.msk.f32.gmra.mxu0 %vm53_vm0, %v1642_v14  ;;  %7477 = vbcast.lane.b32.xlu0 %v7435_v18, 264 }
 0x139   :  { %6877 = vbcast.lane.b32.xlu1 %v6827_v12, 256  ;;  %v1643_v23 = vmax.f32 %v1461_v37, 0.0  ;;  %v1476_v5 = vadd.f32 %v11534_v22, %v12281_v48  ;;  %v5575_v22 = vrot.slane %v12432_v56, %v12275_v45 }
 0x13a   :  { %v1470_v24 = vpop.f32.mrf.mxu1 }
 0x13b   :  { %v1471_v27 = vadd.f32 %v12281_v48, %v1470_v24  ;;  %11633 = vmatprep.mubr.msk.f32.mxu0 %vm53_vm0, %v1643_v23  ;;  %v1646_v28 = vmax.f32 %v1476_v5, 0.0 }
 0x13c   :  { %v11537_v30 = vpop.f32.mrf.mxu1  ;;  %11634 = vmatmul.mubr.msk.f32.gmra.mxu0 %vm53_vm0, %v1644_v19  ;;  %7505 = vbcast.lane.b32.xlu0 %v7451_v26, 264 }
 0x13d   :  { %7473 = vbcast.lane.b32.xlu1 %v7435_v18, 256  ;;  %v1645_v31 = vmax.f32 %v1471_v27, 0.0  ;;  %v1486_v32 = vadd.f32 %v11537_v30, %v12281_v48  ;;  %v5591_v30 = vrot.slane %v12277_v46, %v12275_v45 }
 0x13e   :  { %v1480_v34 = vpop.f32.mrf.mxu1 }
 0x13f   :  { %v1481_v36 = vadd.f32 %v12281_v48, %v1480_v34  ;;  %11636 = vmatprep.mubr.msk.f32.mxu0 %vm53_vm0, %v1645_v31  ;;  %v1648_v39 = vmax.f32 %v1486_v32, 0.0 }
 0x140   :  { %v11540_v25 = vpop.f32.mrf.mxu1  ;;  %11637 = vmatmul.mubr.msk.f32.gmra.mxu0 %vm53_vm0, %v1646_v28  ;;  %8101 = vbcast.lane.b32.xlu0 %v8059_v35, 264 }
 0x141   :  { %7501 = vbcast.lane.b32.xlu1 %v7451_v26, 256  ;;  %v1647_v38 = vmax.f32 %v1481_v36, 0.0  ;;  %v1496_v33 = vadd.f32 %v11540_v25, %v12281_v48 }
 0x142   :  { %v1490_v43 = vpop.f32.mrf.mxu1 }
 0x143   :  { %v1491_v50 = vadd.f32 %v12281_v48, %v1490_v43  ;;  %11639 = vmatprep.mubr.msk.f32.mxu0 %vm53_vm0, %v1647_v38  ;;  %v1650_v51 = vmax.f32 %v1496_v33, 0.0  ;;  %v6199_v33 = vrot.slane %v12432_v56, %v12287_v53 }
 0x144   :  { %v11543_v52 = vpop.f32.mrf.mxu1  ;;  %11640 = vmatmul.mubr.msk.f32.gmra.mxu0 %vm53_vm0, %v1648_v39  ;;  %8129 = vbcast.lane.b32.xlu0 %v8075_v49, 264 }
 0x145   :  { %8097 = vbcast.lane.b32.xlu1 %v8059_v35, 256  ;;  %v1649_v54 = vmax.f32 %v1491_v50, 0.0  ;;  %v1506_v55 = vadd.f32 %v11543_v52, %v12281_v48 }
 0x146   :  { %v1500_v57 = vpop.f32.mrf.mxu1 }
 0x147   :  { %v1501_v59 = vadd.f32 %v12281_v48, %v1500_v57  ;;  %11642 = vmatprep.mubr.msk.f32.mxu0 %vm53_vm0, %v1649_v54  ;;  %v1652_v17 = vmax.f32 %v1506_v55, 0.0 }
 0x148   :  { %v11546_v60 = vpop.f32.mrf.mxu1  ;;  %11643 = vmatmul.mubr.msk.f32.gmra.mxu0 %vm53_vm0, %v1650_v51  ;;  %8725 = vbcast.lane.b32.xlu0 %v8683_v58, 264 }
 0x149   :  { %8125 = vbcast.lane.b32.xlu1 %v8075_v49, 256  ;;  %v1651_v63 = vmax.f32 %v1501_v59, 0.0  ;;  %v1516_v1 = vadd.f32 %v11546_v60, %v12281_v48 }
 0x14a   :  { %v1510_v2 = vpop.f32.mrf.mxu1 }
 0x14b   :  { %v1511_v6 = vadd.f32 %v12281_v48, %v1510_v2  ;;  %11645 = vmatprep.mubr.msk.f32.mxu0 %vm53_vm0, %v1651_v63  ;;  %v1654_v9 = vmax.f32 %v1516_v1, 0.0 }
 0x14c   :  { %v11549_v10 = vpop.f32.mrf.mxu1  ;;  %11646 = vmatmul.mubr.msk.f32.gmra.mxu0 %vm53_vm0, %v1652_v17  ;;  %5130 = vbcast.lane.b32.xlu0 %v5079_v62, 264 }
 0x14d   :  { %8721 = vbcast.lane.b32.xlu1 %v8683_v58, 256  ;;  %v1653_v12 = vmax.f32 %v1511_v6, 0.0  ;;  %v1526_v13 = vadd.f32 %v11549_v10, %v12281_v48  ;;  %v6215_v58 = vrot.slane %v12277_v46, %v12287_v53 }
 0x14e   :  { %v1520_v14 = vpop.f32.mrf.mxu1 }
 0x14f   :  { %v1521_v15 = vadd.f32 %v12281_v48, %v1520_v14  ;;  %11648 = vmatprep.mubr.msk.f32.mxu0 %vm53_vm0, %v1653_v12  ;;  %v1656_v16 = vmax.f32 %v1526_v13, 0.0 }
 0x150   :  { %v11552_v8 = vpop.f32.mrf.mxu1  ;;  %11649 = vmatmul.mubr.msk.f32.gmra.mxu0 %vm53_vm0, %v1654_v9  ;;  %5158 = vbcast.lane.b32.xlu0 %v5095_v29, 264  ;;  %v6823_v9 = vrot.slane %v12432_v56, %v12300_v4 }
 0x151   :  { %5126 = vbcast.lane.b32.xlu1 %v5079_v62, 256  ;;  %v1655_v18 = vmax.f32 %v1521_v15, 0.0  ;;  %v1536_v37 = vadd.f32 %v11552_v8, %v12281_v48 }
 0x152   :  { %v1530_v19 = vpop.f32.mrf.mxu1 }
 0x153   :  { %v1531_v23 = vadd.f32 %v12281_v48, %v1530_v19  ;;  %11651 = vmatprep.mubr.msk.f32.mxu0 %vm53_vm0, %v1655_v18  ;;  %v1658_v5 = vmax.f32 %v1536_v37, 0.0  ;;  %v6839_v18 = vrot.slane %v12277_v46, %v12300_v4 }
 0x154   :  { %v11555_v24 = vpop.f32.mrf.mxu1  ;;  %11652 = vmatmul.mubr.msk.f32.gmra.mxu0 %vm53_vm0, %v1656_v16  ;;  %5626 = vbcast.lane.b32.xlu0 %v5575_v22, 264 }
 0x155   :  { %5154 = vbcast.lane.b32.xlu1 %v5095_v29, 256  ;;  %v1657_v26 = vmax.f32 %v1531_v23, 0.0  ;;  %v1546_v27 = vadd.f32 %v11555_v24, %v12281_v48 }
 0x156   :  { %v1540_v28 = vpop.f32.mrf.mxu1 }
 0x157   :  { %v1541_v31 = vadd.f32 %v12281_v48, %v1540_v28  ;;  %11654 = vmatprep.mubr.msk.f32.mxu0 %vm53_vm0, %v1657_v26  ;;  %v1660_v32 = vmax.f32 %v1546_v27, 0.0  ;;  %v7447_v28 = vrot.slane %v12432_v56, %v12315_v20 }
 0x158   :  { %v11558_v34 = vpop.f32.mrf.mxu1  ;;  %11655 = vmatmul.mubr.msk.f32.gmra.mxu0 %vm53_vm0, %v1658_v5  ;;  %5654 = vbcast.lane.b32.xlu0 %v5591_v30, 264 }
 0x159   :  { %5622 = vbcast.lane.b32.xlu1 %v5575_v22, 256  ;;  %v1659_v35 = vmax.f32 %v1541_v31, 0.0  ;;  %v1556_v36 = vadd.f32 %v11558_v34, %v12281_v48 }
 0x15a   :  { %v1550_v39 = vpop.f32.mrf.mxu1  ;;  %v12464_v25 = vpop.permute.xlu0 %5116 }
 0x15b   :  { %17380 = vst [vmem:[#allocation12_spill] sm:$0xff] %v12464_v25  ;;  %v12466_v38 = vpop.permute.xlu1 %5112  ;;  %v1551_v43 = vadd.f32 %v12281_v48, %v1550_v39  ;;  %11657 = vmatprep.mubr.msk.f32.mxu0 %vm53_vm0, %v1659_v35  ;;  %v1662_v49 = vmax.f32 %v1556_v36, 0.0 }
 0x15c   :  { %17381 = vst [vmem:[#allocation13_spill] sm:$0xff] %v12466_v38  ;;  %v11561_v50 = vpop.f32.mrf.mxu1  ;;  %11658 = vmatmul.mubr.msk.f32.gmra.mxu0 %vm53_vm0, %v1660_v32  ;;  %6250 = vbcast.lane.b32.xlu0 %v6199_v33, 264 }
 0x15d   :  { %5650 = vbcast.lane.b32.xlu1 %v5591_v30, 256  ;;  %v1661_v51 = vmax.f32 %v1551_v43, 0.0  ;;  %v1566_v52 = vadd.f32 %v11561_v50, %v12281_v48  ;;  %v7463_v43 = vrot.slane %v12277_v46, %v12315_v20 }
 0x15e   :  { %v1560_v54 = vpop.f32.mrf.mxu1  ;;  %v12474_v55 = vpop.permute.xlu0 %5144 }
 0x15f   :  { %17382 = vst [vmem:[#allocation14_spill] sm:$0xff] %v12474_v55  ;;  %v12476_v57 = vpop.permute.xlu1 %5140  ;;  %v1561_v59 = vadd.f32 %v12281_v48, %v1560_v54  ;;  %11660 = vmatprep.mubr.msk.f32.mxu0 %vm53_vm0, %v1661_v51  ;;  %v1664_v17 = vmax.f32 %v1566_v52, 0.0 }
 0x160   :  { %17383 = vst [vmem:[#allocation15_spill] sm:$0xff] %v12476_v57  ;;  %v11564_v60 = vpop.f32.mrf.mxu1  ;;  %11661 = vmatmul.mubr.msk.f32.gmra.mxu0 %vm53_vm0, %v1662_v49  ;;  %6278 = vbcast.lane.b32.xlu0 %v6215_v58, 264 }
 0x161   :  { %6246 = vbcast.lane.b32.xlu1 %v6199_v33, 256  ;;  %v1663_v62 = vmax.f32 %v1561_v59, 0.0  ;;  %v1576_v63 = vadd.f32 %v11564_v60, %v12281_v48  ;;  %v12537_v60 = vpop.f32.mrf.mxu0 }
 0x162   :  { %v1570_v1 = vpop.f32.mrf.mxu1  ;;  %v12484_v2 = vpop.permute.xlu0 %5612 }
 0x163   :  { %17384 = vst [vmem:[#allocation16_spill] sm:$0xff] %v12484_v2  ;;  %v12486_v6 = vpop.permute.xlu1 %5608  ;;  %v1571_v10 = vadd.f32 %v12281_v48, %v1570_v1  ;;  %11663 = vmatprep.mubr.msk.f32.mxu0 %vm53_vm0, %v1663_v62  ;;  %v1666_v12 = vmax.f32 %v1576_v63, 0.0  ;;  %v5075_v1 = vrot.slane %v12537_v60, %v11970_v11 }
 0x164   :  { %17385 = vst [vmem:[#allocation17_spill] sm:$0xff] %v12486_v6  ;;  %v11567_v13 = vpop.f32.mrf.mxu1  ;;  %11664 = vmatmul.mubr.msk.f32.gmra.mxu0 %vm53_vm0, %v1664_v17  ;;  %6874 = vbcast.lane.b32.xlu0 %v6823_v9, 264  ;;  %v8087_v17 = vrot.slane %v12277_v46, %v12330_v40 }
 0x165   :  { %6274 = vbcast.lane.b32.xlu1 %v6215_v58, 256  ;;  %v1665_v14 = vmax.f32 %v1571_v10, 0.0  ;;  %v1586_v29 = vadd.f32 %v11567_v13, %v12281_v48  ;;  %v8071_v58 = vrot.slane %v12432_v56, %v12330_v40 }
 0x166   :  { %v1580_v15 = vpop.f32.mrf.mxu1  ;;  %v12494_v16 = vpop.permute.xlu0 %5640 }
 0x167   :  { %17386 = vst [vmem:[#allocation18_spill] sm:$0xff] %v12494_v16  ;;  %v12496_v8 = vpop.permute.xlu1 %5636  ;;  %v1581_v37 = vadd.f32 %v12281_v48, %v1580_v15  ;;  %11666 = vmatprep.mubr.msk.f32.mxu0 %vm53_vm0, %v1665_v14  ;;  %v1668_v19 = vmax.f32 %v1586_v29, 0.0  ;;  %v5571_v29 = vrot.slane %v12537_v60, %v12275_v45 }
 0x168   :  { %17387 = vst [vmem:[#allocation19_spill] sm:$0xff] %v12496_v8  ;;  %v11570_v22 = vpop.f32.mrf.mxu1  ;;  %11667 = vmatmul.mubr.msk.f32.gmra.mxu0 %vm53_vm0, %v1666_v12  ;;  %6902 = vbcast.lane.b32.xlu0 %v6839_v18, 264  ;;  %v5091_v12 = vrot.slane %v12279_v47, %v11970_v11 }
 0x169   :  { %6870 = vbcast.lane.b32.xlu1 %v6823_v9, 256  ;;  %v1667_v23 = vmax.f32 %v1581_v37, 0.0  ;;  %v1596_v5 = vadd.f32 %v11570_v22, %v12281_v48  ;;  %v5587_v37 = vrot.slane %v12279_v47, %v12275_v45 }
 0x16a   :  { %v1590_v24 = vpop.f32.mrf.mxu1  ;;  %v12504_v26 = vpop.permute.xlu0 %6236 }
 0x16b   :  { %17388 = vst [vmem:[#allocation20_spill] sm:$0xff] %v12504_v26  ;;  %v12506_v27 = vpop.permute.xlu1 %6232  ;;  %v1591_v30 = vadd.f32 %v12281_v48, %v1590_v24  ;;  %11669 = vmatprep.mubr.msk.f32.mxu0 %vm53_vm0, %v1667_v23  ;;  %v1670_v31 = vmax.f32 %v1596_v5, 0.0  ;;  %v6195_v23 = vrot.slane %v12537_v60, %v12287_v53 }
 0x16c   :  { %17389 = vst [vmem:[#allocation21_spill] sm:$0xff] %v12506_v27  ;;  %v11573_v32 = vpop.f32.mrf.mxu1  ;;  %11670 = vmatmul.mubr.msk.f32.gmra.mxu0 %vm53_vm0, %v1668_v19  ;;  %7498 = vbcast.lane.b32.xlu0 %v7447_v28, 264 }
 0x16d   :  { %6898 = vbcast.lane.b32.xlu1 %v6839_v18, 256  ;;  %v1669_v34 = vmax.f32 %v1591_v30, 0.0  ;;  %v1606_v35 = vadd.f32 %v11573_v32, %v12281_v48  ;;  %v6819_v32 = vrot.slane %v12537_v60, %v12300_v4 }
 0x16e   :  { %v1600_v36 = vpop.f32.mrf.mxu1  ;;  %v12514_v39 = vpop.permute.xlu0 %6264 }
 0x16f   :  { %17390 = vst [vmem:[#allocation22_spill] sm:$0xff] %v12514_v39  ;;  %v12516_v33 = vpop.permute.xlu1 %6260  ;;  %v1601_v49 = vadd.f32 %v12281_v48, %v1600_v36  ;;  %11672 = vmatprep.mubr.msk.f32.mxu0 %vm53_vm0, %v1669_v34  ;;  %v1672_v50 = vmax.f32 %v1606_v35, 0.0  ;;  %v6835_v36 = vrot.slane %v12279_v47, %v12300_v4 }
 0x170   :  { %17391 = vst [vmem:[#allocation23_spill] sm:$0xff] %v12516_v33  ;;  %11673 = vmatmul.mubr.msk.f32.gmra.mxu0 %vm53_vm0, %v1670_v31  ;;  %7526 = vbcast.lane.b32.xlu0 %v7463_v43, 264 }
 0x171   :  { %7494 = vbcast.lane.b32.xlu1 %v7447_v28, 256  ;;  %v1671_v51 = vmax.f32 %v1601_v49, 0.0  ;;  %v6211_v28 = vrot.slane %v12279_v47, %v12287_v53 }
 0x172   :  { %v12523_v52 = vpop.permute.xlu0 %6860 }
 0x173   :  { %17392 = vst [vmem:[#allocation24_spill] sm:$0xff] %v12523_v52  ;;  %v12525_v54 = vpop.permute.xlu1 %6856  ;;  %11675 = vmatprep.mubr.msk.f32.mxu0 %vm53_vm0, %v1671_v51 }
 0x174   :  { %17393 = vst [vmem:[#allocation25_spill] sm:$0xff] %v12525_v54  ;;  %11676 = vmatmul.mubr.msk.f32.gmra.mxu0 %vm53_vm0, %v1672_v50  ;;  %8122 = vbcast.lane.b32.xlu0 %v8071_v58, 264  ;;  %v7443_v50 = vrot.slane %v12537_v60, %v12315_v20 }
 0x175   :  { %7522 = vbcast.lane.b32.xlu1 %v7463_v43, 256 }
 0x176   :  { %v12531_v48 = vpop.permute.xlu0 %6888 }
 0x177   :  { %17394 = vst [vmem:[#allocation26_spill] sm:$0xff] %v12531_v48  ;;  %v12533_v59 = vpop.permute.xlu1 %6884 }
 0x178   :  { %17395 = vst [vmem:[#allocation27_spill] sm:$0xff] %v12533_v59  ;;  %8150 = vbcast.lane.b32.xlu0 %v8087_v17, 264  ;;  %v8699_v59 = vrot.slane %v12272_v44, %v12345_v21 }
 0x179   :  { %8118 = vbcast.lane.b32.xlu1 %v8071_v58, 256 }
 0x17a   :  { %v12539_v62 = vpop.permute.xlu0 %7484 }
 0x17b   :  { %17396 = vst [vmem:[#allocation28_spill] sm:$0xff] %v12539_v62  ;;  %v12541_v63 = vpop.permute.xlu1 %7480 }
 0x17c   :  { %17397 = vst [vmem:[#allocation29_spill] sm:$0xff] %v12541_v63  ;;  %5123 = vbcast.lane.b32.xlu0 %v5075_v1, 264 }
 0x17d   :  { %8146 = vbcast.lane.b32.xlu1 %v8087_v17, 256  ;;  %v7459_v17 = vrot.slane %v12279_v47, %v12315_v20 }
 0x17e   :  { %v12545_v9 = vpop.permute.xlu0 %7512 }
 0x17f   :  { %17398 = vst [vmem:[#allocation30_spill] sm:$0xff] %v12545_v9  ;;  %v12547_v10 = vpop.permute.xlu1 %7508 }
 0x180   :  { %17399 = vst [vmem:[#allocation31_spill] sm:$0xff] %v12547_v10  ;;  %5151 = vbcast.lane.b32.xlu0 %v5091_v12, 264 }
 0x181   :  { %5119 = vbcast.lane.b32.xlu1 %v5075_v1, 256 }
 0x182   :  { %v12551_v13 = vpop.permute.xlu0 %8108 }
 0x183   :  { %17400 = vst [vmem:[#allocation32_spill] sm:$0xff] %v12551_v13  ;;  %v12553_v14 = vpop.permute.xlu1 %8104 }
 0x184   :  { %17401 = vst [vmem:[#allocation33_spill] sm:$0xff] %v12553_v14  ;;  %5619 = vbcast.lane.b32.xlu0 %v5571_v29, 264 }
 0x185   :  { %5147 = vbcast.lane.b32.xlu1 %v5091_v12, 256 }
 0x186   :  { %v12557_v15 = vpop.permute.xlu0 %8136 }
 0x187   :  { %17402 = vst [vmem:[#allocation34_spill] sm:$0xff] %v12557_v15  ;;  %v12559_v18 = vpop.permute.xlu1 %8132 }
 0x188   :  { %17403 = vst [vmem:[#allocation35_spill] sm:$0xff] %v12559_v18  ;;  %5647 = vbcast.lane.b32.xlu0 %v5587_v37, 264 }
 0x189   :  { %5615 = vbcast.lane.b32.xlu1 %v5571_v29, 256  ;;  %v8067_v29 = vrot.slane %v12537_v60, %v12330_v40 }
 0x18a   :  { %v12565_v22 = vpop.permute.xlu0 %5105 }
 0x18b   :  { %v12563_v19 = vpop.permute.xlu1 %8728  ;;  %17405 = vst [vmem:[#allocation37_spill] sm:$0xff] %v12565_v22 }
 0x18c   :  { %17404 = vst [vmem:[#allocation36_spill] sm:$0xff] %v12563_v19  ;;  %6243 = vbcast.lane.b32.xlu0 %v6195_v23, 264 }
 0x18d   :  { %5643 = vbcast.lane.b32.xlu1 %v5587_v37, 256 }
 0x18e   :  { %v12571_v24 = vpop.permute.xlu0 %5137 }
 0x18f   :  { %v12569_v5 = vpop.permute.xlu1 %5109  ;;  %17407 = vst [vmem:[#allocation39_spill] sm:$0xff] %v12571_v24 }
 0x190   :  { %17406 = vst [vmem:[#allocation38_spill] sm:$0xff] %v12569_v5  ;;  %6271 = vbcast.lane.b32.xlu0 %v6211_v28, 264 }
 0x191   :  { %6239 = vbcast.lane.b32.xlu1 %v6195_v23, 256 }
 0x192   :  { %v12577_v31 = vpop.permute.xlu0 %5605 }
 0x193   :  { %v12575_v30 = vpop.permute.xlu1 %5133  ;;  %17409 = vst [vmem:[#allocation41_spill] sm:$0xff] %v12577_v31 }
 0x194   :  { %17408 = vst [vmem:[#allocation40_spill] sm:$0xff] %v12575_v30  ;;  %6867 = vbcast.lane.b32.xlu0 %v6819_v32, 264 }
 0x195   :  { %6267 = vbcast.lane.b32.xlu1 %v6211_v28, 256  ;;  %v8083_v28 = vrot.slane %v12279_v47, %v12330_v40 }
 0x196   :  { %v12583_v35 = vpop.permute.xlu0 %5633 }
 0x197   :  { %v12581_v34 = vpop.permute.xlu1 %5601  ;;  %17411 = vst [vmem:[#allocation43_spill] sm:$0xff] %v12583_v35 }
 0x198   :  { %17410 = vst [vmem:[#allocation42_spill] sm:$0xff] %v12581_v34  ;;  %6895 = vbcast.lane.b32.xlu0 %v6835_v36, 264 }
 0x199   :  { %6863 = vbcast.lane.b32.xlu1 %v6819_v32, 256 }
 0x19a   :  { %v12589_v49 = vpop.permute.xlu0 %6229 }
 0x19b   :  { %v12587_v43 = vpop.permute.xlu1 %5629  ;;  %17413 = vst [vmem:[#allocation45_spill] sm:$0xff] %v12589_v49 }
 0x19c   :  { %17412 = vst [vmem:[#allocation44_spill] sm:$0xff] %v12587_v43  ;;  %7491 = vbcast.lane.b32.xlu0 %v7443_v50, 264 }
 0x19d   :  { %6891 = vbcast.lane.b32.xlu1 %v6835_v36, 256 }
 0x19e   :  { %v12595_v58 = vpop.permute.xlu0 %6257 }
 0x19f   :  { %v12593_v51 = vpop.permute.xlu1 %6225  ;;  %17415 = vst [vmem:[#allocation47_spill] sm:$0xff] %v12595_v58 }
 0x1a0   :  { %17414 = vst [vmem:[#allocation46_spill] sm:$0xff] %v12593_v51  ;;  %7519 = vbcast.lane.b32.xlu0 %v7459_v17, 264 }
 0x1a1   :  { %7487 = vbcast.lane.b32.xlu1 %v7443_v50, 256 }
 0x1a2   :  { %v12601_v12 = vpop.permute.xlu0 %6853 }
 0x1a3   :  { %v12599_v1 = vpop.permute.xlu1 %6253  ;;  %17417 = vst [vmem:[#allocation49_spill] sm:$0xff] %v12601_v12 }
 0x1a4   :  { %17416 = vst [vmem:[#allocation48_spill] sm:$0xff] %v12599_v1  ;;  %8115 = vbcast.lane.b32.xlu0 %v8067_v29, 264 }
 0x1a5   :  { %7515 = vbcast.lane.b32.xlu1 %v7459_v17, 256  ;;  %v8691_v17 = vrot.slane %v12537_v60, %v12345_v21 }
 0x1a6   :  { %v12607_v23 = vpop.permute.xlu0 %6881 }
 0x1a7   :  { %v12605_v37 = vpop.permute.xlu1 %6849  ;;  %17419 = vst [vmem:[#allocation51_spill] sm:$0xff] %v12607_v23 }
 0x1a8   :  { %17418 = vst [vmem:[#allocation50_spill] sm:$0xff] %v12605_v37  ;;  %8143 = vbcast.lane.b32.xlu0 %v8083_v28, 264 }
 0x1a9   :  { %8111 = vbcast.lane.b32.xlu1 %v8067_v29, 256  ;;  %v8695_v29 = vrot.slane %v12432_v56, %v12345_v21 }
 0x1aa   :  { %v12613_v36 = vpop.permute.xlu0 %7477 }
 0x1ab   :  { %v12611_v32 = vpop.permute.xlu1 %6877  ;;  %17421 = vst [vmem:[#allocation53_spill] sm:$0xff] %v12613_v36 }
 0x1ac   :  { %17420 = vst [vmem:[#allocation52_spill] sm:$0xff] %v12611_v32  ;;  %8732 = vbcast.lane.b32.xlu0 %v12357_v7, 264  ;;  %v12667_v32 = vsub.s32 7, %v11960_v3 }
 0x1ad   :  { %8139 = vbcast.lane.b32.xlu1 %v8083_v28, 256 }
 0x1ae   :  { %v12618_v0 = vpop.permute.xlu0 %7505 }
 0x1af   :  { %v12616_v50 = vpop.permute.xlu1 %7473  ;;  %17423 = vst [vmem:[#allocation55_spill] sm:$0xff] %v12618_v0 }
 0x1b0   :  { %17422 = vst [vmem:[#allocation54_spill] sm:$0xff] %v12616_v50  ;;  %8739 = vbcast.lane.b32.xlu0 %v8691_v17, 264 }
 0x1b1   :  { %8735 = vbcast.lane.b32.xlu1 %v8691_v17, 256 }
 0x1b2   :  { %v12624_v10 = vpop.permute.xlu0 %8101 }
 0x1b3   :  { %v12622_v18 = vpop.permute.xlu1 %7501  ;;  %17425 = vst [vmem:[#allocation57_spill] sm:$0xff] %v12624_v10 }
 0x1b4   :  { %17424 = vst [vmem:[#allocation56_spill] sm:$0xff] %v12622_v18  ;;  %8746 = vbcast.lane.b32.xlu0 %v8695_v29, 264 }
 0x1b5   :  { %8742 = vbcast.lane.b32.xlu1 %v8695_v29, 256  ;;  %v8703_v29 = vrot.slane %v12268_v42, %v12345_v21 }
 0x1b6   :  { %v12630_v28 = vpop.permute.xlu0 %8129 }
 0x1b7   :  { %v12628_v7 = vpop.permute.xlu1 %8097  ;;  %17427 = vst [vmem:[#allocation59_spill] sm:$0xff] %v12630_v28 }
 0x1b8   :  { %17426 = vst [vmem:[#allocation58_spill] sm:$0xff] %v12628_v7  ;;  %v12634_v15 = vpop.f32.mrf.mxu0  ;;  %8753 = vbcast.lane.b32.xlu0 %v8699_v59, 264  ;;  %v12801_v7 = vld [vmem:[#allocation5 + $0x50] ss:$0 sm:$0xff] }
 0x1b9   :  { %8749 = vbcast.lane.b32.xlu1 %v8699_v59, 256  ;;  %v8707_v59 = vrot.slane %v12279_v47, %v12345_v21 }
 0x1ba   :  { %v12636_v17 = vpop.f32.mrf.mxu0  ;;  %v12640_v9 = vpop.permute.xlu0 %8725 }
 0x1bb   :  { %v12638_v33 = vpop.permute.xlu1 %8125  ;;  %17429 = vst [vmem:[#allocation61_spill] sm:$0xff] %v12640_v9 }
 0x1bc   :  { %17428 = vst [vmem:[#allocation60_spill] sm:$0xff] %v12638_v33  ;;  %v12644_v8 = vpop.f32.mrf.mxu0  ;;  %8760 = vbcast.lane.b32.xlu0 %v8703_v29, 264 }
 0x1bd   :  { %8756 = vbcast.lane.b32.xlu1 %v8703_v29, 256  ;;  %v8711_v29 = vrot.slane %v12277_v46, %v12345_v21 }
 0x1be   :  { %v12646_v48 = vpop.f32.mrf.mxu0  ;;  %v12650_v39 = vpop.permute.xlu0 %5130 }
 0x1bf   :  { %v12648_v57 = vpop.permute.xlu1 %8721  ;;  %17431 = vst [vmem:[#allocation63_spill] sm:$0xff] %v12650_v39 }
 0x1c0   :  { %17430 = vst [vmem:[#allocation62_spill] sm:$0xff] %v12648_v57  ;;  %v12654_v16 = vpop.f32.mrf.mxu0  ;;  %8767 = vbcast.lane.b32.xlu0 %v8707_v59, 264 }
 0x1c1   :  { %8763 = vbcast.lane.b32.xlu1 %v8707_v59, 256 }
 0x1c2   :  { %v12656_v55 = vpop.f32.mrf.mxu0  ;;  %v12658_v33 = vpop.permute.xlu0 %5158 }
 0x1c3   :  { %17432 = vst [vmem:[#allocation64_spill] sm:$0xff] %v12658_v33  ;;  %v12660_v18 = vpop.permute.xlu1 %5126  ;;  %v9307_v33 = vrot.slane %v12351_v61, %v12667_v32 }
 0x1c4   :  { %17433 = vst [vmem:[#allocation65_spill] sm:$0xff] %v12660_v18  ;;  %v12664_v28 = vpop.f32.mrf.mxu0  ;;  %8774 = vbcast.lane.b32.xlu0 %v8711_v29, 264 }
 0x1c5   :  { %8770 = vbcast.lane.b32.xlu1 %v8711_v29, 256  ;;  %v9311_v29 = vrot.slane %v12264_v41, %v12667_v32 }
 0x1c6   :  { %v12669_v0 = vpop.f32.mrf.mxu0  ;;  %v12671_v1 = vpop.permute.xlu0 %5626 }
 0x1c7   :  { %17434 = vst [vmem:[#allocation66_spill] sm:$0xff] %v12671_v1  ;;  %v12673_v59 = vpop.permute.xlu1 %5154 }
 0x1c8   :  { %17435 = vst [vmem:[#allocation67_spill] sm:$0xff] %v12673_v59  ;;  %v12677_v23 = vpop.f32.mrf.mxu0  ;;  %9349 = vbcast.lane.b32.xlu0 %v9307_v33, 264 }
 0x1c9   :  { %9345 = vbcast.lane.b32.xlu1 %v9307_v33, 256  ;;  %v9315_v33 = vrot.slane %v12537_v60, %v12667_v32 }
 0x1ca   :  { %v12679_v43 = vpop.f32.mrf.mxu0  ;;  %v12681_v30 = vpop.permute.xlu0 %5654 }
 0x1cb   :  { %17436 = vst [vmem:[#allocation68_spill] sm:$0xff] %v12681_v30  ;;  %v12683_v58 = vpop.permute.xlu1 %5622 }
 0x1cc   :  { %17437 = vst [vmem:[#allocation69_spill] sm:$0xff] %v12683_v58  ;;  %v12687_v35 = vpop.f32.mrf.mxu0  ;;  %9356 = vbcast.lane.b32.xlu0 %v9311_v29, 264 }
 0x1cd   :  { %9352 = vbcast.lane.b32.xlu1 %v9311_v29, 256  ;;  %v9319_v29 = vrot.slane %v12432_v56, %v12667_v32 }
 0x1ce   :  { %v12689_v59 = vpop.f32.mrf.mxu0  ;;  %v12691_v61 = vpop.permute.xlu0 %6250 }
 0x1cf   :  { %17438 = vst [vmem:[#allocation70_spill] sm:$0xff] %v12691_v61  ;;  %v12693_v24 = vpop.permute.xlu1 %5650 }
 0x1d0   :  { %17439 = vst [vmem:[#allocation71_spill] sm:$0xff] %v12693_v24  ;;  %v12697_v18 = vpop.f32.mrf.mxu0  ;;  %9363 = vbcast.lane.b32.xlu0 %v9315_v33, 264 }
 0x1d1   :  { %9359 = vbcast.lane.b32.xlu1 %v9315_v33, 256  ;;  %v9323_v33 = vrot.slane %v12272_v44, %v12667_v32 }
 0x1d2   :  { %v12699_v30 = vpop.f32.mrf.mxu0  ;;  %v12701_v41 = vpop.permute.xlu0 %6278 }
 0x1d3   :  { %17440 = vst [vmem:[#allocation72_spill] sm:$0xff] %v12701_v41  ;;  %v12703_v58 = vpop.permute.xlu1 %6246 }
 0x1d4   :  { %17441 = vst [vmem:[#allocation73_spill] sm:$0xff] %v12703_v58  ;;  %v12707_v1 = vpop.f32.mrf.mxu0  ;;  %9370 = vbcast.lane.b32.xlu0 %v9319_v29, 264 }
 0x1d5   :  { %9366 = vbcast.lane.b32.xlu1 %v9319_v29, 256  ;;  %v9327_v29 = vrot.slane %v12268_v42, %v12667_v32 }
 0x1d6   :  { %v12709_v24 = vpop.f32.mrf.mxu0  ;;  %v12711_v60 = vpop.permute.xlu0 %6874 }
 0x1d7   :  { %17442 = vst [vmem:[#allocation74_spill] sm:$0xff] %v12711_v60  ;;  %v12713_v61 = vpop.permute.xlu1 %6274 }
 0x1d8   :  { %17443 = vst [vmem:[#allocation75_spill] sm:$0xff] %v12713_v61  ;;  %v12717_v39 = vpop.f32.mrf.mxu0  ;;  %9377 = vbcast.lane.b32.xlu0 %v9323_v33, 264 }
 0x1d9   :  { %9373 = vbcast.lane.b32.xlu1 %v9323_v33, 256  ;;  %v9331_v33 = vrot.slane %v12279_v47, %v12667_v32 }
 0x1da   :  { %v12719_v41 = vpop.f32.mrf.mxu0  ;;  %v12721_v56 = vpop.permute.xlu0 %6902 }
 0x1db   :  { %17444 = vst [vmem:[#allocation76_spill] sm:$0xff] %v12721_v56  ;;  %v12723_v58 = vpop.permute.xlu1 %6870 }
 0x1dc   :  { %17445 = vst [vmem:[#allocation77_spill] sm:$0xff] %v12723_v58  ;;  %v12727_v19 = vpop.f32.mrf.mxu0  ;;  %9384 = vbcast.lane.b32.xlu0 %v9327_v29, 264 }
 0x1dd   :  { %9380 = vbcast.lane.b32.xlu1 %v9327_v29, 256  ;;  %v9335_v29 = vrot.slane %v12277_v46, %v12667_v32 }
 0x1de   :  { %v12729_v61 = vpop.f32.mrf.mxu0  ;;  %v12731_v44 = vpop.permute.xlu0 %7498 }
 0x1df   :  { %17446 = vst [vmem:[#allocation78_spill] sm:$0xff] %v12731_v44  ;;  %v12733_v60 = vpop.permute.xlu1 %6898 }
 0x1e0   :  { %17447 = vst [vmem:[#allocation79_spill] sm:$0xff] %v12733_v60  ;;  %v12737_v14 = vpop.f32.mrf.mxu0  ;;  %9391 = vbcast.lane.b32.xlu0 %v9331_v33, 264  ;;  %v11301_v60 = vld [vmem:[#allocation5 + $0x80] ss:$0 sm:$0xff] }
 0x1e1   :  { %9387 = vbcast.lane.b32.xlu1 %v9331_v33, 256 }
 0x1e2   :  { %v12739_v56 = vpop.f32.mrf.mxu0  ;;  %v12741_v42 = vpop.permute.xlu0 %7526 }
 0x1e3   :  { %17448 = vst [vmem:[#allocation80_spill] sm:$0xff] %v12741_v42  ;;  %v12743_v58 = vpop.permute.xlu1 %7494 }
 0x1e4   :  { %17449 = vst [vmem:[#allocation81_spill] sm:$0xff] %v12743_v58  ;;  %v12747_v63 = vpop.f32.mrf.mxu0  ;;  %9398 = vbcast.lane.b32.xlu0 %v9335_v29, 264 }
 0x1e5   :  { %9394 = vbcast.lane.b32.xlu1 %v9335_v29, 256 }
 0x1e6   :  { %v12749_v44 = vpop.f32.mrf.mxu0  ;;  %v12751_v47 = vpop.permute.xlu0 %8122 }
 0x1e7   :  { %17450 = vst [vmem:[#allocation82_spill] sm:$0xff] %v12751_v47  ;;  %v12753_v54 = vpop.permute.xlu1 %7522 }
 0x1e8   :  { %17451 = vst [vmem:[#allocation83_spill] sm:$0xff] %v12753_v54  ;;  %v12755_v33 = vpop.f32.mrf.mxu0  ;;  %9682 = vbcast.lane.b32.xlu0 %v11301_v60, 264 }
 0x1e9   :  { %9678 = vbcast.lane.b32.xlu1 %v11301_v60, 256 }
 0x1ea   :  { %v12757_v42 = vpop.f32.mrf.mxu0  ;;  %v12759_v58 = vpop.permute.xlu0 %8150 }
 0x1eb   :  { %17452 = vst [vmem:[#allocation84_spill] sm:$0xff] %v12759_v58  ;;  %v12761_v46 = vpop.permute.xlu1 %8118 }
 0x1ec   :  { %17453 = vst [vmem:[#allocation85_spill] sm:$0xff] %v12761_v46  ;;  %v12763_v13 = vpop.f32.mrf.mxu0  ;;  %v12783_v46 = vld [vmem:[#allocation5 + $0x48] ss:$0 sm:$0xff] }
 0x1ed   :  { %v1941_v57 = vadd.f32 %v12783_v46, %v12636_v17  ;;  %v1961_v9 = vadd.f32 %v12783_v46, %v12656_v55 }
 0x1ee   :  { %v12765_v29 = vpop.f32.mrf.mxu0  ;;  %v12767_v62 = vpop.permute.xlu0 %5123 }
 0x1ef   :  { %17454 = vst [vmem:[#allocation86_spill] sm:$0xff] %v12767_v62  ;;  %v12769_v27 = vpop.permute.xlu1 %8146  ;;  %v2259_v10 = vmax.f32 %v1941_v57, 0.0  ;;  %v2263_v37 = vmax.f32 %v1961_v9, 0.0 }
 0x1f0   :  { %17455 = vst [vmem:[#allocation87_spill] sm:$0xff] %v12769_v27  ;;  %v12771_v47 = vpop.f32.mrf.mxu0  ;;  %v1946_v27 = vadd.f32 %v12634_v15, %v12783_v46 }
 0x1f1   :  { %v2329_v55 = vmul.f32 %v12801_v7, %v2259_v10 }
 0x1f2   :  { %v12773_v54 = vpop.f32.mrf.mxu0  ;;  %v12775_v52 = vpop.permute.xlu0 %5151 }
 0x1f3   :  { %17456 = vst [vmem:[#allocation88_spill] sm:$0xff] %v12775_v52  ;;  %v12779_v6 = vpop.permute.xlu1 %5119 }
 0x1f4   :  { %v12777_v60 = vpop.f32.mrf.mxu0  ;;  %17457 = vst [vmem:[#allocation89_spill] sm:$0xff] %v12779_v6  ;;  %v2260_v6 = vmax.f32 %v1946_v27, 0.0  ;;  %v1951_v27 = vadd.f32 %v12783_v46, %v12646_v48  ;;  %v2333_v48 = vmul.f32 %v12801_v7, %v2263_v37 }
 0x1f6   :  { %v12781_v58 = vpop.f32.mrf.mxu0  ;;  %v12787_v26 = vpop.permute.xlu0 %5619 }
 0x1f7   :  { %17458 = vst [vmem:[#allocation90_spill] sm:$0xff] %v12787_v26  ;;  %v12793_v2 = vpop.permute.xlu1 %5147  ;;  %v1956_v26 = vadd.f32 %v12644_v8, %v12783_v46  ;;  %v1971_v8 = vadd.f32 %v12783_v46, %v12669_v0  ;;  %v1981_v0 = vadd.f32 %v12783_v46, %v12679_v43  ;;  %v2406_v43 = vsel %vm2393_vm1, %v2333_v48, 0.0 }
 0x1f8   :  { %v12785_v38 = vpop.f32.mrf.mxu0  ;;  %17459 = vst [vmem:[#allocation91_spill] sm:$0xff] %v12793_v2  ;;  %v2330_v2 = vmul.f32 %v12801_v7, %v2260_v6  ;;  %v2261_v6 = vmax.f32 %v1951_v27, 0.0 }
 0x1f9   :  { %v2265_v9 = vmax.f32 %v1971_v8, 0.0  ;;  %v1991_v8 = vadd.f32 %v12783_v46, %v12689_v59 }
 0x1fa   :  { %v12789_v62 = vpop.f32.mrf.mxu0  ;;  %v12797_v25 = vpop.permute.xlu0 %5647  ;;  %v2331_v27 = vmul.f32 %v12801_v7, %v2261_v6 }
 0x1fb   :  { %17460 = vst [vmem:[#allocation92_spill] sm:$0xff] %v12797_v25  ;;  %v12807_v50 = vpop.permute.xlu1 %5615  ;;  %v2262_v25 = vmax.f32 %v1956_v26, 0.0  ;;  %v1966_v26 = vadd.f32 %v12654_v16, %v12783_v46  ;;  %v2335_v37 = vmul.f32 %v12801_v7, %v2265_v9 }
 0x1fc   :  { %v12795_v52 = vpop.f32.mrf.mxu0  ;;  %17461 = vst [vmem:[#allocation93_spill] sm:$0xff] %v12807_v50  ;;  %v2397_v50 = vsel %vm2393_vm1, %v2330_v2, 0.0  ;;  %v1976_v2 = vadd.f32 %v12664_v28, %v12783_v46 }
 0x1fd   :  { %v2332_v57 = vmul.f32 %v12801_v7, %v2262_v25  ;;  %v2394_v25 = vsel %vm2393_vm1, %v2329_v55, 0.0  ;;  %v2412_v59 = vsel %vm2393_vm1, %v2335_v37, 0.0 }
 0x1fe   :  { %v12809_v15 = vpop.f32.mrf.mxu0  ;;  %v12814_v17 = vpop.permute.xlu0 %6243  ;;  %v2266_v55 = vmax.f32 %v1976_v2, 0.0 }
 0x1ff   :  { %17462 = vst [vmem:[#allocation94_spill] sm:$0xff] %v12814_v17  ;;  %v12822_v51 = vpop.permute.xlu1 %5643  ;;  %v2403_v16 = vsel %vm2393_vm1, %v2332_v57, 0.0  ;;  %v2400_v57 = vsel %vm2393_vm1, %v2331_v27, 0.0  ;;  %v1996_v27 = vadd.f32 %v12687_v35, %v12783_v46 }
 0x200   :  { %v12818_v36 = vpop.f32.mrf.mxu0  ;;  %17463 = vst [vmem:[#allocation95_spill] sm:$0xff] %v12822_v51  ;;  %v2264_v51 = vmax.f32 %v1966_v26, 0.0  ;;  %v1986_v26 = vadd.f32 %v12677_v23, %v12783_v46 }
 0x202   :  { %v12830_v17 = vpop.f32.mrf.mxu0  ;;  %v12832_v10 = vpop.permute.xlu0 %6271  ;;  %v2334_v6 = vmul.f32 %v12801_v7, %v2264_v51  ;;  %v2336_v51 = vmul.f32 %v12801_v7, %v2266_v55  ;;  %v2268_v23 = vmax.f32 %v1986_v26, 0.0 }
 0x203   :  { %17464 = vst [vmem:[#allocation96_spill] sm:$0xff] %v12832_v10  ;;  %v12843_v10 = vpop.permute.xlu1 %6239 }
 0x204   :  { %17465 = vst [vmem:[#allocation97_spill] sm:$0xff] %v12843_v10  ;;  %v12845_v28 = vpop.f32.mrf.mxu0  ;;  %v2415_v26 = vsel %vm2393_vm1, %v2336_v51, 0.0  ;;  %v2338_v35 = vmul.f32 %v12801_v7, %v2268_v23 }
 0x206   :  { %v12851_v9 = vpop.permute.xlu0 %6867  ;;  %v12857_v2 = vpop.f32.mrf.mxu0 }
 0x207   :  { %2398 = vadd.xlane.f32.xlu0 %v2397_v50  ;;  %v2267_v50 = vmax.f32 %v1981_v0, 0.0  ;;  %17466 = vst [vmem:[#allocation98_spill] sm:$0xff] %v12851_v9  ;;  %v2269_v0 = vmax.f32 %v1991_v8, 0.0 }
 0x209   :  { %v2337_v48 = vmul.f32 %v12801_v7, %v2267_v50  ;;  %v2409_v50 = vsel %vm2393_vm1, %v2334_v6, 0.0  ;;  %v2006_v6 = vadd.f32 %v12697_v18, %v12783_v46 }
 0x20a   :  { %v12871_v55 = vpop.permute.xlu0 %6895 }
 0x20b   :  { %2395 = vadd.xlane.f32.xlu0 %v2394_v25  ;;  %v2001_v25 = vadd.f32 %v12783_v46, %v12699_v30  ;;  %v2418_v8 = vsel %vm2393_vm1, %v2337_v48, 0.0  ;;  %v2011_v30 = vadd.f32 %v12783_v46, %v12709_v24  ;;  %17468 = vst [vmem:[#allocation100_spill] sm:$0xff] %v12871_v55  ;;  %v2021_v24 = vadd.f32 %v12783_v46, %v12719_v41 }
 0x20c   :  { %v2272_v18 = vmax.f32 %v2006_v6, 0.0 }
 0x20d   :  { %2404 = vadd.xlane.f32.xlu1 %v2403_v16  ;;  %v12860_v16 = vpop.permute.xlu1 %6267  ;;  %v2271_v37 = vmax.f32 %v2001_v25, 0.0  ;;  %v2273_v48 = vmax.f32 %v2011_v30, 0.0 }
 0x20e   :  { %17467 = vst [vmem:[#allocation99_spill] sm:$0xff] %v12860_v16 }
 0x20f   :  { %2407 = vadd.xlane.f32.xlu0 %v2406_v43  ;;  %v2339_v43 = vmul.f32 %v12801_v7, %v2269_v0  ;;  %v2341_v0 = vmul.f32 %v12801_v7, %v2271_v37  ;;  %v2421_v37 = vsel %vm2393_vm1, %v2338_v35, 0.0  ;;  %v2343_v41 = vmul.f32 %v12801_v7, %v2273_v48 }
 0x210   :  { %v2026_v35 = vadd.f32 %v12717_v39, %v12783_v46  ;;  %v2036_v39 = vadd.f32 %v12727_v19, %v12783_v46  ;;  %v2046_v19 = vadd.f32 %v12737_v14, %v12783_v46 }
 0x211   :  { %2401 = vadd.xlane.f32.xlu1 %v2400_v57  ;;  %v12869_v57 = vpop.f32.mrf.mxu0  ;;  %v2424_v25 = vsel %vm2393_vm1, %v2339_v43, 0.0  ;;  %v12881_v16 = vpop.permute.xlu1 %6863  ;;  %v2430_v30 = vsel %vm2393_vm1, %v2341_v0, 0.0 }
 0x212   :  { %17469 = vst [vmem:[#allocation101_spill] sm:$0xff] %v12881_v16  ;;  %v12889_v43 = vpop.permute.xlu0 %7491 }
 0x213   :  { %2413 = vadd.xlane.f32.xlu0 %v2412_v59  ;;  %v2270_v59 = vmax.f32 %v1996_v27, 0.0  ;;  %v12883_v51 = vpop.f32.mrf.mxu0  ;;  %v2016_v27 = vadd.f32 %v12707_v1, %v12783_v46  ;;  %17470 = vst [vmem:[#allocation102_spill] sm:$0xff] %v12889_v43  ;;  %v2342_v1 = vmul.f32 %v12801_v7, %v2272_v18 }
 0x215   :  { %2410 = vadd.xlane.f32.xlu1 %v2409_v50  ;;  %v11927_v50 = vmov 0   ;;  %v2340_v23 = vmul.f32 %v12801_v7, %v2270_v59  ;;  %v12897_v59 = vpop.permute.xlu1 %6891  ;;  %v2274_v6 = vmax.f32 %v2016_v27, 0.0  ;;  %v2276_v27 = vmax.f32 %v2026_v35, 0.0 }
 0x216   :  { %11703 = vset.pattern.permute.xlu0 %v11927_v50  ;;  %11702 = vset.pattern.permute.xlu1 %v11927_v50  ;;  %v12895_v50 = vpop.f32.mrf.mxu0  ;;  %17471 = vst [vmem:[#allocation103_spill] sm:$0xff] %v12897_v59  ;;  %v12909_v59 = vpop.permute.xlu0 %7519  ;;  %v2278_v35 = vmax.f32 %v2036_v39, 0.0  ;;  %v2280_v39 = vmax.f32 %v2046_v19, 0.0 }
 0x217   :  { %2419 = vadd.xlane.f32.xlu0 %v2418_v8  ;;  %v2275_v8 = vmax.f32 %v2021_v24, 0.0  ;;  %v2427_v48 = vsel %vm2393_vm1, %v2340_v23, 0.0  ;;  %v2436_v24 = vsel %vm2393_vm1, %v2343_v41, 0.0  ;;  %17472 = vst [vmem:[#allocation104_spill] sm:$0xff] %v12909_v59  ;;  %v2344_v18 = vmul.f32 %v12801_v7, %v2274_v6 }
 0x218   :  { %v2433_v23 = vsel %vm2393_vm1, %v2342_v1, 0.0  ;;  %v2346_v6 = vmul.f32 %v12801_v7, %v2276_v27  ;;  %v2348_v14 = vmul.f32 %v12801_v7, %v2278_v35  ;;  %v2350_v35 = vmul.f32 %v12801_v7, %v2280_v39 }
 0x219   :  { %2416 = vadd.xlane.f32.xlu1 %v2415_v26  ;;  %v2031_v26 = vadd.f32 %v12783_v46, %v12729_v61  ;;  %v2041_v61 = vadd.f32 %v12783_v46, %v12739_v56  ;;  %v2051_v56 = vadd.f32 %v12783_v46, %v12749_v44  ;;  %v2439_v1 = vsel %vm2393_vm1, %v2344_v18, 0.0 }
 0x21a   :  { %v2056_v18 = vadd.f32 %v12747_v63, %v12783_v46  ;;  %v2066_v63 = vadd.f32 %v12755_v33, %v12783_v46  ;;  %v2076_v33 = vadd.f32 %v12763_v13, %v12783_v46 }
 0x21b   :  { %2425 = vadd.xlane.f32.xlu0 %v2424_v25  ;;  %v2345_v25 = vmul.f32 %v12801_v7, %v2275_v8  ;;  %v2277_v0 = vmax.f32 %v2031_v26, 0.0  ;;  %v2279_v41 = vmax.f32 %v2041_v61, 0.0  ;;  %v12919_v26 = vpop.permute.xlu1 %7487  ;;  %v2061_v61 = vadd.f32 %v12783_v46, %v12757_v42 }
 0x21c   :  { %17473 = vst [vmem:[#allocation105_spill] sm:$0xff] %v12919_v26  ;;  %v2071_v42 = vadd.f32 %v12783_v46, %v12765_v29  ;;  %v2282_v19 = vmax.f32 %v2056_v18, 0.0  ;;  %v2081_v29 = vadd.f32 %v12783_v46, %v12773_v54  ;;  %v2284_v18 = vmax.f32 %v2066_v63, 0.0 }
 0x21d   :  { %2422 = vadd.xlane.f32.xlu1 %v2421_v37  ;;  %v12907_v37 = vpop.f32.mrf.mxu0  ;;  %v2347_v8 = vmul.f32 %v12801_v7, %v2277_v0  ;;  %v12927_v0 = vpop.permute.xlu0 %8115  ;;  %v2286_v63 = vmax.f32 %v2076_v33, 0.0 }
 0x21e   :  { %17474 = vst [vmem:[#allocation106_spill] sm:$0xff] %v12927_v0  ;;  %v2352_v39 = vmul.f32 %v12801_v7, %v2282_v19  ;;  %v2354_v13 = vmul.f32 %v12801_v7, %v2284_v18 }
 0x21f   :  { %2431 = vadd.xlane.f32.xlu0 %v2430_v30  ;;  %v2442_v30 = vsel %vm2393_vm1, %v2345_v25, 0.0  ;;  %v2349_v25 = vmul.f32 %v12801_v7, %v2279_v41  ;;  %v2448_v44 = vsel %vm2393_vm1, %v2347_v8, 0.0  ;;  %v12935_v27 = vpop.permute.xlu1 %7515  ;;  %v2445_v41 = vsel %vm2393_vm1, %v2346_v6, 0.0 }
 0x220   :  { %17475 = vst [vmem:[#allocation107_spill] sm:$0xff] %v12935_v27  ;;  %v2283_v8 = vmax.f32 %v2061_v61, 0.0  ;;  %v2451_v6 = vsel %vm2393_vm1, %v2348_v14, 0.0  ;;  %v2457_v14 = vsel %vm2393_vm1, %v2350_v35, 0.0  ;;  %v2086_v35 = vadd.f32 %v12771_v47, %v12783_v46 }
 0x221   :  { %2428 = vadd.xlane.f32.xlu1 %v2427_v48  ;;  %v12921_v48 = vpop.f32.mrf.mxu0  ;;  %v12947_v27 = vpop.permute.xlu0 %8143  ;;  %v2356_v18 = vmul.f32 %v12801_v7, %v2286_v63  ;;  %v2096_v47 = vadd.f32 %v12777_v60, %v12783_v46  ;;  %v2106_v60 = vadd.f32 %v12785_v38, %v12783_v46 }
 0x222   :  { %17476 = vst [vmem:[#allocation108_spill] sm:$0xff] %v12947_v27  ;;  %v2288_v33 = vmax.f32 %v2086_v35, 0.0 }
 0x223   :  { %2437 = vadd.xlane.f32.xlu0 %v2436_v24  ;;  %v2281_v24 = vmax.f32 %v2051_v56, 0.0  ;;  %v2454_v56 = vsel %vm2393_vm1, %v2349_v25, 0.0  ;;  %v2285_v25 = vmax.f32 %v2071_v42, 0.0  ;;  %v12957_v61 = vpop.permute.xlu1 %8111  ;;  %v2091_v42 = vadd.f32 %v12783_v46, %v12781_v58 }
 0x224   :  { %17477 = vst [vmem:[#allocation109_spill] sm:$0xff] %v12957_v61  ;;  %v2101_v58 = vadd.f32 %v12783_v46, %v12789_v62  ;;  %v2111_v62 = vadd.f32 %v12783_v46, %v12809_v15  ;;  %v2358_v63 = vmul.f32 %v12801_v7, %v2288_v33  ;;  %v2290_v35 = vmax.f32 %v2096_v47, 0.0 }
 0x225   :  { %2434 = vadd.xlane.f32.xlu1 %v2433_v23  ;;  %v12933_v23 = vpop.f32.mrf.mxu0  ;;  %v2292_v47 = vmax.f32 %v2106_v60, 0.0 }
 0x226   :  { %v2360_v38 = vmul.f32 %v12801_v7, %v2290_v35 }
 0x227   :  { %2443 = vadd.xlane.f32.xlu0 %v2442_v30  ;;  %v2351_v30 = vmul.f32 %v12801_v7, %v2281_v24  ;;  %v2353_v24 = vmul.f32 %v12801_v7, %v2283_v8  ;;  %v12965_v8 = vpop.permute.xlu0 %8732  ;;  %v12973_v19 = vpop.permute.xlu1 %8139  ;;  %v2362_v35 = vmul.f32 %v12801_v7, %v2292_v47 }
 0x228   :  { %17478 = vst [vmem:[#allocation110_spill] sm:$0xff] %v12965_v8  ;;  %17479 = vst [vmem:[#allocation111_spill] sm:$0xff] %v12973_v19 }
 0x229   :  { %2440 = vadd.xlane.f32.xlu1 %v2439_v1  ;;  %v12945_v1 = vpop.f32.mrf.mxu0  ;;  %v2466_v54 = vsel %vm2393_vm1, %v2353_v24, 0.0  ;;  %v2289_v24 = vmax.f32 %v2091_v42, 0.0 }
 0x22b   :  { %2449 = vadd.xlane.f32.xlu0 %v2448_v44  ;;  %v2460_v44 = vsel %vm2393_vm1, %v2351_v30, 0.0  ;;  %v2355_v30 = vmul.f32 %v12801_v7, %v2285_v25  ;;  %v2463_v25 = vsel %vm2393_vm1, %v2352_v39, 0.0  ;;  %v12985_v19 = vpop.permute.xlu0 %8739  ;;  %v2469_v39 = vsel %vm2393_vm1, %v2354_v13, 0.0  ;;  %v12995_v42 = vpop.permute.xlu1 %8735 }
 0x22c   :  { %17480 = vst [vmem:[#allocation112_spill] sm:$0xff] %v12985_v19  ;;  %17481 = vst [vmem:[#allocation113_spill] sm:$0xff] %v12995_v42  ;;  %v2475_v13 = vsel %vm2393_vm1, %v2356_v18, 0.0  ;;  %v2116_v18 = vadd.f32 %v12795_v52, %v12783_v46  ;;  %v2126_v52 = vadd.f32 %v12818_v36, %v12783_v46  ;;  %v2136_v36 = vadd.f32 %v12845_v28, %v12783_v46 }
 0x22d   :  { %2446 = vadd.xlane.f32.xlu1 %v2445_v41  ;;  %v12959_v41 = vpop.f32.mrf.mxu0 }
 0x22e   :  { %v2294_v60 = vmax.f32 %v2116_v18, 0.0  ;;  %v2296_v18 = vmax.f32 %v2126_v52, 0.0  ;;  %v2298_v52 = vmax.f32 %v2136_v36, 0.0 }
 0x22f   :  { %2455 = vadd.xlane.f32.xlu0 %v2454_v56  ;;  %v2287_v56 = vmax.f32 %v2081_v29, 0.0  ;;  %v2472_v29 = vsel %vm2393_vm1, %v2355_v30, 0.0  ;;  %v2291_v30 = vmax.f32 %v2101_v58, 0.0  ;;  %v2121_v58 = vadd.f32 %v12783_v46, %v12830_v17  ;;  %v13011_v33 = vpop.permute.xlu1 %8742 }
 0x230   :  { %17483 = vst [vmem:[#allocation115_spill] sm:$0xff] %v13011_v33  ;;  %v2131_v17 = vadd.f32 %v12783_v46, %v12857_v2  ;;  %v2141_v2 = vadd.f32 %v12783_v46, %v12883_v51  ;;  %v2364_v47 = vmul.f32 %v12801_v7, %v2294_v60  ;;  %v2366_v28 = vmul.f32 %v12801_v7, %v2296_v18 }
 0x231   :  { %2452 = vadd.xlane.f32.xlu1 %v2451_v6  ;;  %v12971_v6 = vpop.f32.mrf.mxu0  ;;  %v2368_v18 = vmul.f32 %v12801_v7, %v2298_v52 }
 0x233   :  { %2461 = vadd.xlane.f32.xlu0 %v2460_v44  ;;  %v2357_v44 = vmul.f32 %v12801_v7, %v2287_v56  ;;  %v2359_v56 = vmul.f32 %v12801_v7, %v2289_v24  ;;  %v13003_v24 = vpop.permute.xlu0 %8746 }
 0x234   :  { %17482 = vst [vmem:[#allocation114_spill] sm:$0xff] %v13003_v24 }
 0x235   :  { %2458 = vadd.xlane.f32.xlu1 %v2457_v14  ;;  %v12983_v14 = vpop.f32.mrf.mxu0  ;;  %v2484_v15 = vsel %vm2393_vm1, %v2359_v56, 0.0  ;;  %v2295_v56 = vmax.f32 %v2121_v58, 0.0  ;;  %v13033_v58 = vpop.permute.xlu1 %8749 }
 0x236   :  { %17485 = vst [vmem:[#allocation117_spill] sm:$0xff] %v13033_v58 }
 0x237   :  { %2467 = vadd.xlane.f32.xlu0 %v2466_v54  ;;  %v2478_v54 = vsel %vm2393_vm1, %v2357_v44, 0.0  ;;  %v2361_v44 = vmul.f32 %v12801_v7, %v2291_v30  ;;  %v2481_v30 = vsel %vm2393_vm1, %v2358_v63, 0.0  ;;  %v13023_v27 = vpop.permute.xlu0 %8753  ;;  %v2487_v63 = vsel %vm2393_vm1, %v2360_v38, 0.0 }
 0x238   :  { %17484 = vst [vmem:[#allocation116_spill] sm:$0xff] %v13023_v27  ;;  %v2493_v38 = vsel %vm2393_vm1, %v2362_v35, 0.0  ;;  %v2146_v35 = vadd.f32 %v12869_v57, %v12783_v46  ;;  %v2156_v57 = vadd.f32 %v12895_v50, %v12783_v46  ;;  %v2166_v50 = vadd.f32 %v12921_v48, %v12783_v46 }
 0x239   :  { %2464 = vadd.xlane.f32.xlu1 %v2463_v25  ;;  %v12997_v25 = vpop.f32.mrf.mxu0  ;;  %v13049_v60 = vpop.permute.xlu1 %8756 }
 0x23a   :  { %17487 = vst [vmem:[#allocation119_spill] sm:$0xff] %v13049_v60  ;;  %v2300_v36 = vmax.f32 %v2146_v35, 0.0  ;;  %v2302_v35 = vmax.f32 %v2156_v57, 0.0  ;;  %v2304_v48 = vmax.f32 %v2166_v50, 0.0 }
 0x23b   :  { %2473 = vadd.xlane.f32.xlu0 %v2472_v29  ;;  %v2293_v29 = vmax.f32 %v2111_v62, 0.0  ;;  %v2490_v62 = vsel %vm2393_vm1, %v2361_v44, 0.0  ;;  %v2297_v44 = vmax.f32 %v2131_v17, 0.0  ;;  %v2151_v17 = vadd.f32 %v12783_v46, %v12907_v37 }
 0x23c   :  { %v2161_v37 = vadd.f32 %v12783_v46, %v12933_v23  ;;  %v2171_v23 = vadd.f32 %v12783_v46, %v12959_v41  ;;  %v2370_v52 = vmul.f32 %v12801_v7, %v2300_v36  ;;  %v2372_v57 = vmul.f32 %v12801_v7, %v2302_v35 }
 0x23d   :  { %2470 = vadd.xlane.f32.xlu1 %v2469_v39  ;;  %v13009_v39 = vpop.f32.mrf.mxu0  ;;  %v2374_v35 = vmul.f32 %v12801_v7, %v2304_v48 }
 0x23f   :  { %2479 = vadd.xlane.f32.xlu0 %v2478_v54  ;;  %v2363_v54 = vmul.f32 %v12801_v7, %v2293_v29  ;;  %v2365_v29 = vmul.f32 %v12801_v7, %v2295_v56  ;;  %v13041_v56 = vpop.permute.xlu0 %8760 }
 0x240   :  { %17486 = vst [vmem:[#allocation118_spill] sm:$0xff] %v13041_v56 }
 0x241   :  { %2476 = vadd.xlane.f32.xlu1 %v2475_v13  ;;  %v13021_v13 = vpop.f32.mrf.mxu0  ;;  %v2502_v51 = vsel %vm2393_vm1, %v2365_v29, 0.0  ;;  %v2301_v29 = vmax.f32 %v2151_v17, 0.0  ;;  %v13069_v17 = vpop.permute.xlu1 %8763 }
 0x242   :  { %17489 = vst [vmem:[#allocation121_spill] sm:$0xff] %v13069_v17 }
 0x243   :  { %2485 = vadd.xlane.f32.xlu0 %v2484_v15  ;;  %v2496_v15 = vsel %vm2393_vm1, %v2363_v54, 0.0  ;;  %v2367_v54 = vmul.f32 %v12801_v7, %v2297_v44  ;;  %v2499_v44 = vsel %vm2393_vm1, %v2364_v47, 0.0  ;;  %v13059_v59 = vpop.permute.xlu0 %8767  ;;  %v2505_v47 = vsel %vm2393_vm1, %v2366_v28, 0.0 }
 0x244   :  { %17488 = vst [vmem:[#allocation120_spill] sm:$0xff] %v13059_v59  ;;  %v2511_v28 = vsel %vm2393_vm1, %v2368_v18, 0.0  ;;  %v2176_v18 = vadd.f32 %v12945_v1, %v12783_v46  ;;  %v2186_v1 = vadd.f32 %v12971_v6, %v12783_v46  ;;  %v2196_v6 = vadd.f32 %v12997_v25, %v12783_v46 }
 0x245   :  { %2482 = vadd.xlane.f32.xlu1 %v2481_v30  ;;  %v13035_v30 = vpop.f32.mrf.mxu0  ;;  %v13083_v36 = vpop.permute.xlu1 %8770  ;;  %v2206_v25 = vadd.f32 %v13021_v13, %v12783_v46 }
 0x246   :  { %17491 = vst [vmem:[#allocation123_spill] sm:$0xff] %v13083_v36  ;;  %v2306_v50 = vmax.f32 %v2176_v18, 0.0  ;;  %v2308_v18 = vmax.f32 %v2186_v1, 0.0  ;;  %v2310_v1 = vmax.f32 %v2196_v6, 0.0 }
 0x247   :  { %2491 = vadd.xlane.f32.xlu0 %v2490_v62  ;;  %v2299_v62 = vmax.f32 %v2141_v2, 0.0  ;;  %v2508_v2 = vsel %vm2393_vm1, %v2367_v54, 0.0  ;;  %v2312_v6 = vmax.f32 %v2206_v25, 0.0 }
 0x248   :  { %v2376_v48 = vmul.f32 %v12801_v7, %v2306_v50  ;;  %v2378_v50 = vmul.f32 %v12801_v7, %v2308_v18  ;;  %v2380_v18 = vmul.f32 %v12801_v7, %v2310_v1 }
 0x249   :  { %2488 = vadd.xlane.f32.xlu1 %v2487_v63  ;;  %v13047_v63 = vpop.f32.mrf.mxu0  ;;  %v2382_v1 = vmul.f32 %v12801_v7, %v2312_v6 }
 0x24a   :  { %v2216_v13 = vadd.f32 %v13047_v63, %v12783_v46 }
 0x24b   :  { %2497 = vadd.xlane.f32.xlu0 %v2496_v15  ;;  %v2369_v15 = vmul.f32 %v12801_v7, %v2299_v62  ;;  %v2371_v62 = vmul.f32 %v12801_v7, %v2301_v29  ;;  %v13077_v29 = vpop.permute.xlu0 %8774 }
 0x24c   :  { %17490 = vst [vmem:[#allocation122_spill] sm:$0xff] %v13077_v29  ;;  %v2314_v25 = vmax.f32 %v2216_v13, 0.0 }
 0x24d   :  { %2494 = vadd.xlane.f32.xlu1 %v2493_v38  ;;  %v2210_v38 = vpop.f32.mrf.mxu0  ;;  %v2514_v54 = vsel %vm2393_vm1, %v2369_v15, 0.0  ;;  %v2520_v41 = vsel %vm2393_vm1, %v2371_v62, 0.0 }
 0x24e   :  { %v2384_v6 = vmul.f32 %v12801_v7, %v2314_v25 }
 0x24f   :  { %2503 = vadd.xlane.f32.xlu0 %v2502_v51  ;;  %v2303_v51 = vmax.f32 %v2161_v37, 0.0  ;;  %v2181_v37 = vadd.f32 %v12783_v46, %v12983_v14  ;;  %v2191_v14 = vadd.f32 %v12783_v46, %v13009_v39  ;;  %v13095_v36 = vpop.permute.xlu0 %9349  ;;  %v2201_v39 = vadd.f32 %v12783_v46, %v13035_v30 }
 0x250   :  { %17492 = vst [vmem:[#allocation124_spill] sm:$0xff] %v13095_v36 }
 0x251   :  { %2500 = vadd.xlane.f32.xlu1 %v2499_v44  ;;  %v13071_v44 = vpop.f32.mrf.mxu0  ;;  %v2373_v15 = vmul.f32 %v12801_v7, %v2303_v51 }
 0x252   :  { %v2226_v63 = vadd.f32 %v13071_v44, %v12783_v46 }
 0x253   :  { %2509 = vadd.xlane.f32.xlu0 %v2508_v2  ;;  %v2305_v2 = vmax.f32 %v2171_v23, 0.0  ;;  %v2307_v23 = vmax.f32 %v2181_v37, 0.0  ;;  %v2526_v62 = vsel %vm2393_vm1, %v2373_v15, 0.0  ;;  %v2309_v15 = vmax.f32 %v2191_v14, 0.0  ;;  %v13105_v37 = vpop.permute.xlu1 %9345 }
 0x254   :  { %17493 = vst [vmem:[#allocation125_spill] sm:$0xff] %v13105_v37  ;;  %v2211_v14 = vadd.f32 %v12783_v46, %v2210_v38  ;;  %v2316_v13 = vmax.f32 %v2226_v63, 0.0 }
 0x255   :  { %2506 = vadd.xlane.f32.xlu1 %v2505_v47  ;;  %v2220_v47 = vpop.f32.mrf.mxu0  ;;  %v2375_v51 = vmul.f32 %v12801_v7, %v2305_v2  ;;  %v2377_v2 = vmul.f32 %v12801_v7, %v2307_v23  ;;  %v13111_v23 = vpop.permute.xlu0 %9356 }
 0x256   :  { %17494 = vst [vmem:[#allocation126_spill] sm:$0xff] %v13111_v23  ;;  %v2221_v38 = vadd.f32 %v12783_v46, %v2220_v47 }
 0x257   :  { %2515 = vadd.xlane.f32.xlu0 %v2514_v54  ;;  %v2517_v54 = vsel %vm2393_vm1, %v2370_v52, 0.0  ;;  %v2523_v52 = vsel %vm2393_vm1, %v2372_v57, 0.0  ;;  %v2529_v57 = vsel %vm2393_vm1, %v2374_v35, 0.0  ;;  %v2538_v30 = vsel %vm2393_vm1, %v2377_v2, 0.0  ;;  %v13116_v29 = vpop.permute.xlu1 %9352 }
 0x258   :  { %17495 = vst [vmem:[#allocation127_spill] sm:$0xff] %v13116_v29  ;;  %v2535_v35 = vsel %vm2393_vm1, %v2376_v48, 0.0  ;;  %v2541_v48 = vsel %vm2393_vm1, %v2378_v50, 0.0  ;;  %v2547_v50 = vsel %vm2393_vm1, %v2380_v18, 0.0  ;;  %v2553_v18 = vsel %vm2393_vm1, %v2382_v1, 0.0 }
 0x259   :  { %2512 = vadd.xlane.f32.xlu1 %v2511_v28  ;;  %v13093_v28 = vpop.f32.mrf.mxu0 }
 0x25a   :  { %v2236_v44 = vadd.f32 %v13093_v28, %v12783_v46  ;;  %v2559_v28 = vsel %vm2393_vm1, %v2384_v6, 0.0 }
 0x25b   :  { %2521 = vadd.xlane.f32.xlu0 %v2520_v41  ;;  %v2532_v41 = vsel %vm2393_vm1, %v2375_v51, 0.0  ;;  %v2311_v51 = vmax.f32 %v2201_v39, 0.0 }
 0x25c   :  { %v2318_v25 = vmax.f32 %v2236_v44, 0.0 }
 0x25d   :  { %2518 = vadd.xlane.f32.xlu1 %v2517_v54  ;;  %v2230_v54 = vpop.f32.mrf.mxu0 }
 0x25e   :  { %v2231_v47 = vadd.f32 %v12783_v46, %v2230_v54 }
 0x25f   :  { %2527 = vadd.xlane.f32.xlu0 %v2526_v62  ;;  %v2379_v62 = vmul.f32 %v12801_v7, %v2309_v15  ;;  %v2381_v15 = vmul.f32 %v12801_v7, %v2311_v51 }
 0x261   :  { %2524 = vadd.xlane.f32.xlu1 %v2523_v52  ;;  %v11674_v52 = vpop.f32.mrf.mxu0  ;;  %v2544_v2 = vsel %vm2393_vm1, %v2379_v62, 0.0  ;;  %v2550_v62 = vsel %vm2393_vm1, %v2381_v15, 0.0  ;;  %v2317_v15 = vmax.f32 %v2231_v47, 0.0 }
 0x262   :  { %v2246_v63 = vadd.f32 %v11674_v52, %v12783_v46 }
 0x263   :  { %2533 = vadd.xlane.f32.xlu0 %v2532_v41  ;;  %v2313_v41 = vmax.f32 %v2211_v14, 0.0  ;;  %v2240_v39 = vpop.f32.mrf.mxu0  ;;  %v13134_v14 = vpop.permute.xlu1 %9359 }
 0x264   :  { %17497 = vst [vmem:[#allocation129_spill] sm:$0xff] %v13134_v14 }
 0x265   :  { %2530 = vadd.xlane.f32.xlu1 %v2529_v57  ;;  %v13125_v57 = vpop.permute.xlu0 %9363  ;;  %v2383_v51 = vmul.f32 %v12801_v7, %v2313_v41 }
 0x266   :  { %17496 = vst [vmem:[#allocation128_spill] sm:$0xff] %v13125_v57 }
 0x267   :  { %2539 = vadd.xlane.f32.xlu0 %v2538_v30  ;;  %v2315_v30 = vmax.f32 %v2221_v38, 0.0  ;;  %v2556_v54 = vsel %vm2393_vm1, %v2383_v51, 0.0  ;;  %v2241_v38 = vadd.f32 %v12783_v46, %v2240_v39  ;;  %v13145_v17 = vpop.permute.xlu1 %9366 }
 0x268   :  { %17499 = vst [vmem:[#allocation131_spill] sm:$0xff] %v13145_v17 }
 0x269   :  { %2536 = vadd.xlane.f32.xlu1 %v2535_v35  ;;  %v11677_v35 = vpop.f32.mrf.mxu0  ;;  %v2385_v41 = vmul.f32 %v12801_v7, %v2315_v30  ;;  %v2387_v30 = vmul.f32 %v12801_v7, %v2317_v15 }
 0x26b   :  { %2545 = vadd.xlane.f32.xlu0 %v2544_v2  ;;  %v13140_v2 = vpop.permute.xlu0 %9370  ;;  %v2562_v51 = vsel %vm2393_vm1, %v2385_v41, 0.0  ;;  %v2388_v41 = vmul.f32 %v12801_v7, %v2318_v25 }
 0x26c   :  { %17498 = vst [vmem:[#allocation130_spill] sm:$0xff] %v13140_v2 }
 0x26d   :  { %2542 = vadd.xlane.f32.xlu1 %v2541_v48  ;;  %v2250_v48 = vpop.f32.mrf.mxu0 }
 0x26e   :  { %v2251_v39 = vadd.f32 %v12783_v46, %v2250_v48  ;;  %v2320_v48 = vmax.f32 %v2246_v63, 0.0 }
 0x26f   :  { %2551 = vadd.xlane.f32.xlu0 %v2550_v62  ;;  %v2319_v62 = vmax.f32 %v2241_v38, 0.0  ;;  %v13154_v47 = vpop.permute.xlu0 %9377  ;;  %v13161_v38 = vpop.permute.xlu1 %9373 }
 0x270   :  { %17500 = vst [vmem:[#allocation132_spill] sm:$0xff] %v13154_v47  ;;  %v2321_v15 = vmax.f32 %v2251_v39, 0.0  ;;  %17501 = vst [vmem:[#allocation133_spill] sm:$0xff] %v13161_v38  ;;  %v2571_v39 = vsel %vm2393_vm1, %v2388_v41, 0.0 }
 0x271   :  { %2548 = vadd.xlane.f32.xlu1 %v2547_v50  ;;  %v2386_v50 = vmul.f32 %v12801_v7, %v2316_v13  ;;  %v2389_v1 = vmul.f32 %v12801_v7, %v2319_v62 }
 0x272   :  { %v2391_v6 = vmul.f32 %v12801_v7, %v2321_v15 }
 0x273   :  { %2557 = vadd.xlane.f32.xlu0 %v2556_v54  ;;  %v2568_v54 = vsel %vm2393_vm1, %v2387_v30, 0.0  ;;  %v2565_v13 = vsel %vm2393_vm1, %v2386_v50, 0.0  ;;  %v13166_v52 = vpop.permute.xlu0 %9384  ;;  %v2574_v44 = vsel %vm2393_vm1, %v2389_v1, 0.0  ;;  %v13170_v62 = vpop.permute.xlu1 %9380  ;;  %v2390_v30 = vmul.f32 %v12801_v7, %v2320_v48 }
 0x274   :  { %17502 = vst [vmem:[#allocation134_spill] sm:$0xff] %v13166_v52  ;;  %17503 = vst [vmem:[#allocation135_spill] sm:$0xff] %v13170_v62 }
 0x275   :  { %2554 = vadd.xlane.f32.xlu1 %v2553_v18  ;;  %v2256_v18 = vadd.f32 %v11677_v35, %v12783_v46  ;;  %v2580_v46 = vsel %vm2393_vm1, %v2391_v6, 0.0  ;;  %v2577_v25 = vsel %vm2393_vm1, %v2390_v30, 0.0 }
 0x277   :  { %2563 = vadd.xlane.f32.xlu0 %v2562_v51  ;;  %v2322_v51 = vmax.f32 %v2256_v18, 0.0  ;;  %v13175_v35 = vpop.permute.xlu0 %9391  ;;  %v13179_v63 = vpop.permute.xlu1 %9387  ;;  %v13190_v18 = vld [vmem:[#allocation5 + $0x58] ss:$0 sm:$0xff] }
 0x278   :  { %17504 = vst [vmem:[#allocation136_spill] sm:$0xff] %v13175_v35  ;;  %17505 = vst [vmem:[#allocation137_spill] sm:$0xff] %v13179_v63 }
 0x279   :  { %2560 = vadd.xlane.f32.xlu1 %v2559_v28  ;;  %v2392_v50 = vmul.f32 %v12801_v7, %v2322_v51 }
 0x27b   :  { %2569 = vadd.xlane.f32.xlu0 %v2568_v54  ;;  %v2583_v28 = vsel %vm2393_vm1, %v2392_v50, 0.0  ;;  %v13182_v1 = vpop.permute.xlu0 %9398  ;;  %v13184_v15 = vpop.permute.xlu1 %9394 }
 0x27c   :  { %17506 = vst [vmem:[#allocation138_spill] sm:$0xff] %v13182_v1  ;;  %17507 = vst [vmem:[#allocation139_spill] sm:$0xff] %v13184_v15 }
 0x27d   :  { %2566 = vadd.xlane.f32.xlu1 %v2565_v13 }
 0x27f   :  { %2575 = vadd.xlane.f32.xlu0 %v2574_v44  ;;  %v13186_v54 = vpop.permute.xlu0 %9682  ;;  %v13188_v48 = vpop.permute.xlu1 %9678 }
 0x280   :  { %17508 = vst [vmem:[#allocation140_spill] sm:$0xff] %v13186_v54  ;;  %17509 = vst [vmem:[#allocation141_spill] sm:$0xff] %v13188_v48 }
 0x281   :  { %2572 = vadd.xlane.f32.xlu1 %v2571_v39 }
 0x283   :  { %2581 = vadd.xlane.f32.xlu0 %v2580_v46 }
 0x285   :  { %2578 = vadd.xlane.f32.xlu1 %v2577_v25 }
 0x289   :  { %2584 = vadd.xlane.f32.xlu1 %v2583_v28 }
 0x290   :  { %v2399_v41 = vpop.xlane.xlu0 %2398 }
 0x291   :  { %v13193_v6 = vadd.f32 %v13190_v18, %v2399_v41 }
 0x294   :  { %v2396_v7 = vpop.xlane.xlu0 %2395 }
 0x295   :  { %v13196_v44 = vadd.f32 %v13190_v18, %v2396_v7 }
 0x296   :  { %v2405_v13 = vpop.xlane.xlu1 %2404 }
 0x297   :  { %v13201_v39 = vadd.f32 %v13190_v18, %v2405_v13 }
 0x298   :  { %v2408_v30 = vpop.xlane.xlu0 %2407 }
 0x299   :  { %2719 = vperm.xlu0 %11703, %v13196_v44   ;;  %v13216_v63 = vadd.f32 %v13190_v18, %v2408_v30 }
 0x29a   :  { %2722 = vperm.xlu1 %11702, %v13193_v6   ;;  %v2402_v51 = vpop.xlane.xlu1 %2401 }
 0x29b   :  { %v13205_v25 = vadd.f32 %v13190_v18, %v2402_v51 }
 0x29c   :  { %v2414_v46 = vpop.xlane.xlu0 %2413 }
 0x29d   :  { %v13232_v62 = vadd.f32 %v13190_v18, %v2414_v46 }
 0x29e   :  { %2728 = vperm.xlu1 %11702, %v13201_v39   ;;  %v2411_v50 = vpop.xlane.xlu1 %2410 }
 0x29f   :  { %v13209_v7 = vadd.f32 %v13190_v18, %v2411_v50 }
 0x2a0   :  { %v2420_v28 = vpop.xlane.xlu0 %2419 }
 0x2a1   :  { %v13240_v52 = vadd.f32 %v13190_v18, %v2420_v28 }
 0x2a2   :  { %2725 = vperm.xlu1 %11702, %v13205_v25   ;;  %v2417_v41 = vpop.xlane.xlu1 %2416 }
 0x2a3   :  { %v13224_v50 = vadd.f32 %v13190_v18, %v2417_v41 }
 0x2a4   :  { %v2426_v15 = vpop.xlane.xlu0 %2425 }
 0x2a5   :  { %v13248_v38 = vadd.f32 %v13190_v18, %v2426_v15 }
 0x2a6   :  { %2734 = vperm.xlu1 %11702, %v13209_v7   ;;  %v2423_v1 = vpop.xlane.xlu1 %2422 }
 0x2a7   :  { %v13213_v13 = vadd.f32 %v13190_v18, %v2423_v1 }
 0x2a8   :  { %v2432_v51 = vpop.xlane.xlu0 %2431 }
 0x2a9   :  { %2746 = vperm.xlu0 %11703, %v13213_v13   ;;  %v13256_v47 = vadd.f32 %v13190_v18, %v2432_v51 }
 0x2aa   :  { %v2429_v35 = vpop.xlane.xlu1 %2428  ;;  %2731 = vperm.xlu1 %11702, %v13216_v63  }
 0x2ab   :  { %v13221_v59 = vadd.f32 %v13190_v18, %v2429_v35 }
 0x2ac   :  { %v2438_v55 = vpop.xlane.xlu0 %2437 }
 0x2ad   :  { %2752 = vperm.xlu0 %11703, %v13221_v59   ;;  %v13264_v17 = vadd.f32 %v13190_v18, %v2438_v55 }
 0x2ae   :  { %v2435_v1 = vpop.xlane.xlu1 %2434  ;;  %2740 = vperm.xlu1 %11702, %v13224_v50  }
 0x2af   :  { %v13229_v30 = vadd.f32 %v13190_v18, %v2435_v1 }
 0x2b0   :  { %v2444_v60 = vpop.xlane.xlu0 %2443 }
 0x2b1   :  { %2758 = vperm.xlu0 %11703, %v13229_v30   ;;  %v13272_v2 = vadd.f32 %v13190_v18, %v2444_v60 }
 0x2b2   :  { %v2441_v35 = vpop.xlane.xlu1 %2440  ;;  %2737 = vperm.xlu1 %11702, %v13232_v62  }
 0x2b3   :  { %v13237_v41 = vadd.f32 %v13190_v18, %v2441_v35 }
 0x2b4   :  { %v2450_v56 = vpop.xlane.xlu0 %2449 }
 0x2b5   :  { %2764 = vperm.xlu0 %11703, %v13237_v41   ;;  %v13280_v14 = vadd.f32 %v13190_v18, %v2450_v56 }
 0x2b6   :  { %v2447_v1 = vpop.xlane.xlu1 %2446  ;;  %2743 = vperm.xlu1 %11702, %v13240_v52  }
 0x2b7   :  { %v13245_v46 = vadd.f32 %v13190_v18, %v2447_v1 }
 0x2b8   :  { %v2456_v58 = vpop.xlane.xlu0 %2455 }
 0x2b9   :  { %2770 = vperm.xlu0 %11703, %v13245_v46   ;;  %v13288_v61 = vadd.f32 %v13190_v18, %v2456_v58 }
 0x2ba   :  { %v2453_v35 = vpop.xlane.xlu1 %2452  ;;  %2749 = vperm.xlu1 %11702, %v13248_v38  }
 0x2bb   :  { %v13253_v28 = vadd.f32 %v13190_v18, %v2453_v35 }
 0x2bc   :  { %v2462_v27 = vpop.xlane.xlu0 %2461 }
 0x2bd   :  { %2776 = vperm.xlu0 %11703, %v13253_v28   ;;  %v13296_v26 = vadd.f32 %v13190_v18, %v2462_v27 }
 0x2be   :  { %v2459_v1 = vpop.xlane.xlu1 %2458  ;;  %2755 = vperm.xlu1 %11702, %v13256_v47  }
 0x2bf   :  { %v13261_v15 = vadd.f32 %v13190_v18, %v2459_v1 }
 0x2c0   :  { %v2468_v33 = vpop.xlane.xlu0 %2467 }
 0x2c1   :  { %2782 = vperm.xlu0 %11703, %v13261_v15   ;;  %v13304_v16 = vadd.f32 %v13190_v18, %v2468_v33 }
 0x2c2   :  { %v2465_v35 = vpop.xlane.xlu1 %2464  ;;  %2761 = vperm.xlu1 %11702, %v13264_v17  }
 0x2c3   :  { %v13269_v51 = vadd.f32 %v13190_v18, %v2465_v35 }
 0x2c4   :  { %v2474_v24 = vpop.xlane.xlu0 %2473 }
 0x2c5   :  { %2788 = vperm.xlu0 %11703, %v13269_v51   ;;  %v13312_v43 = vadd.f32 %v13190_v18, %v2474_v24 }
 0x2c6   :  { %v2471_v1 = vpop.xlane.xlu1 %2470  ;;  %2767 = vperm.xlu1 %11702, %v13272_v2  }
 0x2c7   :  { %v13277_v55 = vadd.f32 %v13190_v18, %v2471_v1 }
 0x2c8   :  { %v2480_v42 = vpop.xlane.xlu0 %2479 }
 0x2c9   :  { %2794 = vperm.xlu0 %11703, %v13277_v55   ;;  %v13320_v9 = vadd.f32 %v13190_v18, %v2480_v42 }
 0x2ca   :  { %v2477_v35 = vpop.xlane.xlu1 %2476  ;;  %2773 = vperm.xlu1 %11702, %v13280_v14  }
 0x2cb   :  { %v13285_v60 = vadd.f32 %v13190_v18, %v2477_v35 }
 0x2cc   :  { %v2486_v57 = vpop.xlane.xlu0 %2485 }
 0x2cd   :  { %2800 = vperm.xlu0 %11703, %v13285_v60   ;;  %v13328_v23 = vadd.f32 %v13190_v18, %v2486_v57 }
 0x2ce   :  { %v2483_v1 = vpop.xlane.xlu1 %2482  ;;  %2779 = vperm.xlu1 %11702, %v13288_v61  }
 0x2cf   :  { %v13293_v56 = vadd.f32 %v13190_v18, %v2483_v1  ;;  %17513 = vst [vmem:[#allocation145_spill] sm:$0xff] %v13328_v23 }
 0x2d0   :  { %v2492_v19 = vpop.xlane.xlu0 %2491 }
 0x2d1   :  { %2806 = vperm.xlu0 %11703, %v13293_v56   ;;  %v13336_v48 = vadd.f32 %v13190_v18, %v2492_v19 }
 0x2d2   :  { %v2489_v35 = vpop.xlane.xlu1 %2488  ;;  %2785 = vperm.xlu1 %11702, %v13296_v26  }
 0x2d3   :  { %v13301_v58 = vadd.f32 %v13190_v18, %v2489_v35  ;;  %17515 = vst [vmem:[#allocation147_spill] sm:$0xff] %v13336_v48 }
 0x2d4   :  { %v2498_v0 = vpop.xlane.xlu0 %2497 }
 0x2d5   :  { %2812 = vperm.xlu0 %11703, %v13301_v58   ;;  %v13344_v37 = vadd.f32 %v13190_v18, %v2498_v0 }
 0x2d6   :  { %v2495_v1 = vpop.xlane.xlu1 %2494  ;;  %2791 = vperm.xlu1 %11702, %v13304_v16  }
 0x2d7   :  { %v13309_v27 = vadd.f32 %v13190_v18, %v2495_v1  ;;  %17517 = vst [vmem:[#allocation149_spill] sm:$0xff] %v13344_v37 }
 0x2d8   :  { %v2504_v10 = vpop.xlane.xlu0 %2503 }
 0x2d9   :  { %17510 = vst [vmem:[#allocation142_spill] sm:$0xff] %v13309_v27  ;;  %2818 = vperm.xlu0 %11703, %v13309_v27   ;;  %v13352_v12 = vadd.f32 %v13190_v18, %v2504_v10 }
 0x2da   :  { %v2501_v35 = vpop.xlane.xlu1 %2500  ;;  %2797 = vperm.xlu1 %11702, %v13312_v43  }
 0x2db   :  { %v13317_v33 = vadd.f32 %v13190_v18, %v2501_v35  ;;  %17519 = vst [vmem:[#allocation151_spill] sm:$0xff] %v13352_v12 }
 0x2dc   :  { %v2510_v29 = vpop.xlane.xlu0 %2509 }
 0x2dd   :  { %17511 = vst [vmem:[#allocation143_spill] sm:$0xff] %v13317_v33  ;;  %2824 = vperm.xlu0 %11703, %v13317_v33   ;;  %v13360_v34 = vadd.f32 %v13190_v18, %v2510_v29 }
 0x2de   :  { %v2507_v1 = vpop.xlane.xlu1 %2506  ;;  %2803 = vperm.xlu1 %11702, %v13320_v9  }
 0x2df   :  { %v13325_v24 = vadd.f32 %v13190_v18, %v2507_v1  ;;  %17521 = vst [vmem:[#allocation153_spill] sm:$0xff] %v13360_v34 }
 0x2e0   :  { %v2516_v8 = vpop.xlane.xlu0 %2515 }
 0x2e1   :  { %17512 = vst [vmem:[#allocation144_spill] sm:$0xff] %v13325_v24  ;;  %2830 = vperm.xlu0 %11703, %v13325_v24   ;;  %v13368_v31 = vadd.f32 %v13190_v18, %v2516_v8 }
 0x2e2   :  { %v2513_v35 = vpop.xlane.xlu1 %2512  ;;  %2809 = vperm.xlu1 %11702, %v13328_v23  }
 0x2e3   :  { %v13333_v42 = vadd.f32 %v13190_v18, %v2513_v35  ;;  %17523 = vst [vmem:[#allocation155_spill] sm:$0xff] %v13368_v31 }
 0x2e4   :  { %v2522_v54 = vpop.xlane.xlu0 %2521 }
 0x2e5   :  { %17514 = vst [vmem:[#allocation146_spill] sm:$0xff] %v13333_v42  ;;  %2836 = vperm.xlu0 %11703, %v13333_v42  }
 0x2e6   :  { %v2519_v1 = vpop.xlane.xlu1 %2518  ;;  %2815 = vperm.xlu1 %11702, %v13336_v48  }
 0x2e7   :  { %v13341_v57 = vadd.f32 %v13190_v18, %v2519_v1 }
 0x2e8   :  { %v2528_v36 = vpop.xlane.xlu0 %2527 }
 0x2e9   :  { %17516 = vst [vmem:[#allocation148_spill] sm:$0xff] %v13341_v57  ;;  %2842 = vperm.xlu0 %11703, %v13341_v57   ;;  %v13384_v8 = vadd.f32 %v13190_v18, %v2528_v36  ;;  %v17543_v57 = vlaneseq }
 0x2ea   :  { %v2525_v35 = vpop.xlane.xlu1 %2524  ;;  %2821 = vperm.xlu1 %11702, %v13344_v37  }
 0x2eb   :  { %v13349_v19 = vadd.f32 %v13190_v18, %v2525_v35  ;;  %17527 = vst [vmem:[#allocation159_spill] sm:$0xff] %v13384_v8 }
 0x2ec   :  { %v2534_v49 = vpop.xlane.xlu0 %2533 }
 0x2ed   :  { %17518 = vst [vmem:[#allocation150_spill] sm:$0xff] %v13349_v19  ;;  %2848 = vperm.xlu0 %11703, %v13349_v19  }
 0x2ee   :  { %v2531_v1 = vpop.xlane.xlu1 %2530  ;;  %2827 = vperm.xlu1 %11702, %v13352_v12  }
 0x2ef   :  { %v13357_v0 = vadd.f32 %v13190_v18, %v2531_v1  ;;  %v13376_v1 = vadd.f32 %v13190_v18, %v2522_v54 }
 0x2f0   :  { %v2540_v35 = vpop.xlane.xlu0 %2539 }
 0x2f1   :  { %17520 = vst [vmem:[#allocation152_spill] sm:$0xff] %v13357_v0  ;;  %2854 = vperm.xlu0 %11703, %v13357_v0   ;;  %17525 = vst [vmem:[#allocation157_spill] sm:$0xff] %v13376_v1 }
 0x2f2   :  { %v2537_v22 = vpop.xlane.xlu1 %2536  ;;  %2833 = vperm.xlu1 %11702, %v13360_v34   ;;  %v13449_v34 = vand.u32 127, %v17543_v57 }
 0x2f3   :  { %v13365_v10 = vadd.f32 %v13190_v18, %v2537_v22 }
 0x2f4   :  { %v2546_v0 = vpop.xlane.xlu0 %2545  ;;  %17544 = vst [vmem:[#allocation175_spill] sm:$0xff] %v13449_v34  ;;  %v13453_v42 = vsub.s32 %v13449_v34, %v11960_v3 }
 0x2f5   :  { %17522 = vst [vmem:[#allocation154_spill] sm:$0xff] %v13365_v10  ;;  %2860 = vperm.xlu0 %11703, %v13365_v10  }
 0x2f6   :  { %v2543_v5 = vpop.xlane.xlu1 %2542  ;;  %2839 = vperm.xlu1 %11702, %v13368_v31   ;;  %17545 = vst [vmem:[#allocation176_spill] sm:$0xff] %v13453_v42 }
 0x2f7   :  { %v13373_v29 = vadd.f32 %v13190_v18, %v2543_v5 }
 0x2f8   :  { %v2552_v10 = vpop.xlane.xlu0 %2551 }
 0x2f9   :  { %17524 = vst [vmem:[#allocation156_spill] sm:$0xff] %v13373_v29  ;;  %2866 = vperm.xlu0 %11703, %v13373_v29   ;;  %v13392_v29 = vadd.f32 %v13190_v18, %v2534_v49 }
 0x2fa   :  { %v2549_v19 = vpop.xlane.xlu1 %2548  ;;  %2845 = vperm.xlu1 %11702, %v13376_v1  }
 0x2fb   :  { %v13381_v22 = vadd.f32 %v13190_v18, %v2549_v19  ;;  %17529 = vst [vmem:[#allocation161_spill] sm:$0xff] %v13392_v29  ;;  %v13400_v19 = vadd.f32 %v13190_v18, %v2540_v35 }
 0x2fd   :  { %17526 = vst [vmem:[#allocation158_spill] sm:$0xff] %v13381_v22  ;;  %2872 = vperm.xlu0 %11703, %v13381_v22   ;;  %17531 = vst [vmem:[#allocation163_spill] sm:$0xff] %v13400_v19  ;;  %v2558_v22 = vpop.xlane.xlu0 %2557 }
 0x2fe   :  { %v2555_v5 = vpop.xlane.xlu1 %2554  ;;  %2851 = vperm.xlu1 %11702, %v13384_v8  }
 0x2ff   :  { %v13389_v54 = vadd.f32 %v13190_v18, %v2555_v5  ;;  %v13408_v5 = vadd.f32 %v13190_v18, %v2546_v0 }
 0x301   :  { %17528 = vst [vmem:[#allocation160_spill] sm:$0xff] %v13389_v54  ;;  %2878 = vperm.xlu0 %11703, %v13389_v54   ;;  %17533 = vst [vmem:[#allocation165_spill] sm:$0xff] %v13408_v5  ;;  %v2564_v54 = vpop.xlane.xlu0 %2563 }
 0x302   :  { %v2561_v1 = vpop.xlane.xlu1 %2560  ;;  %2857 = vperm.xlu1 %11702, %v13392_v29  }
 0x303   :  { %v13397_v36 = vadd.f32 %v13190_v18, %v2561_v1 }
 0x305   :  { %17530 = vst [vmem:[#allocation162_spill] sm:$0xff] %v13397_v36  ;;  %2884 = vperm.xlu0 %11703, %v13397_v36   ;;  %v13416_v36 = vadd.f32 %v13190_v18, %v2552_v10 }
 0x306   :  { %v2567_v8 = vpop.xlane.xlu1 %2566  ;;  %2863 = vperm.xlu1 %11702, %v13400_v19  }
 0x307   :  { %v13405_v49 = vadd.f32 %v13190_v18, %v2567_v8  ;;  %17535 = vst [vmem:[#allocation167_spill] sm:$0xff] %v13416_v36  ;;  %v13424_v8 = vadd.f32 %v13190_v18, %v2558_v22 }
 0x309   :  { %17532 = vst [vmem:[#allocation164_spill] sm:$0xff] %v13405_v49  ;;  %2890 = vperm.xlu0 %11703, %v13405_v49   ;;  %17537 = vst [vmem:[#allocation169_spill] sm:$0xff] %v13424_v8  ;;  %v2570_v49 = vpop.xlane.xlu0 %2569 }
 0x30a   :  { %v2573_v1 = vpop.xlane.xlu1 %2572  ;;  %2869 = vperm.xlu1 %11702, %v13408_v5   ;;  %v13437_v22 = vadd.f32 %v13190_v18, %v2570_v49 }
 0x30b   :  { %v13413_v35 = vadd.f32 %v13190_v18, %v2573_v1  ;;  %v13432_v1 = vadd.f32 %v13190_v18, %v2564_v54 }
 0x30c   :  { %17540 = vst [vmem:[#allocation172_spill] sm:$0xff] %v13437_v22 }
 0x30d   :  { %17534 = vst [vmem:[#allocation166_spill] sm:$0xff] %v13413_v35  ;;  %2896 = vperm.xlu0 %11703, %v13413_v35   ;;  %17539 = vst [vmem:[#allocation171_spill] sm:$0xff] %v13432_v1  ;;  %v2576_v35 = vpop.xlane.xlu0 %2575 }
 0x30e   :  { %v2579_v19 = vpop.xlane.xlu1 %2578  ;;  %2875 = vperm.xlu1 %11702, %v13416_v36  }
 0x30f   :  { %v13421_v0 = vadd.f32 %v13190_v18, %v2579_v19 }
 0x311   :  { %17536 = vst [vmem:[#allocation168_spill] sm:$0xff] %v13421_v0  ;;  %2902 = vperm.xlu0 %11703, %v13421_v0   ;;  %v13441_v0 = vadd.f32 %v13190_v18, %v2576_v35 }
 0x312   :  { %v2585_v5 = vpop.xlane.xlu1 %2584  ;;  %2881 = vperm.xlu1 %11702, %v13424_v8  }
 0x313   :  { %v13429_v10 = vadd.f32 %v13190_v18, %v2585_v5  ;;  %17541 = vst [vmem:[#allocation173_spill] sm:$0xff] %v13441_v0  ;;  %v2582_v5 = vpop.xlane.xlu0 %2581 }
 0x314   :  { %v13445_v54 = vadd.f32 %v13190_v18, %v2582_v5 }
 0x315   :  { %17538 = vst [vmem:[#allocation170_spill] sm:$0xff] %v13429_v10  ;;  %2908 = vperm.xlu0 %11703, %v13429_v10  }
 0x316   :  { %v2723_v19 = vpop.permute.xlu1 %2722  ;;  %2887 = vperm.xlu1 %11702, %v13432_v1   ;;  %17542 = vst [vmem:[#allocation174_spill] sm:$0xff] %v13445_v54 }
 0x317   :  { %v2720_v10 = vpop.permute.xlu0 %2719  ;;  %v2919_v5 = vrot.slane %v2723_v19, %v13453_v42 }
 0x318   :  { %v2915_v18 = vrot.slane %v2720_v10, %v13453_v42 }
 0x31a   :  { %v2729_v36 = vpop.permute.xlu1 %2728  ;;  %2893 = vperm.xlu1 %11702, %v13437_v22   ;;  %v3169_v33 = vsel %vm3168_vm2, %v2919_v5, %v2915_v18 }
 0x31b   :  { %v2927_v27 = vrot.slane %v2729_v36, %v13453_v42 }
 0x31e   :  { %v2726_v8 = vpop.permute.xlu1 %2725  ;;  %2899 = vperm.xlu1 %11702, %v13441_v0  }
 0x322   :  { %v2735_v29 = vpop.permute.xlu1 %2734  ;;  %2905 = vperm.xlu1 %11702, %v13445_v54   ;;  %v2923_v54 = vrot.slane %v2726_v8, %v13453_v42 }
 0x324   :  { %v2747_v1 = vpop.permute.xlu0 %2746  ;;  %v3171_v34 = vsel %vm3170_vm3, %v2923_v54, %v3169_v33 }
 0x325   :  { %v2951_v48 = vrot.slane %v2747_v1, %v13453_v42  ;;  %v3173_v18 = vsel %vm3172_vm4, %v2927_v27, %v3171_v34 }
 0x326   :  { %v2732_v49 = vpop.permute.xlu1 %2731 }
 0x327   :  { %v2931_v10 = vrot.slane %v2732_v49, %v13453_v42 }
 0x328   :  { %v2753_v31 = vpop.permute.xlu0 %2752 }
 0x329   :  { %v2959_v1 = vrot.slane %v2753_v31, %v13453_v42  ;;  %v3175_v33 = vsel %vm3174_vm5, %v2931_v10, %v3173_v18 }
 0x32a   :  { %v2741_v22 = vpop.permute.xlu1 %2740 }
 0x32c   :  { %v2759_v35 = vpop.permute.xlu0 %2758 }
 0x32d   :  { %v2967_v34 = vrot.slane %v2759_v35, %v13453_v42 }
 0x32e   :  { %v2738_v0 = vpop.permute.xlu1 %2737 }
 0x32f   :  { %v2939_v54 = vrot.slane %v2738_v0, %v13453_v42 }
 0x330   :  { %v2765_v12 = vpop.permute.xlu0 %2764 }
 0x332   :  { %v2744_v24 = vpop.permute.xlu1 %2743 }
 0x333   :  { %v2947_v57 = vrot.slane %v2744_v24, %v13453_v42 }
 0x334   :  { %v2771_v37 = vpop.permute.xlu0 %2770 }
 0x335   :  { %v3182_v8 = vsel %vm3168_vm2, %v2951_v48, %v2947_v57 }
 0x336   :  { %v2750_v3 = vpop.permute.xlu1 %2749 }
 0x337   :  { %v2955_v19 = vrot.slane %v2750_v3, %v13453_v42  ;;  %v2935_v3 = vrot.slane %v2735_v29, %v13453_v42  ;;  %v2975_v29 = vrot.slane %v2765_v12, %v13453_v42  ;;  %v2983_v12 = vrot.slane %v2771_v37, %v13453_v42 }
 0x338   :  { %v2777_v23 = vpop.permute.xlu0 %2776 }
 0x339   :  { %v3183_v24 = vsel %vm3170_vm3, %v2955_v19, %v3182_v8  ;;  %v3177_v31 = vsel %vm3176_vm6, %v2935_v3, %v3175_v33  ;;  %v2943_v19 = vrot.slane %v2741_v22, %v13453_v42 }
 0x33a   :  { %v2756_v5 = vpop.permute.xlu1 %2755  ;;  %v3184_v36 = vsel %vm3172_vm4, %v2959_v1, %v3183_v24  ;;  %v3179_v0 = vsel %vm3178_vm7, %v2939_v54, %v3177_v31  ;;  %v2991_v31 = vrot.slane %v2777_v23, %v13453_v42 }
 0x33b   :  { %v2963_v49 = vrot.slane %v2756_v5, %v13453_v42  ;;  %v3181_v5 = vsel %vm3180_vm8, %v2943_v19, %v3179_v0 }
 0x33c   :  { %v2783_v48 = vpop.permute.xlu0 %2782  ;;  %v3240_v22 = vsel %vm3239_vm9, %v3181_v5, -inf }
 0x33d   :  { %v3185_v57 = vsel %vm3174_vm5, %v2963_v49, %v3184_v36  ;;  %v2999_v37 = vrot.slane %v2783_v48, %v13453_v42 }
 0x33e   :  { %v2762_v27 = vpop.permute.xlu1 %2761  ;;  %v3186_v24 = vsel %vm3176_vm6, %v2967_v34, %v3185_v57 }
 0x33f   :  { %v2971_v10 = vrot.slane %v2762_v27, %v13453_v42 }
 0x340   :  { %v2789_v8 = vpop.permute.xlu0 %2788 }
 0x341   :  { %v3187_v18 = vsel %vm3178_vm7, %v2971_v10, %v3186_v24 }
 0x342   :  { %v2768_v1 = vpop.permute.xlu1 %2767  ;;  %v3188_v35 = vsel %vm3180_vm8, %v2975_v29, %v3187_v18 }
 0x343   :  { %v3243_v33 = vsel %vm3239_vm9, %v3188_v35, -inf  ;;  %v2979_v49 = vrot.slane %v2768_v1, %v13453_v42  ;;  %v3007_v35 = vrot.slane %v2789_v8, %v13453_v42 }
 0x344   :  { %3244 = vmax.xlane.f32.xlu0 %v3243_v33  ;;  %v2795_v54 = vpop.permute.xlu0 %2794 }
 0x345   :  { %v3189_v57 = vsel %vm3168_vm2, %v2983_v12, %v2979_v49  ;;  %v3015_v48 = vrot.slane %v2795_v54, %v13453_v42 }
 0x346   :  { %v2774_v3 = vpop.permute.xlu1 %2773  ;;  %3241 = vmax.xlane.f32.xlu1 %v3240_v22 }
 0x347   :  { %v2987_v36 = vrot.slane %v2774_v3, %v13453_v42 }
 0x348   :  { %v2801_v34 = vpop.permute.xlu0 %2800 }
 0x349   :  { %v3190_v27 = vsel %vm3170_vm3, %v2987_v36, %v3189_v57 }
 0x34a   :  { %v2780_v10 = vpop.permute.xlu1 %2779  ;;  %v3191_v19 = vsel %vm3172_vm4, %v2991_v31, %v3190_v27 }
 0x34b   :  { %v2995_v0 = vrot.slane %v2780_v10, %v13453_v42 }
 0x34c   :  { %v2807_v29 = vpop.permute.xlu0 %2806 }
 0x34d   :  { %v3192_v24 = vsel %vm3174_vm5, %v2995_v0, %v3191_v19  ;;  %v3023_v0 = vrot.slane %v2801_v34, %v13453_v42  ;;  %v3031_v54 = vrot.slane %v2807_v29, %v13453_v42 }
 0x34e   :  { %v2786_v18 = vpop.permute.xlu1 %2785  ;;  %v3193_v33 = vsel %vm3176_vm6, %v2999_v37, %v3192_v24 }
 0x34f   :  { %v3003_v1 = vrot.slane %v2786_v18, %v13453_v42 }
 0x350   :  { %v2813_v5 = vpop.permute.xlu0 %2812 }
 0x351   :  { %v3194_v23 = vsel %vm3178_vm7, %v3003_v1, %v3193_v33 }
 0x352   :  { %v2792_v49 = vpop.permute.xlu1 %2791  ;;  %v3195_v22 = vsel %vm3180_vm8, %v3007_v35, %v3194_v23  ;;  %v3039_v23 = vrot.slane %v2813_v5, %v13453_v42 }
 0x353   :  { %v3246_v12 = vsel %vm3239_vm9, %v3195_v22, -inf  ;;  %v3011_v3 = vrot.slane %v2792_v49, %v13453_v42 }
 0x354   :  { %3247 = vmax.xlane.f32.xlu0 %v3246_v12  ;;  %v2819_v36 = vpop.permute.xlu0 %2818 }
 0x355   :  { %v3196_v8 = vsel %vm3168_vm2, %v3015_v48, %v3011_v3  ;;  %v3047_v29 = vrot.slane %v2819_v36, %v13453_v42 }
 0x356   :  { %v2798_v57 = vpop.permute.xlu1 %2797 }
 0x357   :  { %v3019_v27 = vrot.slane %v2798_v57, %v13453_v42 }
 0x358   :  { %v2825_v31 = vpop.permute.xlu0 %2824 }
 0x359   :  { %v3197_v10 = vsel %vm3170_vm3, %v3019_v27, %v3196_v8 }
 0x35a   :  { %v2804_v19 = vpop.permute.xlu1 %2803  ;;  %v3198_v37 = vsel %vm3172_vm4, %v3023_v0, %v3197_v10 }
 0x35b   :  { %v3027_v24 = vrot.slane %v2804_v19, %v13453_v42 }
 0x35c   :  { %v2831_v18 = vpop.permute.xlu0 %2830 }
 0x35d   :  { %v3199_v1 = vsel %vm3174_vm5, %v3027_v24, %v3198_v37  ;;  %v3055_v24 = vrot.slane %v2825_v31, %v13453_v42  ;;  %v3063_v36 = vrot.slane %v2831_v18, %v13453_v42 }
 0x35e   :  { %v2810_v35 = vpop.permute.xlu1 %2809  ;;  %v3200_v22 = vsel %vm3176_vm6, %v3031_v54, %v3199_v1 }
 0x35f   :  { %v3035_v33 = vrot.slane %v2810_v35, %v13453_v42 }
 0x360   :  { %v2837_v49 = vpop.permute.xlu0 %2836 }
 0x361   :  { %v3201_v34 = vsel %vm3178_vm7, %v3035_v33, %v3200_v22 }
 0x362   :  { %v2816_v12 = vpop.permute.xlu1 %2815  ;;  %v3202_v3 = vsel %vm3180_vm8, %v3039_v23, %v3201_v34  ;;  %v3071_v34 = vrot.slane %v2837_v49, %v13453_v42 }
 0x363   :  { %v3249_v48 = vsel %vm3239_vm9, %v3202_v3, -inf  ;;  %v3043_v57 = vrot.slane %v2816_v12, %v13453_v42 }
 0x364   :  { %3250 = vmax.xlane.f32.xlu1 %v3249_v48  ;;  %v2843_v27 = vpop.permute.xlu0 %2842 }
 0x365   :  { %v3203_v5 = vsel %vm3168_vm2, %v3047_v29, %v3043_v57  ;;  %v3079_v18 = vrot.slane %v2843_v27, %v13453_v42 }
 0x366   :  { %v2822_v8 = vpop.permute.xlu1 %2821 }
 0x367   :  { %v3051_v10 = vrot.slane %v2822_v8, %v13453_v42 }
 0x368   :  { %v2849_v0 = vpop.permute.xlu0 %2848 }
 0x369   :  { %v3204_v19 = vsel %vm3170_vm3, %v3051_v10, %v3203_v5 }
 0x36a   :  { %v2828_v37 = vpop.permute.xlu1 %2827  ;;  %v3205_v54 = vsel %vm3172_vm4, %v3055_v24, %v3204_v19 }
 0x36b   :  { %v3059_v1 = vrot.slane %v2828_v37, %v13453_v42 }
 0x36c   :  { %v2855_v35 = vpop.permute.xlu0 %2854 }
 0x36d   :  { %v3206_v33 = vsel %vm3174_vm5, %v3059_v1, %v3205_v54  ;;  %v3087_v1 = vrot.slane %v2849_v0, %v13453_v42 }
 0x36e   :  { %v2834_v23 = vpop.permute.xlu1 %2833  ;;  %v3207_v3 = vsel %vm3176_vm6, %v3063_v36, %v3206_v33 }
 0x36f   :  { %v3067_v22 = vrot.slane %v2834_v23, %v13453_v42 }
 0x370   :  { %v2861_v12 = vpop.permute.xlu0 %2860 }
 0x371   :  { %v3208_v31 = vsel %vm3178_vm7, %v3067_v22, %v3207_v3  ;;  %v3095_v22 = vrot.slane %v2855_v35, %v13453_v42 }
 0x372   :  { %v2840_v48 = vpop.permute.xlu1 %2839  ;;  %v3209_v57 = vsel %vm3180_vm8, %v3071_v34, %v3208_v31  ;;  %v3103_v31 = vrot.slane %v2861_v12, %v13453_v42 }
 0x373   :  { %v3252_v29 = vsel %vm3239_vm9, %v3209_v57, -inf  ;;  %v3075_v8 = vrot.slane %v2840_v48, %v13453_v42 }
 0x374   :  { %3253 = vmax.xlane.f32.xlu0 %v3252_v29  ;;  %v2867_v10 = vpop.permute.xlu0 %2866 }
 0x375   :  { %v3210_v49 = vsel %vm3168_vm2, %v3079_v18, %v3075_v8  ;;  %v3111_v35 = vrot.slane %v2867_v10, %v13453_v42 }
 0x376   :  { %v2846_v5 = vpop.permute.xlu1 %2845 }
 0x377   :  { %v3083_v19 = vrot.slane %v2846_v5, %v13453_v42 }
 0x378   :  { %v2873_v37 = vpop.permute.xlu0 %2872 }
 0x379   :  { %v3211_v24 = vsel %vm3170_vm3, %v3083_v19, %v3210_v49 }
 0x37a   :  { %v2852_v54 = vpop.permute.xlu1 %2851  ;;  %v3212_v36 = vsel %vm3172_vm4, %v3087_v1, %v3211_v24  ;;  %v3119_v1 = vrot.slane %v2873_v37, %v13453_v42 }
 0x37b   :  { %v3091_v33 = vrot.slane %v2852_v54, %v13453_v42 }
 0x37c   :  { %v2879_v34 = vpop.permute.xlu0 %2878 }
 0x37d   :  { %v3213_v23 = vsel %vm3174_vm5, %v3091_v33, %v3212_v36 }
 0x37e   :  { %v2858_v27 = vpop.permute.xlu1 %2857  ;;  %v3214_v48 = vsel %vm3176_vm6, %v3095_v22, %v3213_v23 }
 0x37f   :  { %v3099_v3 = vrot.slane %v2858_v27, %v13453_v42  ;;  %v3127_v27 = vrot.slane %v2879_v34, %v13453_v42 }
 0x380   :  { %v2885_v5 = vpop.permute.xlu0 %2884 }
 0x381   :  { %v3215_v57 = vsel %vm3178_vm7, %v3099_v3, %v3214_v48 }
 0x382   :  { %v2864_v0 = vpop.permute.xlu1 %2863  ;;  %v3216_v29 = vsel %vm3180_vm8, %v3103_v31, %v3215_v57  ;;  %v3135_v31 = vrot.slane %v2885_v5, %v13453_v42 }
 0x383   :  { %v3255_v8 = vsel %vm3239_vm9, %v3216_v29, -inf  ;;  %v3107_v18 = vrot.slane %v2864_v0, %v13453_v42 }
 0x384   :  { %3256 = vmax.xlane.f32.xlu1 %v3255_v8  ;;  %v2891_v33 = vpop.permute.xlu0 %2890 }
 0x385   :  { %v3217_v12 = vsel %vm3168_vm2, %v3111_v35, %v3107_v18  ;;  %v3143_v34 = vrot.slane %v2891_v33, %v13453_v42 }
 0x386   :  { %v2870_v19 = vpop.permute.xlu1 %2869 }
 0x387   :  { %v3115_v49 = vrot.slane %v2870_v19, %v13453_v42 }
 0x388   :  { %v2897_v57 = vpop.permute.xlu0 %2896 }
 0x389   :  { %v3218_v24 = vsel %vm3170_vm3, %v3115_v49, %v3217_v12 }
 0x38a   :  { %v2876_v54 = vpop.permute.xlu1 %2875  ;;  %v3219_v23 = vsel %vm3172_vm4, %v3119_v1, %v3218_v24  ;;  %v3151_v24 = vrot.slane %v2897_v57, %v13453_v42 }
 0x38b   :  { %v3123_v36 = vrot.slane %v2876_v54, %v13453_v42 }
 0x38c   :  { %v2903_v19 = vpop.permute.xlu0 %2902 }
 0x38d   :  { %v3220_v22 = vsel %vm3174_vm5, %v3123_v36, %v3219_v23  ;;  %v3159_v33 = vrot.slane %v2903_v19, %v13453_v42 }
 0x38e   :  { %v2882_v10 = vpop.permute.xlu1 %2881  ;;  %v3221_v48 = vsel %vm3176_vm6, %v3127_v27, %v3220_v22 }
 0x38f   :  { %v3131_v3 = vrot.slane %v2882_v10, %v13453_v42 }
 0x390   :  { %v2909_v23 = vpop.permute.xlu0 %2908 }
 0x391   :  { %v3222_v37 = vsel %vm3178_vm7, %v3131_v3, %v3221_v48  ;;  %v3167_v3 = vrot.slane %v2909_v23, %v13453_v42 }
 0x392   :  { %v2888_v0 = vpop.permute.xlu1 %2887  ;;  %v3223_v29 = vsel %vm3180_vm8, %v3135_v31, %v3222_v37 }
 0x393   :  { %v3258_v8 = vsel %vm3239_vm9, %v3223_v29, -inf  ;;  %v3139_v18 = vrot.slane %v2888_v0, %v13453_v42 }
 0x394   :  { %3259 = vmax.xlane.f32.xlu0 %v3258_v8 }
 0x395   :  { %v3224_v5 = vsel %vm3168_vm2, %v3143_v34, %v3139_v18 }
 0x396   :  { %v2894_v35 = vpop.permute.xlu1 %2893 }
 0x397   :  { %v3147_v49 = vrot.slane %v2894_v35, %v13453_v42 }
 0x399   :  { %v3225_v12 = vsel %vm3170_vm3, %v3147_v49, %v3224_v5 }
 0x39a   :  { %v2900_v1 = vpop.permute.xlu1 %2899  ;;  %v3226_v36 = vsel %vm3172_vm4, %v3151_v24, %v3225_v12 }
 0x39b   :  { %v3155_v54 = vrot.slane %v2900_v1, %v13453_v42 }
 0x39d   :  { %v3227_v22 = vsel %vm3174_vm5, %v3155_v54, %v3226_v36 }
 0x39e   :  { %v2906_v27 = vpop.permute.xlu1 %2905  ;;  %v3228_v31 = vsel %vm3176_vm6, %v3159_v33, %v3227_v22 }
 0x39f   :  { %v3163_v10 = vrot.slane %v2906_v27, %v13453_v42 }
 0x3a1   :  { %v3229_v48 = vsel %vm3178_vm7, %v3163_v10, %v3228_v31 }
 0x3a2   :  { %v3230_v57 = vsel %vm3180_vm8, %v3167_v3, %v3229_v48 }
 0x3a3   :  { %v3261_v37 = vsel %vm3239_vm9, %v3230_v57, -inf }
 0x3a4   :  { %3262 = vmax.xlane.f32.xlu1 %v3261_v37 }
 0x3cd   :  { %v3245_v33 = vpop.xlane.xlu0 %3244 }
 0x3ce   :  { %v3307_v3 = vrot.slane %v3245_v33, %v11970_v11  ;;  %v3319_v48 = vrot.slane %v3245_v33, %v12300_v4  ;;  %v3315_v37 = vrot.slane %v3245_v33, %v12287_v53 }
 0x3cf   :  { %v3242_v0 = vpop.xlane.xlu1 %3241 }
 0x3d0   :  { %v3275_v29 = vrot.slane %v3242_v0, %v11970_v11  ;;  %v3279_v8 = vrot.slane %v3242_v0, %v12275_v45  ;;  %v3283_v18 = vrot.slane %v3242_v0, %v12287_v53  ;;  %v3287_v34 = vrot.slane %v3242_v0, %v12300_v4 }
 0x3d1   :  { %v3295_v49 = vrot.slane %v3242_v0, %v12330_v40  ;;  %v3291_v12 = vrot.slane %v3242_v0, %v12315_v20  ;;  %v3303_v36 = vrot.slane %v3242_v0, %v12667_v32 }
 0x3d2   :  { %v3592_v35 = vsub.f32 %v13196_v44, %v3275_v29  ;;  %v3593_v19 = vsub.f32 %v13193_v6, %v3279_v8  ;;  %v3595_v5 = vsub.f32 %v13201_v39, %v3287_v34  ;;  %v3594_v24 = vsub.f32 %v13205_v25, %v3283_v18 }
 0x3d3   :  { %v3597_v23 = vsub.f32 %v13209_v7, %v3295_v49  ;;  %v3299_v44 = vrot.slane %v3242_v0, %v12345_v21  ;;  %v3596_v6 = vsub.f32 %v13216_v63, %v3291_v12  ;;  %v3311_v39 = vrot.slane %v3245_v33, %v12275_v45 }
 0x3d4   :  { %v3656_v1 = vmul.f32 1.442695, %v3592_v35  ;;  %v3658_v54 = vmul.f32 1.442695, %v3593_v19  ;;  %v3662_v22 = vmul.f32 1.442695, %v3595_v5  ;;  %v3599_v10 = vsub.f32 %v13224_v50, %v3303_v36 }
 0x3d5   :  { %v3660_v27 = vmul.f32 1.442695, %v3594_v24  ;;  %v3666_v25 = vmul.f32 1.442695, %v3597_v23  ;;  %v3598_v31 = vsub.f32 %v13232_v62, %v3299_v44  ;;  %v3664_v7 = vmul.f32 1.442695, %v3596_v6 }
 0x3d6   :  { %11712 = vpow2.f32 %v3656_v1  ;;  %v3601_v57 = vsub.f32 %v13213_v13, %v3311_v39  ;;  %v3670_v63 = vmul.f32 1.442695, %v3599_v10  ;;  %v3600_v0 = vsub.f32 %v13240_v52, %v3307_v3 }
 0x3d7   :  { %11714 = vpow2.f32 %v3658_v54  ;;  %v3668_v50 = vmul.f32 1.442695, %v3598_v31  ;;  %v3327_v29 = vrot.slane %v3245_v33, %v12330_v40  ;;  %v3603_v8 = vsub.f32 %v13221_v59, %v3319_v48 }
 0x3d8   :  { %11716 = vpow2.f32 %v3662_v22  ;;  %v3674_v18 = vmul.f32 1.442695, %v3601_v57  ;;  %v3323_v34 = vrot.slane %v3245_v33, %v12315_v20  ;;  %v3602_v13 = vsub.f32 %v13248_v38, %v3315_v37 }
 0x3d9   :  { %11718 = vpow2.f32 %v3660_v27  ;;  %v3672_v35 = vmul.f32 1.442695, %v3600_v0  ;;  %v3335_v52 = vrot.slane %v3245_v33, %v12667_v32  ;;  %v3605_v59 = vsub.f32 %v13229_v30, %v3327_v29 }
 0x3da   :  { %11720 = vpow2.f32 %v3666_v25  ;;  %v3678_v49 = vmul.f32 1.442695, %v3603_v8  ;;  %v3331_v12 = vrot.slane %v3245_v33, %v12345_v21  ;;  %v3604_v38 = vsub.f32 %v13256_v47, %v3323_v34 }
 0x3db   :  { %11722 = vpow2.f32 %v3664_v7  ;;  %v3676_v24 = vmul.f32 1.442695, %v3602_v13  ;;  %v3607_v36 = vsub.f32 %v13237_v41, %v3335_v52  ;;  %v3682_v30 = vmul.f32 1.442695, %v3605_v59 }
 0x3dc   :  { %11724 = vpow2.f32 %v3670_v63  ;;  %v3606_v33 = vsub.f32 %v13264_v17, %v3331_v12  ;;  %v3680_v47 = vmul.f32 1.442695, %v3604_v38 }
 0x3dd   :  { %11726 = vpow2.f32 %v3668_v50  ;;  %v3248_v1 = vpop.xlane.xlu0 %3247  ;;  %v3686_v41 = vmul.f32 1.442695, %v3607_v36 }
 0x3de   :  { %11728 = vpow2.f32 %v3674_v18  ;;  %v3343_v23 = vrot.slane %v3248_v1, %v12275_v45  ;;  %v3339_v44 = vrot.slane %v3248_v1, %v11970_v11  ;;  %v3351_v27 = vrot.slane %v3248_v1, %v12300_v4 }
 0x3df   :  { %11730 = vpow2.f32 %v3672_v35  ;;  %v3684_v17 = vmul.f32 1.442695, %v3606_v33  ;;  %v3347_v25 = vrot.slane %v3248_v1, %v12287_v53  ;;  %v3359_v7 = vrot.slane %v3248_v1, %v12330_v40 }
 0x3e0   :  { %11732 = vpow2.f32 %v3678_v49  ;;  %v3609_v39 = vsub.f32 %v13245_v46, %v3343_v23  ;;  %v3608_v3 = vsub.f32 %v13272_v2, %v3339_v44  ;;  %v3611_v48 = vsub.f32 %v13253_v28, %v3351_v27 }
 0x3e1   :  { %11734 = vpow2.f32 %v3676_v24  ;;  %v3355_v63 = vrot.slane %v3248_v1, %v12315_v20  ;;  %v3610_v37 = vsub.f32 %v13280_v14, %v3347_v25  ;;  %v3367_v50 = vrot.slane %v3248_v1, %v12667_v32 }
 0x3e2   :  { %11736 = vpow2.f32 %v3682_v30  ;;  %v3690_v46 = vmul.f32 1.442695, %v3609_v39  ;;  %v3688_v2 = vmul.f32 1.442695, %v3608_v3  ;;  %v3613_v29 = vsub.f32 %v13261_v15, %v3359_v7 }
 0x3e3   :  { %v13607_v62 = vpop.eup %11712  ;;  %11738 = vpow2.f32 %v3680_v47  ;;  %v3694_v28 = vmul.f32 1.442695, %v3611_v48  ;;  %v3363_v18 = vrot.slane %v3248_v1, %v12345_v21  ;;  %v3612_v34 = vsub.f32 %v13288_v61, %v3355_v63 }
 0x3e4   :  { %v13611_v19 = vpop.eup %11714  ;;  %3849 = vperm.xlu0 %11703, %v13607_v62   ;;  %11740 = vpow2.f32 %v3686_v41  ;;  %v3692_v14 = vmul.f32 1.442695, %v3610_v37  ;;  %v3615_v52 = vsub.f32 %v13269_v51, %v3367_v50  ;;  %v3698_v15 = vmul.f32 1.442695, %v3613_v29 }
 0x3e5   :  { %3852 = vperm.xlu1 %11702, %v13611_v19   ;;  %v13617_v5 = vpop.eup %11716  ;;  %11742 = vpow2.f32 %v3684_v17  ;;  %v3614_v12 = vsub.f32 %v13296_v26, %v3363_v18  ;;  %v3696_v61 = vmul.f32 1.442695, %v3612_v34  ;;  %v17555_v18 = vld [vmem:[#allocation145_spill] sm:$0xff] }
 0x3e6   :  { %v13621_v54 = vpop.eup %11718  ;;  %11744 = vpow2.f32 %v3690_v46  ;;  %v3702_v51 = vmul.f32 1.442695, %v3615_v52 }
 0x3e7   :  { %v13627_v22 = vpop.eup %11720  ;;  %11746 = vpow2.f32 %v3688_v2  ;;  %v3700_v26 = vmul.f32 1.442695, %v3614_v12 }
 0x3e8   :  { %3858 = vperm.xlu0 %11703, %v13617_v5   ;;  %v13631_v6 = vpop.eup %11722  ;;  %11748 = vpow2.f32 %v3694_v28 }
 0x3e9   :  { %3855 = vperm.xlu1 %11702, %v13621_v54   ;;  %v13637_v10 = vpop.eup %11724  ;;  %11750 = vpow2.f32 %v3692_v14 }
 0x3ea   :  { %17546 = vst [vmem:[#allocation177_spill] sm:$0xff] %v13637_v10  ;;  %v13641_v31 = vpop.eup %11726  ;;  %11752 = vpow2.f32 %v3698_v15  ;;  %v17557_v15 = vld [vmem:[#allocation142_spill] sm:$0xff] }
 0x3eb   :  { %17547 = vst [vmem:[#allocation178_spill] sm:$0xff] %v13641_v31  ;;  %v13647_v57 = vpop.eup %11728  ;;  %11754 = vpow2.f32 %v3696_v61 }
 0x3ec   :  { %3864 = vperm.xlu0 %11703, %v13627_v22   ;;  %v13651_v0 = vpop.eup %11730  ;;  %11756 = vpow2.f32 %v3702_v51  ;;  %v17559_v51 = vld [vmem:[#allocation147_spill] sm:$0xff] }
 0x3ed   :  { %3861 = vperm.xlu1 %11702, %v13631_v6   ;;  %v13657_v8 = vpop.eup %11732  ;;  %v3251_v13 = vpop.xlane.xlu1 %3250  ;;  %11758 = vpow2.f32 %v3700_v26 }
 0x3ee   :  { %v13661_v35 = vpop.eup %11734  ;;  %v3375_v59 = vrot.slane %v3251_v13, %v12275_v45  ;;  %v3371_v38 = vrot.slane %v3251_v13, %v11970_v11  ;;  %v3383_v1 = vrot.slane %v3251_v13, %v12300_v4  ;;  %v3379_v23 = vrot.slane %v3251_v13, %v12287_v53 }
 0x3ef   :  { %v13667_v49 = vpop.eup %11736  ;;  %v3391_v44 = vrot.slane %v3251_v13, %v12330_v40  ;;  %v3387_v39 = vrot.slane %v3251_v13, %v12315_v20  ;;  %v3399_v3 = vrot.slane %v3251_v13, %v12667_v32  ;;  %v3395_v46 = vrot.slane %v3251_v13, %v12345_v21 }
 0x3f0   :  { %3870 = vperm.xlu0 %11703, %v13637_v10   ;;  %v13671_v24 = vpop.eup %11738  ;;  %v3617_v36 = vsub.f32 %v13277_v55, %v3375_v59  ;;  %v3616_v33 = vsub.f32 %v13304_v16, %v3371_v38  ;;  %v3619_v41 = vsub.f32 %v13285_v60, %v3383_v1  ;;  %v3618_v17 = vsub.f32 %v13312_v43, %v3379_v23  ;;  %v17561_v23 = vld [vmem:[#allocation143_spill] sm:$0xff] }
 0x3f1   :  { %3867 = vperm.xlu1 %11702, %v13641_v31   ;;  %v13677_v30 = vpop.eup %11740  ;;  %v3621_v7 = vsub.f32 %v13293_v56, %v3391_v44  ;;  %v3620_v63 = vsub.f32 %v13320_v9, %v3387_v39  ;;  %v3623_v50 = vsub.f32 %v13301_v58, %v3399_v3  ;;  %v3622_v34 = vsub.f32 %v17555_v18, %v3395_v46  ;;  %v17563_v39 = vld [vmem:[#allocation149_spill] sm:$0xff] }
 0x3f2   :  { %17548 = vst [vmem:[#allocation179_spill] sm:$0xff] %v13677_v30  ;;  %v13681_v47 = vpop.eup %11742  ;;  %v3706_v55 = vmul.f32 1.442695, %v3617_v36  ;;  %v3704_v16 = vmul.f32 1.442695, %v3616_v33 }
 0x3f3   :  { %17549 = vst [vmem:[#allocation180_spill] sm:$0xff] %v13681_v47  ;;  %v13687_v27 = vpop.eup %11744  ;;  %v3710_v60 = vmul.f32 1.442695, %v3619_v41  ;;  %v3708_v43 = vmul.f32 1.442695, %v3618_v17 }
 0x3f4   :  { %3876 = vperm.xlu0 %11703, %v13647_v57   ;;  %17550 = vst [vmem:[#allocation181_spill] sm:$0xff] %v13687_v27  ;;  %v13691_v25 = vpop.eup %11746  ;;  %11760 = vpow2.f32 %v3706_v55  ;;  %v3714_v56 = vmul.f32 1.442695, %v3621_v7  ;;  %v3712_v9 = vmul.f32 1.442695, %v3620_v63 }
 0x3f5   :  { %3873 = vperm.xlu1 %11702, %v13651_v0   ;;  %17551 = vst [vmem:[#allocation182_spill] sm:$0xff] %v13691_v25  ;;  %v13697_v48 = vpop.eup %11748  ;;  %11762 = vpow2.f32 %v3704_v16  ;;  %v3718_v58 = vmul.f32 1.442695, %v3623_v50  ;;  %v3716_v61 = vmul.f32 1.442695, %v3622_v34 }
 0x3f6   :  { %17552 = vst [vmem:[#allocation183_spill] sm:$0xff] %v13697_v48  ;;  %v13701_v2 = vpop.eup %11750  ;;  %11764 = vpow2.f32 %v3710_v60  ;;  %v17565_v60 = vld [vmem:[#allocation144_spill] sm:$0xff] }
 0x3f7   :  { %17553 = vst [vmem:[#allocation184_spill] sm:$0xff] %v13701_v2  ;;  %v13707_v28 = vpop.eup %11752  ;;  %11766 = vpow2.f32 %v3708_v43 }
 0x3f8   :  { %3882 = vperm.xlu0 %11703, %v13657_v8   ;;  %17554 = vst [vmem:[#allocation185_spill] sm:$0xff] %v13707_v28  ;;  %v13711_v13 = vpop.eup %11754  ;;  %11768 = vpow2.f32 %v3714_v56  ;;  %v17567_v56 = vld [vmem:[#allocation151_spill] sm:$0xff] }
 0x3f9   :  { %3879 = vperm.xlu1 %11702, %v13661_v35   ;;  %17556 = vst [vmem:[#allocation145_spill] sm:$0xff] %v13711_v13  ;;  %v13717_v12 = vpop.eup %11756  ;;  %11770 = vpow2.f32 %v3712_v9 }
 0x3fa   :  { %17558 = vst [vmem:[#allocation142_spill] sm:$0xff] %v13717_v12  ;;  %v13721_v36 = vpop.eup %11758  ;;  %11772 = vpow2.f32 %v3718_v58 }
 0x3fb   :  { %17560 = vst [vmem:[#allocation147_spill] sm:$0xff] %v13721_v36  ;;  %11774 = vpow2.f32 %v3716_v61 }
 0x3fc   :  { %3888 = vperm.xlu0 %11703, %v13667_v49  }
 0x3fd   :  { %3885 = vperm.xlu1 %11702, %v13671_v24   ;;  %v3254_v37 = vpop.xlane.xlu0 %3253 }
 0x3fe   :  { %v3407_v29 = vrot.slane %v3254_v37, %v12275_v45  ;;  %v3403_v14 = vrot.slane %v3254_v37, %v11970_v11  ;;  %v3415_v52 = vrot.slane %v3254_v37, %v12300_v4  ;;  %v3411_v38 = vrot.slane %v3254_v37, %v12287_v53 }
 0x3ff   :  { %v3423_v26 = vrot.slane %v3254_v37, %v12330_v40  ;;  %v3419_v55 = vrot.slane %v3254_v37, %v12315_v20  ;;  %v3431_v7 = vrot.slane %v3254_v37, %v12667_v32  ;;  %v3427_v50 = vrot.slane %v3254_v37, %v12345_v21  ;;  %v17571_v37 = vld [vmem:[#allocation153_spill] sm:$0xff] }
 0x400   :  { %3894 = vperm.xlu0 %11703, %v13677_v30   ;;  %v3625_v59 = vsub.f32 %v17557_v15, %v3407_v29  ;;  %v3624_v1 = vsub.f32 %v17559_v51, %v3403_v14  ;;  %v3627_v33 = vsub.f32 %v17561_v23, %v3415_v52  ;;  %v3626_v17 = vsub.f32 %v17563_v39, %v3411_v38  ;;  %v17569_v14 = vld [vmem:[#allocation146_spill] sm:$0xff] }
 0x401   :  { %3891 = vperm.xlu1 %11702, %v13681_v47   ;;  %v13727_v41 = vpop.eup %11760  ;;  %v3629_v46 = vsub.f32 %v17565_v60, %v3423_v26  ;;  %v3628_v29 = vsub.f32 %v17567_v56, %v3419_v55  ;;  %v3631_v58 = vsub.f32 %v17569_v14, %v3431_v7  ;;  %v3630_v61 = vsub.f32 %v17571_v37, %v3427_v50  ;;  %v17579_v14 = vld [vmem:[#allocation157_spill] sm:$0xff] }
 0x402   :  { %v3722_v44 = vmul.f32 1.442695, %v3625_v59  ;;  %17562 = vst [vmem:[#allocation143_spill] sm:$0xff] %v13727_v41  ;;  %v3720_v16 = vmul.f32 1.442695, %v3624_v1  ;;  %v13731_v3 = vpop.eup %11762 }
 0x403   :  { %17564 = vst [vmem:[#allocation149_spill] sm:$0xff] %v13731_v3  ;;  %v3726_v63 = vmul.f32 1.442695, %v3627_v33  ;;  %v13737_v43 = vpop.eup %11764  ;;  %v3724_v18 = vmul.f32 1.442695, %v3626_v17  ;;  %v17573_v33 = vld [vmem:[#allocation148_spill] sm:$0xff] }
 0x404   :  { %3900 = vperm.xlu0 %11703, %v13687_v27   ;;  %11776 = vpow2.f32 %v3722_v44  ;;  %17566 = vst [vmem:[#allocation144_spill] sm:$0xff] %v13737_v43  ;;  %v13741_v9 = vpop.eup %11766  ;;  %v3730_v52 = vmul.f32 1.442695, %v3629_v46  ;;  %v3728_v38 = vmul.f32 1.442695, %v3628_v29 }
 0x405   :  { %3897 = vperm.xlu1 %11702, %v13691_v25   ;;  %11778 = vpow2.f32 %v3720_v16  ;;  %17568 = vst [vmem:[#allocation151_spill] sm:$0xff] %v13741_v9  ;;  %v13747_v59 = vpop.eup %11768  ;;  %v3734_v26 = vmul.f32 1.442695, %v3631_v58  ;;  %v3732_v39 = vmul.f32 1.442695, %v3630_v61  ;;  %v17575_v16 = vld [vmem:[#allocation155_spill] sm:$0xff] }
 0x406   :  { %11780 = vpow2.f32 %v3726_v63  ;;  %17570 = vst [vmem:[#allocation146_spill] sm:$0xff] %v13747_v59  ;;  %v13751_v1 = vpop.eup %11770  ;;  %v17577_v63 = vld [vmem:[#allocation150_spill] sm:$0xff]  ;;  %v17581_v61 = vld [vmem:[#allocation152_spill] sm:$0xff] }
 0x407   :  { %11782 = vpow2.f32 %v3724_v18  ;;  %17572 = vst [vmem:[#allocation153_spill] sm:$0xff] %v13751_v1  ;;  %v13757_v55 = vpop.eup %11772 }
 0x408   :  { %3906 = vperm.xlu0 %11703, %v13697_v48   ;;  %11784 = vpow2.f32 %v3730_v52  ;;  %17574 = vst [vmem:[#allocation148_spill] sm:$0xff] %v13757_v55  ;;  %v13761_v60 = vpop.eup %11774 }
 0x409   :  { %3903 = vperm.xlu1 %11702, %v13701_v2   ;;  %11786 = vpow2.f32 %v3728_v38  ;;  %17576 = vst [vmem:[#allocation155_spill] sm:$0xff] %v13761_v60 }
 0x40a   :  { %11788 = vpow2.f32 %v3734_v26 }
 0x40b   :  { %11790 = vpow2.f32 %v3732_v39 }
 0x40c   :  { %3912 = vperm.xlu0 %11703, %v13707_v28   ;;  %v17642_v28 = vld [vmem:[#allocation61_spill] sm:$0xff] }
 0x40d   :  { %3909 = vperm.xlu1 %11702, %v13711_v13   ;;  %v3257_v34 = vpop.xlane.xlu1 %3256 }
 0x40e   :  { %v3439_v15 = vrot.slane %v3257_v34, %v12275_v45  ;;  %v3435_v51 = vrot.slane %v3257_v34, %v11970_v11  ;;  %v3447_v23 = vrot.slane %v3257_v34, %v12300_v4  ;;  %v3443_v17 = vrot.slane %v3257_v34, %v12287_v53 }
 0x40f   :  { %v3455_v46 = vrot.slane %v3257_v34, %v12330_v40  ;;  %v3451_v18 = vrot.slane %v3257_v34, %v12315_v20  ;;  %v3463_v37 = vrot.slane %v3257_v34, %v12667_v32 }
 0x410   :  { %3918 = vperm.xlu0 %11703, %v13717_v12   ;;  %v3633_v44 = vsub.f32 %v17573_v33, %v3439_v15  ;;  %v3632_v7 = vsub.f32 %v17575_v16, %v3435_v51  ;;  %v3635_v50 = vsub.f32 %v17577_v63, %v3447_v23  ;;  %v3634_v58 = vsub.f32 %v17579_v14, %v3443_v17  ;;  %v17583_v33 = vld [vmem:[#allocation159_spill] sm:$0xff] }
 0x411   :  { %3915 = vperm.xlu1 %11702, %v13721_v36   ;;  %v13767_v29 = vpop.eup %11776  ;;  %v3637_v38 = vsub.f32 %v17581_v61, %v3455_v46  ;;  %v3459_v23 = vrot.slane %v3257_v34, %v12345_v21  ;;  %v17587_v34 = vld [vmem:[#allocation161_spill] sm:$0xff] }
 0x412   :  { %v3738_v56 = vmul.f32 1.442695, %v3633_v44  ;;  %17578 = vst [vmem:[#allocation150_spill] sm:$0xff] %v13767_v29  ;;  %v3736_v52 = vmul.f32 1.442695, %v3632_v7  ;;  %v13771_v15 = vpop.eup %11778  ;;  %v3636_v44 = vsub.f32 %v17583_v33, %v3451_v18  ;;  %v17585_v7 = vld [vmem:[#allocation154_spill] sm:$0xff] }
 0x413   :  { %17580 = vst [vmem:[#allocation157_spill] sm:$0xff] %v13771_v15  ;;  %v3742_v51 = vmul.f32 1.442695, %v3635_v50  ;;  %v13777_v26 = vpop.eup %11780  ;;  %v3740_v39 = vmul.f32 1.442695, %v3634_v58  ;;  %v3639_v63 = vsub.f32 %v17585_v7, %v3463_v37  ;;  %v3638_v14 = vsub.f32 %v17587_v34, %v3459_v23 }
 0x414   :  { %3924 = vperm.xlu0 %11703, %v13727_v41   ;;  %11792 = vpow2.f32 %v3738_v56  ;;  %17582 = vst [vmem:[#allocation152_spill] sm:$0xff] %v13777_v26  ;;  %v13781_v16 = vpop.eup %11782  ;;  %v3746_v46 = vmul.f32 1.442695, %v3637_v38  ;;  %v3744_v18 = vmul.f32 1.442695, %v3636_v44  ;;  %v17589_v38 = vld [vmem:[#allocation156_spill] sm:$0xff] }
 0x415   :  { %3921 = vperm.xlu1 %11702, %v13731_v3   ;;  %11794 = vpow2.f32 %v3736_v52  ;;  %17584 = vst [vmem:[#allocation159_spill] sm:$0xff] %v13781_v16  ;;  %v13787_v56 = vpop.eup %11784  ;;  %v3750_v37 = vmul.f32 1.442695, %v3639_v63  ;;  %v3748_v23 = vmul.f32 1.442695, %v3638_v14  ;;  %v17640_v41 = vld [vmem:[#allocation57_spill] sm:$0xff] }
 0x416   :  { %11796 = vpow2.f32 %v3742_v51  ;;  %17586 = vst [vmem:[#allocation154_spill] sm:$0xff] %v13787_v56  ;;  %v13791_v52 = vpop.eup %11786 }
 0x417   :  { %11798 = vpow2.f32 %v3740_v39  ;;  %17588 = vst [vmem:[#allocation161_spill] sm:$0xff] %v13791_v52  ;;  %v13797_v33 = vpop.eup %11788  ;;  %v17591_v39 = vld [vmem:[#allocation163_spill] sm:$0xff] }
 0x418   :  { %3930 = vperm.xlu0 %11703, %v13737_v43   ;;  %11800 = vpow2.f32 %v3746_v46  ;;  %17590 = vst [vmem:[#allocation156_spill] sm:$0xff] %v13797_v33  ;;  %v13801_v34 = vpop.eup %11790  ;;  %v17593_v46 = vld [vmem:[#allocation158_spill] sm:$0xff] }
 0x419   :  { %3927 = vperm.xlu1 %11702, %v13741_v9   ;;  %11802 = vpow2.f32 %v3744_v18  ;;  %17592 = vst [vmem:[#allocation163_spill] sm:$0xff] %v13801_v34  ;;  %v17595_v18 = vld [vmem:[#allocation165_spill] sm:$0xff] }
 0x41a   :  { %11804 = vpow2.f32 %v3750_v37 }
 0x41b   :  { %11806 = vpow2.f32 %v3748_v23 }
 0x41c   :  { %3936 = vperm.xlu0 %11703, %v13747_v59  }
 0x41d   :  { %3933 = vperm.xlu1 %11702, %v13751_v1   ;;  %v3260_v17 = vpop.xlane.xlu0 %3259 }
 0x41e   :  { %v3471_v50 = vrot.slane %v3260_v17, %v12275_v45  ;;  %v3467_v58 = vrot.slane %v3260_v17, %v11970_v11  ;;  %v3479_v61 = vrot.slane %v3260_v17, %v12300_v4  ;;  %v3475_v44 = vrot.slane %v3260_v17, %v12287_v53 }
 0x41f   :  { %v3487_v63 = vrot.slane %v3260_v17, %v12330_v40  ;;  %v3483_v14 = vrot.slane %v3260_v17, %v12315_v20  ;;  %v3495_v37 = vrot.slane %v3260_v17, %v12667_v32  ;;  %v3491_v23 = vrot.slane %v3260_v17, %v12345_v21  ;;  %v17603_v17 = vld [vmem:[#allocation169_spill] sm:$0xff] }
 0x420   :  { %3942 = vperm.xlu0 %11703, %v13757_v55   ;;  %v3641_v51 = vsub.f32 %v17589_v38, %v3471_v50  ;;  %v3640_v7 = vsub.f32 %v17591_v39, %v3467_v58 }
 0x421   :  { %3939 = vperm.xlu1 %11702, %v13761_v60   ;;  %v13807_v38 = vpop.eup %11792  ;;  %v17637_v60 = vld [vmem:[#allocation46_spill] sm:$0xff] }
 0x422   :  { %v3754_v50 = vmul.f32 1.442695, %v3641_v51  ;;  %17594 = vst [vmem:[#allocation158_spill] sm:$0xff] %v13807_v38  ;;  %v3752_v58 = vmul.f32 1.442695, %v3640_v7  ;;  %v13811_v39 = vpop.eup %11794 }
 0x423   :  { %17596 = vst [vmem:[#allocation165_spill] sm:$0xff] %v13811_v39  ;;  %v13817_v51 = vpop.eup %11796 }
 0x424   :  { %3948 = vperm.xlu0 %11703, %v13767_v29   ;;  %11808 = vpow2.f32 %v3754_v50  ;;  %v3646_v50 = vsub.f32 %v17603_v17, %v3491_v23 }
 0x425   :  { %3945 = vperm.xlu1 %11702, %v13771_v15   ;;  %11810 = vpow2.f32 %v3752_v58 }
 0x426   :  { %v3764_v23 = vmul.f32 1.442695, %v3646_v50 }
 0x428   :  { %3954 = vperm.xlu0 %11703, %v13777_v26  }
 0x429   :  { %3951 = vperm.xlu1 %11702, %v13781_v16  }
 0x42c   :  { %3960 = vperm.xlu0 %11703, %v13787_v56   ;;  %v3643_v56 = vsub.f32 %v17593_v46, %v3479_v61  ;;  %v17599_v46 = vld [vmem:[#allocation167_spill] sm:$0xff] }
 0x42d   :  { %3957 = vperm.xlu1 %11702, %v13791_v52   ;;  %v3642_v52 = vsub.f32 %v17595_v18, %v3475_v44  ;;  %v3644_v26 = vsub.f32 %v17599_v46, %v3483_v14  ;;  %v3263_v7 = vpop.xlane.xlu1 %3262  ;;  %v13821_v18 = vpop.eup %11798 }
 0x42e   :  { %v3758_v61 = vmul.f32 1.442695, %v3643_v56  ;;  %17600 = vst [vmem:[#allocation167_spill] sm:$0xff] %v13821_v18  ;;  %v3503_v56 = vrot.slane %v3263_v7, %v12275_v45  ;;  %v3515_v50 = vrot.slane %v3263_v7, %v12315_v20 }
 0x42f   :  { %v3756_v44 = vmul.f32 1.442695, %v3642_v52  ;;  %v3760_v14 = vmul.f32 1.442695, %v3644_v26  ;;  %v3499_v52 = vrot.slane %v3263_v7, %v11970_v11  ;;  %v3507_v26 = vrot.slane %v3263_v7, %v12287_v53 }
 0x430   :  { %3966 = vperm.xlu0 %11703, %v13797_v33   ;;  %v17597_v33 = vld [vmem:[#allocation160_spill] sm:$0xff]  ;;  %11812 = vpow2.f32 %v3758_v61 }
 0x431   :  { %3963 = vperm.xlu1 %11702, %v13801_v34   ;;  %v3645_v34 = vsub.f32 %v17597_v33, %v3487_v63  ;;  %17598 = vst [vmem:[#allocation160_spill] sm:$0xff] %v13817_v51  ;;  %v13827_v63 = vpop.eup %11800  ;;  %11814 = vpow2.f32 %v3756_v44  ;;  %v17607_v44 = vld [vmem:[#allocation171_spill] sm:$0xff] }
 0x432   :  { %v13831_v58 = vpop.eup %11802  ;;  %v3648_v17 = vsub.f32 %v17607_v44, %v3499_v52 }
 0x433   :  { %v3762_v33 = vmul.f32 1.442695, %v3645_v34  ;;  %17604 = vst [vmem:[#allocation169_spill] sm:$0xff] %v13831_v58  ;;  %v3511_v34 = vrot.slane %v3263_v7, %v12300_v4  ;;  %v13837_v46 = vpop.eup %11804 }
 0x434   :  { %3972 = vperm.xlu0 %11703, %v13807_v38   ;;  %v17601_v38 = vld [vmem:[#allocation162_spill] sm:$0xff]  ;;  %v3768_v52 = vmul.f32 1.442695, %v3648_v17 }
 0x435   :  { %3969 = vperm.xlu1 %11702, %v13811_v39   ;;  %v3647_v39 = vsub.f32 %v17601_v38, %v3495_v37  ;;  %17602 = vst [vmem:[#allocation162_spill] sm:$0xff] %v13827_v63  ;;  %11816 = vpow2.f32 %v3762_v33  ;;  %v17605_v37 = vld [vmem:[#allocation164_spill] sm:$0xff]  ;;  %v17609_v33 = vld [vmem:[#allocation166_spill] sm:$0xff] }
 0x436   :  { %v3649_v61 = vsub.f32 %v17605_v37, %v3503_v56  ;;  %17606 = vst [vmem:[#allocation164_spill] sm:$0xff] %v13837_v46  ;;  %11818 = vpow2.f32 %v3760_v14  ;;  %v17611_v14 = vld [vmem:[#allocation172_spill] sm:$0xff] }
 0x437   :  { %v3766_v38 = vmul.f32 1.442695, %v3647_v39  ;;  %v3519_v39 = vrot.slane %v3263_v7, %v12330_v40 }
 0x438   :  { %3978 = vperm.xlu0 %11703, %v13817_v51   ;;  %v13841_v51 = vpop.eup %11806  ;;  %v3770_v56 = vmul.f32 1.442695, %v3649_v61 }
 0x439   :  { %3975 = vperm.xlu1 %11702, %v13821_v18   ;;  %17608 = vst [vmem:[#allocation171_spill] sm:$0xff] %v13841_v51  ;;  %11820 = vpow2.f32 %v3766_v38  ;;  %v13847_v37 = vpop.eup %11808  ;;  %v3527_v38 = vrot.slane %v3263_v7, %v12667_v32 }
 0x43a   :  { %17610 = vst [vmem:[#allocation166_spill] sm:$0xff] %v13847_v37  ;;  %11822 = vpow2.f32 %v3764_v23  ;;  %v13851_v44 = vpop.eup %11810  ;;  %v3523_v23 = vrot.slane %v3263_v7, %v12345_v21 }
 0x43b   :  { %17612 = vst [vmem:[#allocation172_spill] sm:$0xff] %v13851_v44  ;;  %11824 = vpow2.f32 %v3770_v56 }
 0x43c   :  { %3984 = vperm.xlu0 %11703, %v13827_v63   ;;  %v3651_v63 = vsub.f32 %v17609_v33, %v3511_v34  ;;  %v17615_v33 = vld [vmem:[#allocation173_spill] sm:$0xff]  ;;  %11826 = vpow2.f32 %v3768_v52 }
 0x43d   :  { %3981 = vperm.xlu1 %11702, %v13831_v58   ;;  %v3650_v58 = vsub.f32 %v17611_v14, %v3507_v26  ;;  %v13857_v61 = vpop.eup %11812  ;;  %v3652_v18 = vsub.f32 %v17615_v33, %v3515_v50  ;;  %v17617_v14 = vld [vmem:[#allocation170_spill] sm:$0xff] }
 0x43e   :  { %v3774_v34 = vmul.f32 1.442695, %v3651_v63  ;;  %v13861_v17 = vpop.eup %11814  ;;  %v17619_v63 = vld [vmem:[#allocation174_spill] sm:$0xff] }
 0x43f   :  { %v3772_v26 = vmul.f32 1.442695, %v3650_v58  ;;  %17616 = vst [vmem:[#allocation173_spill] sm:$0xff] %v13861_v17  ;;  %v3654_v56 = vsub.f32 %v17619_v63, %v3523_v23  ;;  %v3776_v7 = vmul.f32 1.442695, %v3652_v18 }
 0x440   :  { %3990 = vperm.xlu0 %11703, %v13837_v46   ;;  %v17613_v46 = vld [vmem:[#allocation168_spill] sm:$0xff]  ;;  %11828 = vpow2.f32 %v3774_v34 }
 0x441   :  { %3987 = vperm.xlu1 %11702, %v13841_v51   ;;  %v3653_v51 = vsub.f32 %v17613_v46, %v3519_v39  ;;  %17614 = vst [vmem:[#allocation168_spill] sm:$0xff] %v13857_v61  ;;  %11830 = vpow2.f32 %v3772_v26  ;;  %v3780_v52 = vmul.f32 1.442695, %v3654_v56 }
 0x442   :  { %v13866_v39 = vpop.eup %11816 }
 0x443   :  { %v3778_v46 = vmul.f32 1.442695, %v3653_v51  ;;  %17618 = vst [vmem:[#allocation170_spill] sm:$0xff] %v13866_v39 }
 0x444   :  { %3996 = vperm.xlu0 %11703, %v13847_v37   ;;  %v3655_v37 = vsub.f32 %v17617_v14, %v3527_v38 }
 0x445   :  { %3993 = vperm.xlu1 %11702, %v13851_v44   ;;  %v13869_v44 = vpop.eup %11818  ;;  %11832 = vpow2.f32 %v3778_v46 }
 0x446   :  { %17620 = vst [vmem:[#allocation174_spill] sm:$0xff] %v13869_v44  ;;  %v3782_v58 = vmul.f32 1.442695, %v3655_v37  ;;  %v13873_v50 = vpop.eup %11820  ;;  %11834 = vpow2.f32 %v3776_v7 }
 0x447   :  { %17621 = vst [vmem:[#allocation186_spill] sm:$0xff] %v13873_v50  ;;  %v13875_v38 = vpop.eup %11822 }
 0x448   :  { %4002 = vperm.xlu0 %11703, %v13857_v61   ;;  %17622 = vst [vmem:[#allocation187_spill] sm:$0xff] %v13875_v38  ;;  %11836 = vpow2.f32 %v3782_v58  ;;  %v13879_v51 = vpop.eup %11824 }
 0x449   :  { %3999 = vperm.xlu1 %11702, %v13861_v17   ;;  %17623 = vst [vmem:[#allocation188_spill] sm:$0xff] %v13879_v51  ;;  %11838 = vpow2.f32 %v3780_v52  ;;  %v13881_v18 = vpop.eup %11826 }
 0x44a   :  { %17624 = vst [vmem:[#allocation189_spill] sm:$0xff] %v13881_v18 }
 0x44c   :  { %4008 = vperm.xlu0 %11703, %v13866_v39  }
 0x44d   :  { %4005 = vperm.xlu1 %11702, %v13869_v44   ;;  %v13885_v37 = vpop.eup %11828 }
 0x44e   :  { %17625 = vst [vmem:[#allocation190_spill] sm:$0xff] %v13885_v37  ;;  %v13887_v34 = vpop.eup %11830 }
 0x44f   :  { %17626 = vst [vmem:[#allocation191_spill] sm:$0xff] %v13887_v34 }
 0x450   :  { %4014 = vperm.xlu0 %11703, %v13873_v50  }
 0x451   :  { %4011 = vperm.xlu1 %11702, %v13875_v38  }
 0x452   :  { %v13891_v23 = vpop.eup %11832 }
 0x453   :  { %17627 = vst [vmem:[#allocation192_spill] sm:$0xff] %v13891_v23  ;;  %v13893_v33 = vpop.eup %11834 }
 0x454   :  { %4020 = vperm.xlu0 %11703, %v13879_v51   ;;  %17628 = vst [vmem:[#allocation193_spill] sm:$0xff] %v13893_v33 }
 0x455   :  { %4017 = vperm.xlu1 %11702, %v13881_v18   ;;  %v13897_v26 = vpop.eup %11836 }
 0x456   :  { %17629 = vst [vmem:[#allocation194_spill] sm:$0xff] %v13897_v26  ;;  %v13899_v46 = vpop.eup %11838 }
 0x457   :  { %17630 = vst [vmem:[#allocation195_spill] sm:$0xff] %v13899_v46 }
 0x458   :  { %4026 = vperm.xlu0 %11703, %v13885_v37  }
 0x459   :  { %4023 = vperm.xlu1 %11702, %v13887_v34  }
 0x45c   :  { %4032 = vperm.xlu0 %11703, %v13891_v23  }
 0x45d   :  { %4029 = vperm.xlu1 %11702, %v13893_v33  }
 0x45f   :  { %v3850_v14 = vpop.permute.xlu0 %3849 }
 0x460   :  { %v3853_v63 = vpop.permute.xlu1 %3852  ;;  %4038 = vperm.xlu0 %11703, %v13897_v26   ;;  %v4043_v18 = vrot.slane %v3850_v14, %v13453_v42 }
 0x461   :  { %4035 = vperm.xlu1 %11702, %v13899_v46   ;;  %v4047_v33 = vrot.slane %v3853_v63, %v13453_v42 }
 0x463   :  { %v3859_v56 = vpop.permute.xlu0 %3858  ;;  %v4296_v44 = vsel %vm3168_vm2, %v4047_v33, %v4043_v18 }
 0x464   :  { %v3856_v7 = vpop.permute.xlu1 %3855  ;;  %v4055_v61 = vrot.slane %v3859_v56, %v13453_v42 }
 0x465   :  { %v4051_v50 = vrot.slane %v3856_v7, %v13453_v42 }
 0x467   :  { %v3865_v58 = vpop.permute.xlu0 %3864  ;;  %v4297_v16 = vsel %vm3170_vm3, %v4051_v50, %v4296_v44 }
 0x468   :  { %v3862_v52 = vpop.permute.xlu1 %3861  ;;  %v4298_v15 = vsel %vm3172_vm4, %v4055_v61, %v4297_v16  ;;  %v4063_v18 = vrot.slane %v3865_v58, %v13453_v42 }
 0x469   :  { %v4059_v63 = vrot.slane %v3862_v52, %v13453_v42 }
 0x46b   :  { %v3871_v37 = vpop.permute.xlu0 %3870 }
 0x46c   :  { %v3868_v34 = vpop.permute.xlu1 %3867  ;;  %v4071_v61 = vrot.slane %v3871_v37, %v13453_v42 }
 0x46d   :  { %v4067_v44 = vrot.slane %v3868_v34, %v13453_v42 }
 0x46f   :  { %v3877_v51 = vpop.permute.xlu0 %3876 }
 0x470   :  { %v3874_v23 = vpop.permute.xlu1 %3873  ;;  %v4079_v26 = vrot.slane %v3877_v51, %v13453_v42 }
 0x471   :  { %v4075_v38 = vrot.slane %v3874_v23, %v13453_v42 }
 0x473   :  { %v3883_v39 = vpop.permute.xlu0 %3882  ;;  %v4303_v14 = vsel %vm3168_vm2, %v4079_v26, %v4075_v38 }
 0x474   :  { %v3880_v46 = vpop.permute.xlu1 %3879  ;;  %v4087_v7 = vrot.slane %v3883_v39, %v13453_v42 }
 0x475   :  { %v4083_v17 = vrot.slane %v3880_v46, %v13453_v42  ;;  %v4299_v46 = vsel %vm3174_vm5, %v4059_v63, %v4298_v15 }
 0x476   :  { %v4300_v16 = vsel %vm3176_vm6, %v4063_v18, %v4299_v46 }
 0x477   :  { %v4304_v23 = vsel %vm3170_vm3, %v4083_v17, %v4303_v14  ;;  %v3889_v29 = vpop.permute.xlu0 %3888  ;;  %v4301_v34 = vsel %vm3178_vm7, %v4067_v44, %v4300_v16 }
 0x478   :  { %v3886_v51 = vpop.permute.xlu1 %3885  ;;  %v4305_v50 = vsel %vm3172_vm4, %v4087_v7, %v4304_v23  ;;  %v4095_v38 = vrot.slane %v3889_v29, %v13453_v42  ;;  %v4302_v23 = vsel %vm3180_vm8, %v4071_v61, %v4301_v34 }
 0x479   :  { %v4091_v33 = vrot.slane %v3886_v51, %v13453_v42  ;;  %v4360_v46 = vsel %vm3239_vm9, %v4302_v23, 0.0 }
 0x47b   :  { %v4306_v39 = vsel %vm3174_vm5, %v4091_v33, %v4305_v50  ;;  %v3895_v26 = vpop.permute.xlu0 %3894 }
 0x47c   :  { %v3892_v17 = vpop.permute.xlu1 %3891  ;;  %v4103_v56 = vrot.slane %v3895_v26, %v13453_v42  ;;  %v4307_v15 = vsel %vm3176_vm6, %v4095_v38, %v4306_v39 }
 0x47d   :  { %v4099_v58 = vrot.slane %v3892_v17, %v13453_v42 }
 0x47f   :  { %v3901_v52 = vpop.permute.xlu0 %3900  ;;  %v4308_v63 = vsel %vm3178_vm7, %v4099_v58, %v4307_v15 }
 0x480   :  { %v3898_v29 = vpop.permute.xlu1 %3897  ;;  %v4309_v14 = vsel %vm3180_vm8, %v4103_v56, %v4308_v63  ;;  %v4111_v37 = vrot.slane %v3901_v52, %v13453_v42 }
 0x481   :  { %v4363_v7 = vsel %vm3239_vm9, %v4309_v14, 0.0  ;;  %v4107_v51 = vrot.slane %v3898_v29, %v13453_v42 }
 0x482   :  { %4364 = vadd.xlane.f32.xlu0 %v4363_v7 }
 0x483   :  { %v3907_v18 = vpop.permute.xlu0 %3906  ;;  %v4310_v50 = vsel %vm3168_vm2, %v4111_v37, %v4107_v51 }
 0x484   :  { %v3904_v33 = vpop.permute.xlu1 %3903  ;;  %v4119_v38 = vrot.slane %v3907_v18, %v13453_v42 }
 0x485   :  { %v4115_v44 = vrot.slane %v3904_v33, %v13453_v42  ;;  %4361 = vadd.xlane.f32.xlu1 %v4360_v46 }
 0x487   :  { %v4311_v39 = vsel %vm3170_vm3, %v4115_v44, %v4310_v50  ;;  %v3913_v26 = vpop.permute.xlu0 %3912 }
 0x488   :  { %v3910_v17 = vpop.permute.xlu1 %3909  ;;  %v4312_v16 = vsel %vm3172_vm4, %v4119_v38, %v4311_v39  ;;  %v4127_v61 = vrot.slane %v3913_v26, %v13453_v42 }
 0x489   :  { %v4123_v56 = vrot.slane %v3910_v17, %v13453_v42 }
 0x48b   :  { %v4313_v58 = vsel %vm3174_vm5, %v4123_v56, %v4312_v16  ;;  %v3919_v15 = vpop.permute.xlu0 %3918 }
 0x48c   :  { %v3916_v34 = vpop.permute.xlu1 %3915  ;;  %v4135_v52 = vrot.slane %v3919_v15, %v13453_v42  ;;  %v4314_v29 = vsel %vm3176_vm6, %v4127_v61, %v4313_v58 }
 0x48d   :  { %v4131_v63 = vrot.slane %v3916_v34, %v13453_v42 }
 0x48f   :  { %v3925_v14 = vpop.permute.xlu0 %3924  ;;  %v4315_v7 = vsel %vm3178_vm7, %v4131_v63, %v4314_v29 }
 0x490   :  { %v3922_v23 = vpop.permute.xlu1 %3921  ;;  %v4316_v51 = vsel %vm3180_vm8, %v4135_v52, %v4315_v7  ;;  %v4143_v33 = vrot.slane %v3925_v14, %v13453_v42 }
 0x491   :  { %v4366_v37 = vsel %vm3239_vm9, %v4316_v51, 0.0  ;;  %v4139_v18 = vrot.slane %v3922_v23, %v13453_v42 }
 0x492   :  { %4367 = vadd.xlane.f32.xlu0 %v4366_v37 }
 0x493   :  { %v3931_v46 = vpop.permute.xlu0 %3930  ;;  %v4317_v38 = vsel %vm3168_vm2, %v4143_v33, %v4139_v18 }
 0x494   :  { %v3928_v44 = vpop.permute.xlu1 %3927  ;;  %v4151_v39 = vrot.slane %v3931_v46, %v13453_v42 }
 0x495   :  { %v4147_v50 = vrot.slane %v3928_v44, %v13453_v42 }
 0x497   :  { %v4318_v26 = vsel %vm3170_vm3, %v4147_v50, %v4317_v38  ;;  %v3937_v17 = vpop.permute.xlu0 %3936 }
 0x498   :  { %v3934_v56 = vpop.permute.xlu1 %3933  ;;  %v4319_v61 = vsel %vm3172_vm4, %v4151_v39, %v4318_v26  ;;  %v4159_v58 = vrot.slane %v3937_v17, %v13453_v42 }
 0x499   :  { %v4155_v16 = vrot.slane %v3934_v56, %v13453_v42 }
 0x49b   :  { %v4320_v15 = vsel %vm3174_vm5, %v4155_v16, %v4319_v61  ;;  %v3943_v34 = vpop.permute.xlu0 %3942 }
 0x49c   :  { %v3940_v52 = vpop.permute.xlu1 %3939  ;;  %v4167_v63 = vrot.slane %v3943_v34, %v13453_v42  ;;  %v4321_v14 = vsel %vm3176_vm6, %v4159_v58, %v4320_v15 }
 0x49d   :  { %v4163_v29 = vrot.slane %v3940_v52, %v13453_v42 }
 0x49f   :  { %v3949_v7 = vpop.permute.xlu0 %3948  ;;  %v4322_v23 = vsel %vm3178_vm7, %v4163_v29, %v4321_v14 }
 0x4a0   :  { %v3946_v51 = vpop.permute.xlu1 %3945  ;;  %v4323_v37 = vsel %vm3180_vm8, %v4167_v63, %v4322_v23  ;;  %v4175_v46 = vrot.slane %v3949_v7, %v13453_v42 }
 0x4a1   :  { %v4369_v18 = vsel %vm3239_vm9, %v4323_v37, 0.0  ;;  %v4171_v33 = vrot.slane %v3946_v51, %v13453_v42 }
 0x4a2   :  { %4370 = vadd.xlane.f32.xlu1 %v4369_v18 }
 0x4a3   :  { %v3955_v44 = vpop.permute.xlu0 %3954  ;;  %v4324_v39 = vsel %vm3168_vm2, %v4175_v46, %v4171_v33 }
 0x4a4   :  { %v3952_v50 = vpop.permute.xlu1 %3951  ;;  %v4183_v26 = vrot.slane %v3955_v44, %v13453_v42 }
 0x4a5   :  { %v4179_v38 = vrot.slane %v3952_v50, %v13453_v42 }
 0x4a7   :  { %v4325_v17 = vsel %vm3170_vm3, %v4179_v38, %v4324_v39  ;;  %v3961_v56 = vpop.permute.xlu0 %3960 }
 0x4a8   :  { %v3958_v16 = vpop.permute.xlu1 %3957  ;;  %v4326_v58 = vsel %vm3172_vm4, %v4183_v26, %v4325_v17  ;;  %v4191_v15 = vrot.slane %v3961_v56, %v13453_v42 }
 0x4a9   :  { %v4187_v61 = vrot.slane %v3958_v16, %v13453_v42 }
 0x4ab   :  { %v4327_v34 = vsel %vm3174_vm5, %v4187_v61, %v4326_v58  ;;  %v3967_v52 = vpop.permute.xlu0 %3966 }
 0x4ac   :  { %v3964_v63 = vpop.permute.xlu1 %3963  ;;  %v4199_v29 = vrot.slane %v3967_v52, %v13453_v42  ;;  %v4328_v7 = vsel %vm3176_vm6, %v4191_v15, %v4327_v34 }
 0x4ad   :  { %v4195_v14 = vrot.slane %v3964_v63, %v13453_v42 }
 0x4af   :  { %v3973_v23 = vpop.permute.xlu0 %3972  ;;  %v4329_v51 = vsel %vm3178_vm7, %v4195_v14, %v4328_v7 }
 0x4b0   :  { %v3970_v37 = vpop.permute.xlu1 %3969  ;;  %v4330_v18 = vsel %vm3180_vm8, %v4199_v29, %v4329_v51  ;;  %v4207_v44 = vrot.slane %v3973_v23, %v13453_v42 }
 0x4b1   :  { %v4372_v33 = vsel %vm3239_vm9, %v4330_v18, 0.0  ;;  %v4203_v46 = vrot.slane %v3970_v37, %v13453_v42 }
 0x4b2   :  { %4373 = vadd.xlane.f32.xlu0 %v4372_v33 }
 0x4b3   :  { %v3979_v50 = vpop.permute.xlu0 %3978  ;;  %v4331_v26 = vsel %vm3168_vm2, %v4207_v44, %v4203_v46 }
 0x4b4   :  { %v3976_v38 = vpop.permute.xlu1 %3975  ;;  %v4215_v17 = vrot.slane %v3979_v50, %v13453_v42 }
 0x4b5   :  { %v4211_v39 = vrot.slane %v3976_v38, %v13453_v42 }
 0x4b7   :  { %v4332_v56 = vsel %vm3170_vm3, %v4211_v39, %v4331_v26  ;;  %v3985_v16 = vpop.permute.xlu0 %3984 }
 0x4b8   :  { %v3982_v61 = vpop.permute.xlu1 %3981  ;;  %v4333_v15 = vsel %vm3172_vm4, %v4215_v17, %v4332_v56  ;;  %v4223_v34 = vrot.slane %v3985_v16, %v13453_v42 }
 0x4b9   :  { %v4219_v58 = vrot.slane %v3982_v61, %v13453_v42 }
 0x4bb   :  { %v4334_v52 = vsel %vm3174_vm5, %v4219_v58, %v4333_v15  ;;  %v3991_v63 = vpop.permute.xlu0 %3990 }
 0x4bc   :  { %v3988_v29 = vpop.permute.xlu1 %3987  ;;  %v4231_v14 = vrot.slane %v3991_v63, %v13453_v42  ;;  %v4335_v23 = vsel %vm3176_vm6, %v4223_v34, %v4334_v52 }
 0x4bd   :  { %v4227_v7 = vrot.slane %v3988_v29, %v13453_v42 }
 0x4bf   :  { %v3997_v51 = vpop.permute.xlu0 %3996  ;;  %v4336_v37 = vsel %vm3178_vm7, %v4227_v7, %v4335_v23 }
 0x4c0   :  { %v3994_v18 = vpop.permute.xlu1 %3993  ;;  %v4337_v33 = vsel %vm3180_vm8, %v4231_v14, %v4336_v37  ;;  %v4239_v50 = vrot.slane %v3997_v51, %v13453_v42 }
 0x4c1   :  { %v4375_v46 = vsel %vm3239_vm9, %v4337_v33, 0.0  ;;  %v4235_v44 = vrot.slane %v3994_v18, %v13453_v42 }
 0x4c2   :  { %4376 = vadd.xlane.f32.xlu1 %v4375_v46 }
 0x4c3   :  { %v4003_v38 = vpop.permute.xlu0 %4002  ;;  %v4338_v17 = vsel %vm3168_vm2, %v4239_v50, %v4235_v44 }
 0x4c4   :  { %v4000_v39 = vpop.permute.xlu1 %3999  ;;  %v4247_v56 = vrot.slane %v4003_v38, %v13453_v42 }
 0x4c5   :  { %v4243_v26 = vrot.slane %v4000_v39, %v13453_v42 }
 0x4c7   :  { %v4339_v16 = vsel %vm3170_vm3, %v4243_v26, %v4338_v17  ;;  %v4009_v61 = vpop.permute.xlu0 %4008 }
 0x4c8   :  { %v4006_v58 = vpop.permute.xlu1 %4005  ;;  %v4340_v34 = vsel %vm3172_vm4, %v4247_v56, %v4339_v16  ;;  %v4255_v52 = vrot.slane %v4009_v61, %v13453_v42 }
 0x4c9   :  { %v4251_v15 = vrot.slane %v4006_v58, %v13453_v42 }
 0x4cb   :  { %v4341_v63 = vsel %vm3174_vm5, %v4251_v15, %v4340_v34  ;;  %v4015_v29 = vpop.permute.xlu0 %4014 }
 0x4cc   :  { %v4012_v14 = vpop.permute.xlu1 %4011  ;;  %v4263_v7 = vrot.slane %v4015_v29, %v13453_v42  ;;  %v4342_v51 = vsel %vm3176_vm6, %v4255_v52, %v4341_v63 }
 0x4cd   :  { %v4259_v23 = vrot.slane %v4012_v14, %v13453_v42 }
 0x4cf   :  { %v4021_v37 = vpop.permute.xlu0 %4020  ;;  %v4343_v18 = vsel %vm3178_vm7, %v4259_v23, %v4342_v51 }
 0x4d0   :  { %v4018_v33 = vpop.permute.xlu1 %4017  ;;  %v4344_v46 = vsel %vm3180_vm8, %v4263_v7, %v4343_v18  ;;  %v4271_v38 = vrot.slane %v4021_v37, %v13453_v42 }
 0x4d1   :  { %v4378_v44 = vsel %vm3239_vm9, %v4344_v46, 0.0  ;;  %v4267_v50 = vrot.slane %v4018_v33, %v13453_v42 }
 0x4d2   :  { %4379 = vadd.xlane.f32.xlu0 %v4378_v44 }
 0x4d3   :  { %v4027_v39 = vpop.permute.xlu0 %4026  ;;  %v4345_v56 = vsel %vm3168_vm2, %v4271_v38, %v4267_v50 }
 0x4d4   :  { %v4024_v26 = vpop.permute.xlu1 %4023  ;;  %v4279_v16 = vrot.slane %v4027_v39, %v13453_v42 }
 0x4d5   :  { %v4275_v17 = vrot.slane %v4024_v26, %v13453_v42 }
 0x4d7   :  { %v4346_v61 = vsel %vm3170_vm3, %v4275_v17, %v4345_v56  ;;  %v4033_v58 = vpop.permute.xlu0 %4032 }
 0x4d8   :  { %v4030_v15 = vpop.permute.xlu1 %4029  ;;  %v4347_v52 = vsel %vm3172_vm4, %v4279_v16, %v4346_v61  ;;  %v4287_v63 = vrot.slane %v4033_v58, %v13453_v42 }
 0x4d9   :  { %v4283_v34 = vrot.slane %v4030_v15, %v13453_v42  ;;  %v17631_v15 = vld [vmem:[#allocation38_spill] sm:$0xff] }
 0x4db   :  { %v4348_v29 = vsel %vm3174_vm5, %v4283_v34, %v4347_v52  ;;  %v4039_v14 = vpop.permute.xlu0 %4038  ;;  %v17632_v52 = vld [vmem:[#allocation41_spill] sm:$0xff] }
 0x4dc   :  { %v4036_v7 = vpop.permute.xlu1 %4035  ;;  %v4295_v23 = vrot.slane %v4039_v14, %v13453_v42  ;;  %v4349_v37 = vsel %vm3176_vm6, %v4287_v63, %v4348_v29 }
 0x4dd   :  { %v4291_v51 = vrot.slane %v4036_v7, %v13453_v42 }
 0x4df   :  { %v4350_v18 = vsel %vm3178_vm7, %v4291_v51, %v4349_v37  ;;  %v17633_v51 = vld [vmem:[#allocation37_spill] sm:$0xff]  ;;  %v17634_v37 = vld [vmem:[#allocation42_spill] sm:$0xff] }
 0x4e0   :  { %v4351_v33 = vsel %vm3180_vm8, %v4295_v23, %v4350_v18 }
 0x4e1   :  { %v4381_v46 = vsel %vm3239_vm9, %v4351_v33, 0.0 }
 0x4e2   :  { %4382 = vadd.xlane.f32.xlu1 %v4381_v46 }
 0x50b   :  { %v4365_v58 = vpop.xlane.xlu0 %4364 }
 0x50e   :  { %v4362_v44 = vpop.xlane.xlu1 %4361 }
 0x50f   :  { %11840 = vrcp.f32 %v4362_v44 }
 0x510   :  { %11842 = vrcp.f32 %v4365_v58 }
 0x51c   :  { %v11841_v50 = vpop.eup %11840 }
 0x51d   :  { %v4392_v38 = vmul.f32 %v11841_v50, %v4362_v44  ;;  %v17635_v44 = vld [vmem:[#allocation45_spill] sm:$0xff] }
 0x51f   :  { %v4400_v39 = vsub.f32 2.0, %v4392_v38 }
 0x521   :  { %v14031_v26 = vmul.f32 %v11841_v50, %v4400_v39 }
 0x523   :  { %v4427_v17 = vrot.slane %v14031_v26, %v11970_v11  ;;  %v4431_v29 = vrot.slane %v14031_v26, %v12275_v45  ;;  %v4435_v25 = vrot.slane %v14031_v26, %v12287_v53 }
 0x525   :  { %v4744_v56 = vmul.f32 %v13607_v62, %v4427_v17  ;;  %v4745_v33 = vmul.f32 %v13611_v19, %v4431_v29  ;;  %v17636_v17 = vld [vmem:[#allocation49_spill] sm:$0xff]  ;;  %v17639_v29 = vld [vmem:[#allocation50_spill] sm:$0xff]  ;;  %v14078_v47 = vmul.f32 %v13621_v54, %v4435_v25 }
 0x527   :  { %v4811_v16 = vrot.slane %v4744_v56, %v11970_v11  ;;  %v5307_v61 = vrot.slane %v4744_v56, %v12275_v45  ;;  %v5931_v14 = vrot.slane %v4744_v56, %v12287_v53  ;;  %v6555_v23 = vrot.slane %v4744_v56, %v12300_v4 }
 0x528   :  { %v7179_v46 = vrot.slane %v4744_v56, %v12315_v20  ;;  %v7803_v38 = vrot.slane %v4744_v56, %v12330_v40  ;;  %v5311_v9 = vrot.slane %v4745_v33, %v12275_v45  ;;  %v6559_v2 = vrot.slane %v4745_v33, %v12300_v4 }
 0x529   :  { %v5177_v34 = vmul.f32 %v17631_v15, %v4811_v16  ;;  %v5673_v63 = vmul.f32 %v17632_v52, %v5307_v61  ;;  %v5176_v62 = vmul.f32 %v17633_v51, %v4811_v16  ;;  %v5672_v18 = vmul.f32 %v17634_v37, %v5307_v61 }
 0x52a   :  { %v6297_v50 = vmul.f32 %v17635_v44, %v5931_v14  ;;  %v6921_v42 = vmul.f32 %v17636_v17, %v6555_v23  ;;  %v8427_v16 = vrot.slane %v4744_v56, %v12345_v21  ;;  %v4815_v61 = vrot.slane %v4745_v33, %v11970_v11 }
 0x52b   :  { %v5801_v7 = vadd.f32 %v5673_v63, %v5177_v34  ;;  %v5800_v55 = vadd.f32 %v5672_v18, %v5176_v62  ;;  %v6296_v34 = vmul.f32 %v17637_v60, %v5931_v14  ;;  %v17638_v63 = vld [vmem:[#allocation53_spill] sm:$0xff]  ;;  %v6920_v43 = vmul.f32 %v17639_v29, %v6555_v23 }
 0x52c   :  { %v7545_v59 = vmul.f32 %v17638_v63, %v7179_v46  ;;  %v8169_v3 = vmul.f32 %v17640_v41, %v7803_v38  ;;  %v5935_v62 = vrot.slane %v4745_v33, %v12287_v53  ;;  %v5675_v36 = vmul.f32 %v17632_v52, %v5311_v9 }
 0x52d   :  { %v6425_v39 = vadd.f32 %v6297_v50, %v5801_v7  ;;  %v6424_v19 = vadd.f32 %v6296_v34, %v5800_v55  ;;  %v5179_v7 = vmul.f32 %v17631_v15, %v4815_v61  ;;  %v17641_v50 = vld [vmem:[#allocation54_spill] sm:$0xff]  ;;  %v8793_v13 = vmul.f32 %v17642_v28, %v8427_v16 }
 0x52e   :  { %v7544_v12 = vmul.f32 %v17641_v50, %v7179_v46  ;;  %v17643_v55 = vld [vmem:[#allocation58_spill] sm:$0xff]  ;;  %v6299_v27 = vmul.f32 %v17635_v44, %v5935_v62 }
 0x52f   :  { %v7049_v1 = vadd.f32 %v6921_v42, %v6425_v39  ;;  %v7048_v14 = vadd.f32 %v6920_v43, %v6424_v19  ;;  %v9051_v42 = vrot.slane %v4744_v56, %v12667_v32  ;;  %v8168_v23 = vmul.f32 %v17643_v55, %v7803_v38  ;;  %v17644_v56 = vld [vmem:[#allocation124_spill] sm:$0xff] }
 0x530   :  { %v5803_v48 = vadd.f32 %v5675_v36, %v5179_v7  ;;  %v5674_v43 = vmul.f32 %v17634_v37, %v5311_v9  ;;  %v6923_v7 = vmul.f32 %v17636_v17, %v6559_v2  ;;  %v7807_v9 = vrot.slane %v4745_v33, %v12330_v40 }
 0x531   :  { %v7673_v18 = vadd.f32 %v7545_v59, %v7049_v1  ;;  %v7672_v34 = vadd.f32 %v7544_v12, %v7048_v14  ;;  %v5178_v59 = vmul.f32 %v17633_v51, %v4815_v61  ;;  %v11843_v1 = vpop.eup %11842  ;;  %v9417_v30 = vmul.f32 %v17644_v56, %v9051_v42  ;;  %v17645_v12 = vld [vmem:[#allocation62_spill] sm:$0xff] }
 0x532   :  { %v6427_v38 = vadd.f32 %v6299_v27, %v5803_v48  ;;  %v8792_v36 = vmul.f32 %v17645_v12, %v8427_v16  ;;  %v6298_v61 = vmul.f32 %v17637_v60, %v5935_v62  ;;  %v4393_v14 = vmul.f32 %v11843_v1, %v4365_v58  ;;  %v17646_v48 = vld [vmem:[#allocation125_spill] sm:$0xff] }
 0x533   :  { %v8297_v39 = vadd.f32 %v8169_v3, %v7673_v18  ;;  %v8296_v19 = vadd.f32 %v8168_v23, %v7672_v34  ;;  %v5802_v3 = vadd.f32 %v5674_v43, %v5178_v59  ;;  %v7183_v18 = vrot.slane %v4745_v33, %v12315_v20 }
 0x534   :  { %v8431_v27 = vrot.slane %v4745_v33, %v12345_v21  ;;  %v9416_v16 = vmul.f32 %v17646_v48, %v9051_v42  ;;  %v6922_v43 = vmul.f32 %v17639_v29, %v6559_v2  ;;  %v4401_v10 = vsub.f32 2.0, %v4393_v14 }
 0x535   :  { %v8921_v46 = vadd.f32 %v8793_v13, %v8297_v39  ;;  %v8920_v23 = vadd.f32 %v8792_v36, %v8296_v19  ;;  %v7051_v39 = vadd.f32 %v6923_v7, %v6427_v38  ;;  %v6426_v34 = vadd.f32 %v6298_v61, %v5802_v3  ;;  %v17648_v7 = vld [vmem:[#allocation141_spill] sm:$0xff] }
 0x536   :  { %v7547_v59 = vmul.f32 %v17638_v63, %v7183_v18  ;;  %v8171_v58 = vmul.f32 %v17640_v41, %v7807_v9  ;;  %v9055_v62 = vrot.slane %v4745_v33, %v12667_v32  ;;  %v8795_v3 = vmul.f32 %v17642_v28, %v8431_v27 }
 0x537   :  { %v9545_v13 = vadd.f32 %v9417_v30, %v8921_v46  ;;  %v7546_v30 = vmul.f32 %v17641_v50, %v7183_v18  ;;  %v17647_v46 = vld [vmem:[#allocation140_spill] sm:$0xff]  ;;  %v9544_v38 = vadd.f32 %v9416_v16, %v8920_v23  ;;  %v7050_v25 = vadd.f32 %v6922_v43, %v6426_v34 }
 0x538   :  { %v7675_v54 = vadd.f32 %v7547_v59, %v7051_v39  ;;  %v8170_v42 = vmul.f32 %v17643_v55, %v7807_v9  ;;  %v4819_v36 = vrot.slane %v14078_v47, %v11970_v11  ;;  %v5315_v2 = vrot.slane %v14078_v47, %v12275_v45 }
 0x539   :  { %v9687_v19 = vadd.f32 %v17647_v46, %v9545_v13  ;;  %v9686_v33 = vadd.f32 %v17648_v7, %v9544_v38  ;;  %v7674_v18 = vadd.f32 %v7546_v30, %v7050_v25  ;;  %v5939_v14 = vrot.slane %v14078_v47, %v12287_v53 }
 0x53a   :  { %v8299_v61 = vadd.f32 %v8171_v58, %v7675_v54  ;;  %v5181_v13 = vmul.f32 %v17631_v15, %v4819_v36  ;;  %v5677_v23 = vmul.f32 %v17632_v52, %v5315_v2  ;;  %v6563_v9 = vrot.slane %v14078_v47, %v12300_v4 }
 0x53b   :  { %9946 = vperm.xlu0 %11703, %v9687_v19   ;;  %9943 = vperm.xlu1 %11702, %v9686_v33   ;;  %v9419_v34 = vmul.f32 %v17644_v56, %v9055_v62  ;;  %v8298_v16 = vadd.f32 %v8170_v42, %v7674_v18  ;;  %v8794_v59 = vmul.f32 %v17645_v12, %v8431_v27 }
 0x53c   :  { %v8923_v39 = vadd.f32 %v8795_v3, %v8299_v61  ;;  %v14103_v43 = vmul.f32 %v11843_v1, %v4401_v10  ;;  %v5805_v58 = vadd.f32 %v5677_v23, %v5181_v13  ;;  %v6301_v30 = vmul.f32 %v17635_v44, %v5939_v14  ;;  %v14112_v61 = vpop.xlane.xlu0 %4367 }
 0x53d   :  { %v8922_v38 = vadd.f32 %v8794_v59, %v8298_v16  ;;  %v9418_v54 = vmul.f32 %v17646_v48, %v9055_v62  ;;  %v7187_v25 = vrot.slane %v14078_v47, %v12315_v20  ;;  %v4439_v3 = vrot.slane %v14031_v26, %v12300_v4  ;;  %17650 = vst [vmem:[#allocation41_spill] sm:$0xff] %v14112_v61 }
 0x53e   :  { %17649 = vst [vmem:[#allocation38_spill] sm:$0xff] %v14103_v43  ;;  %v9547_v19 = vadd.f32 %v9419_v34, %v8923_v39  ;;  %v6429_v33 = vadd.f32 %v6301_v30, %v5805_v58  ;;  %v6925_v42 = vmul.f32 %v17636_v17, %v6563_v9  ;;  %v5180_v27 = vmul.f32 %v17633_v51, %v4819_v36 }
 0x53f   :  { %v9546_v1 = vadd.f32 %v9418_v54, %v8922_v38  ;;  %v5676_v18 = vmul.f32 %v17634_v37, %v5315_v2  ;;  %v4459_v62 = vrot.slane %v14103_v43, %v11970_v11  ;;  %v7549_v39 = vmul.f32 %v17638_v63, %v7187_v25 }
 0x540   :  { %v9689_v10 = vadd.f32 %v17647_v46, %v9547_v19  ;;  %v7053_v13 = vadd.f32 %v6925_v42, %v6429_v33  ;;  %v7811_v34 = vrot.slane %v14078_v47, %v12330_v40  ;;  %11844 = vrcp.f32 %v14112_v61 }
 0x541   :  { %v9688_v23 = vadd.f32 %v17648_v7, %v9546_v1  ;;  %v8435_v2 = vrot.slane %v14078_v47, %v12345_v21  ;;  %v4747_v58 = vmul.f32 %v13617_v5, %v4439_v3  ;;  %v5804_v19 = vadd.f32 %v5676_v18, %v5180_v27 }
 0x542   :  { %9952 = vperm.xlu0 %11703, %v9689_v10   ;;  %v7677_v30 = vadd.f32 %v7549_v39, %v7053_v13  ;;  %v9059_v42 = vrot.slane %v14078_v47, %v12667_v32  ;;  %v14144_v5 = vmul.f32 %v13651_v0, %v4459_v62  ;;  %v8173_v3 = vmul.f32 %v17640_v41, %v7811_v34 }
 0x543   :  { %9949 = vperm.xlu1 %11702, %v9688_v23   ;;  %v6300_v1 = vmul.f32 %v17637_v60, %v5939_v14  ;;  %v4443_v27 = vrot.slane %v14031_v26, %v12315_v20  ;;  %v4447_v18 = vrot.slane %v14031_v26, %v12330_v40  ;;  %v8797_v13 = vmul.f32 %v17642_v28, %v8435_v2 }
 0x544   :  { %17651 = vst [vmem:[#allocation37_spill] sm:$0xff] %v14144_v5  ;;  %v6924_v47 = vmul.f32 %v17639_v29, %v6563_v9  ;;  %v8301_v23 = vadd.f32 %v8173_v3, %v7677_v30  ;;  %v4823_v10 = vrot.slane %v4747_v58, %v11970_v11  ;;  %v5319_v0 = vrot.slane %v4747_v58, %v12275_v45 }
 0x545   :  { %v6428_v39 = vadd.f32 %v6300_v1, %v5804_v19  ;;  %v9421_v62 = vmul.f32 %v17644_v56, %v9059_v42  ;;  %v7548_v14 = vmul.f32 %v17641_v50, %v7187_v25  ;;  %v5943_v33 = vrot.slane %v4747_v58, %v12287_v53 }
 0x546   :  { %v6567_v54 = vrot.slane %v4747_v58, %v12300_v4  ;;  %v8925_v38 = vadd.f32 %v8797_v13, %v8301_v23  ;;  %v5183_v36 = vmul.f32 %v17631_v15, %v4823_v10  ;;  %v5679_v9 = vmul.f32 %v17632_v52, %v5319_v0 }
 0x547   :  { %v7052_v59 = vadd.f32 %v6924_v47, %v6428_v39  ;;  %v14163_v30 = vmul.f32 %v13631_v6, %v4443_v27  ;;  %v8172_v19 = vmul.f32 %v17643_v55, %v7811_v34  ;;  %v7191_v3 = vrot.slane %v4747_v58, %v12315_v20 }
 0x548   :  { %v7815_v1 = vrot.slane %v4747_v58, %v12330_v40  ;;  %v9549_v25 = vadd.f32 %v9421_v62, %v8925_v38  ;;  %v5807_v61 = vadd.f32 %v5679_v9, %v5183_v36  ;;  %v6303_v31 = vmul.f32 %v17635_v44, %v5943_v33 }
 0x549   :  { %v7676_v16 = vadd.f32 %v7548_v14, %v7052_v59  ;;  %v14170_v13 = vmul.f32 %v13627_v22, %v4447_v18  ;;  %v8796_v47 = vmul.f32 %v17645_v12, %v8435_v2  ;;  %v5182_v23 = vmul.f32 %v17633_v51, %v4823_v10 }
 0x54a   :  { %v5678_v6 = vmul.f32 %v17634_v37, %v5319_v0  ;;  %v9691_v34 = vadd.f32 %v17647_v46, %v9549_v25  ;;  %v6431_v39 = vadd.f32 %v6303_v31, %v5807_v61  ;;  %v6927_v5 = vmul.f32 %v17636_v17, %v6567_v54 }
 0x54b   :  { %v8300_v27 = vadd.f32 %v8172_v19, %v7676_v16  ;;  %v9420_v59 = vmul.f32 %v17646_v48, %v9059_v42  ;;  %v8439_v36 = vrot.slane %v4747_v58, %v12345_v21  ;;  %v6302_v22 = vmul.f32 %v17637_v60, %v5943_v33 }
 0x54c   :  { %v5806_v38 = vadd.f32 %v5678_v6, %v5182_v23  ;;  %9958 = vperm.xlu0 %11703, %v9691_v34   ;;  %v7055_v10 = vadd.f32 %v6927_v5, %v6431_v39  ;;  %v7551_v0 = vmul.f32 %v17638_v63, %v7191_v3  ;;  %v8175_v62 = vmul.f32 %v17640_v41, %v7815_v1 }
 0x54d   :  { %v14180_v18 = vpop.eup %11844  ;;  %v8924_v2 = vadd.f32 %v8796_v47, %v8300_v27  ;;  %v9063_v31 = vrot.slane %v4747_v58, %v12667_v32  ;;  %v6926_v16 = vmul.f32 %v17639_v29, %v6567_v54  ;;  %v4827_v42 = vrot.slane %v14163_v30, %v11970_v11 }
 0x54e   :  { %v6430_v61 = vadd.f32 %v6302_v22, %v5806_v38  ;;  %v7679_v9 = vadd.f32 %v7551_v0, %v7055_v10  ;;  %v5323_v33 = vrot.slane %v14163_v30, %v12275_v45  ;;  %v5947_v5 = vrot.slane %v14163_v30, %v12287_v53 }
 0x54f   :  { %v9548_v14 = vadd.f32 %v9420_v59, %v8924_v2  ;;  %v8799_v19 = vmul.f32 %v17642_v28, %v8439_v36  ;;  %v7550_v47 = vmul.f32 %v17641_v50, %v7191_v3  ;;  %v5185_v58 = vmul.f32 %v17631_v15, %v4827_v42 }
 0x550   :  { %v7054_v25 = vadd.f32 %v6926_v16, %v6430_v61  ;;  %v8303_v23 = vadd.f32 %v8175_v62, %v7679_v9  ;;  %v5681_v6 = vmul.f32 %v17632_v52, %v5323_v33  ;;  %v6571_v34 = vrot.slane %v14163_v30, %v12300_v4 }
 0x551   :  { %v9690_v54 = vadd.f32 %v17648_v7, %v9548_v14  ;;  %v9423_v27 = vmul.f32 %v17644_v56, %v9063_v31  ;;  %v8174_v59 = vmul.f32 %v17643_v55, %v7815_v1  ;;  %v7195_v38 = vrot.slane %v14163_v30, %v12315_v20 }
 0x552   :  { %v7678_v39 = vadd.f32 %v7550_v47, %v7054_v25  ;;  %v8927_v3 = vadd.f32 %v8799_v19, %v8303_v23  ;;  %v8798_v22 = vmul.f32 %v17645_v12, %v8439_v36  ;;  %v5809_v2 = vadd.f32 %v5681_v6, %v5185_v58 }
 0x553   :  { %9955 = vperm.xlu1 %11702, %v9690_v54   ;;  %v6305_v10 = vmul.f32 %v17635_v44, %v5947_v5  ;;  %v7819_v62 = vrot.slane %v14163_v30, %v12330_v40  ;;  %v5184_v61 = vmul.f32 %v17633_v51, %v4827_v42  ;;  %v5680_v16 = vmul.f32 %v17634_v37, %v5323_v33 }
 0x554   :  { %v8302_v0 = vadd.f32 %v8174_v59, %v7678_v39  ;;  %v9551_v14 = vadd.f32 %v9423_v27, %v8927_v3  ;;  %v9422_v1 = vmul.f32 %v17646_v48, %v9063_v31  ;;  %v6929_v25 = vmul.f32 %v17636_v17, %v6571_v34 }
 0x555   :  { %v6433_v9 = vadd.f32 %v6305_v10, %v5809_v2  ;;  %v7553_v36 = vmul.f32 %v17638_v63, %v7195_v38  ;;  %v5808_v47 = vadd.f32 %v5680_v16, %v5184_v61  ;;  %v6304_v58 = vmul.f32 %v17637_v60, %v5947_v5 }
 0x556   :  { %v8926_v19 = vadd.f32 %v8798_v22, %v8302_v0  ;;  %v9693_v54 = vadd.f32 %v17647_v46, %v9551_v14  ;;  %v8443_v42 = vrot.slane %v14163_v30, %v12345_v21  ;;  %v9067_v33 = vrot.slane %v14163_v30, %v12667_v32 }
 0x557   :  { %v7057_v23 = vadd.f32 %v6929_v25, %v6433_v9  ;;  %v8177_v31 = vmul.f32 %v17640_v41, %v7819_v62  ;;  %v6432_v27 = vadd.f32 %v6304_v58, %v5808_v47  ;;  %v6928_v39 = vmul.f32 %v17639_v29, %v6571_v34 }
 0x558   :  { %v9550_v6 = vadd.f32 %v9422_v1, %v8926_v19  ;;  %9964 = vperm.xlu0 %11703, %v9693_v54   ;;  %v4831_v5 = vrot.slane %v14170_v13, %v11970_v11  ;;  %v5327_v3 = vrot.slane %v14170_v13, %v12275_v45  ;;  %v5951_v22 = vrot.slane %v14170_v13, %v12287_v53 }
 0x559   :  { %v7681_v59 = vadd.f32 %v7553_v36, %v7057_v23  ;;  %v17652_v30 = vrot.slane %v14103_v43, %v12275_v45  ;;  %v7056_v34 = vadd.f32 %v6928_v39, %v6432_v27  ;;  %v7552_v0 = vmul.f32 %v17641_v50, %v7195_v38 }
 0x55a   :  { %v9692_v10 = vadd.f32 %v17648_v7, %v9550_v6  ;;  %v8801_v16 = vmul.f32 %v17642_v28, %v8443_v42  ;;  %v5187_v14 = vmul.f32 %v17631_v15, %v4831_v5  ;;  %v5683_v1 = vmul.f32 %v17632_v52, %v5327_v3 }
 0x55b   :  { %v14230_v2 = vmul.f32 %v13647_v57, %v17652_v30  ;;  %v8305_v61 = vadd.f32 %v8177_v31, %v7681_v59  ;;  %v17654_v9 = vrot.slane %v14103_v43, %v12287_v53  ;;  %v7680_v57 = vadd.f32 %v7552_v0, %v7056_v34 }
 0x55c   :  { %9961 = vperm.xlu1 %11702, %v9692_v10   ;;  %v8176_v19 = vmul.f32 %v17643_v55, %v7819_v62  ;;  %v6575_v38 = vrot.slane %v14170_v13, %v12300_v4  ;;  %v9425_v47 = vmul.f32 %v17644_v56, %v9067_v33  ;;  %v5811_v58 = vadd.f32 %v5683_v1, %v5187_v14 }
 0x55d   :  { %17653 = vst [vmem:[#allocation42_spill] sm:$0xff] %v14230_v2  ;;  %v14241_v25 = vmul.f32 %v13661_v35, %v17654_v9  ;;  %v8929_v36 = vadd.f32 %v8801_v16, %v8305_v61  ;;  %v6307_v54 = vmul.f32 %v17635_v44, %v5951_v22  ;;  %v17656_v23 = vrot.slane %v14103_v43, %v12300_v4 }
 0x55e   :  { %v17658_v35 = vrot.slane %v14103_v43, %v12315_v20  ;;  %v17660_v31 = vrot.slane %v14103_v43, %v12330_v40  ;;  %v8304_v39 = vadd.f32 %v8176_v19, %v7680_v57  ;;  %v4451_v59 = vrot.slane %v14031_v26, %v12345_v21 }
 0x55f   :  { %17655 = vst [vmem:[#allocation45_spill] sm:$0xff] %v14241_v25  ;;  %v14252_v6 = vmul.f32 %v13657_v8, %v17656_v23  ;;  %v9553_v30 = vadd.f32 %v9425_v47, %v8929_v36  ;;  %v6435_v10 = vadd.f32 %v6307_v54, %v5811_v58  ;;  %v17662_v8 = vld [vmem:[#allocation37_spill] sm:$0xff]  ;;  %v8800_v0 = vmul.f32 %v17645_v12, %v8443_v42  ;;  %v17663_v47 = vld [vmem:[#allocation178_spill] sm:$0xff] }
 0x560   :  { %v14258_v62 = vmul.f32 %v13671_v24, %v17658_v35  ;;  %v14264_v27 = vmul.f32 %v13667_v49, %v17660_v31  ;;  %v14270_v34 = vrot.slane %v17662_v8, %v11970_v11  ;;  %v6931_v24 = vmul.f32 %v17636_v17, %v6575_v38  ;;  %v17664_v54 = vld [vmem:[#allocation41_spill] sm:$0xff] }
 0x561   :  { %17657 = vst [vmem:[#allocation49_spill] sm:$0xff] %v14252_v6  ;;  %v7199_v61 = vrot.slane %v14170_v13, %v12315_v20  ;;  %v14278_v49 = vrot.slane %v17662_v8, %v12275_v45  ;;  %v4455_v16 = vrot.slane %v14031_v26, %v12667_v32  ;;  %v9695_v14 = vadd.f32 %v17647_v46, %v9553_v30 }
 0x562   :  { %17659 = vst [vmem:[#allocation46_spill] sm:$0xff] %v14258_v62  ;;  %17661 = vst [vmem:[#allocation53_spill] sm:$0xff] %v14264_v27  ;;  %v7823_v1 = vrot.slane %v14170_v13, %v12330_v40  ;;  %v14287_v42 = vrot.slane %v17662_v8, %v12287_v53  ;;  %v8928_v9 = vadd.f32 %v8800_v0, %v8304_v39 }
 0x563   :  { %v7059_v57 = vadd.f32 %v6931_v24, %v6435_v10  ;;  %v5186_v19 = vmul.f32 %v17633_v51, %v4831_v5  ;;  %v5682_v36 = vmul.f32 %v17634_v37, %v5327_v3  ;;  %v4750_v58 = vmul.f32 %v17663_v47, %v4451_v59  ;;  %9970 = vperm.xlu0 %11703, %v9695_v14   ;;  %v17665_v59 = vld [vmem:[#allocation177_spill] sm:$0xff] }
 0x564   :  { %v14294_v26 = vmul.f32 %v14180_v18, %v17664_v54  ;;  %v8447_v23 = vrot.slane %v14170_v13, %v12345_v21  ;;  %v14300_v35 = vrot.slane %v17662_v8, %v12300_v4  ;;  %v9424_v31 = vmul.f32 %v17646_v48, %v9067_v33 }
 0x565   :  { %v7555_v5 = vmul.f32 %v17638_v63, %v7199_v61  ;;  %v14306_v3 = vrot.slane %v17662_v8, %v12315_v20  ;;  %v14310_v39 = vrot.slane %v17662_v8, %v12330_v40  ;;  %v14313_v30 = vmul.f32 %v17665_v59, %v4455_v16 }
 0x566   :  { %v8179_v10 = vmul.f32 %v17640_v41, %v7823_v1  ;;  %v9071_v0 = vrot.slane %v14170_v13, %v12667_v32  ;;  %v14320_v33 = vrot.slane %v17662_v8, %v12345_v21  ;;  %v9552_v24 = vadd.f32 %v9424_v31, %v8928_v9 }
 0x567   :  { %v7683_v14 = vadd.f32 %v7555_v5, %v7059_v57  ;;  %v5810_v47 = vadd.f32 %v5682_v36, %v5186_v19  ;;  %v6306_v54 = vmul.f32 %v17637_v60, %v5951_v22  ;;  %v8803_v62 = vmul.f32 %v17642_v28, %v8447_v23 }
 0x568   :  { %17666 = vst [vmem:[#allocation50_spill] sm:$0xff] %v14320_v33  ;;  %v6930_v16 = vmul.f32 %v17639_v29, %v6575_v38  ;;  %v4835_v59 = vrot.slane %v4750_v58, %v11970_v11  ;;  %v9694_v6 = vadd.f32 %v17648_v7, %v9552_v24  ;;  %v5331_v25 = vrot.slane %v4750_v58, %v12275_v45 }
 0x569   :  { %v8307_v13 = vadd.f32 %v8179_v10, %v7683_v14  ;;  %v6434_v43 = vadd.f32 %v6306_v54, %v5810_v47  ;;  %v9427_v9 = vmul.f32 %v17644_v56, %v9071_v0  ;;  %v7554_v57 = vmul.f32 %v17641_v50, %v7199_v61 }
 0x56a   :  { %v5189_v22 = vmul.f32 %v17631_v15, %v4835_v59  ;;  %v5955_v19 = vrot.slane %v4750_v58, %v12287_v53  ;;  %9967 = vperm.xlu1 %11702, %v9694_v6   ;;  %v5685_v38 = vmul.f32 %v17632_v52, %v5331_v25  ;;  %v6579_v5 = vrot.slane %v4750_v58, %v12300_v4 }
 0x56b   :  { %v8931_v36 = vadd.f32 %v8803_v62, %v8307_v13  ;;  %v7058_v31 = vadd.f32 %v6930_v16, %v6434_v43  ;;  %v8178_v10 = vmul.f32 %v17643_v55, %v7823_v1  ;;  %v7203_v14 = vrot.slane %v4750_v58, %v12315_v20 }
 0x56c   :  { %v6309_v24 = vmul.f32 %v17635_v44, %v5955_v19  ;;  %v7827_v47 = vrot.slane %v4750_v58, %v12330_v40  ;;  %v5813_v27 = vadd.f32 %v5685_v38, %v5189_v22  ;;  %v8451_v33 = vrot.slane %v4750_v58, %v12345_v21 }
 0x56d   :  { %v9555_v61 = vadd.f32 %v9427_v9, %v8931_v36  ;;  %v7682_v54 = vadd.f32 %v7554_v57, %v7058_v31  ;;  %v8802_v6 = vmul.f32 %v17645_v12, %v8447_v23  ;;  %v9426_v43 = vmul.f32 %v17646_v48, %v9071_v0 }
 0x56e   :  { %v5188_v62 = vmul.f32 %v17633_v51, %v4835_v59  ;;  %v5684_v16 = vmul.f32 %v17634_v37, %v5331_v25  ;;  %v6437_v2 = vadd.f32 %v6309_v24, %v5813_v27  ;;  %v6933_v8 = vmul.f32 %v17636_v17, %v6579_v5 }
 0x56f   :  { %v9697_v1 = vadd.f32 %v17647_v46, %v9555_v61  ;;  %v8306_v13 = vadd.f32 %v8178_v10, %v7682_v54  ;;  %v7557_v9 = vmul.f32 %v17638_v63, %v7203_v14  ;;  %v8181_v57 = vmul.f32 %v17640_v41, %v7827_v47 }
 0x570   :  { %v5812_v22 = vadd.f32 %v5684_v16, %v5188_v62  ;;  %v6308_v36 = vmul.f32 %v17637_v60, %v5955_v19  ;;  %v7061_v0 = vadd.f32 %v6933_v8, %v6437_v2  ;;  %v8805_v59 = vmul.f32 %v17642_v28, %v8451_v33 }
 0x571   :  { %9976 = vperm.xlu0 %11703, %v9697_v1   ;;  %v8930_v23 = vadd.f32 %v8802_v6, %v8306_v13  ;;  %v9075_v25 = vrot.slane %v4750_v58, %v12667_v32  ;;  %v6932_v38 = vmul.f32 %v17639_v29, %v6579_v5  ;;  %v4839_v27 = vrot.slane %v14313_v30, %v11970_v11 }
 0x572   :  { %v6436_v31 = vadd.f32 %v6308_v36, %v5812_v22  ;;  %v5335_v10 = vrot.slane %v14313_v30, %v12275_v45  ;;  %v7685_v61 = vadd.f32 %v7557_v9, %v7061_v0  ;;  %v7556_v19 = vmul.f32 %v17641_v50, %v7203_v14  ;;  %v14373_v36 = vpop.xlane.xlu1 %4370 }
 0x573   :  { %v9554_v24 = vadd.f32 %v9426_v43, %v8930_v23  ;;  %v5959_v2 = vrot.slane %v14313_v30, %v12287_v53  ;;  %v5191_v54 = vmul.f32 %v17631_v15, %v4839_v27  ;;  %v6583_v5 = vrot.slane %v14313_v30, %v12300_v4 }
 0x574   :  { %v7060_v8 = vadd.f32 %v6932_v38, %v6436_v31  ;;  %v5687_v58 = vmul.f32 %v17632_v52, %v5335_v10  ;;  %v8309_v62 = vadd.f32 %v8181_v57, %v7685_v61  ;;  %v9429_v16 = vmul.f32 %v17644_v56, %v9075_v25 }
 0x575   :  { %v9696_v6 = vadd.f32 %v17648_v7, %v9554_v24  ;;  %v7207_v43 = vrot.slane %v14313_v30, %v12315_v20  ;;  %v8180_v1 = vmul.f32 %v17643_v55, %v7827_v47  ;;  %v6311_v9 = vmul.f32 %v17635_v44, %v5959_v2 }
 0x576   :  { %v7684_v14 = vadd.f32 %v7556_v19, %v7060_v8  ;;  %v5815_v13 = vadd.f32 %v5687_v58, %v5191_v54  ;;  %v8933_v15 = vadd.f32 %v8805_v59, %v8309_v62  ;;  %v8804_v52 = vmul.f32 %v17645_v12, %v8451_v33 }
 0x577   :  { %9973 = vperm.xlu1 %11702, %v9696_v6   ;;  %v7831_v22 = vrot.slane %v14313_v30, %v12330_v40  ;;  %v5190_v57 = vmul.f32 %v17633_v51, %v4839_v27  ;;  %v6935_v31 = vmul.f32 %v17636_v17, %v6583_v5  ;;  %v5686_v47 = vmul.f32 %v17634_v37, %v5335_v10 }
 0x578   :  { %v8308_v23 = vadd.f32 %v8180_v1, %v7684_v14  ;;  %v6439_v0 = vadd.f32 %v6311_v9, %v5815_v13  ;;  %v9557_v38 = vadd.f32 %v9429_v16, %v8933_v15  ;;  %v9428_v44 = vmul.f32 %v17646_v48, %v9075_v25  ;;  %v17670_v1 = vld [vmem:[#allocation20_spill] sm:$0xff]  ;;  %v17671_v15 = vld [vmem:[#allocation13_spill] sm:$0xff] }
 0x579   :  { %v7559_v59 = vmul.f32 %v17638_v63, %v7207_v43  ;;  %v8455_v33 = vrot.slane %v14313_v30, %v12345_v21  ;;  %v5814_v19 = vadd.f32 %v5686_v47, %v5190_v57  ;;  %v6310_v51 = vmul.f32 %v17637_v60, %v5959_v2  ;;  %v17668_v2 = vld [vmem:[#allocation12_spill] sm:$0xff]  ;;  %v17672_v57 = vld [vmem:[#allocation17_spill] sm:$0xff] }
 0x57a   :  { %v8932_v24 = vadd.f32 %v8804_v52, %v8308_v23  ;;  %v7063_v61 = vadd.f32 %v6935_v31, %v6439_v0  ;;  %11846 = vrcp.f32 %v14373_v36  ;;  %v9699_v27 = vadd.f32 %v17647_v46, %v9557_v38  ;;  %v17674_v38 = vld [vmem:[#allocation21_spill] sm:$0xff] }
 0x57b   :  { %v8183_v17 = vmul.f32 %v17640_v41, %v7831_v22  ;;  %v9079_v37 = vrot.slane %v14313_v30, %v12667_v32  ;;  %v6438_v63 = vadd.f32 %v6310_v51, %v5814_v19  ;;  %v6934_v8 = vmul.f32 %v17639_v29, %v6583_v5  ;;  %v17669_v41 = vld [vmem:[#allocation16_spill] sm:$0xff] }
 0x57c   :  { %v9556_v25 = vadd.f32 %v9428_v44, %v8932_v24  ;;  %v7687_v10 = vadd.f32 %v7559_v59, %v7063_v61  ;;  %v17667_v54 = vsub.f32 2.0, %v14294_v26  ;;  %9982 = vperm.xlu0 %11703, %v9699_v27   ;;  %v8807_v60 = vmul.f32 %v17642_v28, %v8455_v33  ;;  %v17678_v27 = vld [vmem:[#allocation25_spill] sm:$0xff] }
 0x57d   :  { %v5193_v6 = vmul.f32 %v17668_v2, %v14270_v34  ;;  %v5689_v62 = vmul.f32 %v17669_v41, %v14278_v49  ;;  %v7062_v14 = vadd.f32 %v6934_v8, %v6438_v63  ;;  %v7558_v29 = vmul.f32 %v17641_v50, %v7207_v43 }
 0x57e   :  { %v14391_v58 = vmul.f32 %v14180_v18, %v17667_v54  ;;  %v9698_v30 = vadd.f32 %v17648_v7, %v9556_v25  ;;  %v8311_v16 = vadd.f32 %v8183_v17, %v7687_v10  ;;  %v9431_v26 = vmul.f32 %v17644_v56, %v9079_v37  ;;  %v17680_v54 = vld [vmem:[#allocation50_spill] sm:$0xff] }
 0x57f   :  { %v8182_v18 = vmul.f32 %v17643_v55, %v7831_v22  ;;  %v5817_v5 = vadd.f32 %v5689_v62, %v5193_v6  ;;  %v6313_v28 = vmul.f32 %v17670_v1, %v14287_v42  ;;  %v7686_v9 = vadd.f32 %v7558_v29, %v7062_v14  ;;  %v17673_v55 = vld [vmem:[#allocation24_spill] sm:$0xff] }
 0x580   :  { %9979 = vperm.xlu1 %11702, %v9698_v30   ;;  %v8935_v13 = vadd.f32 %v8807_v60, %v8311_v16  ;;  %v5192_v52 = vmul.f32 %v17671_v15, %v14270_v34  ;;  %v5688_v23 = vmul.f32 %v17672_v57, %v14278_v49  ;;  %v8806_v0 = vmul.f32 %v17645_v12, %v8455_v33  ;;  %v17675_v34 = vld [vmem:[#allocation28_spill] sm:$0xff]  ;;  %v17677_v12 = vld [vmem:[#allocation37_spill] sm:$0xff]  ;;  %v17681_v60 = vld [vmem:[#allocation110_spill] sm:$0xff] }
 0x581   :  { %v9430_v50 = vmul.f32 %v17646_v48, %v9079_v37  ;;  %v6441_v56 = vadd.f32 %v6313_v28, %v5817_v5  ;;  %v6937_v43 = vmul.f32 %v17673_v55, %v14300_v35  ;;  %v8310_v31 = vadd.f32 %v8182_v18, %v7686_v9  ;;  %v17676_v49 = vld [vmem:[#allocation32_spill] sm:$0xff]  ;;  %v17682_v30 = vld [vmem:[#allocation29_spill] sm:$0xff]  ;;  %v17683_v28 = vld [vmem:[#allocation126_spill] sm:$0xff] }
 0x582   :  { %v9559_v22 = vadd.f32 %v9431_v26, %v8935_v13  ;;  %v5816_v47 = vadd.f32 %v5688_v23, %v5192_v52  ;;  %v6312_v44 = vmul.f32 %v17674_v38, %v14287_v42  ;;  %v7561_v24 = vmul.f32 %v17675_v34, %v14306_v3  ;;  %v17679_v42 = vld [vmem:[#allocation42_spill] sm:$0xff]  ;;  %v17684_v52 = vld [vmem:[#allocation33_spill] sm:$0xff] }
 0x583   :  { %v7065_v59 = vadd.f32 %v6937_v43, %v6441_v56  ;;  %v8185_v61 = vmul.f32 %v17676_v49, %v14310_v39  ;;  %v9083_v48 = vrot.slane %v17677_v12, %v12667_v32  ;;  %v8934_v19 = vadd.f32 %v8806_v0, %v8310_v31 }
 0x584   :  { %v9701_v33 = vadd.f32 %v17647_v46, %v9559_v22  ;;  %v6440_v51 = vadd.f32 %v6312_v44, %v5816_v47  ;;  %v6936_v17 = vmul.f32 %v17678_v27, %v14300_v35  ;;  %v4847_v25 = vrot.slane %v17679_v42, %v11970_v11  ;;  %v17685_v22 = vld [vmem:[#allocation36_spill] sm:$0xff] }
 0x585   :  { %v7689_v37 = vadd.f32 %v7561_v24, %v7065_v59  ;;  %v5343_v10 = vrot.slane %v17679_v42, %v12275_v45  ;;  %v5967_v63 = vrot.slane %v17679_v42, %v12287_v53  ;;  %v9558_v8 = vadd.f32 %v9430_v50, %v8934_v19 }
 0x586   :  { %9988 = vperm.xlu0 %11703, %v9701_v33   ;;  %v8809_v6 = vmul.f32 %v17681_v60, %v17680_v54  ;;  %v7064_v62 = vadd.f32 %v6936_v17, %v6440_v51  ;;  %v7560_v16 = vmul.f32 %v17682_v30, %v14306_v3  ;;  %v5195_v14 = vmul.f32 %v17668_v2, %v4847_v25  ;;  %v17686_v33 = vld [vmem:[#allocation127_spill] sm:$0xff] }
 0x587   :  { %v8313_v35 = vadd.f32 %v8185_v61, %v7689_v37  ;;  %v5691_v29 = vmul.f32 %v17669_v41, %v5343_v10  ;;  %v6591_v26 = vrot.slane %v17679_v42, %v12300_v4  ;;  %v14437_v18 = vpop.eup %11846  ;;  %v9700_v5 = vadd.f32 %v17648_v7, %v9558_v8 }
 0x588   :  { %v9433_v13 = vmul.f32 %v17683_v28, %v9083_v48  ;;  %v7688_v9 = vadd.f32 %v7560_v16, %v7064_v62  ;;  %v8184_v23 = vmul.f32 %v17684_v52, %v14310_v39  ;;  %v6315_v50 = vmul.f32 %v17670_v1, %v5967_v63 }
 0x589   :  { %v8937_v0 = vadd.f32 %v8809_v6, %v8313_v35  ;;  %v5819_v3 = vadd.f32 %v5691_v29, %v5195_v14  ;;  %v7215_v56 = vrot.slane %v17679_v42, %v12315_v20  ;;  %9985 = vperm.xlu1 %11702, %v9700_v5   ;;  %v8808_v31 = vmul.f32 %v17685_v22, %v17680_v54 }
 0x58a   :  { %v8312_v43 = vadd.f32 %v8184_v23, %v7688_v9  ;;  %v5194_v47 = vmul.f32 %v17671_v15, %v4847_v25  ;;  %v5690_v44 = vmul.f32 %v17672_v57, %v5343_v10  ;;  %v6939_v39 = vmul.f32 %v17673_v55, %v6591_v26 }
 0x58b   :  { %v9561_v59 = vadd.f32 %v9433_v13, %v8937_v0  ;;  %v6443_v24 = vadd.f32 %v6315_v50, %v5819_v3  ;;  %v7839_v61 = vrot.slane %v17679_v42, %v12330_v40  ;;  %v9432_v19 = vmul.f32 %v17686_v33, %v9083_v48  ;;  %v17688_v50 = vld [vmem:[#allocation38_spill] sm:$0xff] }
 0x58c   :  { %v8936_v12 = vadd.f32 %v8808_v31, %v8312_v43  ;;  %v5818_v51 = vadd.f32 %v5690_v44, %v5194_v47  ;;  %v6314_v17 = vmul.f32 %v17674_v38, %v5967_v63  ;;  %v7563_v25 = vmul.f32 %v17675_v34, %v7215_v56  ;;  %v17687_v63 = vld [vmem:[#allocation45_spill] sm:$0xff]  ;;  %v17690_v31 = vld [vmem:[#allocation180_spill] sm:$0xff] }
 0x58d   :  { %v9703_v37 = vadd.f32 %v17647_v46, %v9561_v59  ;;  %v7067_v8 = vadd.f32 %v6939_v39, %v6443_v24  ;;  %v8463_v10 = vrot.slane %v17679_v42, %v12345_v21  ;;  %v9087_v6 = vrot.slane %v17679_v42, %v12667_v32 }
 0x58e   :  { %v9560_v54 = vadd.f32 %v9432_v19, %v8936_v12  ;;  %v6442_v62 = vadd.f32 %v6314_v17, %v5818_v51  ;;  %v6938_v16 = vmul.f32 %v17678_v27, %v6591_v26  ;;  %v8187_v35 = vmul.f32 %v17676_v49, %v7839_v61  ;;  %v17692_v17 = vld [vmem:[#allocation179_spill] sm:$0xff] }
 0x58f   :  { %9994 = vperm.xlu0 %11703, %v9703_v37   ;;  %v7691_v48 = vadd.f32 %v7563_v25, %v7067_v8  ;;  %v4851_v14 = vrot.slane %v17687_v63, %v11970_v11  ;;  %v5347_v29 = vrot.slane %v17687_v63, %v12275_v45  ;;  %v7562_v9 = vmul.f32 %v17682_v30, %v7215_v56 }
 0x590   :  { %v9702_v5 = vadd.f32 %v17648_v7, %v9560_v54  ;;  %v7066_v13 = vadd.f32 %v6938_v16, %v6442_v62  ;;  %v5971_v42 = vrot.slane %v17687_v63, %v12287_v53  ;;  %v8811_v26 = vmul.f32 %v17681_v60, %v8463_v10 }
 0x591   :  { %v8315_v23 = vadd.f32 %v8187_v35, %v7691_v48  ;;  %v5197_v0 = vmul.f32 %v17668_v2, %v4851_v14  ;;  %v5693_v3 = vmul.f32 %v17669_v41, %v5347_v29  ;;  %v17689_v43 = vrot.slane %v17688_v50, %v12345_v21 }
 0x592   :  { %9991 = vperm.xlu1 %11702, %v9702_v5   ;;  %v7690_v44 = vadd.f32 %v7562_v9, %v7066_v13  ;;  %v8186_v56 = vmul.f32 %v17684_v52, %v7839_v61  ;;  %v6595_v59 = vrot.slane %v17687_v63, %v12300_v4  ;;  %v9435_v39 = vmul.f32 %v17683_v28, %v9087_v6 }
 0x593   :  { %v14478_v47 = vmul.f32 %v17690_v31, %v17689_v43  ;;  %v8939_v24 = vadd.f32 %v8811_v26, %v8315_v23  ;;  %v5821_v12 = vadd.f32 %v5693_v3, %v5197_v0  ;;  %v6317_v19 = vmul.f32 %v17670_v1, %v5971_v42 }
 0x594   :  { %v17691_v51 = vrot.slane %v17688_v50, %v12667_v32  ;;  %v4491_v8 = vrot.slane %v14391_v58, %v11970_v11  ;;  %v4495_v61 = vrot.slane %v14391_v58, %v12275_v45  ;;  %v8314_v25 = vadd.f32 %v8186_v56, %v7690_v44  ;;  %v17693_v56 = vld [vmem:[#allocation182_spill] sm:$0xff] }
 0x595   :  { %v4499_v54 = vrot.slane %v14391_v58, %v12287_v53  ;;  %v4503_v62 = vrot.slane %v14391_v58, %v12300_v4  ;;  %v9563_v16 = vadd.f32 %v9435_v39, %v8939_v24  ;;  %v6445_v48 = vadd.f32 %v6317_v19, %v5821_v12  ;;  %v17694_v19 = vld [vmem:[#allocation181_spill] sm:$0xff] }
 0x596   :  { %v14489_v37 = vmul.f32 %v17692_v17, %v17691_v51  ;;  %v4507_v35 = vrot.slane %v14391_v58, %v12315_v20  ;;  %v8810_v5 = vmul.f32 %v17685_v22, %v8463_v10  ;;  %v6941_v13 = vmul.f32 %v17673_v55, %v6595_v59  ;;  %v17695_v17 = vld [vmem:[#allocation184_spill] sm:$0xff] }
 0x597   :  { %v7219_v9 = vrot.slane %v17687_v63, %v12315_v20  ;;  %v4511_v23 = vrot.slane %v14391_v58, %v12330_v40  ;;  %v9705_v0 = vadd.f32 %v17647_v46, %v9563_v16  ;;  %v7843_v3 = vrot.slane %v17687_v63, %v12330_v40  ;;  %v17697_v16 = vld [vmem:[#allocation183_spill] sm:$0xff] }
 0x598   :  { %v8938_v50 = vadd.f32 %v8810_v5, %v8314_v25  ;;  %v7069_v43 = vadd.f32 %v6941_v13, %v6445_v48  ;;  %v5196_v10 = vmul.f32 %v17671_v15, %v4851_v14  ;;  %v5692_v31 = vmul.f32 %v17672_v57, %v5347_v29  ;;  %v17699_v48 = vld [vmem:[#allocation145_spill] sm:$0xff] }
 0x599   :  { %v14517_v24 = vmul.f32 %v17693_v56, %v4491_v8  ;;  %v4395_v39 = vmul.f32 %v14437_v18, %v14373_v36  ;;  %10000 = vperm.xlu0 %11703, %v9705_v0   ;;  %v8467_v12 = vrot.slane %v17687_v63, %v12345_v21  ;;  %v14524_v51 = vmul.f32 %v17694_v19, %v4495_v61  ;;  %v17701_v19 = vld [vmem:[#allocation185_spill] sm:$0xff] }
 0x59a   :  { %v14527_v14 = vmul.f32 %v17695_v17, %v4499_v54  ;;  %v9434_v29 = vmul.f32 %v17686_v33, %v9087_v6  ;;  %v7565_v25 = vmul.f32 %v17675_v34, %v7219_v9  ;;  %v14532_v8 = vmul.f32 %v17697_v16, %v4503_v62 }
 0x59b   :  { %v14535_v5 = vmul.f32 %v17699_v48, %v4507_v35  ;;  %v8189_v36 = vmul.f32 %v17676_v49, %v7843_v3  ;;  %v9091_v13 = vrot.slane %v17687_v63, %v12667_v32  ;;  %v5820_v56 = vadd.f32 %v5692_v31, %v5196_v10  ;;  %v14546_v35 = vpop.xlane.xlu0 %4373  ;;  %v17703_v63 = vld [vmem:[#allocation49_spill] sm:$0xff] }
 0x59c   :  { %17696 = vst [vmem:[#allocation57_spill] sm:$0xff] %v14527_v14  ;;  %17698 = vst [vmem:[#allocation54_spill] sm:$0xff] %v14532_v8  ;;  %v9562_v61 = vadd.f32 %v9434_v29, %v8938_v50  ;;  %v7693_v0 = vadd.f32 %v7565_v25, %v7069_v43  ;;  %v6316_v54 = vmul.f32 %v17674_v38, %v5971_v42  ;;  %v4403_v17 = vsub.f32 2.0, %v4395_v39  ;;  %v17714_v14 = vld [vmem:[#allocation151_spill] sm:$0xff] }
 0x59d   :  { %17700 = vst [vmem:[#allocation61_spill] sm:$0xff] %v14535_v5  ;;  %v14542_v6 = vmul.f32 %v17701_v19, %v4511_v23  ;;  %v8813_v62 = vmul.f32 %v17681_v60, %v8467_v12  ;;  %v6940_v16 = vmul.f32 %v17678_v27, %v6595_v59  ;;  %v4855_v50 = vrot.slane %v17703_v63, %v11970_v11  ;;  %v17713_v5 = vld [vmem:[#allocation143_spill] sm:$0xff] }
 0x59e   :  { %v9704_v48 = vadd.f32 %v17648_v7, %v9562_v61  ;;  %v8317_v44 = vadd.f32 %v8189_v36, %v7693_v0  ;;  %v6444_v26 = vadd.f32 %v6316_v54, %v5820_v56  ;;  %v9437_v43 = vmul.f32 %v17683_v28, %v9091_v13 }
 0x59f   :  { %17702 = vst [vmem:[#allocation58_spill] sm:$0xff] %v14542_v6  ;;  %v7564_v42 = vmul.f32 %v17682_v30, %v7219_v9  ;;  %v5351_v23 = vrot.slane %v17703_v63, %v12275_v45  ;;  %v5975_v10 = vrot.slane %v17703_v63, %v12287_v53  ;;  %v5199_v39 = vmul.f32 %v17668_v2, %v4855_v50 }
 0x5a0   :  { %9997 = vperm.xlu1 %11702, %v9704_v48   ;;  %v8941_v59 = vadd.f32 %v8813_v62, %v8317_v44  ;;  %v7068_v31 = vadd.f32 %v6940_v16, %v6444_v26  ;;  %v6599_v29 = vrot.slane %v17703_v63, %v12300_v4  ;;  %v14561_v25 = vmul.f32 %v14437_v18, %v4403_v17 }
 0x5a1   :  { %11848 = vrcp.f32 %v14546_v35  ;;  %v8188_v9 = vmul.f32 %v17684_v52, %v7843_v3  ;;  %v5695_v36 = vmul.f32 %v17669_v41, %v5351_v23  ;;  %v7223_v44 = vrot.slane %v17703_v63, %v12315_v20 }
 0x5a2   :  { %v9565_v61 = vadd.f32 %v9437_v43, %v8941_v59  ;;  %v7692_v0 = vadd.f32 %v7564_v42, %v7068_v31  ;;  %v7847_v26 = vrot.slane %v17703_v63, %v12330_v40  ;;  %v6319_v54 = vmul.f32 %v17670_v1, %v5975_v10 }
 0x5a3   :  { %v5823_v56 = vadd.f32 %v5695_v36, %v5199_v39  ;;  %v5198_v18 = vmul.f32 %v17671_v15, %v4855_v50  ;;  %v5694_v19 = vmul.f32 %v17672_v57, %v5351_v23  ;;  %v8812_v62 = vmul.f32 %v17685_v22, %v8467_v12 }
 0x5a4   :  { %v9707_v17 = vadd.f32 %v17647_v46, %v9565_v61  ;;  %v8316_v3 = vadd.f32 %v8188_v9, %v7692_v0  ;;  %v6943_v16 = vmul.f32 %v17673_v55, %v6599_v29  ;;  %v8471_v43 = vrot.slane %v17703_v63, %v12345_v21 }
 0x5a5   :  { %v6447_v48 = vadd.f32 %v6319_v54, %v5823_v56  ;;  %v5822_v42 = vadd.f32 %v5694_v19, %v5198_v18  ;;  %v6318_v59 = vmul.f32 %v17674_v38, %v5975_v10  ;;  %v9436_v50 = vmul.f32 %v17686_v33, %v9091_v13  ;;  %v17704_v56 = vld [vmem:[#allocation46_spill] sm:$0xff] }
 0x5a6   :  { %10006 = vperm.xlu0 %11703, %v9707_v17   ;;  %v8940_v31 = vadd.f32 %v8812_v62, %v8316_v3  ;;  %v7567_v23 = vmul.f32 %v17675_v34, %v7223_v44  ;;  %v8191_v39 = vmul.f32 %v17676_v49, %v7847_v26  ;;  %v9095_v12 = vrot.slane %v17703_v63, %v12667_v32 }
 0x5a7   :  { %v7071_v9 = vadd.f32 %v6943_v16, %v6447_v48  ;;  %v6446_v36 = vadd.f32 %v6318_v59, %v5822_v42  ;;  %v6942_v61 = vmul.f32 %v17678_v27, %v6599_v29  ;;  %v4859_v54 = vrot.slane %v17704_v56, %v11970_v11 }
 0x5a8   :  { %v9564_v0 = vadd.f32 %v9436_v50, %v8940_v31  ;;  %v5355_v10 = vrot.slane %v17704_v56, %v12275_v45  ;;  %v5979_v13 = vrot.slane %v17704_v56, %v12287_v53  ;;  %v8815_v19 = vmul.f32 %v17681_v60, %v8471_v43 }
 0x5a9   :  { %v7695_v18 = vadd.f32 %v7567_v23, %v7071_v9  ;;  %v7070_v17 = vadd.f32 %v6942_v61, %v6446_v36  ;;  %v7566_v3 = vmul.f32 %v17682_v30, %v7223_v44  ;;  %v5201_v29 = vmul.f32 %v17668_v2, %v4859_v54 }
 0x5aa   :  { %v9706_v63 = vadd.f32 %v17648_v7, %v9564_v0  ;;  %v5697_v62 = vmul.f32 %v17669_v41, %v5355_v10  ;;  %v6603_v16 = vrot.slane %v17704_v56, %v12300_v4  ;;  %v9439_v42 = vmul.f32 %v17683_v28, %v9095_v12 }
 0x5ab   :  { %v8319_v48 = vadd.f32 %v8191_v39, %v7695_v18  ;;  %v7694_v59 = vadd.f32 %v7566_v3, %v7070_v17  ;;  %v8190_v31 = vmul.f32 %v17684_v52, %v7847_v26  ;;  %v8814_v50 = vmul.f32 %v17685_v22, %v8471_v43 }
 0x5ac   :  { %10003 = vperm.xlu1 %11702, %v9706_v63   ;;  %v5825_v23 = vadd.f32 %v5697_v62, %v5201_v29  ;;  %v6321_v44 = vmul.f32 %v17670_v1, %v5979_v13  ;;  %v7227_v9 = vrot.slane %v17704_v56, %v12315_v20  ;;  %v5200_v0 = vmul.f32 %v17671_v15, %v4859_v54 }
 0x5ad   :  { %v8943_v36 = vadd.f32 %v8815_v19, %v8319_v48  ;;  %v8318_v61 = vadd.f32 %v8190_v31, %v7694_v59  ;;  %v5696_v39 = vmul.f32 %v17672_v57, %v5355_v10  ;;  %v9438_v17 = vmul.f32 %v17686_v33, %v9095_v12 }
 0x5ae   :  { %v14606_v18 = vpop.eup %11848  ;;  %v6449_v26 = vadd.f32 %v6321_v44, %v5825_v23  ;;  %v6945_v3 = vmul.f32 %v17673_v55, %v6603_v16  ;;  %v7851_v43 = vrot.slane %v17704_v56, %v12330_v40  ;;  %v6320_v19 = vmul.f32 %v17674_v38, %v5979_v13  ;;  %v17705_v13 = vld [vmem:[#allocation53_spill] sm:$0xff] }
 0x5af   :  { %v9567_v63 = vadd.f32 %v9439_v42, %v8943_v36  ;;  %v8942_v29 = vadd.f32 %v8814_v50, %v8318_v61  ;;  %v5824_v62 = vadd.f32 %v5696_v39, %v5200_v0  ;;  %v7569_v54 = vmul.f32 %v17675_v34, %v7227_v9 }
 0x5b0   :  { %v7073_v48 = vadd.f32 %v6945_v3, %v6449_v26  ;;  %v8475_v10 = vrot.slane %v17704_v56, %v12345_v21  ;;  %v9099_v12 = vrot.slane %v17704_v56, %v12667_v32  ;;  %v6944_v44 = vmul.f32 %v17678_v27, %v6603_v16 }
 0x5b1   :  { %v9709_v59 = vadd.f32 %v17647_v46, %v9567_v63  ;;  %v9566_v31 = vadd.f32 %v9438_v17, %v8942_v29  ;;  %v6448_v23 = vadd.f32 %v6320_v19, %v5824_v62  ;;  %v8193_v50 = vmul.f32 %v17676_v49, %v7851_v43  ;;  %v17707_v62 = vld [vmem:[#allocation147_spill] sm:$0xff] }
 0x5b2   :  { %v7697_v42 = vadd.f32 %v7569_v54, %v7073_v48  ;;  %v4863_v36 = vrot.slane %v17705_v13, %v11970_v11  ;;  %v5359_v61 = vrot.slane %v17705_v13, %v12275_v45  ;;  %v7568_v56 = vmul.f32 %v17682_v30, %v7227_v9 }
 0x5b3   :  { %10012 = vperm.xlu0 %11703, %v9709_v59   ;;  %v9708_v0 = vadd.f32 %v17648_v7, %v9566_v31  ;;  %v7072_v39 = vadd.f32 %v6944_v44, %v6448_v23  ;;  %v5983_v17 = vrot.slane %v17705_v13, %v12287_v53  ;;  %v8817_v16 = vmul.f32 %v17681_v60, %v8475_v10 }
 0x5b4   :  { %v8321_v26 = vadd.f32 %v8193_v50, %v7697_v42  ;;  %v5203_v3 = vmul.f32 %v17668_v2, %v4863_v36  ;;  %v5699_v63 = vmul.f32 %v17669_v41, %v5359_v61  ;;  %v17706_v29 = vrot.slane %v14391_v58, %v12345_v21  ;;  %v17710_v50 = vld [vmem:[#allocation142_spill] sm:$0xff] }
 0x5b5   :  { %10009 = vperm.xlu1 %11702, %v9708_v0   ;;  %v7696_v48 = vadd.f32 %v7568_v56, %v7072_v39  ;;  %v8192_v9 = vmul.f32 %v17684_v52, %v7851_v43  ;;  %v6607_v54 = vrot.slane %v17705_v13, %v12300_v4  ;;  %v9441_v31 = vmul.f32 %v17683_v28, %v9099_v12 }
 0x5b6   :  { %v14636_v19 = vmul.f32 %v17707_v62, %v17706_v29  ;;  %v8945_v59 = vadd.f32 %v8817_v16, %v8321_v26  ;;  %v5827_v23 = vadd.f32 %v5699_v63, %v5203_v3  ;;  %v6323_v44 = vmul.f32 %v17670_v1, %v5983_v17 }
 0x5b7   :  { %v17709_v42 = vrot.slane %v14391_v58, %v12667_v32  ;;  %v4523_v0 = vrot.slane %v14561_v25, %v11970_v11  ;;  %v4527_v43 = vrot.slane %v14561_v25, %v12275_v45  ;;  %v8320_v39 = vadd.f32 %v8192_v9, %v7696_v48 }
 0x5b8   :  { %17708 = vst [vmem:[#allocation124_spill] sm:$0xff] %v14636_v19  ;;  %v4531_v56 = vrot.slane %v14561_v25, %v12287_v53  ;;  %v4535_v26 = vrot.slane %v14561_v25, %v12300_v4  ;;  %v9569_v16 = vadd.f32 %v9441_v31, %v8945_v59  ;;  %v6451_v3 = vadd.f32 %v6323_v44, %v5827_v23 }
 0x5b9   :  { %v14647_v6 = vmul.f32 %v17710_v50, %v17709_v42  ;;  %v4539_v58 = vrot.slane %v14561_v25, %v12315_v20  ;;  %v8816_v63 = vmul.f32 %v17685_v22, %v8475_v10  ;;  %v6947_v29 = vmul.f32 %v17673_v55, %v6607_v54 }
 0x5ba   :  { %v7231_v62 = vrot.slane %v17705_v13, %v12315_v20  ;;  %v4543_v48 = vrot.slane %v14561_v25, %v12330_v40  ;;  %v4547_v9 = vrot.slane %v14561_v25, %v12345_v21  ;;  %v9711_v42 = vadd.f32 %v17647_v46, %v9569_v16 }
 0x5bb   :  { %17711 = vst [vmem:[#allocation62_spill] sm:$0xff] %v14647_v6  ;;  %v7855_v59 = vrot.slane %v17705_v13, %v12330_v40  ;;  %v8944_v31 = vadd.f32 %v8816_v63, %v8320_v39  ;;  %v7075_v23 = vadd.f32 %v6947_v29, %v6451_v3  ;;  %v5202_v10 = vmul.f32 %v17671_v15, %v4863_v36  ;;  %v17712_v6 = vld [vmem:[#allocation149_spill] sm:$0xff]  ;;  %v17716_v3 = vld [vmem:[#allocation144_spill] sm:$0xff] }
 0x5bc   :  { %v5698_v44 = vmul.f32 %v17672_v57, %v5359_v61  ;;  %v4551_v50 = vrot.slane %v14561_v25, %v12667_v32  ;;  %v14675_v19 = vmul.f32 %v17712_v6, %v4523_v0  ;;  %v14678_v8 = vmul.f32 %v17713_v5, %v4527_v43  ;;  %10018 = vperm.xlu0 %11703, %v9711_v42   ;;  %v17718_v63 = vld [vmem:[#allocation153_spill] sm:$0xff]  ;;  %v17719_v0 = vld [vmem:[#allocation146_spill] sm:$0xff] }
 0x5bd   :  { %v8479_v16 = vrot.slane %v17705_v13, %v12345_v21  ;;  %v14683_v39 = vmul.f32 %v17714_v14, %v4531_v56  ;;  %v14686_v36 = vmul.f32 %v17716_v3, %v4535_v26  ;;  %v9440_v61 = vmul.f32 %v17686_v33, %v9099_v12  ;;  %v17721_v3 = vld [vmem:[#allocation155_spill] sm:$0xff] }
 0x5be   :  { %v7571_v25 = vmul.f32 %v17675_v34, %v7231_v62  ;;  %v14691_v6 = vmul.f32 %v17718_v63, %v4539_v58  ;;  %v14694_v5 = vmul.f32 %v17719_v0, %v4543_v48  ;;  %v8195_v43 = vmul.f32 %v17676_v49, %v7855_v59 }
 0x5bf   :  { %17715 = vst [vmem:[#allocation125_spill] sm:$0xff] %v14683_v39  ;;  %17717 = vst [vmem:[#allocation140_spill] sm:$0xff] %v14686_v36  ;;  %v9103_v29 = vrot.slane %v17705_v13, %v12667_v32  ;;  %v9568_v14 = vadd.f32 %v9440_v61, %v8944_v31  ;;  %v5826_v42 = vadd.f32 %v5698_v44, %v5202_v10  ;;  %v17722_v36 = vld [vmem:[#allocation148_spill] sm:$0xff] }
 0x5c0   :  { %17720 = vst [vmem:[#allocation141_spill] sm:$0xff] %v14694_v5  ;;  %v7699_v56 = vadd.f32 %v7571_v25, %v7075_v23  ;;  %v6322_v26 = vmul.f32 %v17674_v38, %v5983_v17  ;;  %v14701_v12 = vmul.f32 %v17721_v3, %v4547_v9  ;;  %v14704_v39 = vmul.f32 %v17722_v36, %v4551_v50 }
 0x5c1   :  { %v8819_v58 = vmul.f32 %v17681_v60, %v8479_v16  ;;  %v6946_v48 = vmul.f32 %v17678_v27, %v6607_v54  ;;  %v9710_v63 = vadd.f32 %v17648_v7, %v9568_v14  ;;  %v4867_v13 = vrot.slane %v14478_v47, %v11970_v11 }
 0x5c2   :  { %v8323_v0 = vadd.f32 %v8195_v43, %v7699_v56  ;;  %v6450_v5 = vadd.f32 %v6322_v26, %v5826_v42  ;;  %v14713_v17 = vmul.f32 %v14606_v18, %v14546_v35  ;;  %v9443_v9 = vmul.f32 %v17683_v28, %v9103_v29 }
 0x5c3   :  { %v5363_v31 = vrot.slane %v14478_v47, %v12275_v45  ;;  %v5987_v23 = vrot.slane %v14478_v47, %v12287_v53  ;;  %10015 = vperm.xlu1 %11702, %v9710_v63   ;;  %v7570_v44 = vmul.f32 %v17682_v30, %v7231_v62  ;;  %v5205_v50 = vmul.f32 %v17668_v2, %v4867_v13 }
 0x5c4   :  { %v8947_v54 = vadd.f32 %v8819_v58, %v8323_v0  ;;  %v7074_v10 = vadd.f32 %v6946_v48, %v6450_v5  ;;  %v8194_v36 = vmul.f32 %v17684_v52, %v7855_v59  ;;  %v8818_v35 = vmul.f32 %v17685_v22, %v8479_v16 }
 0x5c5   :  { %v5701_v61 = vmul.f32 %v17669_v41, %v5363_v31  ;;  %v6611_v25 = vrot.slane %v14478_v47, %v12300_v4  ;;  %v7235_v56 = vrot.slane %v14478_v47, %v12315_v20  ;;  %v7859_v5 = vrot.slane %v14478_v47, %v12330_v40 }
 0x5c6   :  { %v9571_v43 = vadd.f32 %v9443_v9, %v8947_v54  ;;  %v7698_v14 = vadd.f32 %v7570_v44, %v7074_v10  ;;  %v6325_v42 = vmul.f32 %v17670_v1, %v5987_v23  ;;  %v5204_v59 = vmul.f32 %v17671_v15, %v4867_v13 }
 0x5c7   :  { %v5829_v62 = vadd.f32 %v5701_v61, %v5205_v50  ;;  %v5700_v16 = vmul.f32 %v17672_v57, %v5363_v31  ;;  %v9442_v58 = vmul.f32 %v17686_v33, %v9103_v29  ;;  %v8483_v48 = vrot.slane %v14478_v47, %v12345_v21 }
 0x5c8   :  { %v9713_v26 = vadd.f32 %v17647_v46, %v9571_v43  ;;  %v8322_v3 = vadd.f32 %v8194_v36, %v7698_v14  ;;  %v6949_v0 = vmul.f32 %v17673_v55, %v6611_v25  ;;  %v6324_v54 = vmul.f32 %v17674_v38, %v5987_v23 }
 0x5c9   :  { %v6453_v63 = vadd.f32 %v6325_v42, %v5829_v62  ;;  %v5828_v9 = vadd.f32 %v5700_v16, %v5204_v59  ;;  %v7573_v13 = vmul.f32 %v17675_v34, %v7235_v56  ;;  %v8197_v31 = vmul.f32 %v17676_v49, %v7859_v5 }
 0x5ca   :  { %10024 = vperm.xlu0 %11703, %v9713_v26   ;;  %v8946_v10 = vadd.f32 %v8818_v35, %v8322_v3  ;;  %v9107_v44 = vrot.slane %v14478_v47, %v12667_v32  ;;  %v6948_v36 = vmul.f32 %v17678_v27, %v6611_v25  ;;  %v4871_v61 = vrot.slane %v14489_v37, %v11970_v11 }
 0x5cb   :  { %v7077_v50 = vadd.f32 %v6949_v0, %v6453_v63  ;;  %v6452_v29 = vadd.f32 %v6324_v54, %v5828_v9  ;;  %v8821_v14 = vmul.f32 %v17681_v60, %v8483_v48  ;;  %v5367_v23 = vrot.slane %v14489_v37, %v12275_v45 }
 0x5cc   :  { %v9570_v43 = vadd.f32 %v9442_v58, %v8946_v10  ;;  %v5991_v35 = vrot.slane %v14489_v37, %v12287_v53  ;;  %v7572_v47 = vmul.f32 %v17682_v30, %v7235_v56  ;;  %v5207_v59 = vmul.f32 %v17668_v2, %v4871_v61 }
 0x5cd   :  { %v7701_v62 = vadd.f32 %v7573_v13, %v7077_v50  ;;  %v7076_v42 = vadd.f32 %v6948_v36, %v6452_v29  ;;  %v9445_v16 = vmul.f32 %v17683_v28, %v9107_v44  ;;  %v5703_v26 = vmul.f32 %v17669_v41, %v5367_v23 }
 0x5ce   :  { %v9712_v25 = vadd.f32 %v17648_v7, %v9570_v43  ;;  %v6615_v3 = vrot.slane %v14489_v37, %v12300_v4  ;;  %v8196_v0 = vmul.f32 %v17684_v52, %v7859_v5  ;;  %v7239_v9 = vrot.slane %v14489_v37, %v12315_v20 }
 0x5cf   :  { %v8325_v58 = vadd.f32 %v8197_v31, %v7701_v62  ;;  %v7700_v63 = vadd.f32 %v7572_v47, %v7076_v42  ;;  %v5831_v56 = vadd.f32 %v5703_v26, %v5207_v59  ;;  %v6327_v2 = vmul.f32 %v17670_v1, %v5991_v35 }
 0x5d0   :  { %10021 = vperm.xlu1 %11702, %v9712_v25   ;;  %v7863_v54 = vrot.slane %v14489_v37, %v12330_v40  ;;  %v5206_v10 = vmul.f32 %v17671_v15, %v4871_v61  ;;  %v8820_v50 = vmul.f32 %v17685_v22, %v8483_v48  ;;  %v5702_v31 = vmul.f32 %v17672_v57, %v5367_v23 }
 0x5d1   :  { %v8949_v41 = vadd.f32 %v8821_v14, %v8325_v58  ;;  %v8324_v13 = vadd.f32 %v8196_v0, %v7700_v63  ;;  %v9444_v5 = vmul.f32 %v17686_v33, %v9107_v44  ;;  %v6455_v29 = vadd.f32 %v6327_v2, %v5831_v56  ;;  %v17724_v58 = vld [vmem:[#allocation90_spill] sm:$0xff] }
 0x5d2   :  { %v6951_v36 = vmul.f32 %v17673_v55, %v6615_v3  ;;  %v8487_v43 = vrot.slane %v14489_v37, %v12345_v21  ;;  %v5830_v42 = vadd.f32 %v5702_v31, %v5206_v10  ;;  %v6326_v47 = vmul.f32 %v17674_v38, %v5991_v35 }
 0x5d3   :  { %v9573_v1 = vadd.f32 %v9445_v16, %v8949_v41  ;;  %v8948_v62 = vadd.f32 %v8820_v50, %v8324_v13  ;;  %v7575_v61 = vmul.f32 %v17675_v34, %v7239_v9  ;;  %v8199_v48 = vmul.f32 %v17676_v49, %v7863_v54  ;;  %v17725_v50 = vld [vmem:[#allocation94_spill] sm:$0xff] }
 0x5d4   :  { %v7079_v15 = vadd.f32 %v6951_v36, %v6455_v29  ;;  %v9111_v57 = vrot.slane %v14489_v37, %v12667_v32  ;;  %v6454_v55 = vadd.f32 %v6326_v47, %v5830_v42  ;;  %v6950_v23 = vmul.f32 %v17678_v27, %v6615_v3  ;;  %v17723_v27 = vld [vmem:[#allocation86_spill] sm:$0xff]  ;;  %v17726_v29 = vld [vmem:[#allocation89_spill] sm:$0xff] }
 0x5d5   :  { %v9715_v44 = vadd.f32 %v17647_v46, %v9573_v1  ;;  %v9572_v14 = vadd.f32 %v9444_v5, %v8948_v62  ;;  %v4875_v25 = vrot.slane %v14517_v24, %v11970_v11  ;;  %v5371_v38 = vrot.slane %v14517_v24, %v12275_v45  ;;  %v17727_v1 = vld [vmem:[#allocation93_spill] sm:$0xff] }
 0x5d6   :  { %v7703_v59 = vadd.f32 %v7575_v61, %v7079_v15  ;;  %v5995_v34 = vrot.slane %v14517_v24, %v12287_v53  ;;  %v8823_v37 = vmul.f32 %v17681_v60, %v8487_v43  ;;  %v7078_v35 = vadd.f32 %v6950_v23, %v6454_v55  ;;  %v17729_v61 = vld [vmem:[#allocation97_spill] sm:$0xff]  ;;  %v17730_v55 = vld [vmem:[#allocation102_spill] sm:$0xff] }
 0x5d7   :  { %10030 = vperm.xlu0 %11703, %v9715_v44   ;;  %v9714_v49 = vadd.f32 %v17648_v7, %v9572_v14  ;;  %v7574_v16 = vmul.f32 %v17682_v30, %v7239_v9  ;;  %v5209_v3 = vmul.f32 %v17723_v27, %v4875_v25  ;;  %v5705_v63 = vmul.f32 %v17724_v58, %v5371_v38 }
 0x5d8   :  { %v8327_v26 = vadd.f32 %v8199_v48, %v7703_v59  ;;  %v6619_v0 = vrot.slane %v14517_v24, %v12300_v4  ;;  %v9447_v56 = vmul.f32 %v17683_v28, %v9111_v57  ;;  %v8198_v10 = vmul.f32 %v17684_v52, %v7863_v54 }
 0x5d9   :  { %10027 = vperm.xlu1 %11702, %v9714_v49   ;;  %v7702_v2 = vadd.f32 %v7574_v16, %v7078_v35  ;;  %v8822_v41 = vmul.f32 %v17685_v22, %v8487_v43  ;;  %v5833_v13 = vadd.f32 %v5705_v63, %v5209_v3  ;;  %v6329_v30 = vmul.f32 %v17725_v50, %v5995_v34  ;;  %v17728_v22 = vld [vmem:[#allocation98_spill] sm:$0xff]  ;;  %v17732_v49 = vld [vmem:[#allocation101_spill] sm:$0xff] }
 0x5da   :  { %v8951_v60 = vadd.f32 %v8823_v37, %v8327_v26  ;;  %v7243_v9 = vrot.slane %v14517_v24, %v12315_v20  ;;  %v7867_v5 = vrot.slane %v14517_v24, %v12330_v40  ;;  %v5208_v36 = vmul.f32 %v17726_v29, %v4875_v25 }
 0x5db   :  { %v8326_v31 = vadd.f32 %v8198_v10, %v7702_v2  ;;  %v5704_v28 = vmul.f32 %v17727_v1, %v5371_v38  ;;  %v9446_v52 = vmul.f32 %v17686_v33, %v9111_v57  ;;  %v6457_v54 = vadd.f32 %v6329_v30, %v5833_v13  ;;  %v17731_v33 = vld [vmem:[#allocation106_spill] sm:$0xff]  ;;  %v17734_v2 = vld [vmem:[#allocation105_spill] sm:$0xff]  ;;  %v17735_v30 = vld [vmem:[#allocation128_spill] sm:$0xff] }
 0x5dc   :  { %v9575_v62 = vadd.f32 %v9447_v56, %v8951_v60  ;;  %v6953_v43 = vmul.f32 %v17728_v22, %v6619_v0  ;;  %v8491_v47 = vrot.slane %v14517_v24, %v12345_v21  ;;  %v6328_v48 = vmul.f32 %v17729_v61, %v5995_v34 }
 0x5dd   :  { %v8950_v42 = vadd.f32 %v8822_v41, %v8326_v31  ;;  %v5832_v15 = vadd.f32 %v5704_v28, %v5208_v36  ;;  %v7577_v23 = vmul.f32 %v17730_v55, %v7243_v9  ;;  %v9115_v59 = vrot.slane %v14517_v24, %v12667_v32  ;;  %v17733_v24 = vld [vmem:[#allocation112_spill] sm:$0xff]  ;;  %v17736_v28 = vld [vmem:[#allocation109_spill] sm:$0xff] }
 0x5de   :  { %v9717_v44 = vadd.f32 %v17647_v46, %v9575_v62  ;;  %v7081_v14 = vadd.f32 %v6953_v43, %v6457_v54  ;;  %v8201_v57 = vmul.f32 %v17731_v33, %v7867_v5  ;;  %v6952_v37 = vmul.f32 %v17732_v49, %v6619_v0 }
 0x5df   :  { %v9574_v25 = vadd.f32 %v9446_v52, %v8950_v42  ;;  %v6456_v38 = vadd.f32 %v6328_v48, %v5832_v15  ;;  %v4879_v16 = vrot.slane %v14524_v51, %v11970_v11  ;;  %v5375_v34 = vrot.slane %v14524_v51, %v12275_v45  ;;  %v17737_v52 = vld [vmem:[#allocation113_spill] sm:$0xff] }
 0x5e0   :  { %10036 = vperm.xlu0 %11703, %v9717_v44   ;;  %v7705_v35 = vadd.f32 %v7577_v23, %v7081_v14  ;;  %v5999_v26 = vrot.slane %v14524_v51, %v12287_v53  ;;  %v8825_v63 = vmul.f32 %v17733_v24, %v8491_v47  ;;  %v7576_v10 = vmul.f32 %v17734_v2, %v7243_v9 }
 0x5e1   :  { %v9716_v3 = vadd.f32 %v17648_v7, %v9574_v25  ;;  %v7080_v56 = vadd.f32 %v6952_v37, %v6456_v38  ;;  %v5211_v0 = vmul.f32 %v17723_v27, %v4879_v16  ;;  %v5707_v60 = vmul.f32 %v17724_v58, %v5375_v34 }
 0x5e2   :  { %v8329_v41 = vadd.f32 %v8201_v57, %v7705_v35  ;;  %v6623_v13 = vrot.slane %v14524_v51, %v12300_v4  ;;  %v9449_v31 = vmul.f32 %v17735_v30, %v9115_v59  ;;  %v8200_v62 = vmul.f32 %v17736_v28, %v7867_v5  ;;  %v17738_v57 = vld [vmem:[#allocation129_spill] sm:$0xff] }
 0x5e3   :  { %10033 = vperm.xlu1 %11702, %v9716_v3   ;;  %v7704_v36 = vadd.f32 %v7576_v10, %v7080_v56  ;;  %v8824_v54 = vmul.f32 %v17737_v52, %v8491_v47  ;;  %v5835_v42 = vadd.f32 %v5707_v60, %v5211_v0  ;;  %v6331_v9 = vmul.f32 %v17725_v50, %v5999_v26 }
 0x5e4   :  { %v8953_v43 = vadd.f32 %v8825_v63, %v8329_v41  ;;  %v7247_v15 = vrot.slane %v14524_v51, %v12315_v20  ;;  %v7871_v44 = vrot.slane %v14524_v51, %v12330_v40  ;;  %v5210_v14 = vmul.f32 %v17726_v29, %v4879_v16 }
 0x5e5   :  { %v8328_v48 = vadd.f32 %v8200_v62, %v7704_v36  ;;  %v5706_v23 = vmul.f32 %v17727_v1, %v5375_v34  ;;  %v9448_v5 = vmul.f32 %v17738_v57, %v9115_v59  ;;  %v6459_v38 = vadd.f32 %v6331_v9, %v5835_v42  ;;  %v17739_v36 = vld [vmem:[#allocation57_spill] sm:$0xff] }
 0x5e6   :  { %v9577_v25 = vadd.f32 %v9449_v31, %v8953_v43  ;;  %v6955_v47 = vmul.f32 %v17728_v22, %v6623_v13  ;;  %v8495_v35 = vrot.slane %v14524_v51, %v12345_v21  ;;  %v6330_v63 = vmul.f32 %v17729_v61, %v5999_v26 }
 0x5e7   :  { %v8952_v37 = vadd.f32 %v8824_v54, %v8328_v48  ;;  %v5834_v3 = vadd.f32 %v5706_v23, %v5210_v14  ;;  %v7579_v16 = vmul.f32 %v17730_v55, %v7247_v15  ;;  %v9119_v34 = vrot.slane %v14524_v51, %v12667_v32 }
 0x5e8   :  { %v9719_v56 = vadd.f32 %v17647_v46, %v9577_v25  ;;  %v7083_v10 = vadd.f32 %v6955_v47, %v6459_v38  ;;  %v8203_v59 = vmul.f32 %v17731_v33, %v7871_v44  ;;  %v6954_v60 = vmul.f32 %v17732_v49, %v6623_v13 }
 0x5e9   :  { %v9576_v41 = vadd.f32 %v9448_v5, %v8952_v37  ;;  %v6458_v0 = vadd.f32 %v6330_v63, %v5834_v3  ;;  %v4883_v62 = vrot.slane %v17739_v36, %v11970_v11  ;;  %v5379_v26 = vrot.slane %v17739_v36, %v12275_v45 }
 0x5ea   :  { %10042 = vperm.xlu0 %11703, %v9719_v56   ;;  %v7707_v31 = vadd.f32 %v7579_v16, %v7083_v10  ;;  %v6003_v54 = vrot.slane %v17739_v36, %v12287_v53  ;;  %v8827_v51 = vmul.f32 %v17733_v24, %v8495_v35  ;;  %v7578_v9 = vmul.f32 %v17734_v2, %v7247_v15 }
 0x5eb   :  { %v9718_v43 = vadd.f32 %v17648_v7, %v9576_v41  ;;  %v7082_v42 = vadd.f32 %v6954_v60, %v6458_v0  ;;  %v5213_v13 = vmul.f32 %v17723_v27, %v4883_v62  ;;  %v5709_v14 = vmul.f32 %v17724_v58, %v5379_v26 }
 0x5ec   :  { %v8331_v48 = vadd.f32 %v8203_v59, %v7707_v31  ;;  %v6627_v23 = vrot.slane %v17739_v36, %v12300_v4  ;;  %v9451_v25 = vmul.f32 %v17735_v30, %v9119_v34  ;;  %v8202_v38 = vmul.f32 %v17736_v28, %v7871_v44 }
 0x5ed   :  { %10039 = vperm.xlu1 %11702, %v9718_v43   ;;  %v7706_v5 = vadd.f32 %v7578_v9, %v7082_v42  ;;  %v8826_v47 = vmul.f32 %v17737_v52, %v8495_v35  ;;  %v5837_v3 = vadd.f32 %v5709_v14, %v5213_v13  ;;  %v6333_v15 = vmul.f32 %v17725_v50, %v6003_v54 }
 0x5ee   :  { %v8955_v37 = vadd.f32 %v8827_v51, %v8331_v48  ;;  %v7251_v63 = vrot.slane %v17739_v36, %v12315_v20  ;;  %v7875_v10 = vrot.slane %v17739_v36, %v12330_v40  ;;  %v5212_v16 = vmul.f32 %v17726_v29, %v4883_v62 }
 0x5ef   :  { %v8330_v56 = vadd.f32 %v8202_v38, %v7706_v5  ;;  %v5708_v41 = vmul.f32 %v17727_v1, %v5379_v26  ;;  %v9450_v44 = vmul.f32 %v17738_v57, %v9119_v34  ;;  %v6461_v0 = vadd.f32 %v6333_v15, %v5837_v3  ;;  %v17740_v5 = vld [vmem:[#allocation54_spill] sm:$0xff] }
 0x5f0   :  { %v9579_v59 = vadd.f32 %v9451_v25, %v8955_v37  ;;  %v6957_v35 = vmul.f32 %v17728_v22, %v6627_v23  ;;  %v8499_v31 = vrot.slane %v17739_v36, %v12345_v21  ;;  %v6332_v51 = vmul.f32 %v17729_v61, %v6003_v54 }
 0x5f1   :  { %v8954_v60 = vadd.f32 %v8826_v47, %v8330_v56  ;;  %v5836_v43 = vadd.f32 %v5708_v41, %v5212_v16  ;;  %v7581_v62 = vmul.f32 %v17730_v55, %v7251_v63  ;;  %v9123_v26 = vrot.slane %v17739_v36, %v12667_v32 }
 0x5f2   :  { %v9721_v42 = vadd.f32 %v17647_v46, %v9579_v59  ;;  %v7085_v9 = vadd.f32 %v6957_v35, %v6461_v0  ;;  %v8205_v34 = vmul.f32 %v17731_v33, %v7875_v10  ;;  %v6956_v14 = vmul.f32 %v17732_v49, %v6627_v23 }
 0x5f3   :  { %v9578_v48 = vadd.f32 %v9450_v44, %v8954_v60  ;;  %v6460_v13 = vadd.f32 %v6332_v51, %v5836_v43  ;;  %v4887_v38 = vrot.slane %v17740_v5, %v11970_v11  ;;  %v5383_v54 = vrot.slane %v17740_v5, %v12275_v45 }
 0x5f4   :  { %10048 = vperm.xlu0 %11703, %v9721_v42   ;;  %v7709_v25 = vadd.f32 %v7581_v62, %v7085_v9  ;;  %v6007_v47 = vrot.slane %v17740_v5, %v12287_v53  ;;  %v8829_v36 = vmul.f32 %v17733_v24, %v8499_v31  ;;  %v7580_v15 = vmul.f32 %v17734_v2, %v7251_v63 }
 0x5f5   :  { %v9720_v37 = vadd.f32 %v17648_v7, %v9578_v48  ;;  %v7084_v3 = vadd.f32 %v6956_v14, %v6460_v13  ;;  %v5215_v23 = vmul.f32 %v17723_v27, %v4887_v38  ;;  %v5711_v16 = vmul.f32 %v17724_v58, %v5383_v54 }
 0x5f6   :  { %v8333_v56 = vadd.f32 %v8205_v34, %v7709_v25  ;;  %v6631_v41 = vrot.slane %v17740_v5, %v12300_v4  ;;  %v9453_v59 = vmul.f32 %v17735_v30, %v9123_v26  ;;  %v8204_v0 = vmul.f32 %v17736_v28, %v7875_v10 }
 0x5f7   :  { %10045 = vperm.xlu1 %11702, %v9720_v37   ;;  %v7708_v44 = vadd.f32 %v7580_v15, %v7084_v3  ;;  %v8828_v35 = vmul.f32 %v17737_v52, %v8499_v31  ;;  %v5839_v43 = vadd.f32 %v5711_v16, %v5215_v23  ;;  %v6335_v63 = vmul.f32 %v17725_v50, %v6007_v47 }
 0x5f8   :  { %v8957_v60 = vadd.f32 %v8829_v36, %v8333_v56  ;;  %v7255_v51 = vrot.slane %v17740_v5, %v12315_v20  ;;  %v7879_v9 = vrot.slane %v17740_v5, %v12330_v40  ;;  %v5214_v62 = vmul.f32 %v17726_v29, %v4887_v38 }
 0x5f9   :  { %v8332_v42 = vadd.f32 %v8204_v0, %v7708_v44  ;;  %v5710_v48 = vmul.f32 %v17727_v1, %v5383_v54  ;;  %v9452_v10 = vmul.f32 %v17738_v57, %v9123_v26  ;;  %v6463_v13 = vadd.f32 %v6335_v63, %v5839_v43  ;;  %v17741_v44 = vld [vmem:[#allocation61_spill] sm:$0xff] }
 0x5fa   :  { %v9581_v34 = vadd.f32 %v9453_v59, %v8957_v60  ;;  %v6959_v31 = vmul.f32 %v17728_v22, %v6631_v41  ;;  %v8503_v25 = vrot.slane %v17740_v5, %v12345_v21  ;;  %v6334_v36 = vmul.f32 %v17729_v61, %v6007_v47 }
 0x5fb   :  { %v8956_v14 = vadd.f32 %v8828_v35, %v8332_v42  ;;  %v5838_v37 = vadd.f32 %v5710_v48, %v5214_v62  ;;  %v7583_v38 = vmul.f32 %v17730_v55, %v7255_v51  ;;  %v9127_v54 = vrot.slane %v17740_v5, %v12667_v32 }
 0x5fc   :  { %v9723_v3 = vadd.f32 %v17647_v46, %v9581_v34  ;;  %v7087_v15 = vadd.f32 %v6959_v31, %v6463_v13  ;;  %v8207_v26 = vmul.f32 %v17731_v33, %v7879_v9  ;;  %v6958_v16 = vmul.f32 %v17732_v49, %v6631_v41 }
 0x5fd   :  { %v9580_v56 = vadd.f32 %v9452_v10, %v8956_v14  ;;  %v6462_v23 = vadd.f32 %v6334_v36, %v5838_v37  ;;  %v4891_v0 = vrot.slane %v17741_v44, %v11970_v11  ;;  %v5387_v47 = vrot.slane %v17741_v44, %v12275_v45 }
 0x5fe   :  { %10054 = vperm.xlu0 %11703, %v9723_v3   ;;  %v7711_v59 = vadd.f32 %v7583_v38, %v7087_v15  ;;  %v6011_v35 = vrot.slane %v17741_v44, %v12287_v53  ;;  %v8831_v5 = vmul.f32 %v17733_v24, %v8503_v25  ;;  %v7582_v63 = vmul.f32 %v17734_v2, %v7255_v51 }
 0x5ff   :  { %v9722_v60 = vadd.f32 %v17648_v7, %v9580_v56  ;;  %v7086_v43 = vadd.f32 %v6958_v16, %v6462_v23  ;;  %v5217_v41 = vmul.f32 %v17723_v27, %v4891_v0  ;;  %v5713_v62 = vmul.f32 %v17724_v58, %v5387_v47 }
 0x600   :  { %v8335_v42 = vadd.f32 %v8207_v26, %v7711_v59  ;;  %v6635_v48 = vrot.slane %v17741_v44, %v12300_v4  ;;  %v9455_v34 = vmul.f32 %v17735_v30, %v9127_v54  ;;  %v8206_v13 = vmul.f32 %v17736_v28, %v7879_v9 }
 0x601   :  { %10051 = vperm.xlu1 %11702, %v9722_v60   ;;  %v7710_v10 = vadd.f32 %v7582_v63, %v7086_v43  ;;  %v8830_v31 = vmul.f32 %v17737_v52, %v8503_v25  ;;  %v5841_v37 = vadd.f32 %v5713_v62, %v5217_v41  ;;  %v6337_v51 = vmul.f32 %v17725_v50, %v6011_v35 }
 0x602   :  { %v8959_v14 = vadd.f32 %v8831_v5, %v8335_v42  ;;  %v7259_v36 = vrot.slane %v17741_v44, %v12315_v20  ;;  %v7883_v15 = vrot.slane %v17741_v44, %v12330_v40  ;;  %v5216_v38 = vmul.f32 %v17726_v29, %v4891_v0 }
 0x603   :  { %v8334_v3 = vadd.f32 %v8206_v13, %v7710_v10  ;;  %v5712_v56 = vmul.f32 %v17727_v1, %v5387_v47  ;;  %v9454_v9 = vmul.f32 %v17738_v57, %v9127_v54  ;;  %v6465_v23 = vadd.f32 %v6337_v51, %v5841_v37  ;;  %v17742_v10 = vld [vmem:[#allocation58_spill] sm:$0xff] }
 0x604   :  { %v9583_v26 = vadd.f32 %v9455_v34, %v8959_v14  ;;  %v6961_v25 = vmul.f32 %v17728_v22, %v6635_v48  ;;  %v8507_v59 = vrot.slane %v17741_v44, %v12345_v21  ;;  %v6336_v5 = vmul.f32 %v17729_v61, %v6011_v35 }
 0x605   :  { %v8958_v16 = vadd.f32 %v8830_v31, %v8334_v3  ;;  %v5840_v60 = vadd.f32 %v5712_v56, %v5216_v38  ;;  %v7585_v0 = vmul.f32 %v17730_v55, %v7259_v36  ;;  %v9131_v47 = vrot.slane %v17741_v44, %v12667_v32 }
 0x606   :  { %v9725_v43 = vadd.f32 %v17647_v46, %v9583_v26  ;;  %v7089_v63 = vadd.f32 %v6961_v25, %v6465_v23  ;;  %v8209_v54 = vmul.f32 %v17731_v33, %v7883_v15  ;;  %v6960_v62 = vmul.f32 %v17732_v49, %v6635_v48 }
 0x607   :  { %v9582_v42 = vadd.f32 %v9454_v9, %v8958_v16  ;;  %v6464_v41 = vadd.f32 %v6336_v5, %v5840_v60  ;;  %v4895_v13 = vrot.slane %v17742_v10, %v11970_v11  ;;  %v5391_v35 = vrot.slane %v17742_v10, %v12275_v45 }
 0x608   :  { %10060 = vperm.xlu0 %11703, %v9725_v43   ;;  %v7713_v34 = vadd.f32 %v7585_v0, %v7089_v63  ;;  %v6015_v31 = vrot.slane %v17742_v10, %v12287_v53  ;;  %v8833_v44 = vmul.f32 %v17733_v24, %v8507_v59  ;;  %v7584_v51 = vmul.f32 %v17734_v2, %v7259_v36 }
 0x609   :  { %v9724_v14 = vadd.f32 %v17648_v7, %v9582_v42  ;;  %v7088_v37 = vadd.f32 %v6960_v62, %v6464_v41  ;;  %v5219_v48 = vmul.f32 %v17723_v27, %v4895_v13  ;;  %v5715_v38 = vmul.f32 %v17724_v58, %v5391_v35 }
 0x60a   :  { %v8337_v3 = vadd.f32 %v8209_v54, %v7713_v34  ;;  %v6639_v56 = vrot.slane %v17742_v10, %v12300_v4  ;;  %v9457_v26 = vmul.f32 %v17735_v30, %v9131_v47  ;;  %v8208_v23 = vmul.f32 %v17736_v28, %v7883_v15 }
 0x60b   :  { %10057 = vperm.xlu1 %11702, %v9724_v14   ;;  %v7712_v9 = vadd.f32 %v7584_v51, %v7088_v37  ;;  %v8832_v25 = vmul.f32 %v17737_v52, %v8507_v59  ;;  %v5843_v60 = vadd.f32 %v5715_v38, %v5219_v48  ;;  %v6339_v36 = vmul.f32 %v17725_v50, %v6015_v31 }
 0x60c   :  { %v8961_v16 = vadd.f32 %v8833_v44, %v8337_v3  ;;  %v7263_v5 = vrot.slane %v17742_v10, %v12315_v20  ;;  %v7887_v63 = vrot.slane %v17742_v10, %v12330_v40  ;;  %v5218_v0 = vmul.f32 %v17726_v29, %v4895_v13 }
 0x60d   :  { %v8336_v43 = vadd.f32 %v8208_v23, %v7712_v9  ;;  %v5714_v42 = vmul.f32 %v17727_v1, %v5391_v35  ;;  %v9456_v15 = vmul.f32 %v17738_v57, %v9131_v47  ;;  %v6467_v41 = vadd.f32 %v6339_v36, %v5843_v60  ;;  %v17743_v9 = vld [vmem:[#allocation124_spill] sm:$0xff] }
 0x60e   :  { %v9585_v54 = vadd.f32 %v9457_v26, %v8961_v16  ;;  %v6963_v59 = vmul.f32 %v17728_v22, %v6639_v56  ;;  %v8511_v34 = vrot.slane %v17742_v10, %v12345_v21  ;;  %v6338_v44 = vmul.f32 %v17729_v61, %v6015_v31 }
 0x60f   :  { %v8960_v62 = vadd.f32 %v8832_v25, %v8336_v43  ;;  %v5842_v14 = vadd.f32 %v5714_v42, %v5218_v0  ;;  %v7587_v13 = vmul.f32 %v17730_v55, %v7263_v5  ;;  %v9135_v35 = vrot.slane %v17742_v10, %v12667_v32 }
 0x610   :  { %v9727_v37 = vadd.f32 %v17647_v46, %v9585_v54  ;;  %v7091_v51 = vadd.f32 %v6963_v59, %v6467_v41  ;;  %v8211_v47 = vmul.f32 %v17731_v33, %v7887_v63  ;;  %v6962_v38 = vmul.f32 %v17732_v49, %v6639_v56 }
 0x611   :  { %v9584_v3 = vadd.f32 %v9456_v15, %v8960_v62  ;;  %v6466_v48 = vadd.f32 %v6338_v44, %v5842_v14  ;;  %v4899_v23 = vrot.slane %v17743_v9, %v11970_v11  ;;  %v5395_v31 = vrot.slane %v17743_v9, %v12275_v45 }
 0x612   :  { %10066 = vperm.xlu0 %11703, %v9727_v37   ;;  %v7715_v26 = vadd.f32 %v7587_v13, %v7091_v51  ;;  %v6019_v25 = vrot.slane %v17743_v9, %v12287_v53  ;;  %v8835_v10 = vmul.f32 %v17733_v24, %v8511_v34  ;;  %v7586_v36 = vmul.f32 %v17734_v2, %v7263_v5 }
 0x613   :  { %v9726_v16 = vadd.f32 %v17648_v7, %v9584_v3  ;;  %v7090_v60 = vadd.f32 %v6962_v38, %v6466_v48  ;;  %v5221_v56 = vmul.f32 %v17723_v27, %v4899_v23  ;;  %v5717_v0 = vmul.f32 %v17724_v58, %v5395_v31 }
 0x614   :  { %v8339_v43 = vadd.f32 %v8211_v47, %v7715_v26  ;;  %v6643_v42 = vrot.slane %v17743_v9, %v12300_v4  ;;  %v9459_v54 = vmul.f32 %v17735_v30, %v9135_v35  ;;  %v8210_v41 = vmul.f32 %v17736_v28, %v7887_v63 }
 0x615   :  { %10063 = vperm.xlu1 %11702, %v9726_v16   ;;  %v7714_v15 = vadd.f32 %v7586_v36, %v7090_v60  ;;  %v8834_v59 = vmul.f32 %v17737_v52, %v8511_v34  ;;  %v5845_v14 = vadd.f32 %v5717_v0, %v5221_v56  ;;  %v6341_v5 = vmul.f32 %v17725_v50, %v6019_v25 }
 0x616   :  { %v8963_v62 = vadd.f32 %v8835_v10, %v8339_v43  ;;  %v7267_v44 = vrot.slane %v17743_v9, %v12315_v20  ;;  %v7891_v51 = vrot.slane %v17743_v9, %v12330_v40  ;;  %v5220_v13 = vmul.f32 %v17726_v29, %v4899_v23 }
 0x617   :  { %v8338_v37 = vadd.f32 %v8210_v41, %v7714_v15  ;;  %v5716_v3 = vmul.f32 %v17727_v1, %v5395_v31  ;;  %v9458_v63 = vmul.f32 %v17738_v57, %v9135_v35  ;;  %v6469_v48 = vadd.f32 %v6341_v5, %v5845_v14  ;;  %v17744_v15 = vld [vmem:[#allocation62_spill] sm:$0xff] }
 0x618   :  { %v9587_v47 = vadd.f32 %v9459_v54, %v8963_v62  ;;  %v6965_v34 = vmul.f32 %v17728_v22, %v6643_v42  ;;  %v8515_v26 = vrot.slane %v17743_v9, %v12345_v21  ;;  %v6340_v10 = vmul.f32 %v17729_v61, %v6019_v25 }
 0x619   :  { %v8962_v38 = vadd.f32 %v8834_v59, %v8338_v37  ;;  %v5844_v16 = vadd.f32 %v5716_v3, %v5220_v13  ;;  %v7589_v23 = vmul.f32 %v17730_v55, %v7267_v44  ;;  %v9139_v31 = vrot.slane %v17743_v9, %v12667_v32 }
 0x61a   :  { %v9729_v60 = vadd.f32 %v17647_v46, %v9587_v47  ;;  %v7093_v36 = vadd.f32 %v6965_v34, %v6469_v48  ;;  %v8213_v35 = vmul.f32 %v17731_v33, %v7891_v51  ;;  %v6964_v0 = vmul.f32 %v17732_v49, %v6643_v42 }
 0x61b   :  { %v9586_v43 = vadd.f32 %v9458_v63, %v8962_v38  ;;  %v6468_v56 = vadd.f32 %v6340_v10, %v5844_v16  ;;  %v4903_v41 = vrot.slane %v17744_v15, %v11970_v11  ;;  %v5399_v25 = vrot.slane %v17744_v15, %v12275_v45 }
 0x61c   :  { %10072 = vperm.xlu0 %11703, %v9729_v60   ;;  %v7717_v54 = vadd.f32 %v7589_v23, %v7093_v36  ;;  %v6023_v59 = vrot.slane %v17744_v15, %v12287_v53  ;;  %v8837_v9 = vmul.f32 %v17733_v24, %v8515_v26  ;;  %v7588_v5 = vmul.f32 %v17734_v2, %v7267_v44 }
 0x61d   :  { %v9728_v62 = vadd.f32 %v17648_v7, %v9586_v43  ;;  %v7092_v14 = vadd.f32 %v6964_v0, %v6468_v56  ;;  %v5223_v42 = vmul.f32 %v17723_v27, %v4903_v41  ;;  %v5719_v13 = vmul.f32 %v17724_v58, %v5399_v25 }
 0x61e   :  { %v8341_v37 = vadd.f32 %v8213_v35, %v7717_v54  ;;  %v6647_v3 = vrot.slane %v17744_v15, %v12300_v4  ;;  %v9461_v47 = vmul.f32 %v17735_v30, %v9139_v31  ;;  %v8212_v48 = vmul.f32 %v17736_v28, %v7891_v51 }
 0x61f   :  { %10069 = vperm.xlu1 %11702, %v9728_v62   ;;  %v7716_v63 = vadd.f32 %v7588_v5, %v7092_v14  ;;  %v8836_v34 = vmul.f32 %v17737_v52, %v8515_v26  ;;  %v5847_v16 = vadd.f32 %v5719_v13, %v5223_v42  ;;  %v6343_v44 = vmul.f32 %v17725_v50, %v6023_v59  ;;  %v17746_v13 = vld [vmem:[#allocation66_spill] sm:$0xff] }
 0x620   :  { %v8965_v38 = vadd.f32 %v8837_v9, %v8341_v37  ;;  %v7271_v27 = vrot.slane %v17744_v15, %v12315_v20  ;;  %v7895_v58 = vrot.slane %v17744_v15, %v12330_v40  ;;  %v5222_v60 = vmul.f32 %v17726_v29, %v4903_v41 }
 0x621   :  { %v8340_v10 = vadd.f32 %v8212_v48, %v7716_v63  ;;  %v5718_v36 = vmul.f32 %v17727_v1, %v5399_v25  ;;  %v9460_v51 = vmul.f32 %v17738_v57, %v9139_v31  ;;  %v6471_v43 = vadd.f32 %v6343_v44, %v5847_v16  ;;  %v17747_v44 = vld [vmem:[#allocation70_spill] sm:$0xff] }
 0x622   :  { %v9589_v23 = vadd.f32 %v9461_v47, %v8965_v38  ;;  %v6967_v26 = vmul.f32 %v17728_v22, %v6647_v3  ;;  %v8519_v50 = vrot.slane %v17744_v15, %v12345_v21  ;;  %v6342_v0 = vmul.f32 %v17729_v61, %v6023_v59 }
 0x623   :  { %v8964_v35 = vadd.f32 %v8836_v34, %v8340_v10  ;;  %v5846_v56 = vadd.f32 %v5718_v36, %v5222_v60  ;;  %v7591_v29 = vmul.f32 %v17730_v55, %v7271_v27  ;;  %v9143_v1 = vrot.slane %v17744_v15, %v12667_v32  ;;  %v17748_v36 = vld [vmem:[#allocation65_spill] sm:$0xff] }
 0x624   :  { %v9731_v54 = vadd.f32 %v17647_v46, %v9589_v23  ;;  %v7095_v62 = vadd.f32 %v6967_v26, %v6471_v43  ;;  %v8215_v31 = vmul.f32 %v17731_v33, %v7895_v58  ;;  %v6966_v22 = vmul.f32 %v17732_v49, %v6647_v3  ;;  %v17745_v49 = vld [vmem:[#allocation63_spill] sm:$0xff] }
 0x625   :  { %v9588_v41 = vadd.f32 %v9460_v51, %v8964_v35  ;;  %v6470_v25 = vadd.f32 %v6342_v0, %v5846_v56  ;;  %v4907_v14 = vrot.slane %v14675_v19, %v11970_v11  ;;  %v5403_v61 = vrot.slane %v14675_v19, %v12275_v45  ;;  %v17749_v51 = vld [vmem:[#allocation69_spill] sm:$0xff] }
 0x626   :  { %10078 = vperm.xlu0 %11703, %v9731_v54   ;;  %v7719_v9 = vadd.f32 %v7591_v29, %v7095_v62  ;;  %v6027_v55 = vrot.slane %v14675_v19, %v12287_v53  ;;  %v8839_v15 = vmul.f32 %v17733_v24, %v8519_v50  ;;  %v7590_v33 = vmul.f32 %v17734_v2, %v7271_v27  ;;  %v17751_v0 = vld [vmem:[#allocation73_spill] sm:$0xff] }
 0x627   :  { %v9730_v59 = vadd.f32 %v17648_v7, %v9588_v41  ;;  %v7094_v5 = vadd.f32 %v6966_v22, %v6470_v25  ;;  %v5225_v42 = vmul.f32 %v17745_v49, %v4907_v14  ;;  %v5721_v3 = vmul.f32 %v17746_v13, %v5403_v61  ;;  %v17752_v41 = vld [vmem:[#allocation78_spill] sm:$0xff] }
 0x628   :  { %v8343_v37 = vadd.f32 %v8215_v31, %v7719_v9  ;;  %v6651_v47 = vrot.slane %v14675_v19, %v12300_v4  ;;  %v9463_v63 = vmul.f32 %v17735_v30, %v9143_v1  ;;  %v8214_v34 = vmul.f32 %v17736_v28, %v7895_v58 }
 0x629   :  { %10075 = vperm.xlu1 %11702, %v9730_v59   ;;  %v7718_v48 = vadd.f32 %v7590_v33, %v7094_v5  ;;  %v8838_v38 = vmul.f32 %v17737_v52, %v8519_v50  ;;  %v5849_v16 = vadd.f32 %v5721_v3, %v5225_v42  ;;  %v6345_v2 = vmul.f32 %v17747_v44, %v6027_v55  ;;  %v17750_v52 = vld [vmem:[#allocation74_spill] sm:$0xff]  ;;  %v17756_v3 = vld [vmem:[#allocation81_spill] sm:$0xff] }
 0x62a   :  { %v8967_v24 = vadd.f32 %v8839_v15, %v8343_v37  ;;  %v7275_v27 = vrot.slane %v14675_v19, %v12315_v20  ;;  %v7899_v60 = vrot.slane %v14675_v19, %v12330_v40  ;;  %v5224_v23 = vmul.f32 %v17748_v36, %v4907_v14  ;;  %v17754_v14 = vld [vmem:[#allocation77_spill] sm:$0xff] }
 0x62b   :  { %v8342_v10 = vadd.f32 %v8214_v34, %v7718_v48  ;;  %v5720_v30 = vmul.f32 %v17749_v51, %v5403_v61  ;;  %v9462_v28 = vmul.f32 %v17738_v57, %v9143_v1  ;;  %v6473_v58 = vadd.f32 %v6345_v2, %v5849_v16  ;;  %v17753_v57 = vld [vmem:[#allocation82_spill] sm:$0xff] }
 0x62c   :  { %v9591_v43 = vadd.f32 %v9463_v63, %v8967_v24  ;;  %v6969_v26 = vmul.f32 %v17750_v52, %v6651_v47  ;;  %v8523_v50 = vrot.slane %v14675_v19, %v12345_v21  ;;  %v6344_v54 = vmul.f32 %v17751_v0, %v6027_v55  ;;  %v17757_v24 = vld [vmem:[#allocation130_spill] sm:$0xff] }
 0x62d   :  { %v8966_v35 = vadd.f32 %v8838_v38, %v8342_v10  ;;  %v5848_v56 = vadd.f32 %v5720_v30, %v5224_v23  ;;  %v7593_v31 = vmul.f32 %v17752_v41, %v7275_v27  ;;  %v9147_v25 = vrot.slane %v14675_v19, %v12667_v32  ;;  %v17755_v19 = vld [vmem:[#allocation114_spill] sm:$0xff]  ;;  %v17758_v10 = vld [vmem:[#allocation85_spill] sm:$0xff]  ;;  %v17759_v30 = vld [vmem:[#allocation115_spill] sm:$0xff] }
 0x62e   :  { %v9733_v62 = vadd.f32 %v17647_v46, %v9591_v43  ;;  %v7097_v29 = vadd.f32 %v6969_v26, %v6473_v58  ;;  %v8217_v1 = vmul.f32 %v17753_v57, %v7899_v60  ;;  %v6968_v61 = vmul.f32 %v17754_v14, %v6651_v47 }
 0x62f   :  { %v9590_v22 = vadd.f32 %v9462_v28, %v8966_v35  ;;  %v6472_v9 = vadd.f32 %v6344_v54, %v5848_v56  ;;  %v4911_v15 = vrot.slane %v14678_v8, %v11970_v11  ;;  %v5407_v55 = vrot.slane %v14678_v8, %v12275_v45 }
 0x630   :  { %10084 = vperm.xlu0 %11703, %v9733_v62   ;;  %v7721_v59 = vadd.f32 %v7593_v31, %v7097_v29  ;;  %v6031_v5 = vrot.slane %v14678_v8, %v12287_v53  ;;  %v8841_v37 = vmul.f32 %v17755_v19, %v8523_v50  ;;  %v7592_v63 = vmul.f32 %v17756_v3, %v7275_v27  ;;  %v17760_v31 = vld [vmem:[#allocation131_spill] sm:$0xff] }
 0x631   :  { %v9732_v33 = vadd.f32 %v17648_v7, %v9590_v22  ;;  %v7096_v42 = vadd.f32 %v6968_v61, %v6472_v9  ;;  %v5227_v47 = vmul.f32 %v17745_v49, %v4911_v15  ;;  %v5723_v34 = vmul.f32 %v17746_v13, %v5407_v55 }
 0x632   :  { %v8345_v48 = vadd.f32 %v8217_v1, %v7721_v59  ;;  %v6655_v38 = vrot.slane %v14678_v8, %v12300_v4  ;;  %v9465_v16 = vmul.f32 %v17757_v24, %v9147_v25  ;;  %v8216_v23 = vmul.f32 %v17758_v10, %v7899_v60 }
 0x633   :  { %10081 = vperm.xlu1 %11702, %v9732_v33   ;;  %v7720_v2 = vadd.f32 %v7592_v63, %v7096_v42  ;;  %v8840_v43 = vmul.f32 %v17759_v30, %v8523_v50  ;;  %v5851_v58 = vadd.f32 %v5723_v34, %v5227_v47  ;;  %v6347_v27 = vmul.f32 %v17747_v44, %v6031_v5  ;;  %v17761_v34 = vld [vmem:[#allocation125_spill] sm:$0xff] }
 0x634   :  { %v8969_v28 = vadd.f32 %v8841_v37, %v8345_v48  ;;  %v7279_v26 = vrot.slane %v14678_v8, %v12315_v20  ;;  %v7903_v56 = vrot.slane %v14678_v8, %v12330_v40  ;;  %v5226_v54 = vmul.f32 %v17748_v36, %v4911_v15 }
 0x635   :  { %v8344_v35 = vadd.f32 %v8216_v23, %v7720_v2  ;;  %v5722_v62 = vmul.f32 %v17749_v51, %v5407_v55  ;;  %v9464_v60 = vmul.f32 %v17760_v31, %v9147_v25  ;;  %v6475_v22 = vadd.f32 %v6347_v27, %v5851_v58 }
 0x636   :  { %v9593_v29 = vadd.f32 %v9465_v16, %v8969_v28  ;;  %v6971_v50 = vmul.f32 %v17750_v52, %v6655_v38  ;;  %v8527_v9 = vrot.slane %v14678_v8, %v12345_v21  ;;  %v6346_v59 = vmul.f32 %v17751_v0, %v6031_v5 }
 0x637   :  { %v8968_v1 = vadd.f32 %v8840_v43, %v8344_v35  ;;  %v5850_v61 = vadd.f32 %v5722_v62, %v5226_v54  ;;  %v7595_v15 = vmul.f32 %v17752_v41, %v7279_v26  ;;  %v9151_v55 = vrot.slane %v14678_v8, %v12667_v32 }
 0x638   :  { %v9735_v33 = vadd.f32 %v17647_v46, %v9593_v29  ;;  %v7099_v37 = vadd.f32 %v6971_v50, %v6475_v22  ;;  %v8219_v25 = vmul.f32 %v17753_v57, %v7903_v56  ;;  %v6970_v48 = vmul.f32 %v17754_v14, %v6655_v38 }
 0x639   :  { %v9592_v42 = vadd.f32 %v9464_v60, %v8968_v1  ;;  %v6474_v63 = vadd.f32 %v6346_v59, %v5850_v61  ;;  %v4915_v16 = vrot.slane %v17761_v34, %v11970_v11  ;;  %v5411_v5 = vrot.slane %v17761_v34, %v12275_v45 }
 0x63a   :  { %10090 = vperm.xlu0 %11703, %v9735_v33   ;;  %v7723_v47 = vadd.f32 %v7595_v15, %v7099_v37  ;;  %v6035_v2 = vrot.slane %v17761_v34, %v12287_v53  ;;  %v8843_v8 = vmul.f32 %v17755_v19, %v8527_v9  ;;  %v7594_v28 = vmul.f32 %v17756_v3, %v7279_v26 }
 0x63b   :  { %v9734_v23 = vadd.f32 %v17648_v7, %v9592_v42  ;;  %v7098_v43 = vadd.f32 %v6970_v48, %v6474_v63  ;;  %v5229_v38 = vmul.f32 %v17745_v49, %v4915_v16  ;;  %v5725_v27 = vmul.f32 %v17746_v13, %v5411_v5 }
 0x63c   :  { %v8347_v58 = vadd.f32 %v8219_v25, %v7723_v47  ;;  %v6659_v35 = vrot.slane %v17761_v34, %v12300_v4  ;;  %v9467_v54 = vmul.f32 %v17757_v24, %v9151_v55  ;;  %v8218_v29 = vmul.f32 %v17758_v10, %v7903_v56 }
 0x63d   :  { %10087 = vperm.xlu1 %11702, %v9734_v23   ;;  %v7722_v62 = vadd.f32 %v7594_v28, %v7098_v43  ;;  %v8842_v60 = vmul.f32 %v17759_v30, %v8527_v9  ;;  %v5853_v50 = vadd.f32 %v5725_v27, %v5229_v38  ;;  %v6349_v26 = vmul.f32 %v17747_v44, %v6035_v2  ;;  %v17762_v27 = vld [vmem:[#allocation140_spill] sm:$0xff] }
 0x63e   :  { %v8971_v22 = vadd.f32 %v8843_v8, %v8347_v58  ;;  %v7283_v1 = vrot.slane %v17761_v34, %v12315_v20  ;;  %v7907_v59 = vrot.slane %v17761_v34, %v12330_v40  ;;  %v5228_v33 = vmul.f32 %v17748_v36, %v4915_v16 }
 0x63f   :  { %v8346_v61 = vadd.f32 %v8218_v29, %v7722_v62  ;;  %v5724_v37 = vmul.f32 %v17749_v51, %v5411_v5  ;;  %v9466_v56 = vmul.f32 %v17760_v31, %v9151_v55  ;;  %v6477_v42 = vadd.f32 %v6349_v26, %v5853_v50 }
 0x640   :  { %v9595_v15 = vadd.f32 %v9467_v54, %v8971_v22  ;;  %v6973_v9 = vmul.f32 %v17750_v52, %v6659_v35  ;;  %v8531_v63 = vrot.slane %v17761_v34, %v12345_v21  ;;  %v6348_v47 = vmul.f32 %v17751_v0, %v6035_v2 }
 0x641   :  { %v8970_v25 = vadd.f32 %v8842_v60, %v8346_v61  ;;  %v5852_v48 = vadd.f32 %v5724_v37, %v5228_v33  ;;  %v7597_v16 = vmul.f32 %v17752_v41, %v7283_v1  ;;  %v9155_v5 = vrot.slane %v17761_v34, %v12667_v32 }
 0x642   :  { %v9737_v23 = vadd.f32 %v17647_v46, %v9595_v15  ;;  %v7101_v8 = vadd.f32 %v6973_v9, %v6477_v42  ;;  %v8221_v55 = vmul.f32 %v17753_v57, %v7907_v59  ;;  %v6972_v58 = vmul.f32 %v17754_v14, %v6659_v35 }
 0x643   :  { %v9594_v43 = vadd.f32 %v9466_v56, %v8970_v25  ;;  %v6476_v28 = vadd.f32 %v6348_v47, %v5852_v48  ;;  %v4919_v54 = vrot.slane %v17762_v27, %v11970_v11  ;;  %v5415_v2 = vrot.slane %v17762_v27, %v12275_v45 }
 0x644   :  { %10096 = vperm.xlu0 %11703, %v9737_v23   ;;  %v7725_v38 = vadd.f32 %v7597_v16, %v7101_v8  ;;  %v6039_v62 = vrot.slane %v17762_v27, %v12287_v53  ;;  %v8845_v34 = vmul.f32 %v17755_v19, %v8531_v63  ;;  %v7596_v22 = vmul.f32 %v17756_v3, %v7283_v1 }
 0x645   :  { %v9736_v29 = vadd.f32 %v17648_v7, %v9594_v43  ;;  %v7100_v60 = vadd.f32 %v6972_v58, %v6476_v28  ;;  %v5231_v35 = vmul.f32 %v17745_v49, %v4919_v54  ;;  %v5727_v26 = vmul.f32 %v17746_v13, %v5415_v2 }
 0x646   :  { %v8349_v50 = vadd.f32 %v8221_v55, %v7725_v38  ;;  %v6663_v61 = vrot.slane %v17762_v27, %v12300_v4  ;;  %v9469_v33 = vmul.f32 %v17757_v24, %v9155_v5  ;;  %v8220_v15 = vmul.f32 %v17758_v10, %v7907_v59 }
 0x647   :  { %10093 = vperm.xlu1 %11702, %v9736_v29   ;;  %v7724_v37 = vadd.f32 %v7596_v22, %v7100_v60  ;;  %v8844_v56 = vmul.f32 %v17759_v30, %v8531_v63  ;;  %v5855_v9 = vadd.f32 %v5727_v26, %v5231_v35  ;;  %v6351_v1 = vmul.f32 %v17747_v44, %v6039_v62 }
 0x648   :  { %v8973_v42 = vadd.f32 %v8845_v34, %v8349_v50  ;;  %v7287_v25 = vrot.slane %v17762_v27, %v12315_v20  ;;  %v7911_v47 = vrot.slane %v17762_v27, %v12330_v40  ;;  %v5230_v23 = vmul.f32 %v17748_v36, %v4919_v54 }
 0x649   :  { %v8348_v48 = vadd.f32 %v8220_v15, %v7724_v37  ;;  %v5726_v8 = vmul.f32 %v17749_v51, %v5415_v2  ;;  %v9468_v59 = vmul.f32 %v17760_v31, %v9155_v5  ;;  %v6479_v43 = vadd.f32 %v6351_v1, %v5855_v9 }
 0x64a   :  { %v9597_v16 = vadd.f32 %v9469_v33, %v8973_v42  ;;  %v6975_v63 = vmul.f32 %v17750_v52, %v6663_v61  ;;  %v8535_v28 = vrot.slane %v17762_v27, %v12345_v21  ;;  %v6350_v38 = vmul.f32 %v17751_v0, %v6039_v62 }
 0x64b   :  { %v8972_v55 = vadd.f32 %v8844_v56, %v8348_v48  ;;  %v5854_v58 = vadd.f32 %v5726_v8, %v5230_v23  ;;  %v7599_v54 = vmul.f32 %v17752_v41, %v7287_v25  ;;  %v9159_v2 = vrot.slane %v17762_v27, %v12667_v32 }
 0x64c   :  { %v9739_v29 = vadd.f32 %v17647_v46, %v9597_v16  ;;  %v7103_v34 = vadd.f32 %v6975_v63, %v6479_v43  ;;  %v8223_v5 = vmul.f32 %v17753_v57, %v7911_v47  ;;  %v6974_v50 = vmul.f32 %v17754_v14, %v6663_v61 }
 0x64d   :  { %v9596_v60 = vadd.f32 %v9468_v59, %v8972_v55  ;;  %v6478_v22 = vadd.f32 %v6350_v38, %v5854_v58  ;;  %v4923_v26 = vrot.slane %v14691_v6, %v11970_v11  ;;  %v5419_v62 = vrot.slane %v14691_v6, %v12275_v45 }
 0x64e   :  { %10102 = vperm.xlu0 %11703, %v9739_v29   ;;  %v7727_v35 = vadd.f32 %v7599_v54, %v7103_v34  ;;  %v6043_v33 = vrot.slane %v14691_v6, %v12287_v53  ;;  %v8847_v27 = vmul.f32 %v17755_v19, %v8535_v28  ;;  %v7598_v56 = vmul.f32 %v17756_v3, %v7287_v25 }
 0x64f   :  { %v9738_v37 = vadd.f32 %v17648_v7, %v9596_v60  ;;  %v7102_v15 = vadd.f32 %v6974_v50, %v6478_v22  ;;  %v5233_v61 = vmul.f32 %v17745_v49, %v4923_v26  ;;  %v5729_v9 = vmul.f32 %v17746_v13, %v5419_v62 }
 0x650   :  { %v8351_v42 = vadd.f32 %v8223_v5, %v7727_v35  ;;  %v6667_v1 = vrot.slane %v14691_v6, %v12300_v4  ;;  %v9471_v48 = vmul.f32 %v17757_v24, %v9159_v2  ;;  %v8222_v8 = vmul.f32 %v17758_v10, %v7911_v47 }
 0x651   :  { %10099 = vperm.xlu1 %11702, %v9738_v37   ;;  %v7726_v23 = vadd.f32 %v7598_v56, %v7102_v15  ;;  %v8846_v16 = vmul.f32 %v17759_v30, %v8535_v28  ;;  %v5857_v43 = vadd.f32 %v5729_v9, %v5233_v61  ;;  %v6353_v25 = vmul.f32 %v17747_v44, %v6043_v33  ;;  %v17763_v61 = vld [vmem:[#allocation141_spill] sm:$0xff] }
 0x652   :  { %v8975_v59 = vadd.f32 %v8847_v27, %v8351_v42  ;;  %v7291_v63 = vrot.slane %v14691_v6, %v12315_v20  ;;  %v7915_v58 = vrot.slane %v14691_v6, %v12330_v40  ;;  %v5232_v38 = vmul.f32 %v17748_v36, %v4923_v26 }
 0x653   :  { %v8350_v55 = vadd.f32 %v8222_v8, %v7726_v23  ;;  %v5728_v29 = vmul.f32 %v17749_v51, %v5419_v62  ;;  %v9470_v47 = vmul.f32 %v17760_v31, %v9159_v2  ;;  %v6481_v54 = vadd.f32 %v6353_v25, %v5857_v43 }
 0x654   :  { %v9599_v34 = vadd.f32 %v9471_v48, %v8975_v59  ;;  %v6977_v28 = vmul.f32 %v17750_v52, %v6667_v1  ;;  %v8539_v5 = vrot.slane %v14691_v6, %v12345_v21  ;;  %v6352_v50 = vmul.f32 %v17751_v0, %v6043_v33 }
 0x655   :  { %v8974_v60 = vadd.f32 %v8846_v16, %v8350_v55  ;;  %v5856_v22 = vadd.f32 %v5728_v29, %v5232_v38  ;;  %v7601_v26 = vmul.f32 %v17752_v41, %v7291_v63  ;;  %v9163_v62 = vrot.slane %v14691_v6, %v12667_v32 }
 0x656   :  { %v9741_v35 = vadd.f32 %v17647_v46, %v9599_v34  ;;  %v7105_v37 = vadd.f32 %v6977_v28, %v6481_v54  ;;  %v8225_v2 = vmul.f32 %v17753_v57, %v7915_v58  ;;  %v6976_v56 = vmul.f32 %v17754_v14, %v6667_v1 }
 0x657   :  { %v9598_v27 = vadd.f32 %v9470_v47, %v8974_v60  ;;  %v6480_v15 = vadd.f32 %v6352_v50, %v5856_v22  ;;  %v4927_v9 = vrot.slane %v17763_v61, %v11970_v11  ;;  %v5423_v33 = vrot.slane %v17763_v61, %v12275_v45 }
 0x658   :  { %10108 = vperm.xlu0 %11703, %v9741_v35   ;;  %v7729_v42 = vadd.f32 %v7601_v26, %v7105_v37  ;;  %v6047_v48 = vrot.slane %v17763_v61, %v12287_v53  ;;  %v8849_v6 = vmul.f32 %v17755_v19, %v8539_v5  ;;  %v7600_v16 = vmul.f32 %v17756_v3, %v7291_v63 }
 0x659   :  { %v9740_v23 = vadd.f32 %v17648_v7, %v9598_v27  ;;  %v7104_v8 = vadd.f32 %v6976_v56, %v6480_v15  ;;  %v5235_v1 = vmul.f32 %v17745_v49, %v4927_v9  ;;  %v5731_v43 = vmul.f32 %v17746_v13, %v5423_v33 }
 0x65a   :  { %v8353_v59 = vadd.f32 %v8225_v2, %v7729_v42  ;;  %v6671_v25 = vrot.slane %v17763_v61, %v12300_v4  ;;  %v9473_v55 = vmul.f32 %v17757_v24, %v9163_v62  ;;  %v8224_v29 = vmul.f32 %v17758_v10, %v7915_v58 }
 0x65b   :  { %10105 = vperm.xlu1 %11702, %v9740_v23   ;;  %v7728_v38 = vadd.f32 %v7600_v16, %v7104_v8  ;;  %v8848_v34 = vmul.f32 %v17759_v30, %v8539_v5  ;;  %v5859_v54 = vadd.f32 %v5731_v43, %v5235_v1  ;;  %v6355_v63 = vmul.f32 %v17747_v44, %v6047_v48 }
 0x65c   :  { %v8977_v47 = vadd.f32 %v8849_v6, %v8353_v59  ;;  %v7295_v28 = vrot.slane %v17763_v61, %v12315_v20  ;;  %v7919_v22 = vrot.slane %v17763_v61, %v12330_v40  ;;  %v5234_v50 = vmul.f32 %v17748_v36, %v4927_v9 }
 0x65d   :  { %v8352_v60 = vadd.f32 %v8224_v29, %v7728_v38  ;;  %v5730_v35 = vmul.f32 %v17749_v51, %v5423_v33  ;;  %v9472_v58 = vmul.f32 %v17760_v31, %v9163_v62  ;;  %v6483_v26 = vadd.f32 %v6355_v63, %v5859_v54 }
 0x65e   :  { %v9601_v37 = vadd.f32 %v9473_v55, %v8977_v47  ;;  %v6979_v5 = vmul.f32 %v17750_v52, %v6671_v25  ;;  %v8543_v2 = vrot.slane %v17763_v61, %v12345_v21  ;;  %v6354_v56 = vmul.f32 %v17751_v0, %v6047_v48 }
 0x65f   :  { %v8976_v27 = vadd.f32 %v8848_v34, %v8352_v60  ;;  %v5858_v15 = vadd.f32 %v5730_v35, %v5234_v50  ;;  %v7603_v9 = vmul.f32 %v17752_v41, %v7295_v28  ;;  %v9167_v33 = vrot.slane %v17763_v61, %v12667_v32 }
 0x660   :  { %v9743_v42 = vadd.f32 %v17647_v46, %v9601_v37  ;;  %v7107_v23 = vadd.f32 %v6979_v5, %v6483_v26  ;;  %v8227_v62 = vmul.f32 %v17753_v57, %v7919_v22  ;;  %v6978_v16 = vmul.f32 %v17754_v14, %v6671_v25 }
 0x661   :  { %v9600_v6 = vadd.f32 %v9472_v58, %v8976_v27  ;;  %v6482_v8 = vadd.f32 %v6354_v56, %v5858_v15  ;;  %v4931_v1 = vrot.slane %v14701_v12, %v11970_v11  ;;  %v5427_v48 = vrot.slane %v14701_v12, %v12275_v45 }
 0x662   :  { %10114 = vperm.xlu0 %11703, %v9743_v42   ;;  %v7731_v59 = vadd.f32 %v7603_v9, %v7107_v23  ;;  %v6051_v43 = vrot.slane %v14701_v12, %v12287_v53  ;;  %v8851_v61 = vmul.f32 %v17755_v19, %v8543_v2  ;;  %v7602_v29 = vmul.f32 %v17756_v3, %v7295_v28 }
 0x663   :  { %v9742_v55 = vadd.f32 %v17648_v7, %v9600_v6  ;;  %v7106_v38 = vadd.f32 %v6978_v16, %v6482_v8  ;;  %v5237_v25 = vmul.f32 %v17745_v49, %v4931_v1  ;;  %v5733_v47 = vmul.f32 %v17746_v13, %v5427_v48 }
 0x664   :  { %v8355_v34 = vadd.f32 %v8227_v62, %v7731_v59  ;;  %v6675_v54 = vrot.slane %v14701_v12, %v12300_v4  ;;  %v4404_v63 = vsub.f32 2.0, %v14713_v17  ;;  %v9475_v60 = vmul.f32 %v17757_v24, %v9167_v33 }
 0x665   :  { %10111 = vperm.xlu1 %11702, %v9742_v55   ;;  %v7730_v50 = vadd.f32 %v7602_v29, %v7106_v38  ;;  %v8226_v35 = vmul.f32 %v17758_v10, %v7919_v22  ;;  %v5861_v58 = vadd.f32 %v5733_v47, %v5237_v25  ;;  %v6357_v28 = vmul.f32 %v17747_v44, %v6051_v43 }
 0x666   :  { %v8979_v37 = vadd.f32 %v8851_v61, %v8355_v34  ;;  %v7299_v26 = vrot.slane %v14701_v12, %v12315_v20  ;;  %v8850_v27 = vmul.f32 %v17759_v30, %v8543_v2  ;;  %v5236_v15 = vmul.f32 %v17748_v36, %v4931_v1 }
 0x667   :  { %v8354_v5 = vadd.f32 %v8226_v35, %v7730_v50  ;;  %v5732_v17 = vmul.f32 %v17749_v51, %v5427_v48  ;;  %v6485_v42 = vadd.f32 %v6357_v28, %v5861_v58  ;;  %v6981_v23 = vmul.f32 %v17750_v52, %v6675_v54 }
 0x668   :  { %v9603_v56 = vadd.f32 %v9475_v60, %v8979_v37  ;;  %v7923_v22 = vrot.slane %v14701_v12, %v12330_v40  ;;  %v9474_v6 = vmul.f32 %v17760_v31, %v9167_v33  ;;  %v6356_v8 = vmul.f32 %v17751_v0, %v6051_v43 }
 0x669   :  { %v8978_v9 = vadd.f32 %v8850_v27, %v8354_v5  ;;  %v5860_v62 = vadd.f32 %v5732_v17, %v5236_v15  ;;  %v7109_v2 = vadd.f32 %v6981_v23, %v6485_v42  ;;  %v7605_v59 = vmul.f32 %v17752_v41, %v7299_v26 }
 0x66a   :  { %v9745_v16 = vadd.f32 %v17647_v46, %v9603_v56  ;;  %v8547_v1 = vrot.slane %v14701_v12, %v12345_v21  ;;  %v15287_v48 = vmul.f32 %v14606_v18, %v4404_v63  ;;  %v6980_v38 = vmul.f32 %v17754_v14, %v6675_v54 }
 0x66b   :  { %v9602_v55 = vadd.f32 %v9474_v6, %v8978_v9  ;;  %v6484_v61 = vadd.f32 %v6356_v8, %v5860_v62  ;;  %v7733_v33 = vadd.f32 %v7605_v59, %v7109_v2  ;;  %v8229_v29 = vmul.f32 %v17753_v57, %v7923_v22  ;;  %v17764_v2 = vld [vmem:[#allocation157_spill] sm:$0xff] }
 0x66c   :  { %10120 = vperm.xlu0 %11703, %v9745_v16   ;;  %v9171_v43 = vrot.slane %v14701_v12, %v12667_v32  ;;  %v7604_v34 = vmul.f32 %v17756_v3, %v7299_v26  ;;  %v4935_v18 = vrot.slane %v14704_v39, %v11970_v11  ;;  %v5431_v63 = vrot.slane %v14704_v39, %v12275_v45 }
 0x66d   :  { %v9744_v25 = vadd.f32 %v17648_v7, %v9602_v55  ;;  %v7108_v47 = vadd.f32 %v6980_v38, %v6484_v61  ;;  %v8357_v60 = vadd.f32 %v8229_v29, %v7733_v33  ;;  %v8853_v54 = vmul.f32 %v17755_v19, %v8547_v1 }
 0x66e   :  { %v8228_v50 = vmul.f32 %v17758_v10, %v7923_v22  ;;  %v6055_v35 = vrot.slane %v14704_v39, %v12287_v53  ;;  %v5239_v37 = vmul.f32 %v17745_v49, %v4935_v18  ;;  %v5735_v58 = vmul.f32 %v17746_v13, %v5431_v63 }
 0x66f   :  { %10117 = vperm.xlu1 %11702, %v9744_v25   ;;  %v7732_v12 = vadd.f32 %v7604_v34, %v7108_v47  ;;  %v6679_v28 = vrot.slane %v14704_v39, %v12300_v4  ;;  %v4555_v26 = vrot.slane %v15287_v48, %v11970_v11  ;;  %v8981_v5 = vadd.f32 %v8853_v54, %v8357_v60 }
 0x670   :  { %v9477_v27 = vmul.f32 %v17757_v24, %v9171_v43  ;;  %v7303_v15 = vrot.slane %v14704_v39, %v12315_v20  ;;  %v8852_v56 = vmul.f32 %v17759_v30, %v8547_v1  ;;  %v5863_v42 = vadd.f32 %v5735_v58, %v5239_v37  ;;  %v17767_v37 = vld [vmem:[#allocation43_spill] sm:$0xff] }
 0x671   :  { %v8356_v17 = vadd.f32 %v8228_v50, %v7732_v12  ;;  %v6359_v49 = vmul.f32 %v17747_v44, %v6055_v35  ;;  %v9476_v13 = vmul.f32 %v17760_v31, %v9171_v43  ;;  %v7927_v22 = vrot.slane %v14704_v39, %v12330_v40 }
 0x672   :  { %v9605_v23 = vadd.f32 %v9477_v27, %v8981_v5  ;;  %v5238_v9 = vmul.f32 %v17748_v36, %v4935_v18  ;;  %v6983_v8 = vmul.f32 %v17750_v52, %v6679_v28  ;;  %v5734_v16 = vmul.f32 %v17749_v51, %v5431_v63 }
 0x673   :  { %v8980_v6 = vadd.f32 %v8852_v56, %v8356_v17  ;;  %v6487_v62 = vadd.f32 %v6359_v49, %v5863_v42  ;;  %v4776_v59 = vmul.f32 %v17764_v2, %v4555_v26  ;;  %v7607_v44 = vmul.f32 %v17752_v41, %v7303_v15  ;;  %v17768_v56 = vld [vmem:[#allocation47_spill] sm:$0xff] }
 0x674   :  { %v9747_v1 = vadd.f32 %v17647_v46, %v9605_v23  ;;  %v8551_v55 = vrot.slane %v14704_v39, %v12345_v21  ;;  %v5862_v33 = vadd.f32 %v5734_v16, %v5238_v9  ;;  %v6358_v36 = vmul.f32 %v17751_v0, %v6055_v35  ;;  %v17766_v35 = vld [vmem:[#allocation39_spill] sm:$0xff]  ;;  %v17769_v23 = vld [vmem:[#allocation40_spill] sm:$0xff] }
 0x675   :  { %v9604_v61 = vadd.f32 %v9476_v13, %v8980_v6  ;;  %v7111_v38 = vadd.f32 %v6983_v8, %v6487_v62  ;;  %v4559_v29 = vrot.slane %v15287_v48, %v12275_v45  ;;  %v8231_v51 = vmul.f32 %v17753_v57, %v7927_v22  ;;  %v17770_v9 = vld [vmem:[#allocation44_spill] sm:$0xff] }
 0x676   :  { %10126 = vperm.xlu0 %11703, %v9747_v1   ;;  %v9175_v52 = vrot.slane %v14704_v39, %v12667_v32  ;;  %v6486_v34 = vadd.f32 %v6358_v36, %v5862_v33  ;;  %v6982_v25 = vmul.f32 %v17754_v14, %v6679_v28  ;;  %v4939_v47 = vrot.slane %v4776_v59, %v11970_v11  ;;  %v17765_v39 = vld [vmem:[#allocation150_spill] sm:$0xff]  ;;  %v17772_v1 = vld [vmem:[#allocation48_spill] sm:$0xff] }
 0x677   :  { %v9746_v43 = vadd.f32 %v17648_v7, %v9604_v61  ;;  %v7735_v41 = vadd.f32 %v7607_v44, %v7111_v38  ;;  %v5435_v18 = vrot.slane %v4776_v59, %v12275_v45  ;;  %v6059_v0 = vrot.slane %v4776_v59, %v12287_v53  ;;  %v17773_v61 = vld [vmem:[#allocation55_spill] sm:$0xff] }
 0x678   :  { %v8855_v60 = vmul.f32 %v17755_v19, %v8551_v55  ;;  %v7110_v57 = vadd.f32 %v6982_v25, %v6486_v34  ;;  %v7606_v54 = vmul.f32 %v17756_v3, %v7303_v15  ;;  %v15339_v50 = vmul.f32 %v17765_v39, %v4559_v29  ;;  %v17776_v25 = vld [vmem:[#allocation56_spill] sm:$0xff] }
 0x679   :  { %10123 = vperm.xlu1 %11702, %v9746_v43   ;;  %v8359_v63 = vadd.f32 %v8231_v51, %v7735_v41  ;;  %v5241_v12 = vmul.f32 %v17766_v35, %v4939_v47  ;;  %v5737_v14 = vmul.f32 %v17767_v37, %v5435_v18  ;;  %v6683_v58 = vrot.slane %v4776_v59, %v12300_v4  ;;  %v17774_v51 = vld [vmem:[#allocation52_spill] sm:$0xff]  ;;  %v17775_v41 = vld [vmem:[#allocation59_spill] sm:$0xff] }
 0x67a   :  { %v9479_v26 = vmul.f32 %v17757_v24, %v9175_v52  ;;  %v7734_v5 = vadd.f32 %v7606_v54, %v7110_v57  ;;  %v8230_v27 = vmul.f32 %v17758_v10, %v7927_v22  ;;  %v8854_v19 = vmul.f32 %v17759_v30, %v8551_v55  ;;  %v17771_v24 = vld [vmem:[#allocation51_spill] sm:$0xff]  ;;  %v17777_v39 = vld [vmem:[#allocation116_spill] sm:$0xff] }
 0x67b   :  { %v8983_v28 = vadd.f32 %v8855_v60, %v8359_v63  ;;  %v5865_v17 = vadd.f32 %v5737_v14, %v5241_v12  ;;  %v6361_v3 = vmul.f32 %v17768_v56, %v6059_v0  ;;  %v7307_v15 = vrot.slane %v4776_v59, %v12315_v20 }
 0x67c   :  { %v8358_v49 = vadd.f32 %v8230_v27, %v7734_v5  ;;  %v5240_v13 = vmul.f32 %v17769_v23, %v4939_v47  ;;  %v5736_v6 = vmul.f32 %v17770_v9, %v5435_v18  ;;  %v9478_v62 = vmul.f32 %v17760_v31, %v9175_v52 }
 0x67d   :  { %v9607_v42 = vadd.f32 %v9479_v26, %v8983_v28  ;;  %v6489_v8 = vadd.f32 %v6361_v3, %v5865_v17  ;;  %v6985_v16 = vmul.f32 %v17771_v24, %v6683_v58  ;;  %v7931_v10 = vrot.slane %v4776_v59, %v12330_v40  ;;  %v17778_v28 = vld [vmem:[#allocation60_spill] sm:$0xff] }
 0x67e   :  { %v8982_v22 = vadd.f32 %v8854_v19, %v8358_v49  ;;  %v5864_v2 = vadd.f32 %v5736_v6, %v5240_v13  ;;  %v6360_v44 = vmul.f32 %v17772_v1, %v6059_v0  ;;  %v7609_v38 = vmul.f32 %v17773_v61, %v7307_v15  ;;  %v17779_v17 = vld [vmem:[#allocation132_spill] sm:$0xff] }
 0x67f   :  { %v9749_v30 = vadd.f32 %v17647_v46, %v9607_v42  ;;  %v7113_v55 = vadd.f32 %v6985_v16, %v6489_v8  ;;  %v8555_v33 = vrot.slane %v4776_v59, %v12345_v21  ;;  %v9179_v31 = vrot.slane %v4776_v59, %v12667_v32  ;;  %v17781_v8 = vld [vmem:[#allocation159_spill] sm:$0xff] }
 0x680   :  { %v9606_v36 = vadd.f32 %v9478_v62, %v8982_v22  ;;  %v6488_v29 = vadd.f32 %v6360_v44, %v5864_v2  ;;  %v6984_v52 = vmul.f32 %v17774_v51, %v6683_v58  ;;  %v8233_v34 = vmul.f32 %v17775_v41, %v7931_v10 }
 0x681   :  { %10132 = vperm.xlu0 %11703, %v9749_v30   ;;  %v7737_v43 = vadd.f32 %v7609_v38, %v7113_v55  ;;  %v7608_v47 = vmul.f32 %v17776_v25, %v7307_v15  ;;  %v4943_v18 = vrot.slane %v15339_v50, %v11970_v11  ;;  %v5439_v60 = vrot.slane %v15339_v50, %v12275_v45  ;;  %v17780_v15 = vld [vmem:[#allocation117_spill] sm:$0xff] }
 0x682   :  { %v9748_v0 = vadd.f32 %v17648_v7, %v9606_v36  ;;  %v7112_v63 = vadd.f32 %v6984_v52, %v6488_v29  ;;  %v6063_v59 = vrot.slane %v15339_v50, %v12287_v53  ;;  %v4563_v57 = vrot.slane %v15287_v48, %v12287_v53  ;;  %v17782_v30 = vld [vmem:[#allocation133_spill] sm:$0xff] }
 0x683   :  { %v8361_v54 = vadd.f32 %v8233_v34, %v7737_v43  ;;  %v8857_v12 = vmul.f32 %v17777_v39, %v8555_v33  ;;  %v5243_v14 = vmul.f32 %v17766_v35, %v4943_v18  ;;  %v8232_v26 = vmul.f32 %v17778_v28, %v7931_v10 }
 0x684   :  { %10129 = vperm.xlu1 %11702, %v9748_v0   ;;  %v7736_v58 = vadd.f32 %v7608_v47, %v7112_v63  ;;  %v5739_v5 = vmul.f32 %v17767_v37, %v5439_v60  ;;  %v6687_v27 = vrot.slane %v15339_v50, %v12300_v4  ;;  %v9481_v3 = vmul.f32 %v17779_v17, %v9179_v31 }
 0x685   :  { %v8985_v19 = vadd.f32 %v8857_v12, %v8361_v54  ;;  %v8856_v42 = vmul.f32 %v17780_v15, %v8555_v33  ;;  %v6363_v6 = vmul.f32 %v17768_v56, %v6063_v59  ;;  %v7311_v62 = vrot.slane %v15339_v50, %v12315_v20 }
 0x686   :  { %v8360_v49 = vadd.f32 %v8232_v26, %v7736_v58  ;;  %v5867_v13 = vadd.f32 %v5739_v5, %v5243_v14  ;;  %v4778_v16 = vmul.f32 %v17781_v8, %v4563_v57  ;;  %v9480_v22 = vmul.f32 %v17782_v30, %v9179_v31 }
 0x687   :  { %v9609_v10 = vadd.f32 %v9481_v3, %v8985_v19  ;;  %v5242_v2 = vmul.f32 %v17769_v23, %v4943_v18  ;;  %v6987_v38 = vmul.f32 %v17771_v24, %v6687_v27  ;;  %v7935_v33 = vrot.slane %v15339_v50, %v12330_v40 }
 0x688   :  { %v8984_v44 = vadd.f32 %v8856_v42, %v8360_v49  ;;  %v6491_v55 = vadd.f32 %v6363_v6, %v5867_v13  ;;  %v5738_v29 = vmul.f32 %v17770_v9, %v5439_v60  ;;  %v7611_v34 = vmul.f32 %v17773_v61, %v7311_v62  ;;  %v17783_v6 = vld [vmem:[#allocation152_spill] sm:$0xff] }
 0x689   :  { %v9751_v36 = vadd.f32 %v17647_v46, %v9609_v10  ;;  %v8559_v31 = vrot.slane %v15339_v50, %v12345_v21  ;;  %v4567_v47 = vrot.slane %v15287_v48, %v12300_v4  ;;  %v9183_v18 = vrot.slane %v15339_v50, %v12667_v32 }
 0x68a   :  { %v9608_v52 = vadd.f32 %v9480_v22, %v8984_v44  ;;  %v7115_v43 = vadd.f32 %v6987_v38, %v6491_v55  ;;  %v5866_v0 = vadd.f32 %v5738_v29, %v5242_v2  ;;  %v6362_v63 = vmul.f32 %v17772_v1, %v6063_v59 }
 0x68b   :  { %10138 = vperm.xlu0 %11703, %v9751_v36   ;;  %v8235_v54 = vmul.f32 %v17775_v41, %v7935_v33  ;;  %v4947_v12 = vrot.slane %v4778_v16, %v11970_v11  ;;  %v6986_v58 = vmul.f32 %v17774_v51, %v6687_v27  ;;  %v5443_v26 = vrot.slane %v4778_v16, %v12275_v45 }
 0x68c   :  { %v9750_v57 = vadd.f32 %v17648_v7, %v9608_v52  ;;  %v7739_v60 = vadd.f32 %v7611_v34, %v7115_v43  ;;  %v6490_v14 = vadd.f32 %v6362_v63, %v5866_v0  ;;  %v6067_v5 = vrot.slane %v4778_v16, %v12287_v53 }
 0x68d   :  { %v8859_v50 = vmul.f32 %v17777_v39, %v8559_v31  ;;  %v5245_v59 = vmul.f32 %v17766_v35, %v4947_v12  ;;  %v7610_v42 = vmul.f32 %v17776_v25, %v7311_v62  ;;  %v5741_v49 = vmul.f32 %v17767_v37, %v5443_v26 }
 0x68e   :  { %10135 = vperm.xlu1 %11702, %v9750_v57   ;;  %v8363_v19 = vadd.f32 %v8235_v54, %v7739_v60  ;;  %v7114_v3 = vadd.f32 %v6986_v58, %v6490_v14  ;;  %v6691_v13 = vrot.slane %v4778_v16, %v12300_v4  ;;  %v15410_v8 = vmul.f32 %v17783_v6, %v4567_v47 }
 0x68f   :  { %v9483_v10 = vmul.f32 %v17779_v17, %v9183_v18  ;;  %v8234_v22 = vmul.f32 %v17778_v28, %v7935_v33  ;;  %v5869_v44 = vadd.f32 %v5741_v49, %v5245_v59  ;;  %v6365_v55 = vmul.f32 %v17768_v56, %v6067_v5 }
 0x690   :  { %v8987_v27 = vadd.f32 %v8859_v50, %v8363_v19  ;;  %v7738_v2 = vadd.f32 %v7610_v42, %v7114_v3  ;;  %v7315_v38 = vrot.slane %v4778_v16, %v12315_v20  ;;  %v8858_v62 = vmul.f32 %v17780_v15, %v8559_v31 }
 0x691   :  { %v5244_v29 = vmul.f32 %v17769_v23, %v4947_v12  ;;  %v5740_v52 = vmul.f32 %v17770_v9, %v5443_v26  ;;  %v6493_v34 = vadd.f32 %v6365_v55, %v5869_v44  ;;  %v6989_v47 = vmul.f32 %v17771_v24, %v6691_v13 }
 0x692   :  { %v9611_v36 = vadd.f32 %v9483_v10, %v8987_v27  ;;  %v8362_v43 = vadd.f32 %v8234_v22, %v7738_v2  ;;  %v7939_v0 = vrot.slane %v4778_v16, %v12330_v40  ;;  %v9482_v63 = vmul.f32 %v17782_v30, %v9183_v18 }
 0x693   :  { %v5868_v57 = vadd.f32 %v5740_v52, %v5244_v29  ;;  %v6364_v60 = vmul.f32 %v17772_v1, %v6067_v5  ;;  %v7117_v14 = vadd.f32 %v6989_v47, %v6493_v34  ;;  %v7613_v31 = vmul.f32 %v17773_v61, %v7315_v38 }
 0x694   :  { %v9753_v33 = vadd.f32 %v17647_v46, %v9611_v36  ;;  %v8986_v54 = vadd.f32 %v8858_v62, %v8362_v43  ;;  %v8563_v12 = vrot.slane %v4778_v16, %v12345_v21  ;;  %v4571_v58 = vrot.slane %v15287_v48, %v12315_v20 }
 0x695   :  { %v9187_v26 = vrot.slane %v4778_v16, %v12667_v32  ;;  %v6492_v19 = vadd.f32 %v6364_v60, %v5868_v57  ;;  %v6988_v50 = vmul.f32 %v17774_v51, %v6691_v13  ;;  %v7741_v18 = vadd.f32 %v7613_v31, %v7117_v14 }
 0x696   :  { %10144 = vperm.xlu0 %11703, %v9753_v33   ;;  %v9610_v59 = vadd.f32 %v9482_v63, %v8986_v54  ;;  %v8237_v3 = vmul.f32 %v17775_v41, %v7939_v0  ;;  %v4951_v5 = vrot.slane %v15410_v8, %v11970_v11  ;;  %v7612_v49 = vmul.f32 %v17776_v25, %v7315_v38  ;;  %v17784_v33 = vld [vmem:[#allocation161_spill] sm:$0xff]  ;;  %v15455_v54 = vpop.xlane.xlu1 %4376 }
 0x697   :  { %v7116_v42 = vadd.f32 %v6988_v50, %v6492_v19  ;;  %v5447_v6 = vrot.slane %v15410_v8, %v12275_v45  ;;  %v6071_v27 = vrot.slane %v15410_v8, %v12287_v53  ;;  %v8861_v13 = vmul.f32 %v17777_v39, %v8563_v12 }
 0x698   :  { %v9752_v16 = vadd.f32 %v17648_v7, %v9610_v59  ;;  %v8365_v10 = vadd.f32 %v8237_v3, %v7741_v18  ;;  %v5247_v22 = vmul.f32 %v17766_v35, %v4951_v5  ;;  %v8236_v44 = vmul.f32 %v17778_v28, %v7939_v0 }
 0x699   :  { %v7740_v2 = vadd.f32 %v7612_v49, %v7116_v42  ;;  %v5743_v55 = vmul.f32 %v17767_v37, %v5447_v6  ;;  %v6695_v38 = vrot.slane %v15410_v8, %v12300_v4  ;;  %v9485_v62 = vmul.f32 %v17779_v17, %v9187_v26 }
 0x69a   :  { %10141 = vperm.xlu1 %11702, %v9752_v16   ;;  %v8989_v36 = vadd.f32 %v8861_v13, %v8365_v10  ;;  %v8860_v29 = vmul.f32 %v17780_v15, %v8563_v12  ;;  %v6367_v34 = vmul.f32 %v17768_v56, %v6071_v27  ;;  %v7319_v47 = vrot.slane %v15410_v8, %v12315_v20 }
 0x69b   :  { %v8364_v52 = vadd.f32 %v8236_v44, %v7740_v2  ;;  %v5871_v43 = vadd.f32 %v5743_v55, %v5247_v22  ;;  %v15451_v0 = vmul.f32 %v17784_v33, %v4571_v58  ;;  %v9484_v57 = vmul.f32 %v17782_v30, %v9187_v26 }
 0x69c   :  { %v9613_v63 = vadd.f32 %v9485_v62, %v8989_v36  ;;  %v5246_v60 = vmul.f32 %v17769_v23, %v4951_v5  ;;  %v6991_v12 = vmul.f32 %v17771_v24, %v6695_v38  ;;  %v7943_v19 = vrot.slane %v15410_v8, %v12330_v40 }
 0x69d   :  { %v8988_v14 = vadd.f32 %v8860_v29, %v8364_v52  ;;  %v6495_v31 = vadd.f32 %v6367_v34, %v5871_v43  ;;  %v4575_v50 = vrot.slane %v15287_v48, %v12330_v40  ;;  %v5742_v59 = vmul.f32 %v17770_v9, %v5447_v6  ;;  %v17785_v34 = vld [vmem:[#allocation154_spill] sm:$0xff] }
 0x69e   :  { %v9755_v58 = vadd.f32 %v17647_v46, %v9613_v63  ;;  %v7615_v3 = vmul.f32 %v17773_v61, %v7319_v47  ;;  %v8567_v5 = vrot.slane %v15410_v8, %v12345_v21  ;;  %11850 = vrcp.f32 %v15455_v54 }
 0x69f   :  { %v9612_v18 = vadd.f32 %v9484_v57, %v8988_v14  ;;  %v7119_v26 = vadd.f32 %v6991_v12, %v6495_v31  ;;  %v9191_v42 = vrot.slane %v15410_v8, %v12667_v32  ;;  %v5870_v49 = vadd.f32 %v5742_v59, %v5246_v60 }
 0x6a0   :  { %10150 = vperm.xlu0 %11703, %v9755_v58   ;;  %v6366_v16 = vmul.f32 %v17772_v1, %v6071_v27  ;;  %v8239_v6 = vmul.f32 %v17775_v41, %v7943_v19  ;;  %v4955_v22 = vrot.slane %v15451_v0, %v11970_v11  ;;  %v6990_v44 = vmul.f32 %v17774_v51, %v6695_v38 }
 0x6a1   :  { %v9754_v10 = vadd.f32 %v17648_v7, %v9612_v18  ;;  %v7743_v13 = vadd.f32 %v7615_v3, %v7119_v26  ;;  %v5451_v55 = vrot.slane %v15451_v0, %v12275_v45  ;;  %v6075_v8 = vrot.slane %v15451_v0, %v12287_v53 }
 0x6a2   :  { %v6494_v2 = vadd.f32 %v6366_v16, %v5870_v49  ;;  %v8863_v27 = vmul.f32 %v17777_v39, %v8567_v5  ;;  %v5249_v62 = vmul.f32 %v17766_v35, %v4955_v22  ;;  %v7614_v52 = vmul.f32 %v17776_v25, %v7319_v47 }
 0x6a3   :  { %10147 = vperm.xlu1 %11702, %v9754_v10   ;;  %v8367_v36 = vadd.f32 %v8239_v6, %v7743_v13  ;;  %v5745_v43 = vmul.f32 %v17767_v37, %v5451_v55  ;;  %v6699_v38 = vrot.slane %v15451_v0, %v12300_v4  ;;  %v15487_v33 = vmul.f32 %v17785_v34, %v4575_v50 }
 0x6a4   :  { %v7118_v29 = vadd.f32 %v6990_v44, %v6494_v2  ;;  %v9487_v57 = vmul.f32 %v17779_v17, %v9191_v42  ;;  %v8238_v60 = vmul.f32 %v17778_v28, %v7943_v19  ;;  %v6369_v12 = vmul.f32 %v17768_v56, %v6075_v8 }
 0x6a5   :  { %v8991_v63 = vadd.f32 %v8863_v27, %v8367_v36  ;;  %v5873_v31 = vadd.f32 %v5745_v43, %v5249_v62  ;;  %v7323_v47 = vrot.slane %v15451_v0, %v12315_v20  ;;  %v8862_v59 = vmul.f32 %v17780_v15, %v8567_v5 }
 0x6a6   :  { %v7742_v14 = vadd.f32 %v7614_v52, %v7118_v29  ;;  %v5248_v18 = vmul.f32 %v17769_v23, %v4955_v22  ;;  %v5744_v50 = vmul.f32 %v17770_v9, %v5451_v55  ;;  %v6993_v49 = vmul.f32 %v17771_v24, %v6699_v38 }
 0x6a7   :  { %v9615_v58 = vadd.f32 %v9487_v57, %v8991_v63  ;;  %v6497_v3 = vadd.f32 %v6369_v12, %v5873_v31  ;;  %v7947_v19 = vrot.slane %v15451_v0, %v12330_v40  ;;  %v9486_v10 = vmul.f32 %v17782_v30, %v9191_v42 }
 0x6a8   :  { %v8366_v26 = vadd.f32 %v8238_v60, %v7742_v14  ;;  %v5872_v13 = vadd.f32 %v5744_v50, %v5248_v18  ;;  %v6368_v6 = vmul.f32 %v17772_v1, %v6075_v8  ;;  %v7617_v22 = vmul.f32 %v17773_v61, %v7323_v47  ;;  %v17786_v18 = vld [vmem:[#allocation163_spill] sm:$0xff] }
 0x6a9   :  { %v9757_v16 = vadd.f32 %v17647_v46, %v9615_v58  ;;  %v7121_v5 = vadd.f32 %v6993_v49, %v6497_v3  ;;  %v8571_v44 = vrot.slane %v15451_v0, %v12345_v21  ;;  %v4579_v55 = vrot.slane %v15287_v48, %v12345_v21 }
 0x6aa   :  { %v8990_v2 = vadd.f32 %v8862_v59, %v8366_v26  ;;  %v9195_v36 = vrot.slane %v15451_v0, %v12667_v32  ;;  %v6496_v27 = vadd.f32 %v6368_v6, %v5872_v13  ;;  %v6992_v42 = vmul.f32 %v17774_v51, %v6699_v38 }
 0x6ab   :  { %10156 = vperm.xlu0 %11703, %v9757_v16   ;;  %v7745_v29 = vadd.f32 %v7617_v22, %v7121_v5  ;;  %v8241_v8 = vmul.f32 %v17775_v41, %v7947_v19  ;;  %v4959_v52 = vrot.slane %v15487_v33, %v11970_v11  ;;  %v11851_v43 = vpop.eup %11850  ;;  %v7616_v63 = vmul.f32 %v17776_v25, %v7323_v47 }
 0x6ac   :  { %v9614_v62 = vadd.f32 %v9486_v10, %v8990_v2  ;;  %v7120_v34 = vadd.f32 %v6992_v42, %v6496_v27  ;;  %v5455_v57 = vrot.slane %v15487_v33, %v12275_v45  ;;  %v6079_v0 = vrot.slane %v15487_v33, %v12287_v53 }
 0x6ad   :  { %v8369_v38 = vadd.f32 %v8241_v8, %v7745_v29  ;;  %v8865_v14 = vmul.f32 %v17777_v39, %v8571_v44  ;;  %v5251_v31 = vmul.f32 %v17766_v35, %v4959_v52  ;;  %v8240_v58 = vmul.f32 %v17778_v28, %v7947_v19 }
 0x6ae   :  { %v9756_v60 = vadd.f32 %v17648_v7, %v9614_v62  ;;  %v7744_v12 = vadd.f32 %v7616_v63, %v7120_v34  ;;  %v5747_v59 = vmul.f32 %v17767_v37, %v5455_v57  ;;  %v6703_v47 = vrot.slane %v15487_v33, %v12300_v4 }
 0x6af   :  { %v15527_v50 = vmul.f32 %v17786_v18, %v4579_v55  ;;  %v8993_v26 = vadd.f32 %v8865_v14, %v8369_v38  ;;  %v9489_v3 = vmul.f32 %v17779_v17, %v9195_v36  ;;  %v8864_v49 = vmul.f32 %v17780_v15, %v8571_v44 }
 0x6b0   :  { %10153 = vperm.xlu1 %11702, %v9756_v60   ;;  %v8368_v16 = vadd.f32 %v8240_v58, %v7744_v12  ;;  %v5875_v10 = vadd.f32 %v5747_v59, %v5251_v31  ;;  %v6371_v13 = vmul.f32 %v17768_v56, %v6079_v0  ;;  %v7327_v19 = vrot.slane %v15487_v33, %v12315_v20 }
 0x6b1   :  { %v4397_v6 = vmul.f32 %v11851_v43, %v15455_v54  ;;  %v9617_v2 = vadd.f32 %v9489_v3, %v8993_v26  ;;  %v9488_v5 = vmul.f32 %v17782_v30, %v9195_v36  ;;  %v5250_v22 = vmul.f32 %v17769_v23, %v4959_v52  ;;  %v17787_v26 = vld [vmem:[#allocation156_spill] sm:$0xff] }
 0x6b2   :  { %v8992_v55 = vadd.f32 %v8864_v49, %v8368_v16  ;;  %v6499_v27 = vadd.f32 %v6371_v13, %v5875_v10  ;;  %v6995_v42 = vmul.f32 %v17771_v24, %v6703_v47  ;;  %v7951_v44 = vrot.slane %v15487_v33, %v12330_v40 }
 0x6b3   :  { %v4583_v62 = vrot.slane %v15287_v48, %v12667_v32  ;;  %v9759_v29 = vadd.f32 %v17647_v46, %v9617_v2  ;;  %v5746_v8 = vmul.f32 %v17770_v9, %v5455_v57  ;;  %v7619_v36 = vmul.f32 %v17773_v61, %v7327_v19 }
 0x6b4   :  { %v9616_v54 = vadd.f32 %v9488_v5, %v8992_v55  ;;  %v7123_v34 = vadd.f32 %v6995_v42, %v6499_v27  ;;  %v8575_v52 = vrot.slane %v15487_v33, %v12345_v21  ;;  %v4405_v63 = vsub.f32 2.0, %v4397_v6 }
 0x6b5   :  { %10162 = vperm.xlu0 %11703, %v9759_v29   ;;  %v9199_v60 = vrot.slane %v15487_v33, %v12667_v32  ;;  %v5874_v38 = vadd.f32 %v5746_v8, %v5250_v22  ;;  %v6370_v14 = vmul.f32 %v17772_v1, %v6079_v0  ;;  %v8243_v57 = vmul.f32 %v17775_v41, %v7951_v44 }
 0x6b6   :  { %v9758_v48 = vadd.f32 %v17648_v7, %v9616_v54  ;;  %v7747_v31 = vadd.f32 %v7619_v36, %v7123_v34  ;;  %v4963_v12 = vrot.slane %v15527_v50, %v11970_v11  ;;  %v6994_v59 = vmul.f32 %v17774_v51, %v6703_v47 }
 0x6b7   :  { %v6498_v58 = vadd.f32 %v6370_v14, %v5874_v38  ;;  %v5459_v18 = vrot.slane %v15527_v50, %v12275_v45  ;;  %v6083_v33 = vrot.slane %v15527_v50, %v12287_v53  ;;  %v15560_v3 = vmul.f32 %v17787_v26, %v4583_v62 }
 0x6b8   :  { %10159 = vperm.xlu1 %11702, %v9758_v48   ;;  %v8371_v0 = vadd.f32 %v8243_v57, %v7747_v31  ;;  %v8867_v49 = vmul.f32 %v17777_v39, %v8575_v52  ;;  %v5253_v16 = vmul.f32 %v17766_v35, %v4963_v12  ;;  %v7618_v13 = vmul.f32 %v17776_v25, %v7327_v19 }
 0x6b9   :  { %v7122_v10 = vadd.f32 %v6994_v59, %v6498_v58  ;;  %v5749_v47 = vmul.f32 %v17767_v37, %v5459_v18  ;;  %v6707_v6 = vrot.slane %v15527_v50, %v12300_v4  ;;  %v15568_v2 = vmul.f32 %v11851_v43, %v4405_v63 }
 0x6ba   :  { %v8995_v5 = vadd.f32 %v8867_v49, %v8371_v0  ;;  %v9491_v22 = vmul.f32 %v17779_v17, %v9199_v60  ;;  %v8242_v55 = vmul.f32 %v17778_v28, %v7951_v44  ;;  %v6373_v62 = vmul.f32 %v17768_v56, %v6083_v33 }
 0x6bb   :  { %v7746_v27 = vadd.f32 %v7618_v13, %v7122_v10  ;;  %v5877_v42 = vadd.f32 %v5749_v47, %v5253_v16  ;;  %v7331_v29 = vrot.slane %v15527_v50, %v12315_v20  ;;  %v8866_v8 = vmul.f32 %v17780_v15, %v8575_v52 }
 0x6bc   :  { %v9619_v19 = vadd.f32 %v9491_v22, %v8995_v5  ;;  %v5252_v54 = vmul.f32 %v17769_v23, %v4963_v12  ;;  %v5748_v43 = vmul.f32 %v17770_v9, %v5459_v18  ;;  %v6997_v63 = vmul.f32 %v17771_v24, %v6707_v6 }
 0x6bd   :  { %v8370_v34 = vadd.f32 %v8242_v55, %v7746_v27  ;;  %v6501_v36 = vadd.f32 %v6373_v62, %v5877_v42  ;;  %v7955_v44 = vrot.slane %v15527_v50, %v12330_v40  ;;  %v9490_v14 = vmul.f32 %v17782_v30, %v9199_v60  ;;  %v15603_v27 = vpop.xlane.xlu1 %4382 }
 0x6be   :  { %v9761_v38 = vadd.f32 %v17647_v46, %v9619_v19  ;;  %v5876_v48 = vadd.f32 %v5748_v43, %v5252_v54  ;;  %v6372_v31 = vmul.f32 %v17772_v1, %v6083_v33  ;;  %v7621_v12 = vmul.f32 %v17773_v61, %v7331_v29 }
 0x6bf   :  { %v8994_v57 = vadd.f32 %v8866_v8, %v8370_v34  ;;  %v7125_v52 = vadd.f32 %v6997_v63, %v6501_v36  ;;  %v8579_v58 = vrot.slane %v15527_v50, %v12345_v21  ;;  %v4587_v59 = vrot.slane %v15568_v2, %v11970_v11  ;;  %v15609_v8 = vpop.xlane.xlu0 %4379 }
 0x6c0   :  { %10168 = vperm.xlu0 %11703, %v9761_v38   ;;  %v9203_v18 = vrot.slane %v15527_v50, %v12667_v32  ;;  %v6500_v26 = vadd.f32 %v6372_v31, %v5876_v48  ;;  %v6996_v60 = vmul.f32 %v17774_v51, %v6707_v6  ;;  %v8245_v33 = vmul.f32 %v17775_v41, %v7955_v44  ;;  %v17788_v38 = vld [vmem:[#allocation165_spill] sm:$0xff] }
 0x6c1   :  { %v9618_v0 = vadd.f32 %v9490_v14, %v8994_v57  ;;  %v7749_v49 = vadd.f32 %v7621_v12, %v7125_v52  ;;  %v4967_v16 = vrot.slane %v15560_v3, %v11970_v11  ;;  %v7620_v13 = vmul.f32 %v17776_v25, %v7331_v29  ;;  %v15623_v52 = vpop.permute.xlu1 %9943 }
 0x6c2   :  { %v7124_v10 = vadd.f32 %v6996_v60, %v6500_v26  ;;  %v5463_v47 = vrot.slane %v15560_v3, %v12275_v45  ;;  %v6087_v5 = vrot.slane %v15560_v3, %v12287_v53  ;;  %v8869_v6 = vmul.f32 %v17777_v39, %v8579_v58 }
 0x6c3   :  { %v9760_v50 = vadd.f32 %v17648_v7, %v9618_v0  ;;  %v8373_v22 = vadd.f32 %v8245_v33, %v7749_v49  ;;  %v5255_v55 = vmul.f32 %v17766_v35, %v4967_v16  ;;  %v8244_v62 = vmul.f32 %v17778_v28, %v7955_v44 }
 0x6c4   :  { %v7748_v42 = vadd.f32 %v7620_v13, %v7124_v10  ;;  %v5751_v29 = vmul.f32 %v17767_v37, %v5463_v47  ;;  %v6711_v19 = vrot.slane %v15560_v3, %v12300_v4  ;;  %v9493_v43 = vmul.f32 %v17779_v17, %v9203_v18 }
 0x6c5   :  { %10165 = vperm.xlu1 %11702, %v9760_v50   ;;  %v8997_v54 = vadd.f32 %v8869_v6, %v8373_v22  ;;  %v8868_v34 = vmul.f32 %v17780_v15, %v8579_v58  ;;  %v7335_v35 = vrot.slane %v15560_v3, %v12315_v20  ;;  %v6375_v44 = vmul.f32 %v17768_v56, %v6087_v5  ;;  %v15627_v56 = vpop.permute.xlu0 %9946 }
 0x6c6   :  { %v8372_v36 = vadd.f32 %v8244_v62, %v7748_v42  ;;  %v5879_v63 = vadd.f32 %v5751_v29, %v5255_v55  ;;  %v5254_v37 = vmul.f32 %v17769_v23, %v4967_v16  ;;  %v15618_v14 = vmul.f32 %v17788_v38, %v4587_v59  ;;  %v17789_v55 = vld [vmem:[#allocation14_spill] sm:$0xff]  ;;  %v17792_v38 = vld [vmem:[#allocation15_spill] sm:$0xff] }
 0x6c7   :  { %v9621_v48 = vadd.f32 %v9493_v43, %v8997_v54  ;;  %v9492_v31 = vmul.f32 %v17782_v30, %v9203_v18  ;;  %v7959_v57 = vrot.slane %v15560_v3, %v12330_v40  ;;  %v6999_v26 = vmul.f32 %v17771_v24, %v6711_v19 }
 0x6c8   :  { %v8996_v12 = vadd.f32 %v8868_v34, %v8372_v36  ;;  %v6503_v58 = vadd.f32 %v6375_v44, %v5879_v63  ;;  %v5750_v60 = vmul.f32 %v17770_v9, %v5463_v47  ;;  %v7623_v59 = vmul.f32 %v17773_v61, %v7335_v35 }
 0x6c9   :  { %v9763_v23 = vadd.f32 %v17647_v46, %v9621_v48  ;;  %v8583_v18 = vrot.slane %v15560_v3, %v12345_v21  ;;  %v6374_v16 = vmul.f32 %v17772_v1, %v6087_v5  ;;  %v8247_v10 = vmul.f32 %v17775_v41, %v7959_v57  ;;  %v15646_v5 = vpop.permute.xlu1 %9949  ;;  %v15652_v29 = vpop.permute.xlu0 %9952 }
 0x6ca   :  { %v9620_v0 = vadd.f32 %v9492_v31, %v8996_v12  ;;  %v7127_v49 = vadd.f32 %v6999_v26, %v6503_v58  ;;  %v5878_v33 = vadd.f32 %v5750_v60, %v5254_v37  ;;  %v9207_v9 = vrot.slane %v15560_v3, %v12667_v32  ;;  %v17793_v60 = vld [vmem:[#allocation158_spill] sm:$0xff] }
 0x6cb   :  { %10174 = vperm.xlu0 %11703, %v9763_v23   ;;  %v6998_v24 = vmul.f32 %v17774_v51, %v6711_v19  ;;  %v4971_v50 = vrot.slane %v15618_v14, %v11970_v11  ;;  %v8871_v22 = vmul.f32 %v17777_v39, %v8583_v18  ;;  %v5467_v1 = vrot.slane %v15618_v14, %v12275_v45  ;;  %v17790_v39 = vld [vmem:[#allocation18_spill] sm:$0xff] }
 0x6cc   :  { %v9762_v13 = vadd.f32 %v17648_v7, %v9620_v0  ;;  %v7751_v47 = vadd.f32 %v7623_v59, %v7127_v49  ;;  %v6502_v61 = vadd.f32 %v6374_v16, %v5878_v33  ;;  %v6091_v41 = vrot.slane %v15618_v14, %v12287_v53  ;;  %v17795_v59 = vld [vmem:[#allocation19_spill] sm:$0xff] }
 0x6cd   :  { %v7622_v6 = vmul.f32 %v17776_v25, %v7335_v35  ;;  %v5257_v42 = vmul.f32 %v17789_v55, %v4971_v50  ;;  %v4591_v62 = vrot.slane %v15568_v2, %v12275_v45  ;;  %v5753_v19 = vmul.f32 %v17790_v39, %v5467_v1  ;;  %v17791_v25 = vld [vmem:[#allocation22_spill] sm:$0xff]  ;;  %v15671_v49 = vpop.permute.xlu1 %9955 }
 0x6ce   :  { %10171 = vperm.xlu1 %11702, %v9762_v13   ;;  %v8375_v3 = vadd.f32 %v8247_v10, %v7751_v47  ;;  %v7126_v51 = vadd.f32 %v6998_v24, %v6502_v61  ;;  %v6715_v54 = vrot.slane %v15618_v14, %v12300_v4  ;;  %v9495_v34 = vmul.f32 %v17779_v17, %v9207_v9  ;;  %v17796_v13 = vld [vmem:[#allocation30_spill] sm:$0xff] }
 0x6cf   :  { %v8246_v63 = vmul.f32 %v17778_v28, %v7959_v57  ;;  %v5881_v44 = vadd.f32 %v5753_v19, %v5257_v42  ;;  %v6377_v35 = vmul.f32 %v17791_v25, %v6091_v41  ;;  %v7339_v37 = vrot.slane %v15618_v14, %v12315_v20  ;;  %v17794_v28 = vld [vmem:[#allocation26_spill] sm:$0xff]  ;;  %v17799_v42 = vld [vmem:[#allocation27_spill] sm:$0xff] }
 0x6d0   :  { %v8999_v43 = vadd.f32 %v8871_v22, %v8375_v3  ;;  %v7750_v36 = vadd.f32 %v7622_v6, %v7126_v51  ;;  %v5256_v48 = vmul.f32 %v17792_v38, %v4971_v50  ;;  %v8870_v58 = vmul.f32 %v17780_v15, %v8583_v18  ;;  %v15677_v18 = vpop.permute.xlu0 %9958  ;;  %v17797_v50 = vld [vmem:[#allocation23_spill] sm:$0xff]  ;;  %v17798_v3 = vld [vmem:[#allocation34_spill] sm:$0xff] }
 0x6d1   :  { %v7963_v26 = vrot.slane %v15618_v14, %v12330_v40  ;;  %v15667_v17 = vmul.f32 %v17793_v60, %v4591_v62  ;;  %v6505_v23 = vadd.f32 %v6377_v35, %v5881_v44  ;;  %v7001_v57 = vmul.f32 %v17794_v28, %v6715_v54 }
 0x6d2   :  { %v9623_v31 = vadd.f32 %v9495_v34, %v8999_v43  ;;  %v8374_v12 = vadd.f32 %v8246_v63, %v7750_v36  ;;  %v5752_v0 = vmul.f32 %v17795_v59, %v5467_v1  ;;  %v9494_v10 = vmul.f32 %v17782_v30, %v9207_v9 }
 0x6d3   :  { %v8587_v15 = vrot.slane %v15618_v14, %v12345_v21  ;;  %v7129_v24 = vadd.f32 %v7001_v57, %v6505_v23  ;;  %v7625_v47 = vmul.f32 %v17796_v13, %v7339_v37  ;;  %v6376_v22 = vmul.f32 %v17797_v50, %v6091_v41  ;;  %v17800_v41 = vld [vmem:[#allocation118_spill] sm:$0xff] }
 0x6d4   :  { %v9765_v33 = vadd.f32 %v17647_v46, %v9623_v31  ;;  %v8998_v16 = vadd.f32 %v8870_v58, %v8374_v12  ;;  %v5880_v61 = vadd.f32 %v5752_v0, %v5256_v48  ;;  %v8249_v51 = vmul.f32 %v17798_v3, %v7963_v26  ;;  %v15697_v12 = vpop.permute.xlu1 %9961  ;;  %v15702_v23 = vpop.permute.xlu0 %9964  ;;  %v17804_v0 = vld [vmem:[#allocation134_spill] sm:$0xff] }
 0x6d5   :  { %v9211_v6 = vrot.slane %v15618_v14, %v12667_v32  ;;  %v7000_v30 = vmul.f32 %v17799_v42, %v6715_v54  ;;  %v7753_v9 = vadd.f32 %v7625_v47, %v7129_v24  ;;  %v4975_v19 = vrot.slane %v15667_v17, %v11970_v11  ;;  %v17801_v14 = vld [vmem:[#allocation31_spill] sm:$0xff]  ;;  %17802 = vst [vmem:[#allocation178_spill] sm:$0xff] %v15697_v12 }
 0x6d6   :  { %10180 = vperm.xlu0 %11703, %v9765_v33   ;;  %v9622_v1 = vadd.f32 %v9494_v10, %v8998_v16  ;;  %v6504_v62 = vadd.f32 %v6376_v22, %v5880_v61  ;;  %v5471_v43 = vrot.slane %v15667_v17, %v12275_v45  ;;  %v8873_v36 = vmul.f32 %v17800_v41, %v8587_v15 }
 0x6d7   :  { %v6095_v63 = vrot.slane %v15667_v17, %v12287_v53  ;;  %v8377_v44 = vadd.f32 %v8249_v51, %v7753_v9  ;;  %v7624_v48 = vmul.f32 %v17801_v14, %v7339_v37  ;;  %v5259_v54 = vmul.f32 %v17789_v55, %v4975_v19  ;;  %17803 = vst [vmem:[#allocation41_spill] sm:$0xff] %v15702_v23  ;;  %v17805_v37 = vld [vmem:[#allocation35_spill] sm:$0xff] }
 0x6d8   :  { %v9764_v34 = vadd.f32 %v17648_v7, %v9622_v1  ;;  %v7128_v35 = vadd.f32 %v7000_v30, %v6504_v62  ;;  %v4595_v31 = vrot.slane %v15568_v2, %v12287_v53  ;;  %v5755_v58 = vmul.f32 %v17790_v39, %v5471_v43  ;;  %v17806_v30 = vld [vmem:[#allocation119_spill] sm:$0xff] }
 0x6d9   :  { %v6719_v60 = vrot.slane %v15667_v17, %v12300_v4  ;;  %v9001_v57 = vadd.f32 %v8873_v36, %v8377_v44  ;;  %v9497_v33 = vmul.f32 %v17804_v0, %v9211_v6  ;;  %v8248_v10 = vmul.f32 %v17805_v37, %v7963_v26 }
 0x6da   :  { %10177 = vperm.xlu1 %11702, %v9764_v34   ;;  %v7752_v16 = vadd.f32 %v7624_v48, %v7128_v35  ;;  %v5883_v24 = vadd.f32 %v5755_v58, %v5259_v54  ;;  %v6379_v47 = vmul.f32 %v17791_v25, %v6095_v63  ;;  %v7343_v61 = vrot.slane %v15667_v17, %v12315_v20  ;;  %v17807_v34 = vld [vmem:[#allocation167_spill] sm:$0xff] }
 0x6db   :  { %v5258_v22 = vmul.f32 %v17792_v38, %v4975_v19  ;;  %v9625_v1 = vadd.f32 %v9497_v33, %v9001_v57  ;;  %v8872_v9 = vmul.f32 %v17806_v30, %v8587_v15  ;;  %v7967_v62 = vrot.slane %v15667_v17, %v12330_v40  ;;  %v17808_v58 = vld [vmem:[#allocation135_spill] sm:$0xff]  ;;  %v15722_v15 = vpop.permute.xlu1 %9967 }
 0x6dc   :  { %v8376_v51 = vadd.f32 %v8248_v10, %v7752_v16  ;;  %v15714_v36 = vmul.f32 %v17807_v34, %v4595_v31  ;;  %v6507_v44 = vadd.f32 %v6379_v47, %v5883_v24  ;;  %v7003_v26 = vmul.f32 %v17794_v28, %v6719_v60  ;;  %17809 = vst [vmem:[#allocation177_spill] sm:$0xff] %v15722_v15  ;;  %v15726_v24 = vpop.permute.xlu0 %9970 }
 0x6dd   :  { %v5754_v35 = vmul.f32 %v17795_v59, %v5471_v43  ;;  %v9767_v48 = vadd.f32 %v17647_v46, %v9625_v1  ;;  %v9496_v19 = vmul.f32 %v17808_v58, %v9211_v6  ;;  %v8591_v57 = vrot.slane %v15667_v17, %v12345_v21  ;;  %17810 = vst [vmem:[#allocation12_spill] sm:$0xff] %v15726_v24 }
 0x6de   :  { %v9000_v54 = vadd.f32 %v8872_v9, %v8376_v51  ;;  %v7131_v33 = vadd.f32 %v7003_v26, %v6507_v44  ;;  %v7627_v16 = vmul.f32 %v17796_v13, %v7343_v61  ;;  %v6378_v10 = vmul.f32 %v17797_v50, %v6095_v63 }
 0x6df   :  { %v5882_v31 = vadd.f32 %v5754_v35, %v5258_v22  ;;  %10186 = vperm.xlu0 %11703, %v9767_v48   ;;  %v8251_v47 = vmul.f32 %v17798_v3, %v7967_v62  ;;  %v9215_v6 = vrot.slane %v15667_v17, %v12667_v32  ;;  %v7002_v1 = vmul.f32 %v17799_v42, %v6719_v60 }
 0x6e0   :  { %v9624_v43 = vadd.f32 %v9496_v19, %v9000_v54  ;;  %v7755_v51 = vadd.f32 %v7627_v16, %v7131_v33  ;;  %v4979_v34 = vrot.slane %v15714_v36, %v11970_v11  ;;  %v5475_v22 = vrot.slane %v15714_v36, %v12275_v45  ;;  %v15747_v16 = vpop.permute.xlu1 %9973 }
 0x6e1   :  { %v6506_v9 = vadd.f32 %v6378_v10, %v5882_v31  ;;  %v8875_v44 = vmul.f32 %v17800_v41, %v8591_v57  ;;  %v6099_v26 = vrot.slane %v15714_v36, %v12287_v53  ;;  %v7626_v17 = vmul.f32 %v17801_v14, %v7343_v61  ;;  %17811 = vst [vmem:[#allocation16_spill] sm:$0xff] %v15747_v16  ;;  %v15751_v61 = vpop.permute.xlu0 %9976 }
 0x6e2   :  { %v9766_v63 = vadd.f32 %v17648_v7, %v9624_v43  ;;  %v8379_v35 = vadd.f32 %v8251_v47, %v7755_v51  ;;  %v5261_v60 = vmul.f32 %v17789_v55, %v4979_v34  ;;  %v4599_v54 = vrot.slane %v15568_v2, %v12300_v4  ;;  %17812 = vst [vmem:[#allocation20_spill] sm:$0xff] %v15751_v61 }
 0x6e3   :  { %v7130_v48 = vadd.f32 %v7002_v1, %v6506_v9  ;;  %v5757_v19 = vmul.f32 %v17790_v39, %v5475_v22  ;;  %v6723_v33 = vrot.slane %v15714_v36, %v12300_v4  ;;  %v9499_v10 = vmul.f32 %v17804_v0, %v9215_v6 }
 0x6e4   :  { %10183 = vperm.xlu1 %11702, %v9766_v63   ;;  %v9003_v31 = vadd.f32 %v8875_v44, %v8379_v35  ;;  %v8250_v47 = vmul.f32 %v17805_v37, %v7967_v62  ;;  %v6381_v51 = vmul.f32 %v17791_v25, %v6099_v26  ;;  %v7347_v9 = vrot.slane %v15714_v36, %v12315_v20  ;;  %v17813_v35 = vld [vmem:[#allocation160_spill] sm:$0xff] }
 0x6e5   :  { %v7754_v43 = vadd.f32 %v7626_v17, %v7130_v48  ;;  %v5885_v1 = vadd.f32 %v5757_v19, %v5261_v60  ;;  %v5260_v63 = vmul.f32 %v17792_v38, %v4979_v34  ;;  %v8874_v16 = vmul.f32 %v17806_v30, %v8591_v57 }
 0x6e6   :  { %v9627_v24 = vadd.f32 %v9499_v10, %v9003_v31  ;;  %v7971_v44 = vrot.slane %v15714_v36, %v12330_v40  ;;  %v15761_v48 = vmul.f32 %v17813_v35, %v4599_v54  ;;  %v7005_v17 = vmul.f32 %v17794_v28, %v6723_v33 }
 0x6e7   :  { %v8378_v15 = vadd.f32 %v8250_v47, %v7754_v43  ;;  %v6509_v62 = vadd.f32 %v6381_v51, %v5885_v1  ;;  %v5756_v60 = vmul.f32 %v17795_v59, %v5475_v22  ;;  %v9498_v34 = vmul.f32 %v17808_v58, %v9215_v6  ;;  %v15771_v47 = vpop.permute.xlu1 %9979  ;;  %v15777_v6 = vpop.permute.xlu0 %9982 }
 0x6e8   :  { %v9769_v19 = vadd.f32 %v17647_v46, %v9627_v24  ;;  %v8595_v31 = vrot.slane %v15714_v36, %v12345_v21  ;;  %v7629_v10 = vmul.f32 %v17796_v13, %v7347_v9  ;;  %v6380_v54 = vmul.f32 %v17797_v50, %v6099_v26  ;;  %17814 = vst [vmem:[#allocation13_spill] sm:$0xff] %v15771_v47 }
 0x6e9   :  { %v9002_v61 = vadd.f32 %v8874_v16, %v8378_v15  ;;  %v7133_v57 = vadd.f32 %v7005_v17, %v6509_v62  ;;  %v5884_v43 = vadd.f32 %v5756_v60, %v5260_v63  ;;  %v8253_v22 = vmul.f32 %v17798_v3, %v7971_v44  ;;  %17815 = vst [vmem:[#allocation17_spill] sm:$0xff] %v15777_v6 }
 0x6ea   :  { %10192 = vperm.xlu0 %11703, %v9769_v19   ;;  %v9219_v15 = vrot.slane %v15714_v36, %v12667_v32  ;;  %v7004_v24 = vmul.f32 %v17799_v42, %v6723_v33  ;;  %v4983_v63 = vrot.slane %v15761_v48, %v11970_v11  ;;  %v5479_v26 = vrot.slane %v15761_v48, %v12275_v45 }
 0x6eb   :  { %v9626_v1 = vadd.f32 %v9498_v34, %v9002_v61  ;;  %v7757_v16 = vadd.f32 %v7629_v10, %v7133_v57  ;;  %v6508_v51 = vadd.f32 %v6380_v54, %v5884_v43  ;;  %v8877_v61 = vmul.f32 %v17800_v41, %v8595_v31 }
 0x6ec   :  { %v6103_v62 = vrot.slane %v15761_v48, %v12287_v53  ;;  %v7628_v33 = vmul.f32 %v17801_v14, %v7347_v9  ;;  %v5263_v60 = vmul.f32 %v17789_v55, %v4983_v63  ;;  %v4603_v19 = vrot.slane %v15568_v2, %v12315_v20 }
 0x6ed   :  { %v9768_v35 = vadd.f32 %v17648_v7, %v9626_v1  ;;  %v8381_v36 = vadd.f32 %v8253_v22, %v7757_v16  ;;  %v7132_v17 = vadd.f32 %v7004_v24, %v6508_v51  ;;  %v5759_v34 = vmul.f32 %v17790_v39, %v5479_v26  ;;  %v15796_v22 = vpop.permute.xlu1 %9985 }
 0x6ee   :  { %v6727_v57 = vrot.slane %v15761_v48, %v12300_v4  ;;  %v9501_v43 = vmul.f32 %v17804_v0, %v9219_v15  ;;  %v8252_v1 = vmul.f32 %v17805_v37, %v7971_v44  ;;  %17816 = vst [vmem:[#allocation24_spill] sm:$0xff] %v15796_v22  ;;  %v6383_v24 = vmul.f32 %v17791_v25, %v6103_v62  ;;  %v17818_v44 = vld [vmem:[#allocation169_spill] sm:$0xff] }
 0x6ef   :  { %10189 = vperm.xlu1 %11702, %v9768_v35   ;;  %v9005_v10 = vadd.f32 %v8877_v61, %v8381_v36  ;;  %v7756_v54 = vadd.f32 %v7628_v33, %v7132_v17  ;;  %v5887_v9 = vadd.f32 %v5759_v34, %v5263_v60  ;;  %v7351_v16 = vrot.slane %v15761_v48, %v12315_v20  ;;  %v15802_v35 = vpop.permute.xlu0 %9988 }
 0x6f0   :  { %v5262_v51 = vmul.f32 %v17792_v38, %v4983_v63  ;;  %17817 = vst [vmem:[#allocation21_spill] sm:$0xff] %v15802_v35  ;;  %v8876_v61 = vmul.f32 %v17806_v30, %v8595_v31  ;;  %v7975_v36 = vrot.slane %v15761_v48, %v12330_v40  ;;  %v15808_v17 = vmul.f32 %v17818_v44, %v4603_v19 }
 0x6f1   :  { %v9629_v6 = vadd.f32 %v9501_v43, %v9005_v10  ;;  %v8380_v47 = vadd.f32 %v8252_v1, %v7756_v54  ;;  %v6511_v33 = vadd.f32 %v6383_v24, %v5887_v9  ;;  %v7007_v60 = vmul.f32 %v17794_v28, %v6727_v57 }
 0x6f2   :  { %v5758_v34 = vmul.f32 %v17795_v59, %v5479_v26  ;;  %v9500_v35 = vmul.f32 %v17808_v58, %v9219_v15  ;;  %v8599_v10 = vrot.slane %v15761_v48, %v12345_v21  ;;  %v7631_v43 = vmul.f32 %v17796_v13, %v7351_v16 }
 0x6f3   :  { %v9771_v22 = vadd.f32 %v17647_v46, %v9629_v6  ;;  %v9004_v63 = vadd.f32 %v8876_v61, %v8380_v47  ;;  %v7135_v31 = vadd.f32 %v7007_v60, %v6511_v33  ;;  %v6382_v19 = vmul.f32 %v17797_v50, %v6103_v62  ;;  %v15822_v6 = vpop.permute.xlu1 %9991  ;;  %v15829_v62 = vpop.permute.xlu0 %9994 }
 0x6f4   :  { %v5886_v54 = vadd.f32 %v5758_v34, %v5262_v51  ;;  %v8255_v9 = vmul.f32 %v17798_v3, %v7975_v36  ;;  %v9223_v26 = vrot.slane %v15761_v48, %v12667_v32  ;;  %v7006_v47 = vmul.f32 %v17799_v42, %v6727_v57  ;;  %17819 = vst [vmem:[#allocation28_spill] sm:$0xff] %v15822_v6 }
 0x6f5   :  { %10198 = vperm.xlu0 %11703, %v9771_v22   ;;  %v9628_v1 = vadd.f32 %v9500_v35, %v9004_v63  ;;  %v7759_v15 = vadd.f32 %v7631_v43, %v7135_v31  ;;  %v4987_v61 = vrot.slane %v15808_v17, %v11970_v11  ;;  %v5483_v51 = vrot.slane %v15808_v17, %v12275_v45 }
 0x6f6   :  { %v6510_v24 = vadd.f32 %v6382_v19, %v5886_v54  ;;  %11852 = vrcp.f32 %v15609_v8  ;;  %17820 = vst [vmem:[#allocation32_spill] sm:$0xff] %v15829_v62  ;;  %v8879_v48 = vmul.f32 %v17800_v41, %v8599_v10  ;;  %v6107_v57 = vrot.slane %v15808_v17, %v12287_v53 }
 0x6f7   :  { %v9770_v22 = vadd.f32 %v17648_v7, %v9628_v1  ;;  %v8383_v35 = vadd.f32 %v8255_v9, %v7759_v15  ;;  %v7630_v33 = vmul.f32 %v17801_v14, %v7351_v16  ;;  %v5265_v60 = vmul.f32 %v17789_v55, %v4987_v61 }
 0x6f8   :  { %v7134_v44 = vadd.f32 %v7006_v47, %v6510_v24  ;;  %v4607_v34 = vrot.slane %v15568_v2, %v12330_v40  ;;  %v4611_v63 = vrot.slane %v15568_v2, %v12345_v21  ;;  %v5761_v31 = vmul.f32 %v17790_v39, %v5483_v51 }
 0x6f9   :  { %10195 = vperm.xlu1 %11702, %v9770_v22   ;;  %v6731_v43 = vrot.slane %v15808_v17, %v12300_v4  ;;  %v9007_v54 = vadd.f32 %v8879_v48, %v8383_v35  ;;  %v9503_v19 = vmul.f32 %v17804_v0, %v9223_v26  ;;  %v8254_v16 = vmul.f32 %v17805_v37, %v7975_v36  ;;  %v15850_v22 = vpop.permute.xlu1 %9997  ;;  %v17822_v35 = vld [vmem:[#allocation162_spill] sm:$0xff]  ;;  %v15858_v36 = vpop.permute.xlu0 %10000 }
 0x6fa   :  { %v7758_v1 = vadd.f32 %v7630_v33, %v7134_v44  ;;  %v5889_v9 = vadd.f32 %v5761_v31, %v5265_v60  ;;  %v6385_v47 = vmul.f32 %v17791_v25, %v6107_v57  ;;  %v7355_v15 = vrot.slane %v15808_v17, %v12315_v20  ;;  %17821 = vst [vmem:[#allocation37_spill] sm:$0xff] %v15850_v22 }
 0x6fb   :  { %v5264_v24 = vmul.f32 %v17792_v38, %v4987_v61  ;;  %v9631_v62 = vadd.f32 %v9503_v19, %v9007_v54  ;;  %v8878_v23 = vmul.f32 %v17806_v30, %v8599_v10  ;;  %v7979_v48 = vrot.slane %v15808_v17, %v12330_v40  ;;  %17823 = vst [vmem:[#allocation25_spill] sm:$0xff] %v15858_v36 }
 0x6fc   :  { %v8382_v6 = vadd.f32 %v8254_v16, %v7758_v1  ;;  %v15856_v44 = vmul.f32 %v17822_v35, %v4607_v34  ;;  %v6513_v33 = vadd.f32 %v6385_v47, %v5889_v9  ;;  %v7009_v60 = vmul.f32 %v17794_v28, %v6731_v43 }
 0x6fd   :  { %v5760_v31 = vmul.f32 %v17795_v59, %v5483_v51  ;;  %v9773_v61 = vadd.f32 %v17647_v46, %v9631_v62  ;;  %v9502_v54 = vmul.f32 %v17808_v58, %v9223_v26  ;;  %v8603_v10 = vrot.slane %v15808_v17, %v12345_v21 }
 0x6fe   :  { %v9006_v22 = vadd.f32 %v8878_v23, %v8382_v6  ;;  %v7137_v19 = vadd.f32 %v7009_v60, %v6513_v33  ;;  %v7633_v1 = vmul.f32 %v17796_v13, %v7355_v15  ;;  %v6384_v16 = vmul.f32 %v17797_v50, %v6107_v57 }
 0x6ff   :  { %v5888_v34 = vadd.f32 %v5760_v31, %v5264_v24  ;;  %10204 = vperm.xlu0 %11703, %v9773_v61   ;;  %v8257_v47 = vmul.f32 %v17798_v3, %v7979_v48  ;;  %v9227_v51 = vrot.slane %v15808_v17, %v12667_v32  ;;  %v7008_v23 = vmul.f32 %v17799_v42, %v6731_v43  ;;  %v15876_v24 = vpop.permute.xlu1 %10003  ;;  %v15882_v17 = vpop.permute.xlu0 %10006 }
 0x700   :  { %v9630_v9 = vadd.f32 %v9502_v54, %v9006_v22  ;;  %v7761_v6 = vadd.f32 %v7633_v1, %v7137_v19  ;;  %v4991_v62 = vrot.slane %v15856_v44, %v11970_v11  ;;  %v5487_v35 = vrot.slane %v15856_v44, %v12275_v45  ;;  %17824 = vst [vmem:[#allocation42_spill] sm:$0xff] %v15876_v24  ;;  %v17826_v1 = vld [vmem:[#allocation171_spill] sm:$0xff] }
 0x701   :  { %v6512_v26 = vadd.f32 %v6384_v16, %v5888_v34  ;;  %v8881_v22 = vmul.f32 %v17800_v41, %v8603_v10  ;;  %v6111_v33 = vrot.slane %v15856_v44, %v12287_v53  ;;  %17825 = vst [vmem:[#allocation50_spill] sm:$0xff] %v15882_v17  ;;  %v7632_v31 = vmul.f32 %v17801_v14, %v7355_v15 }
 0x702   :  { %v9772_v57 = vadd.f32 %v17648_v7, %v9630_v9  ;;  %v8385_v43 = vadd.f32 %v8257_v47, %v7761_v6  ;;  %v5267_v61 = vmul.f32 %v17789_v55, %v4991_v62  ;;  %v4615_v19 = vrot.slane %v15568_v2, %v12667_v32 }
 0x703   :  { %v7136_v60 = vadd.f32 %v7008_v23, %v6512_v26  ;;  %v15886_v54 = vpop.eup %11852  ;;  %v15891_v34 = vmul.f32 %v17826_v1, %v4611_v63  ;;  %v5763_v16 = vmul.f32 %v17790_v39, %v5487_v35  ;;  %v6735_v9 = vrot.slane %v15856_v44, %v12300_v4 }
 0x704   :  { %10201 = vperm.xlu1 %11702, %v9772_v57   ;;  %v9009_v47 = vadd.f32 %v8881_v22, %v8385_v43  ;;  %v9505_v23 = vmul.f32 %v17804_v0, %v9227_v51  ;;  %v8256_v6 = vmul.f32 %v17805_v37, %v7979_v48  ;;  %v6387_v17 = vmul.f32 %v17791_v25, %v6111_v33 }
 0x705   :  { %v7760_v15 = vadd.f32 %v7632_v31, %v7136_v60  ;;  %v5891_v26 = vadd.f32 %v5763_v16, %v5267_v61  ;;  %v7359_v2 = vrot.slane %v15856_v44, %v12315_v20  ;;  %v5266_v63 = vmul.f32 %v17792_v38, %v4991_v62  ;;  %v15907_v60 = vpop.permute.xlu1 %10009  ;;  %v15911_v16 = vpop.permute.xlu0 %10012 }
 0x706   :  { %v9633_v57 = vadd.f32 %v9505_v23, %v9009_v47  ;;  %v8880_v24 = vmul.f32 %v17806_v30, %v8603_v10  ;;  %v7983_v22 = vrot.slane %v15856_v44, %v12330_v40  ;;  %v4398_v43 = vmul.f32 %v15886_v54, %v15609_v8  ;;  %17827 = vst [vmem:[#allocation110_spill] sm:$0xff] %v15907_v60 }
 0x707   :  { %v8384_v1 = vadd.f32 %v8256_v6, %v7760_v15  ;;  %v6515_v48 = vadd.f32 %v6387_v17, %v5891_v26  ;;  %v7011_v31 = vmul.f32 %v17794_v28, %v6735_v9  ;;  %v5762_v61 = vmul.f32 %v17795_v59, %v5487_v35  ;;  %17828 = vst [vmem:[#allocation29_spill] sm:$0xff] %v15911_v16 }
 0x708   :  { %v9775_v62 = vadd.f32 %v17647_v46, %v9633_v57  ;;  %v9504_v10 = vmul.f32 %v17808_v58, %v9227_v51  ;;  %v8607_v23 = vrot.slane %v15856_v44, %v12345_v21  ;;  %v7635_v8 = vmul.f32 %v17796_v13, %v7359_v2 }
 0x709   :  { %v9008_v47 = vadd.f32 %v8880_v24, %v8384_v1  ;;  %v7139_v15 = vadd.f32 %v7011_v31, %v6515_v48  ;;  %v5890_v6 = vadd.f32 %v5762_v61, %v5266_v63  ;;  %v6386_v17 = vmul.f32 %v17797_v50, %v6111_v33  ;;  %v17829_v63 = vld [vmem:[#allocation164_spill] sm:$0xff] }
 0x70a   :  { %10210 = vperm.xlu0 %11703, %v9775_v62   ;;  %v8259_v35 = vmul.f32 %v17798_v3, %v7983_v22  ;;  %v9231_v16 = vrot.slane %v15856_v44, %v12667_v32  ;;  %v7010_v24 = vmul.f32 %v17799_v42, %v6735_v9  ;;  %v4995_v1 = vrot.slane %v15891_v34, %v11970_v11  ;;  %v15934_v62 = vpop.permute.xlu1 %10015 }
 0x70b   :  { %v9632_v26 = vadd.f32 %v9504_v10, %v9008_v47  ;;  %v7763_v57 = vadd.f32 %v7635_v8, %v7139_v15  ;;  %v6514_v51 = vadd.f32 %v6386_v17, %v5890_v6  ;;  %v5491_v48 = vrot.slane %v15891_v34, %v12275_v45  ;;  %17830 = vst [vmem:[#allocation126_spill] sm:$0xff] %v15934_v62  ;;  %v15938_v6 = vpop.permute.xlu0 %10018 }
 0x70c   :  { %v15928_v31 = vmul.f32 %v17829_v63, %v4615_v19  ;;  %v8883_v61 = vmul.f32 %v17800_v41, %v8607_v23  ;;  %v6115_v44 = vrot.slane %v15891_v34, %v12287_v53  ;;  %v7634_v10 = vmul.f32 %v17801_v14, %v7359_v2  ;;  %17831 = vst [vmem:[#allocation33_spill] sm:$0xff] %v15938_v6 }
 0x70d   :  { %v9774_v33 = vadd.f32 %v17648_v7, %v9632_v26  ;;  %v8387_v9 = vadd.f32 %v8259_v35, %v7763_v57  ;;  %v7138_v47 = vadd.f32 %v7010_v24, %v6514_v51  ;;  %v5269_v15 = vmul.f32 %v17789_v55, %v4995_v1 }
 0x70e   :  { %v4406_v8 = vsub.f32 2.0, %v4398_v43  ;;  %v9507_v19 = vmul.f32 %v17804_v0, %v9231_v16  ;;  %v5765_v17 = vmul.f32 %v17790_v39, %v5491_v48  ;;  %v6739_v26 = vrot.slane %v15891_v34, %v12300_v4 }
 0x70f   :  { %10207 = vperm.xlu1 %11702, %v9774_v33   ;;  %v9011_v63 = vadd.f32 %v8883_v61, %v8387_v9  ;;  %v7762_v60 = vadd.f32 %v7634_v10, %v7138_v47  ;;  %v8258_v35 = vmul.f32 %v17805_v37, %v7983_v22  ;;  %v7363_v2 = vrot.slane %v15891_v34, %v12315_v20  ;;  %v15959_v10 = vpop.permute.xlu1 %10021 }
 0x710   :  { %v8882_v24 = vmul.f32 %v17806_v30, %v8607_v23  ;;  %v5893_v43 = vadd.f32 %v5765_v17, %v5269_v15  ;;  %v6389_v57 = vmul.f32 %v17791_v25, %v6115_v44  ;;  %v5268_v51 = vmul.f32 %v17792_v38, %v4995_v1  ;;  %17832 = vst [vmem:[#allocation36_spill] sm:$0xff] %v15959_v10  ;;  %v15964_v17 = vpop.permute.xlu0 %10024 }
 0x711   :  { %v9635_v33 = vadd.f32 %v9507_v19, %v9011_v63  ;;  %v8386_v6 = vadd.f32 %v8258_v35, %v7762_v60  ;;  %v7987_v62 = vrot.slane %v15891_v34, %v12330_v40  ;;  %v8611_v61 = vrot.slane %v15891_v34, %v12345_v21  ;;  %17833 = vst [vmem:[#allocation127_spill] sm:$0xff] %v15964_v17  ;;  %v17836_v17 = vld [vmem:[#allocation172_spill] sm:$0xff] }
 0x712   :  { %v15955_v22 = vmul.f32 %v15886_v54, %v4406_v8  ;;  %v6517_v9 = vadd.f32 %v6389_v57, %v5893_v43  ;;  %v7013_v47 = vmul.f32 %v17794_v28, %v6739_v26  ;;  %v5764_v23 = vmul.f32 %v17795_v59, %v5491_v48 }
 0x713   :  { %v9777_v1 = vadd.f32 %v17647_v46, %v9635_v33  ;;  %v9010_v15 = vadd.f32 %v8882_v24, %v8386_v6  ;;  %v9506_v60 = vmul.f32 %v17808_v58, %v9231_v16  ;;  %v7637_v19 = vmul.f32 %v17796_v13, %v7363_v2 }
 0x714   :  { %v7141_v63 = vadd.f32 %v7013_v47, %v6517_v9  ;;  %v9235_v54 = vrot.slane %v15891_v34, %v12667_v32  ;;  %v5892_v8 = vadd.f32 %v5764_v23, %v5268_v51  ;;  %v6388_v35 = vmul.f32 %v17797_v50, %v6115_v44 }
 0x715   :  { %10216 = vperm.xlu0 %11703, %v9777_v1   ;;  %v9634_v48 = vadd.f32 %v9506_v60, %v9010_v15  ;;  %v8261_v43 = vmul.f32 %v17798_v3, %v7987_v62  ;;  %v8885_v57 = vmul.f32 %v17800_v41, %v8611_v61  ;;  %v7012_v6 = vmul.f32 %v17799_v42, %v6739_v26 }
 0x716   :  { %v7765_v16 = vadd.f32 %v7637_v19, %v7141_v63  ;;  %v6516_v24 = vadd.f32 %v6388_v35, %v5892_v8  ;;  %v4999_v33 = vrot.slane %v15928_v31, %v11970_v11  ;;  %v5495_v9 = vrot.slane %v15928_v31, %v12275_v45  ;;  %v15986_v19 = vpop.permute.xlu1 %10027  ;;  %v15991_v35 = vpop.permute.xlu0 %10030 }
 0x717   :  { %v9776_v34 = vadd.f32 %v17648_v7, %v9634_v48  ;;  %v7636_v44 = vmul.f32 %v17801_v14, %v7363_v2  ;;  %v6119_v51 = vrot.slane %v15928_v31, %v12287_v53  ;;  %v6743_v47 = vrot.slane %v15928_v31, %v12300_v4  ;;  %17834 = vst [vmem:[#allocation45_spill] sm:$0xff] %v15986_v19 }
 0x718   :  { %v8389_v23 = vadd.f32 %v8261_v43, %v7765_v16  ;;  %v7140_v26 = vadd.f32 %v7012_v6, %v6516_v24  ;;  %v5271_v1 = vmul.f32 %v17789_v55, %v4999_v33  ;;  %v5767_v15 = vmul.f32 %v17790_v39, %v5495_v9  ;;  %17835 = vst [vmem:[#allocation38_spill] sm:$0xff] %v15991_v35 }
 0x719   :  { %v4619_v60 = vrot.slane %v15955_v22, %v11970_v11  ;;  %10213 = vperm.xlu1 %11702, %v9776_v34   ;;  %v9509_v2 = vmul.f32 %v17804_v0, %v9235_v54  ;;  %v8260_v63 = vmul.f32 %v17805_v37, %v7987_v62  ;;  %v6391_v8 = vmul.f32 %v17791_v25, %v6119_v51 }
 0x71a   :  { %v9013_v48 = vadd.f32 %v8885_v57, %v8389_v23  ;;  %v7764_v43 = vadd.f32 %v7636_v44, %v7140_v26  ;;  %v5895_v6 = vadd.f32 %v5767_v15, %v5271_v1  ;;  %v7367_v55 = vrot.slane %v15928_v31, %v12315_v20 }
 0x71b   :  { %v8884_v39 = vmul.f32 %v17806_v30, %v8611_v61  ;;  %v7991_v16 = vrot.slane %v15928_v31, %v12330_v40  ;;  %v5270_v24 = vmul.f32 %v17792_v38, %v4999_v33  ;;  %v7015_v25 = vmul.f32 %v17794_v28, %v6743_v47  ;;  %v16007_v33 = vpop.permute.xlu1 %10033 }
 0x71c   :  { %v9637_v34 = vadd.f32 %v9509_v2, %v9013_v48  ;;  %v8388_v19 = vadd.f32 %v8260_v63, %v7764_v43  ;;  %v6519_v62 = vadd.f32 %v6391_v8, %v5895_v6  ;;  %v4792_v35 = vmul.f32 %v17836_v17, %v4619_v60  ;;  %17837 = vst [vmem:[#allocation180_spill] sm:$0xff] %v16007_v33  ;;  %v16011_v60 = vpop.permute.xlu0 %10036  ;;  %v17839_v6 = vld [vmem:[#allocation88_spill] sm:$0xff]  ;;  %v17858_v33 = vld [vmem:[#allocation121_spill] sm:$0xff] }
 0x71d   :  { %v9508_v57 = vmul.f32 %v17808_v58, %v9235_v54  ;;  %v8615_v44 = vrot.slane %v15928_v31, %v12345_v21  ;;  %v5766_v23 = vmul.f32 %v17795_v59, %v5495_v9  ;;  %v7639_v38 = vmul.f32 %v17796_v13, %v7367_v55  ;;  %17838 = vst [vmem:[#allocation179_spill] sm:$0xff] %v16011_v60 }
 0x71e   :  { %v9779_v61 = vadd.f32 %v17647_v46, %v9637_v34  ;;  %v9012_v26 = vadd.f32 %v8884_v39, %v8388_v19  ;;  %v7143_v1 = vadd.f32 %v7015_v25, %v6519_v62  ;;  %v8263_v15 = vmul.f32 %v17798_v3, %v7991_v16 }
 0x71f   :  { %v5894_v28 = vadd.f32 %v5766_v23, %v5270_v24  ;;  %v6390_v17 = vmul.f32 %v17797_v50, %v6119_v51  ;;  %v9239_v59 = vrot.slane %v15928_v31, %v12667_v32  ;;  %v7014_v9 = vmul.f32 %v17799_v42, %v6743_v47  ;;  %v17840_v31 = vld [vmem:[#allocation92_spill] sm:$0xff] }
 0x720   :  { %10222 = vperm.xlu0 %11703, %v9779_v61   ;;  %v9636_v54 = vadd.f32 %v9508_v57, %v9012_v26  ;;  %v7767_v2 = vadd.f32 %v7639_v38, %v7143_v1  ;;  %v5003_v13 = vrot.slane %v4792_v35, %v11970_v11  ;;  %v5499_v63 = vrot.slane %v4792_v35, %v12275_v45  ;;  %v16029_v57 = vpop.permute.xlu1 %10039  ;;  %v16033_v26 = vpop.permute.xlu0 %10042 }
 0x721   :  { %v6518_v19 = vadd.f32 %v6390_v17, %v5894_v28  ;;  %v6123_v3 = vrot.slane %v4792_v35, %v12287_v53  ;;  %v8887_v51 = vmul.f32 %v17800_v41, %v8615_v44  ;;  %v7638_v48 = vmul.f32 %v17801_v14, %v7367_v55  ;;  %17841 = vst [vmem:[#allocation182_spill] sm:$0xff] %v16029_v57  ;;  %v17842_v55 = vld [vmem:[#allocation96_spill] sm:$0xff] }
 0x722   :  { %v9778_v8 = vadd.f32 %v17648_v7, %v9636_v54  ;;  %v8391_v50 = vadd.f32 %v8263_v15, %v7767_v2  ;;  %v5273_v39 = vmul.f32 %v17839_v6, %v5003_v13  ;;  %v5769_v24 = vmul.f32 %v17840_v31, %v5499_v63  ;;  %17843 = vst [vmem:[#allocation181_spill] sm:$0xff] %v16033_v26  ;;  %v17844_v15 = vld [vmem:[#allocation91_spill] sm:$0xff] }
 0x723   :  { %v7142_v43 = vadd.f32 %v7014_v9, %v6518_v19  ;;  %v6747_v42 = vrot.slane %v4792_v35, %v12300_v4  ;;  %v4623_v47 = vrot.slane %v15955_v22, %v12275_v45  ;;  %v9511_v62 = vmul.f32 %v17804_v0, %v9239_v59  ;;  %v17845_v0 = vld [vmem:[#allocation100_spill] sm:$0xff] }
 0x724   :  { %10219 = vperm.xlu1 %11702, %v9778_v8   ;;  %v9015_v34 = vadd.f32 %v8887_v51, %v8391_v50  ;;  %v8262_v25 = vmul.f32 %v17805_v37, %v7991_v16  ;;  %v5897_v14 = vadd.f32 %v5769_v24, %v5273_v39  ;;  %v6393_v23 = vmul.f32 %v17842_v55, %v6123_v3  ;;  %v17846_v16 = vld [vmem:[#allocation166_spill] sm:$0xff]  ;;  %v17847_v50 = vld [vmem:[#allocation95_spill] sm:$0xff]  ;;  %v17848_v39 = vld [vmem:[#allocation104_spill] sm:$0xff] }
 0x725   :  { %v7766_v41 = vadd.f32 %v7638_v48, %v7142_v43  ;;  %v7371_v61 = vrot.slane %v4792_v35, %v12315_v20  ;;  %v8886_v38 = vmul.f32 %v17806_v30, %v8615_v44  ;;  %v5272_v28 = vmul.f32 %v17844_v15, %v5003_v13 }
 0x726   :  { %v9639_v1 = vadd.f32 %v9511_v62, %v9015_v34  ;;  %v6521_v54 = vadd.f32 %v6393_v23, %v5897_v14  ;;  %v7017_v2 = vmul.f32 %v17845_v0, %v6747_v42  ;;  %v7995_v37 = vrot.slane %v4792_v35, %v12330_v40  ;;  %v17849_v34 = vld [vmem:[#allocation99_spill] sm:$0xff]  ;;  %v17851_v14 = vld [vmem:[#allocation108_spill] sm:$0xff]  ;;  %v16051_v23 = vpop.permute.xlu0 %10048 }
 0x727   :  { %v8390_v17 = vadd.f32 %v8262_v25, %v7766_v41  ;;  %v4793_v9 = vmul.f32 %v17846_v16, %v4623_v47  ;;  %v9510_v8 = vmul.f32 %v17808_v58, %v9239_v59  ;;  %v5768_v51 = vmul.f32 %v17847_v50, %v5499_v63  ;;  %v16047_v47 = vpop.permute.xlu1 %10045  ;;  %v17852_v59 = vld [vmem:[#allocation103_spill] sm:$0xff]  ;;  %17853 = vst [vmem:[#allocation183_spill] sm:$0xff] %v16051_v23 }
 0x728   :  { %v9781_v19 = vadd.f32 %v17647_v46, %v9639_v1  ;;  %v7145_v43 = vadd.f32 %v7017_v2, %v6521_v54  ;;  %v7641_v30 = vmul.f32 %v17848_v39, %v7371_v61  ;;  %v8619_v44 = vrot.slane %v4792_v35, %v12345_v21  ;;  %17850 = vst [vmem:[#allocation184_spill] sm:$0xff] %v16047_v47  ;;  %v17854_v54 = vld [vmem:[#allocation120_spill] sm:$0xff]  ;;  %v17855_v16 = vld [vmem:[#allocation107_spill] sm:$0xff] }
 0x729   :  { %v9014_v48 = vadd.f32 %v8886_v38, %v8390_v17  ;;  %v9243_v13 = vrot.slane %v4792_v35, %v12667_v32  ;;  %v5896_v24 = vadd.f32 %v5768_v51, %v5272_v28  ;;  %v6392_v62 = vmul.f32 %v17849_v34, %v6123_v3 }
 0x72a   :  { %10228 = vperm.xlu0 %11703, %v9781_v19   ;;  %v7769_v41 = vadd.f32 %v7641_v30, %v7145_v43  ;;  %v8265_v58 = vmul.f32 %v17851_v14, %v7995_v37  ;;  %v7016_v63 = vmul.f32 %v17852_v59, %v6747_v42  ;;  %v5007_v38 = vrot.slane %v4793_v9, %v11970_v11 }
 0x72b   :  { %v9638_v25 = vadd.f32 %v9510_v8, %v9014_v48  ;;  %v6520_v1 = vadd.f32 %v6392_v62, %v5896_v24  ;;  %v5503_v17 = vrot.slane %v4793_v9, %v12275_v45  ;;  %v6127_v35 = vrot.slane %v4793_v9, %v12287_v53  ;;  %v17856_v24 = vld [vmem:[#allocation136_spill] sm:$0xff]  ;;  %v16069_v57 = vpop.permute.xlu1 %10051 }
 0x72c   :  { %v8393_v3 = vadd.f32 %v8265_v58, %v7769_v41  ;;  %v8889_v2 = vmul.f32 %v17854_v54, %v8619_v44  ;;  %v7640_v19 = vmul.f32 %v17855_v16, %v7371_v61  ;;  %v5275_v51 = vmul.f32 %v17839_v6, %v5007_v38  ;;  %17859 = vst [vmem:[#allocation145_spill] sm:$0xff] %v16069_v57 }
 0x72d   :  { %v9780_v28 = vadd.f32 %v17648_v7, %v9638_v25  ;;  %v7144_v8 = vadd.f32 %v7016_v63, %v6520_v1  ;;  %v5771_v42 = vmul.f32 %v17840_v31, %v5503_v17  ;;  %v6751_v48 = vrot.slane %v4793_v9, %v12300_v4  ;;  %v17857_v25 = vld [vmem:[#allocation111_spill] sm:$0xff] }
 0x72e   :  { %v4627_v43 = vrot.slane %v15955_v22, %v12287_v53  ;;  %v9017_v30 = vadd.f32 %v8889_v2, %v8393_v3  ;;  %v9513_v62 = vmul.f32 %v17856_v24, %v9243_v13  ;;  %v8264_v41 = vmul.f32 %v17857_v25, %v7995_v37 }
 0x72f   :  { %10225 = vperm.xlu1 %11702, %v9780_v28   ;;  %v7768_v58 = vadd.f32 %v7640_v19, %v7144_v8  ;;  %v5899_v60 = vadd.f32 %v5771_v42, %v5275_v51  ;;  %v6395_v61 = vmul.f32 %v17842_v55, %v6127_v35  ;;  %v7375_v63 = vrot.slane %v4793_v9, %v12315_v20  ;;  %v16072_v28 = vpop.permute.xlu0 %10054  ;;  %v17861_v19 = vld [vmem:[#allocation173_spill] sm:$0xff] }
 0x730   :  { %v9641_v1 = vadd.f32 %v9513_v62, %v9017_v30  ;;  %v8888_v26 = vmul.f32 %v17858_v33, %v8619_v44  ;;  %v5274_v23 = vmul.f32 %v17844_v15, %v5007_v38  ;;  %17860 = vst [vmem:[#allocation185_spill] sm:$0xff] %v16072_v28  ;;  %v7019_v2 = vmul.f32 %v17845_v0, %v6751_v48  ;;  %v17862_v42 = vld [vmem:[#allocation137_spill] sm:$0xff] }
 0x731   :  { %v8392_v47 = vadd.f32 %v8264_v41, %v7768_v58  ;;  %v6523_v3 = vadd.f32 %v6395_v61, %v5899_v60  ;;  %v7999_v37 = vrot.slane %v4793_v9, %v12330_v40  ;;  %v4794_v8 = vmul.f32 %v17861_v19, %v4627_v43 }
 0x732   :  { %v9783_v51 = vadd.f32 %v17647_v46, %v9641_v1  ;;  %v9512_v30 = vmul.f32 %v17862_v42, %v9243_v13  ;;  %v5770_v44 = vmul.f32 %v17847_v50, %v5503_v17  ;;  %v7643_v38 = vmul.f32 %v17848_v39, %v7375_v63  ;;  %v16086_v17 = vpop.permute.xlu1 %10057 }
 0x733   :  { %v9016_v62 = vadd.f32 %v8888_v26, %v8392_v47  ;;  %v7147_v57 = vadd.f32 %v7019_v2, %v6523_v3  ;;  %v8623_v41 = vrot.slane %v4793_v9, %v12345_v21  ;;  %v9247_v60 = vrot.slane %v4793_v9, %v12667_v32  ;;  %17863 = vst [vmem:[#allocation49_spill] sm:$0xff] %v16086_v17  ;;  %v16094_v2 = vpop.permute.xlu0 %10060 }
 0x734   :  { %10234 = vperm.xlu1 %11702, %v9783_v51   ;;  %v5898_v58 = vadd.f32 %v5770_v44, %v5274_v23  ;;  %v6394_v61 = vmul.f32 %v17849_v34, %v6127_v35  ;;  %v8267_v1 = vmul.f32 %v17851_v14, %v7999_v37  ;;  %v7018_v13 = vmul.f32 %v17852_v59, %v6751_v48 }
 0x735   :  { %v9640_v28 = vadd.f32 %v9512_v30, %v9016_v62  ;;  %v7771_v43 = vadd.f32 %v7643_v38, %v7147_v57  ;;  %v5011_v26 = vrot.slane %v4794_v8, %v11970_v11  ;;  %v5507_v47 = vrot.slane %v4794_v8, %v12275_v45  ;;  %17864 = vst [vmem:[#allocation46_spill] sm:$0xff] %v16094_v2 }
 0x736   :  { %v6522_v19 = vadd.f32 %v6394_v61, %v5898_v58  ;;  %v6131_v3 = vrot.slane %v4794_v8, %v12287_v53  ;;  %v8891_v35 = vmul.f32 %v17854_v54, %v8623_v41  ;;  %v7642_v57 = vmul.f32 %v17855_v16, %v7375_v63 }
 0x737   :  { %v9782_v9 = vadd.f32 %v17648_v7, %v9640_v28  ;;  %v8395_v23 = vadd.f32 %v8267_v1, %v7771_v43  ;;  %v5277_v48 = vmul.f32 %v17839_v6, %v5011_v26  ;;  %v5773_v30 = vmul.f32 %v17840_v31, %v5507_v47 }
 0x738   :  { %v7146_v51 = vadd.f32 %v7018_v13, %v6522_v19  ;;  %v6755_v44 = vrot.slane %v4794_v8, %v12300_v4  ;;  %v4631_v62 = vrot.slane %v15955_v22, %v12300_v4  ;;  %v9515_v28 = vmul.f32 %v17856_v24, %v9247_v60 }
 0x739   :  { %10231 = vperm.xlu0 %11703, %v9782_v9   ;;  %v9019_v38 = vadd.f32 %v8891_v35, %v8395_v23  ;;  %v8266_v58 = vmul.f32 %v17857_v25, %v7999_v37  ;;  %v5901_v63 = vadd.f32 %v5773_v30, %v5277_v48  ;;  %v6397_v43 = vmul.f32 %v17842_v55, %v6131_v3  ;;  %v16109_v35 = vpop.permute.xlu1 %10063  ;;  %v17866_v37 = vld [vmem:[#allocation168_spill] sm:$0xff] }
 0x73a   :  { %v7770_v61 = vadd.f32 %v7642_v57, %v7146_v51  ;;  %v7379_v1 = vrot.slane %v4794_v8, %v12315_v20  ;;  %v8890_v19 = vmul.f32 %v17858_v33, %v8623_v41  ;;  %v5276_v2 = vmul.f32 %v17844_v15, %v5011_v26  ;;  %17865 = vst [vmem:[#allocation53_spill] sm:$0xff] %v16109_v35 }
 0x73b   :  { %v9643_v13 = vadd.f32 %v9515_v28, %v9019_v38  ;;  %v6525_v10 = vadd.f32 %v6397_v43, %v5901_v63  ;;  %v7021_v9 = vmul.f32 %v17845_v0, %v6755_v44  ;;  %v8003_v23 = vrot.slane %v4794_v8, %v12330_v40  ;;  %v16115_v38 = vpop.permute.xlu0 %10066 }
 0x73c   :  { %v8394_v17 = vadd.f32 %v8266_v58, %v7770_v61  ;;  %v4795_v57 = vmul.f32 %v17866_v37, %v4631_v62  ;;  %v9514_v48 = vmul.f32 %v17862_v42, %v9247_v60  ;;  %v5772_v30 = vmul.f32 %v17847_v50, %v5507_v47  ;;  %17867 = vst [vmem:[#allocation147_spill] sm:$0xff] %v16115_v38 }
 0x73d   :  { %v9785_v51 = vadd.f32 %v17647_v46, %v9643_v13  ;;  %v7149_v26 = vadd.f32 %v7021_v9, %v6525_v10  ;;  %v7645_v28 = vmul.f32 %v17848_v39, %v7379_v1  ;;  %v8627_v58 = vrot.slane %v4794_v8, %v12345_v21 }
 0x73e   :  { %v9018_v41 = vadd.f32 %v8890_v19, %v8394_v17  ;;  %v9251_v61 = vrot.slane %v4794_v8, %v12667_v32  ;;  %v5900_v63 = vadd.f32 %v5772_v30, %v5276_v2  ;;  %v6396_v62 = vmul.f32 %v17849_v34, %v6131_v3  ;;  %v16129_v2 = vpop.permute.xlu1 %10069 }
 0x73f   :  { %10240 = vperm.xlu1 %11702, %v9785_v51   ;;  %v7773_v13 = vadd.f32 %v7645_v28, %v7149_v26  ;;  %v8269_v60 = vmul.f32 %v17851_v14, %v8003_v23  ;;  %v7020_v47 = vmul.f32 %v17852_v59, %v6755_v44  ;;  %v5015_v17 = vrot.slane %v4795_v57, %v11970_v11  ;;  %v16134_v26 = vpop.permute.xlu0 %10072 }
 0x740   :  { %v9642_v43 = vadd.f32 %v9514_v48, %v9018_v41  ;;  %v6524_v37 = vadd.f32 %v6396_v62, %v5900_v63  ;;  %v5511_v10 = vrot.slane %v4795_v57, %v12275_v45  ;;  %v6135_v19 = vrot.slane %v4795_v57, %v12287_v53  ;;  %17868 = vst [vmem:[#allocation142_spill] sm:$0xff] %v16129_v2 }
 0x741   :  { %v8397_v51 = vadd.f32 %v8269_v60, %v7773_v13  ;;  %v8893_v8 = vmul.f32 %v17854_v54, %v8627_v58  ;;  %v7644_v3 = vmul.f32 %v17855_v16, %v7379_v1  ;;  %v5279_v30 = vmul.f32 %v17839_v6, %v5015_v17  ;;  %17869 = vst [vmem:[#allocation149_spill] sm:$0xff] %v16134_v26 }
 0x742   :  { %v9784_v9 = vadd.f32 %v17648_v7, %v9642_v43  ;;  %v7148_v48 = vadd.f32 %v7020_v47, %v6524_v37  ;;  %v5775_v44 = vmul.f32 %v17840_v31, %v5511_v10  ;;  %v6759_v41 = vrot.slane %v4795_v57, %v12300_v4 }
 0x743   :  { %v4635_v28 = vrot.slane %v15955_v22, %v12315_v20  ;;  %v9021_v63 = vadd.f32 %v8893_v8, %v8397_v51  ;;  %v9517_v62 = vmul.f32 %v17856_v24, %v9251_v61  ;;  %v8268_v1 = vmul.f32 %v17857_v25, %v8003_v23  ;;  %v17870_v8 = vld [vmem:[#allocation174_spill] sm:$0xff] }
 0x744   :  { %10237 = vperm.xlu0 %11703, %v9784_v9   ;;  %v7772_v43 = vadd.f32 %v7644_v3, %v7148_v48  ;;  %v5903_v13 = vadd.f32 %v5775_v44, %v5279_v30  ;;  %v6399_v60 = vmul.f32 %v17842_v55, %v6135_v19  ;;  %v7383_v47 = vrot.slane %v4795_v57, %v12315_v20  ;;  %v16150_v30 = vpop.permute.xlu1 %10075 }
 0x745   :  { %v9645_v37 = vadd.f32 %v9517_v62, %v9021_v63  ;;  %v8892_v2 = vmul.f32 %v17858_v33, %v8627_v58  ;;  %v5278_v26 = vmul.f32 %v17844_v15, %v5015_v17  ;;  %v7023_v9 = vmul.f32 %v17845_v0, %v6759_v41  ;;  %17871 = vst [vmem:[#allocation143_spill] sm:$0xff] %v16150_v30  ;;  %v16154_v62 = vpop.permute.xlu0 %10078 }
 0x746   :  { %v8396_v38 = vadd.f32 %v8268_v1, %v7772_v43  ;;  %v6527_v35 = vadd.f32 %v6399_v60, %v5903_v13  ;;  %v8007_v51 = vrot.slane %v4795_v57, %v12330_v40  ;;  %v4796_v36 = vmul.f32 %v17870_v8, %v4635_v28  ;;  %17872 = vst [vmem:[#allocation151_spill] sm:$0xff] %v16154_v62 }
 0x747   :  { %v9787_v23 = vadd.f32 %v17647_v46, %v9645_v37  ;;  %v9516_v3 = vmul.f32 %v17862_v42, %v9251_v61  ;;  %v5774_v48 = vmul.f32 %v17847_v50, %v5511_v10  ;;  %v7647_v17 = vmul.f32 %v17848_v39, %v7383_v47 }
 0x748   :  { %v9020_v44 = vadd.f32 %v8892_v2, %v8396_v38  ;;  %v7151_v58 = vadd.f32 %v7023_v9, %v6527_v35  ;;  %v8631_v63 = vrot.slane %v4795_v57, %v12345_v21  ;;  %v4639_v1 = vrot.slane %v15955_v22, %v12330_v40 }
 0x749   :  { %10246 = vperm.xlu1 %11702, %v9787_v23   ;;  %v9255_v28 = vrot.slane %v4795_v57, %v12667_v32  ;;  %v5902_v43 = vadd.f32 %v5774_v48, %v5278_v26  ;;  %v6398_v61 = vmul.f32 %v17849_v34, %v6135_v19  ;;  %v8271_v38 = vmul.f32 %v17851_v14, %v8007_v51 }
 0x74a   :  { %v9644_v10 = vadd.f32 %v9516_v3, %v9020_v44  ;;  %v7775_v13 = vadd.f32 %v7647_v17, %v7151_v58  ;;  %v7022_v35 = vmul.f32 %v17852_v59, %v6759_v41  ;;  %v5019_v60 = vrot.slane %v4796_v36, %v11970_v11  ;;  %v16171_v44 = vpop.permute.xlu1 %10081 }
 0x74b   :  { %v6526_v2 = vadd.f32 %v6398_v61, %v5902_v43  ;;  %v5515_v37 = vrot.slane %v4796_v36, %v12275_v45  ;;  %v6139_v9 = vrot.slane %v4796_v36, %v12287_v53  ;;  %v8895_v57 = vmul.f32 %v17854_v54, %v8631_v63  ;;  %17873 = vst [vmem:[#allocation144_spill] sm:$0xff] %v16171_v44  ;;  %v16176_v61 = vpop.permute.xlu0 %10084 }
 0x74c   :  { %v9786_v8 = vadd.f32 %v17648_v7, %v9644_v10  ;;  %v8399_v23 = vadd.f32 %v8271_v38, %v7775_v13  ;;  %v7646_v19 = vmul.f32 %v17855_v16, %v7383_v47  ;;  %v5281_v3 = vmul.f32 %v17839_v6, %v5019_v60  ;;  %17874 = vst [vmem:[#allocation153_spill] sm:$0xff] %v16176_v61 }
 0x74d   :  { %v7150_v26 = vadd.f32 %v7022_v35, %v6526_v2  ;;  %v5777_v48 = vmul.f32 %v17840_v31, %v5515_v37  ;;  %v6763_v41 = vrot.slane %v4796_v36, %v12300_v4  ;;  %11854 = vrcp.f32 %v15603_v27 }
 0x74e   :  { %10243 = vperm.xlu0 %11703, %v9786_v8   ;;  %v9023_v58 = vadd.f32 %v8895_v57, %v8399_v23  ;;  %v9519_v17 = vmul.f32 %v17856_v24, %v9255_v28  ;;  %v8270_v43 = vmul.f32 %v17857_v25, %v8007_v51  ;;  %v6401_v13 = vmul.f32 %v17842_v55, %v6139_v9  ;;  %v17875_v51 = vld [vmem:[#allocation170_spill] sm:$0xff] }
 0x74f   :  { %v7774_v47 = vadd.f32 %v7646_v19, %v7150_v26  ;;  %v5905_v10 = vadd.f32 %v5777_v48, %v5281_v3  ;;  %v7387_v38 = vrot.slane %v4796_v36, %v12315_v20  ;;  %v8894_v2 = vmul.f32 %v17858_v33, %v8631_v63 }
 0x750   :  { %v9647_v35 = vadd.f32 %v9519_v17, %v9023_v58  ;;  %v5280_v44 = vmul.f32 %v17844_v15, %v5019_v60  ;;  %v7025_v23 = vmul.f32 %v17845_v0, %v6763_v41  ;;  %v8011_v57 = vrot.slane %v4796_v36, %v12330_v40  ;;  %v16192_v17 = vpop.permute.xlu1 %10087 }
 0x751   :  { %v8398_v62 = vadd.f32 %v8270_v43, %v7774_v47  ;;  %v6529_v8 = vadd.f32 %v6401_v13, %v5905_v10  ;;  %v16185_v30 = vmul.f32 %v17875_v51, %v4639_v1  ;;  %v9518_v26 = vmul.f32 %v17862_v42, %v9255_v28  ;;  %17876 = vst [vmem:[#allocation146_spill] sm:$0xff] %v16192_v17  ;;  %v16196_v10 = vpop.permute.xlu0 %10090 }
 0x752   :  { %v9789_v19 = vadd.f32 %v17647_v46, %v9647_v35  ;;  %v5776_v3 = vmul.f32 %v17847_v50, %v5515_v37  ;;  %v7649_v63 = vmul.f32 %v17848_v39, %v7387_v38  ;;  %v8635_v60 = vrot.slane %v4796_v36, %v12345_v21  ;;  %17877 = vst [vmem:[#allocation155_spill] sm:$0xff] %v16196_v10 }
 0x753   :  { %v9022_v48 = vadd.f32 %v8894_v2, %v8398_v62  ;;  %v7153_v58 = vadd.f32 %v7025_v23, %v6529_v8  ;;  %v9259_v43 = vrot.slane %v4796_v36, %v12667_v32  ;;  %v6400_v1 = vmul.f32 %v17849_v34, %v6139_v9 }
 0x754   :  { %10252 = vperm.xlu1 %11702, %v9789_v19   ;;  %v5904_v47 = vadd.f32 %v5776_v3, %v5280_v44  ;;  %v8273_v37 = vmul.f32 %v17851_v14, %v8011_v57  ;;  %v7024_v62 = vmul.f32 %v17852_v59, %v6763_v41  ;;  %v5023_v2 = vrot.slane %v16185_v30, %v11970_v11 }
 0x755   :  { %v9646_v13 = vadd.f32 %v9518_v26, %v9022_v48  ;;  %v7777_v28 = vadd.f32 %v7649_v63, %v7153_v58  ;;  %v5519_v8 = vrot.slane %v16185_v30, %v12275_v45  ;;  %v6143_v36 = vrot.slane %v16185_v30, %v12287_v53 }
 0x756   :  { %v6528_v35 = vadd.f32 %v6400_v1, %v5904_v47  ;;  %v8897_v23 = vmul.f32 %v17854_v54, %v8635_v60  ;;  %v7648_v51 = vmul.f32 %v17855_v16, %v7387_v38  ;;  %v5283_v41 = vmul.f32 %v17839_v6, %v5023_v2  ;;  %v16217_v1 = vpop.permute.xlu1 %10093 }
 0x757   :  { %v9788_v9 = vadd.f32 %v17648_v7, %v9646_v13  ;;  %v8401_v44 = vadd.f32 %v8273_v37, %v7777_v28  ;;  %v5779_v26 = vmul.f32 %v17840_v31, %v5519_v8  ;;  %v6767_v3 = vrot.slane %v16185_v30, %v12300_v4  ;;  %17878 = vst [vmem:[#allocation148_spill] sm:$0xff] %v16217_v1 }
 0x758   :  { %v7152_v19 = vadd.f32 %v7024_v62, %v6528_v35  ;;  %v4643_v48 = vrot.slane %v15955_v22, %v12345_v21  ;;  %v9521_v63 = vmul.f32 %v17856_v24, %v9259_v43  ;;  %v8272_v47 = vmul.f32 %v17857_v25, %v8011_v57  ;;  %v16222_v62 = vpop.permute.xlu0 %10096 }
 0x759   :  { %10249 = vperm.xlu0 %11703, %v9788_v9   ;;  %v9025_v58 = vadd.f32 %v8897_v23, %v8401_v44  ;;  %v5907_v13 = vadd.f32 %v5779_v26, %v5283_v41  ;;  %v6403_v28 = vmul.f32 %v17842_v55, %v6143_v36  ;;  %v7391_v37 = vrot.slane %v16185_v30, %v12315_v20 }
 0x75a   :  { %v7776_v38 = vadd.f32 %v7648_v51, %v7152_v19  ;;  %17879 = vst [vmem:[#allocation86_spill] sm:$0xff] %v16222_v62  ;;  %v11855_v35 = vpop.eup %11854  ;;  %v8896_v9 = vmul.f32 %v17858_v33, %v8635_v60  ;;  %v5282_v44 = vmul.f32 %v17844_v15, %v5023_v2  ;;  %v7027_v57 = vmul.f32 %v17845_v0, %v6767_v3  ;;  %v17880_v19 = vld [vmem:[#allocation187_spill] sm:$0xff] }
 0x75b   :  { %v9649_v61 = vadd.f32 %v9521_v63, %v9025_v58  ;;  %v6531_v10 = vadd.f32 %v6403_v28, %v5907_v13  ;;  %v8015_v51 = vrot.slane %v16185_v30, %v12330_v40  ;;  %v4798_v41 = vmul.f32 %v17880_v19, %v4643_v48  ;;  %v16238_v48 = vpop.permute.xlu1 %10099 }
 0x75c   :  { %v8400_v23 = vadd.f32 %v8272_v47, %v7776_v38  ;;  %v8639_v17 = vrot.slane %v16185_v30, %v12345_v21  ;;  %v5778_v58 = vmul.f32 %v17847_v50, %v5519_v8  ;;  %v9520_v60 = vmul.f32 %v17862_v42, %v9259_v43  ;;  %17881 = vst [vmem:[#allocation90_spill] sm:$0xff] %v16238_v48 }
 0x75d   :  { %v9791_v26 = vadd.f32 %v17647_v46, %v9649_v61  ;;  %v7155_v2 = vadd.f32 %v7027_v57, %v6531_v10  ;;  %v7651_v47 = vmul.f32 %v17848_v39, %v7391_v37  ;;  %v4399_v38 = vmul.f32 %v11855_v35, %v15603_v27 }
 0x75e   :  { %v9024_v63 = vadd.f32 %v8896_v9, %v8400_v23  ;;  %v5906_v13 = vadd.f32 %v5778_v58, %v5282_v44  ;;  %v6402_v28 = vmul.f32 %v17849_v34, %v6143_v36  ;;  %v8275_v62 = vmul.f32 %v17851_v14, %v8015_v51  ;;  %v16243_v9 = vpop.permute.xlu0 %10102 }
 0x75f   :  { %10258 = vperm.xlu1 %11702, %v9791_v26   ;;  %v7779_v19 = vadd.f32 %v7651_v47, %v7155_v2  ;;  %v9263_v8 = vrot.slane %v16185_v30, %v12667_v32  ;;  %17882 = vst [vmem:[#allocation94_spill] sm:$0xff] %v16243_v9  ;;  %v8899_v43 = vmul.f32 %v17854_v54, %v8639_v17 }
 0x760   :  { %v9648_v61 = vadd.f32 %v9520_v60, %v9024_v63  ;;  %v6530_v10 = vadd.f32 %v6402_v28, %v5906_v13  ;;  %v7026_v27 = vmul.f32 %v17852_v59, %v6767_v3  ;;  %v5027_v44 = vrot.slane %v4798_v41, %v11970_v11 }
 0x761   :  { %v8403_v23 = vadd.f32 %v8275_v62, %v7779_v19  ;;  %v5523_v57 = vrot.slane %v4798_v41, %v12275_v45  ;;  %v6147_v26 = vrot.slane %v4798_v41, %v12287_v53  ;;  %v4647_v58 = vrot.slane %v15955_v22, %v12667_v32  ;;  %v16259_v19 = vpop.permute.xlu1 %10105 }
 0x762   :  { %v9790_v36 = vadd.f32 %v17648_v7, %v9648_v61  ;;  %v7154_v30 = vadd.f32 %v7026_v27, %v6530_v10  ;;  %v7650_v63 = vmul.f32 %v17855_v16, %v7391_v37  ;;  %v5285_v60 = vmul.f32 %v17839_v6, %v5027_v44  ;;  %17883 = vst [vmem:[#allocation89_spill] sm:$0xff] %v16259_v19 }
 0x763   :  { %v9027_v2 = vadd.f32 %v8899_v43, %v8403_v23  ;;  %v9523_v3 = vmul.f32 %v17856_v24, %v9263_v8  ;;  %v5781_v47 = vmul.f32 %v17840_v31, %v5523_v57  ;;  %v4407_v13 = vsub.f32 2.0, %v4399_v38  ;;  %v17885_v43 = vld [vmem:[#allocation186_spill] sm:$0xff] }
 0x764   :  { %10255 = vperm.xlu0 %11703, %v9790_v36   ;;  %v7778_v62 = vadd.f32 %v7650_v63, %v7154_v30  ;;  %v8274_v28 = vmul.f32 %v17857_v25, %v8015_v51  ;;  %v6405_v61 = vmul.f32 %v17842_v55, %v6147_v26  ;;  %v6771_v37 = vrot.slane %v4798_v41, %v12300_v4  ;;  %v16263_v36 = vpop.permute.xlu0 %10108 }
 0x765   :  { %v9651_v22 = vadd.f32 %v9523_v3, %v9027_v2  ;;  %v5909_v10 = vadd.f32 %v5781_v47, %v5285_v60  ;;  %v7395_v27 = vrot.slane %v4798_v41, %v12315_v20  ;;  %17884 = vst [vmem:[#allocation93_spill] sm:$0xff] %v16263_v36  ;;  %v16266_v23 = vmul.f32 %v17885_v43, %v4647_v58 }
 0x766   :  { %v8402_v9 = vadd.f32 %v8274_v28, %v7778_v62  ;;  %v8898_v38 = vmul.f32 %v17858_v33, %v8639_v17  ;;  %v7029_v63 = vmul.f32 %v17845_v0, %v6771_v37  ;;  %v8019_v2 = vrot.slane %v4798_v41, %v12330_v40 }
 0x767   :  { %v9793_v51 = vadd.f32 %v17647_v46, %v9651_v22  ;;  %v6533_v30 = vadd.f32 %v6405_v61, %v5909_v10  ;;  %v16272_v60 = vmul.f32 %v11855_v35, %v4407_v13  ;;  %v9522_v47 = vmul.f32 %v17862_v42, %v9263_v8  ;;  %v16280_v10 = vpop.permute.xlu1 %10111 }
 0x768   :  { %v9026_v3 = vadd.f32 %v8898_v38, %v8402_v9  ;;  %v8643_v36 = vrot.slane %v4798_v41, %v12345_v21  ;;  %v7653_v62 = vmul.f32 %v17848_v39, %v7395_v27  ;;  %v5284_v17 = vmul.f32 %v17844_v15, %v5027_v44  ;;  %17886 = vst [vmem:[#allocation98_spill] sm:$0xff] %v16280_v10  ;;  %v16284_v43 = vpop.permute.xlu0 %10114 }
 0x769   :  { %10264 = vperm.xlu1 %11702, %v9793_v51   ;;  %v7157_v58 = vadd.f32 %v7029_v63, %v6533_v30  ;;  %v5780_v28 = vmul.f32 %v17847_v50, %v5523_v57  ;;  %v9267_v22 = vrot.slane %v4798_v41, %v12667_v32  ;;  %v8277_v9 = vmul.f32 %v17851_v14, %v8019_v2 }
 0x76a   :  { %v9650_v61 = vadd.f32 %v9522_v47, %v9026_v3  ;;  %v6404_v8 = vmul.f32 %v17849_v34, %v6147_v26  ;;  %17887 = vst [vmem:[#allocation97_spill] sm:$0xff] %v16284_v43  ;;  %v4651_v38 = vrot.slane %v16272_v60, %v11970_v11  ;;  %v8901_v57 = vmul.f32 %v17854_v54, %v8643_v36 }
 0x76b   :  { %v7781_v35 = vadd.f32 %v7653_v62, %v7157_v58  ;;  %v5908_v13 = vadd.f32 %v5780_v28, %v5284_v17  ;;  %v7028_v41 = vmul.f32 %v17852_v59, %v6771_v37  ;;  %v5031_v63 = vrot.slane %v16266_v23, %v11970_v11 }
 0x76c   :  { %v9792_v44 = vadd.f32 %v17648_v7, %v9650_v61  ;;  %v9525_v3 = vmul.f32 %v17856_v24, %v9267_v22  ;;  %v5527_v26 = vrot.slane %v16266_v23, %v12275_v45  ;;  %v6151_v47 = vrot.slane %v16266_v23, %v12287_v53  ;;  %v17888_v61 = vld [vmem:[#allocation189_spill] sm:$0xff] }
 0x76d   :  { %v8405_v51 = vadd.f32 %v8277_v9, %v7781_v35  ;;  %v6532_v30 = vadd.f32 %v6404_v8, %v5908_v13  ;;  %v7652_v17 = vmul.f32 %v17855_v16, %v7395_v27  ;;  %v5286_v28 = vmul.f32 %v17844_v15, %v5031_v63  ;;  %v16306_v13 = vpop.permute.xlu1 %10117  ;;  %v16311_v27 = vpop.permute.xlu0 %10120 }
 0x76e   :  { %10261 = vperm.xlu0 %11703, %v9792_v44   ;;  %v16301_v37 = vmul.f32 %v17888_v61, %v4651_v38  ;;  %v5782_v35 = vmul.f32 %v17847_v50, %v5527_v26  ;;  %v6775_v9 = vrot.slane %v16266_v23, %v12300_v4  ;;  %17889 = vst [vmem:[#allocation102_spill] sm:$0xff] %v16306_v13  ;;  %17890 = vst [vmem:[#allocation106_spill] sm:$0xff] %v16311_v27 }
 0x76f   :  { %v9029_v58 = vadd.f32 %v8901_v57, %v8405_v51  ;;  %v7156_v62 = vadd.f32 %v7028_v41, %v6532_v30  ;;  %v8276_v43 = vmul.f32 %v17857_v25, %v8019_v2  ;;  %v7399_v57 = vrot.slane %v16266_v23, %v12315_v20 }
 0x770   :  { %v5910_v15 = vadd.f32 %v5782_v35, %v5286_v28  ;;  %v6406_v38 = vmul.f32 %v17849_v34, %v6151_v47  ;;  %v5287_v51 = vmul.f32 %v17839_v6, %v5031_v63  ;;  %v5783_v50 = vmul.f32 %v17840_v31, %v5527_v26 }
 0x771   :  { %v9653_v8 = vadd.f32 %v9525_v3, %v9029_v58  ;;  %v7780_v44 = vadd.f32 %v7652_v17, %v7156_v62  ;;  %v8900_v3 = vmul.f32 %v17858_v33, %v8643_v36  ;;  %v8023_v2 = vrot.slane %v16266_v23, %v12330_v40 }
 0x772   :  { %v6534_v58 = vadd.f32 %v6406_v38, %v5910_v15  ;;  %v7030_v62 = vmul.f32 %v17852_v59, %v6775_v9  ;;  %v5911_v17 = vadd.f32 %v5783_v50, %v5287_v51  ;;  %v6407_v28 = vmul.f32 %v17842_v55, %v6151_v47  ;;  %v16329_v59 = vpop.permute.xlu1 %10123  ;;  %v17894_v50 = vld [vmem:[#allocation68_spill] sm:$0xff] }
 0x773   :  { %v9795_v30 = vadd.f32 %v17647_v46, %v9653_v8  ;;  %v8404_v41 = vadd.f32 %v8276_v43, %v7780_v44  ;;  %v9524_v6 = vmul.f32 %v17862_v42, %v9267_v22  ;;  %v7654_v31 = vmul.f32 %v17855_v16, %v7399_v57  ;;  %17891 = vst [vmem:[#allocation101_spill] sm:$0xff] %v16329_v59  ;;  %v16335_v22 = vpop.permute.xlu0 %10126 }
 0x774   :  { %v8647_v43 = vrot.slane %v16266_v23, %v12345_v21  ;;  %v7158_v63 = vadd.f32 %v7030_v62, %v6534_v58  ;;  %v9271_v36 = vrot.slane %v16266_v23, %v12667_v32  ;;  %v6535_v26 = vadd.f32 %v6407_v28, %v5911_v17  ;;  %17892 = vst [vmem:[#allocation112_spill] sm:$0xff] %v16335_v22 }
 0x775   :  { %10270 = vperm.xlu1 %11702, %v9795_v30   ;;  %v9028_v34 = vadd.f32 %v8900_v3, %v8404_v41  ;;  %v7031_v61 = vmul.f32 %v17845_v0, %v6775_v9  ;;  %v8278_v55 = vmul.f32 %v17857_v25, %v8023_v2  ;;  %v7655_v47 = vmul.f32 %v17848_v39, %v7399_v57  ;;  %v17893_v39 = vld [vmem:[#allocation64_spill] sm:$0xff] }
 0x776   :  { %v5035_v16 = vrot.slane %v16301_v37, %v11970_v11  ;;  %v7782_v8 = vadd.f32 %v7654_v31, %v7158_v63  ;;  %v5531_v23 = vrot.slane %v16301_v37, %v12275_v45  ;;  %v6155_v0 = vrot.slane %v16301_v37, %v12287_v53 }
 0x777   :  { %v9652_v35 = vadd.f32 %v9524_v6, %v9028_v34  ;;  %v7159_v44 = vadd.f32 %v7031_v61, %v6535_v26  ;;  %v8902_v15 = vmul.f32 %v17858_v33, %v8647_v43  ;;  %v8279_v25 = vmul.f32 %v17851_v14, %v8023_v2  ;;  %v17895_v33 = vld [vmem:[#allocation72_spill] sm:$0xff]  ;;  %v16355_v6 = vpop.permute.xlu1 %10129  ;;  %v17897_v26 = vld [vmem:[#allocation67_spill] sm:$0xff] }
 0x778   :  { %v5289_v57 = vmul.f32 %v17893_v39, %v5035_v16  ;;  %v8406_v38 = vadd.f32 %v8278_v55, %v7782_v8  ;;  %v5785_v30 = vmul.f32 %v17894_v50, %v5531_v23  ;;  %v6779_v41 = vrot.slane %v16301_v37, %v12300_v4  ;;  %17896 = vst [vmem:[#allocation105_spill] sm:$0xff] %v16355_v6  ;;  %v17899_v55 = vld [vmem:[#allocation76_spill] sm:$0xff]  ;;  %v17911_v6 = vld [vmem:[#allocation138_spill] sm:$0xff] }
 0x779   :  { %v9794_v9 = vadd.f32 %v17648_v7, %v9652_v35  ;;  %v7783_v51 = vadd.f32 %v7655_v47, %v7159_v44  ;;  %v4655_v3 = vrot.slane %v16272_v60, %v12275_v45  ;;  %v9526_v58 = vmul.f32 %v17862_v42, %v9271_v36  ;;  %v16361_v42 = vpop.permute.xlu0 %10132  ;;  %v17900_v8 = vld [vmem:[#allocation188_spill] sm:$0xff] }
 0x77a   :  { %v8903_v62 = vmul.f32 %v17854_v54, %v8647_v43  ;;  %v6409_v17 = vmul.f32 %v17895_v33, %v6155_v0  ;;  %v9030_v14 = vadd.f32 %v8902_v15, %v8406_v38  ;;  %v5913_v28 = vadd.f32 %v5785_v30, %v5289_v57  ;;  %17898 = vst [vmem:[#allocation128_spill] sm:$0xff] %v16361_v42  ;;  %v17901_v15 = vld [vmem:[#allocation71_spill] sm:$0xff]  ;;  %v17902_v38 = vld [vmem:[#allocation80_spill] sm:$0xff] }
 0x77b   :  { %10267 = vperm.xlu0 %11703, %v9794_v9   ;;  %v8407_v2 = vadd.f32 %v8279_v25, %v7783_v51  ;;  %v7403_v34 = vrot.slane %v16301_v37, %v12315_v20  ;;  %v9527_v31 = vmul.f32 %v17856_v24, %v9271_v36  ;;  %v8027_v63 = vrot.slane %v16301_v37, %v12330_v40  ;;  %v17903_v30 = vld [vmem:[#allocation84_spill] sm:$0xff] }
 0x77c   :  { %v5288_v61 = vmul.f32 %v17897_v26, %v5035_v16  ;;  %v9654_v54 = vadd.f32 %v9526_v58, %v9030_v14  ;;  %v6537_v35 = vadd.f32 %v6409_v17, %v5913_v28  ;;  %v7033_v47 = vmul.f32 %v17899_v55, %v6779_v41  ;;  %v17904_v17 = vld [vmem:[#allocation75_spill] sm:$0xff] }
 0x77d   :  { %v9031_v43 = vadd.f32 %v8903_v62, %v8407_v2  ;;  %v4801_v44 = vmul.f32 %v17900_v8, %v4655_v3  ;;  %v8651_v9 = vrot.slane %v16301_v37, %v12345_v21  ;;  %v5784_v25 = vmul.f32 %v17901_v15, %v5531_v23  ;;  %v17905_v28 = vld [vmem:[#allocation79_spill] sm:$0xff]  ;;  %v16383_v8 = vpop.permute.xlu0 %10138 }
 0x77e   :  { %v9796_v24 = vadd.f32 %v17648_v7, %v9654_v54  ;;  %v7161_v57 = vadd.f32 %v7033_v47, %v6537_v35  ;;  %v7657_v16 = vmul.f32 %v17902_v38, %v7403_v34  ;;  %v4659_v51 = vrot.slane %v16272_v60, %v12287_v53  ;;  %v16378_v54 = vpop.permute.xlu1 %10135  ;;  %17907 = vst [vmem:[#allocation113_spill] sm:$0xff] %v16383_v8  ;;  %v17912_v8 = vld [vmem:[#allocation87_spill] sm:$0xff] }
 0x77f   :  { %v9655_v36 = vadd.f32 %v9527_v31, %v9031_v43  ;;  %v8281_v58 = vmul.f32 %v17903_v30, %v8027_v63  ;;  %v5912_v62 = vadd.f32 %v5784_v25, %v5288_v61  ;;  %v6408_v14 = vmul.f32 %v17904_v17, %v6155_v0  ;;  %17906 = vst [vmem:[#allocation109_spill] sm:$0xff] %v16378_v54  ;;  %v17908_v25 = vld [vmem:[#allocation122_spill] sm:$0xff] }
 0x780   :  { %10273 = vperm.xlu1 %11702, %v9796_v24   ;;  %v7785_v2 = vadd.f32 %v7657_v16, %v7161_v57  ;;  %v9275_v23 = vrot.slane %v16301_v37, %v12667_v32  ;;  %v7032_v31 = vmul.f32 %v17905_v28, %v6779_v41  ;;  %v5039_v35 = vrot.slane %v4801_v44, %v11970_v11 }
 0x781   :  { %v9797_v3 = vadd.f32 %v17647_v46, %v9655_v36  ;;  %v6536_v43 = vadd.f32 %v6408_v14, %v5912_v62  ;;  %v5535_v47 = vrot.slane %v4801_v44, %v12275_v45  ;;  %v6159_v61 = vrot.slane %v4801_v44, %v12287_v53  ;;  %v17909_v36 = vld [vmem:[#allocation83_spill] sm:$0xff] }
 0x782   :  { %v8409_v0 = vadd.f32 %v8281_v58, %v7785_v2  ;;  %v8905_v24 = vmul.f32 %v17908_v25, %v8651_v9  ;;  %v7656_v57 = vmul.f32 %v17909_v36, %v7403_v34  ;;  %v5291_v41 = vmul.f32 %v17893_v39, %v5039_v35  ;;  %v17910_v14 = vld [vmem:[#allocation191_spill] sm:$0xff] }
 0x783   :  { %10276 = vperm.xlu0 %11703, %v9797_v3   ;;  %v7160_v37 = vadd.f32 %v7032_v31, %v6536_v43  ;;  %v5787_v16 = vmul.f32 %v17894_v50, %v5535_v47  ;;  %v6783_v62 = vrot.slane %v4801_v44, %v12300_v4  ;;  %v16391_v54 = vmul.f32 %v17910_v14, %v4659_v51  ;;  %v17913_v43 = vld [vmem:[#allocation123_spill] sm:$0xff]  ;;  %v16400_v51 = vpop.permute.xlu1 %10141 }
 0x784   :  { %v9033_v42 = vadd.f32 %v8905_v24, %v8409_v0  ;;  %v9529_v22 = vmul.f32 %v17911_v6, %v9275_v23  ;;  %v8280_v3 = vmul.f32 %v17912_v8, %v8027_v63  ;;  %v6411_v59 = vmul.f32 %v17895_v33, %v6159_v61  ;;  %17914 = vst [vmem:[#allocation129_spill] sm:$0xff] %v16400_v51 }
 0x785   :  { %v7784_v58 = vadd.f32 %v7656_v57, %v7160_v37  ;;  %v5915_v2 = vadd.f32 %v5787_v16, %v5291_v41  ;;  %v7407_v34 = vrot.slane %v4801_v44, %v12315_v20  ;;  %v8904_v27 = vmul.f32 %v17913_v43, %v8651_v9  ;;  %v16404_v57 = vpop.permute.xlu0 %10144  ;;  %v17916_v41 = vld [vmem:[#allocation139_spill] sm:$0xff] }
 0x786   :  { %v9657_v31 = vadd.f32 %v9529_v22, %v9033_v42  ;;  %v5290_v13 = vmul.f32 %v17897_v26, %v5039_v35  ;;  %v5786_v10 = vmul.f32 %v17901_v15, %v5535_v47  ;;  %v7035_v14 = vmul.f32 %v17899_v55, %v6783_v62  ;;  %17915 = vst [vmem:[#allocation57_spill] sm:$0xff] %v16404_v57 }
 0x787   :  { %v8408_v0 = vadd.f32 %v8280_v3, %v7784_v58  ;;  %v6539_v24 = vadd.f32 %v6411_v59, %v5915_v2  ;;  %v8031_v63 = vrot.slane %v4801_v44, %v12330_v40  ;;  %v9528_v22 = vmul.f32 %v17916_v41, %v9275_v23 }
 0x788   :  { %v9799_v37 = vadd.f32 %v17647_v46, %v9657_v31  ;;  %v5914_v42 = vadd.f32 %v5786_v10, %v5290_v13  ;;  %v6410_v9 = vmul.f32 %v17904_v17, %v6159_v61  ;;  %v7659_v47 = vmul.f32 %v17902_v38, %v7407_v34 }
 0x789   :  { %v9032_v35 = vadd.f32 %v8904_v27, %v8408_v0  ;;  %v7163_v16 = vadd.f32 %v7035_v14, %v6539_v24  ;;  %v8655_v3 = vrot.slane %v4801_v44, %v12345_v21  ;;  %v9279_v59 = vrot.slane %v4801_v44, %v12667_v32  ;;  %v16421_v44 = vpop.permute.xlu1 %10147 }
 0x78a   :  { %10282 = vperm.xlu1 %11702, %v9799_v37   ;;  %v6538_v58 = vadd.f32 %v6410_v9, %v5914_v42  ;;  %v7034_v2 = vmul.f32 %v17905_v28, %v6783_v62  ;;  %v8283_v31 = vmul.f32 %v17903_v30, %v8031_v63  ;;  %v7658_v10 = vmul.f32 %v17909_v36, %v7407_v34  ;;  %v16426_v34 = vpop.permute.xlu0 %10150 }
 0x78b   :  { %v9656_v57 = vadd.f32 %v9528_v22, %v9032_v35  ;;  %v7787_v51 = vadd.f32 %v7659_v47, %v7163_v16  ;;  %v5043_v27 = vrot.slane %v16391_v54, %v11970_v11  ;;  %v5539_v23 = vrot.slane %v16391_v54, %v12275_v45  ;;  %17917 = vst [vmem:[#allocation54_spill] sm:$0xff] %v16421_v44 }
 0x78c   :  { %v7162_v13 = vadd.f32 %v7034_v2, %v6538_v58  ;;  %v6163_v61 = vrot.slane %v16391_v54, %v12287_v53  ;;  %v8907_v24 = vmul.f32 %v17908_v25, %v8655_v3  ;;  %v8282_v14 = vmul.f32 %v17912_v8, %v8031_v63  ;;  %17918 = vst [vmem:[#allocation61_spill] sm:$0xff] %v16426_v34 }
 0x78d   :  { %v9798_v62 = vadd.f32 %v17648_v7, %v9656_v57  ;;  %v8411_v0 = vadd.f32 %v8283_v31, %v7787_v51  ;;  %v5293_v22 = vmul.f32 %v17893_v39, %v5043_v27  ;;  %v5789_v42 = vmul.f32 %v17894_v50, %v5539_v23 }
 0x78e   :  { %v7786_v37 = vadd.f32 %v7658_v10, %v7162_v13  ;;  %v6787_v9 = vrot.slane %v16391_v54, %v12300_v4  ;;  %v4663_v35 = vrot.slane %v16272_v60, %v12300_v4  ;;  %v9531_v51 = vmul.f32 %v17911_v6, %v9279_v59 }
 0x78f   :  { %10279 = vperm.xlu0 %11703, %v9798_v62   ;;  %v9035_v57 = vadd.f32 %v8907_v24, %v8411_v0  ;;  %v8906_v16 = vmul.f32 %v17913_v43, %v8655_v3  ;;  %v5917_v47 = vadd.f32 %v5789_v42, %v5293_v22  ;;  %v6413_v58 = vmul.f32 %v17895_v33, %v6163_v61  ;;  %v16444_v3 = vpop.permute.xlu1 %10153  ;;  %v17920_v24 = vld [vmem:[#allocation190_spill] sm:$0xff]  ;;  %v16449_v42 = vpop.permute.xlu0 %10156 }
 0x790   :  { %v8410_v63 = vadd.f32 %v8282_v14, %v7786_v37  ;;  %v7411_v2 = vrot.slane %v16391_v54, %v12315_v20  ;;  %v9530_v10 = vmul.f32 %v17916_v41, %v9279_v59  ;;  %v5292_v13 = vmul.f32 %v17897_v26, %v5043_v27  ;;  %17919 = vst [vmem:[#allocation58_spill] sm:$0xff] %v16444_v3 }
 0x791   :  { %v9659_v31 = vadd.f32 %v9531_v51, %v9035_v57  ;;  %v6541_v44 = vadd.f32 %v6413_v58, %v5917_v47  ;;  %v7037_v62 = vmul.f32 %v17899_v55, %v6787_v9  ;;  %v8035_v0 = vrot.slane %v16391_v54, %v12330_v40  ;;  %17921 = vst [vmem:[#allocation124_spill] sm:$0xff] %v16449_v42 }
 0x792   :  { %v9034_v34 = vadd.f32 %v8906_v16, %v8410_v63  ;;  %v4803_v14 = vmul.f32 %v17920_v24, %v4663_v35  ;;  %v5788_v22 = vmul.f32 %v17901_v15, %v5539_v23  ;;  %v7661_v27 = vmul.f32 %v17902_v38, %v7411_v2 }
 0x793   :  { %v9801_v37 = vadd.f32 %v17647_v46, %v9659_v31  ;;  %v7165_v57 = vadd.f32 %v7037_v62, %v6541_v44  ;;  %v8659_v51 = vrot.slane %v16391_v54, %v12345_v21  ;;  %v4667_v16 = vrot.slane %v16272_v60, %v12315_v20 }
 0x794   :  { %v9658_v59 = vadd.f32 %v9530_v10, %v9034_v34  ;;  %v9283_v35 = vrot.slane %v16391_v54, %v12667_v32  ;;  %v5916_v63 = vadd.f32 %v5788_v22, %v5292_v13  ;;  %v6412_v47 = vmul.f32 %v17904_v17, %v6163_v61  ;;  %v16467_v13 = vpop.permute.xlu1 %10159 }
 0x795   :  { %10288 = vperm.xlu1 %11702, %v9801_v37   ;;  %v7789_v58 = vadd.f32 %v7661_v27, %v7165_v57  ;;  %v8285_v44 = vmul.f32 %v17903_v30, %v8035_v0  ;;  %v7036_v34 = vmul.f32 %v17905_v28, %v6787_v9  ;;  %v5047_v10 = vrot.slane %v4803_v14, %v11970_v11  ;;  %v16472_v27 = vpop.permute.xlu0 %10162 }
 0x796   :  { %v9800_v23 = vadd.f32 %v17648_v7, %v9658_v59  ;;  %v6540_v31 = vadd.f32 %v6412_v47, %v5916_v63  ;;  %v5543_v62 = vrot.slane %v4803_v14, %v12275_v45  ;;  %v6167_v24 = vrot.slane %v4803_v14, %v12287_v53  ;;  %17922 = vst [vmem:[#allocation62_spill] sm:$0xff] %v16467_v13  ;;  %v17924_v63 = vld [vmem:[#allocation193_spill] sm:$0xff] }
 0x797   :  { %v8413_v37 = vadd.f32 %v8285_v44, %v7789_v58  ;;  %v8909_v54 = vmul.f32 %v17908_v25, %v8659_v51  ;;  %v7660_v61 = vmul.f32 %v17909_v36, %v7411_v2  ;;  %v5295_v59 = vmul.f32 %v17893_v39, %v5047_v10  ;;  %17923 = vst [vmem:[#allocation63_spill] sm:$0xff] %v16472_v27 }
 0x798   :  { %10285 = vperm.xlu0 %11703, %v9800_v23   ;;  %v7164_v22 = vadd.f32 %v7036_v34, %v6540_v31  ;;  %v5791_v9 = vmul.f32 %v17894_v50, %v5543_v62  ;;  %v6791_v57 = vrot.slane %v4803_v14, %v12300_v4  ;;  %v16475_v47 = vmul.f32 %v17924_v63, %v4667_v16 }
 0x799   :  { %v9037_v23 = vadd.f32 %v8909_v54, %v8413_v37  ;;  %v9533_v58 = vmul.f32 %v17911_v6, %v9283_v35  ;;  %v8284_v44 = vmul.f32 %v17912_v8, %v8035_v0  ;;  %v6415_v34 = vmul.f32 %v17895_v33, %v6167_v24 }
 0x79a   :  { %v7788_v2 = vadd.f32 %v7660_v61, %v7164_v22  ;;  %v5919_v42 = vadd.f32 %v5791_v9, %v5295_v59  ;;  %v7415_v31 = vrot.slane %v4803_v14, %v12315_v20  ;;  %v8908_v3 = vmul.f32 %v17913_v43, %v8659_v51  ;;  %v16489_v9 = vpop.permute.xlu1 %10165 }
 0x79b   :  { %v9661_v13 = vadd.f32 %v9533_v58, %v9037_v23  ;;  %v5294_v19 = vmul.f32 %v17897_v26, %v5047_v10  ;;  %v5790_v27 = vmul.f32 %v17901_v15, %v5543_v62  ;;  %v7039_v37 = vmul.f32 %v17899_v55, %v6791_v57  ;;  %17925 = vst [vmem:[#allocation66_spill] sm:$0xff] %v16489_v9 }
 0x79c   :  { %v8412_v16 = vadd.f32 %v8284_v44, %v7788_v2  ;;  %v6543_v63 = vadd.f32 %v6415_v34, %v5919_v42  ;;  %v8039_v54 = vrot.slane %v4803_v14, %v12330_v40  ;;  %v9532_v61 = vmul.f32 %v17916_v41, %v9283_v35  ;;  %v16493_v42 = vpop.permute.xlu0 %10168 }
 0x79d   :  { %v9803_v0 = vadd.f32 %v17647_v46, %v9661_v13  ;;  %v5918_v22 = vadd.f32 %v5790_v27, %v5294_v19  ;;  %v6414_v59 = vmul.f32 %v17904_v17, %v6167_v24  ;;  %v7663_v10 = vmul.f32 %v17902_v38, %v7415_v31  ;;  %17926 = vst [vmem:[#allocation70_spill] sm:$0xff] %v16493_v42 }
 0x79e   :  { %v9036_v51 = vadd.f32 %v8908_v3, %v8412_v16  ;;  %v7167_v23 = vadd.f32 %v7039_v37, %v6543_v63  ;;  %v8663_v62 = vrot.slane %v4803_v14, %v12345_v21  ;;  %v9287_v58 = vrot.slane %v4803_v14, %v12667_v32 }
 0x79f   :  { %10294 = vperm.xlu1 %11702, %v9803_v0   ;;  %v6542_v44 = vadd.f32 %v6414_v59, %v5918_v22  ;;  %v7038_v13 = vmul.f32 %v17905_v28, %v6791_v57  ;;  %v8287_v24 = vmul.f32 %v17903_v30, %v8039_v54  ;;  %v7662_v27 = vmul.f32 %v17909_v36, %v7415_v31  ;;  %v16512_v59 = vpop.permute.xlu1 %10171 }
 0x7a0   :  { %v9660_v35 = vadd.f32 %v9532_v61, %v9036_v51  ;;  %v7791_v19 = vadd.f32 %v7663_v10, %v7167_v23  ;;  %v5051_v2 = vrot.slane %v16475_v47, %v11970_v11  ;;  %v5547_v34 = vrot.slane %v16475_v47, %v12275_v45  ;;  %17927 = vst [vmem:[#allocation65_spill] sm:$0xff] %v16512_v59 }
 0x7a1   :  { %v7166_v3 = vadd.f32 %v7038_v13, %v6542_v44  ;;  %v6171_v16 = vrot.slane %v16475_v47, %v12287_v53  ;;  %v8911_v57 = vmul.f32 %v17908_v25, %v8663_v62  ;;  %v8286_v37 = vmul.f32 %v17912_v8, %v8039_v54  ;;  %v16518_v54 = vpop.permute.xlu0 %10174 }
 0x7a2   :  { %v9802_v14 = vadd.f32 %v17648_v7, %v9660_v35  ;;  %v8415_v63 = vadd.f32 %v8287_v24, %v7791_v19  ;;  %v5297_v31 = vmul.f32 %v17893_v39, %v5051_v2  ;;  %v5793_v61 = vmul.f32 %v17894_v50, %v5547_v34  ;;  %17928 = vst [vmem:[#allocation69_spill] sm:$0xff] %v16518_v54  ;;  %v17929_v54 = vld [vmem:[#allocation192_spill] sm:$0xff] }
 0x7a3   :  { %v7790_v0 = vadd.f32 %v7662_v27, %v7166_v3  ;;  %v6795_v22 = vrot.slane %v16475_v47, %v12300_v4  ;;  %v4671_v51 = vrot.slane %v16272_v60, %v12330_v40  ;;  %v9535_v10 = vmul.f32 %v17911_v6, %v9287_v58 }
 0x7a4   :  { %10291 = vperm.xlu0 %11703, %v9802_v14   ;;  %v9039_v23 = vadd.f32 %v8911_v57, %v8415_v63  ;;  %v8910_v44 = vmul.f32 %v17913_v43, %v8663_v62  ;;  %v5921_v35 = vadd.f32 %v5793_v61, %v5297_v31  ;;  %v6417_v19 = vmul.f32 %v17895_v33, %v6171_v16 }
 0x7a5   :  { %v8414_v13 = vadd.f32 %v8286_v37, %v7790_v0  ;;  %v7419_v24 = vrot.slane %v16475_v47, %v12315_v20  ;;  %v9534_v3 = vmul.f32 %v17916_v41, %v9287_v58  ;;  %v5296_v59 = vmul.f32 %v17897_v26, %v5051_v2  ;;  %v16534_v2 = vpop.permute.xlu1 %10177 }
 0x7a6   :  { %v9663_v27 = vadd.f32 %v9535_v10, %v9039_v23  ;;  %v6545_v63 = vadd.f32 %v6417_v19, %v5921_v35  ;;  %v7041_v57 = vmul.f32 %v17899_v55, %v6795_v22  ;;  %v8043_v62 = vrot.slane %v16475_v47, %v12330_v40  ;;  %17930 = vst [vmem:[#allocation74_spill] sm:$0xff] %v16534_v2 }
 0x7a7   :  { %v9038_v14 = vadd.f32 %v8910_v44, %v8414_v13  ;;  %v4805_v37 = vmul.f32 %v17929_v54, %v4671_v51  ;;  %v5792_v31 = vmul.f32 %v17901_v15, %v5547_v34  ;;  %v7665_v23 = vmul.f32 %v17902_v38, %v7419_v24  ;;  %v16541_v34 = vpop.permute.xlu0 %10180 }
 0x7a8   :  { %v9805_v0 = vadd.f32 %v17647_v46, %v9663_v27  ;;  %v7169_v42 = vadd.f32 %v7041_v57, %v6545_v63  ;;  %v8667_v58 = vrot.slane %v16475_v47, %v12345_v21  ;;  %v4675_v10 = vrot.slane %v16272_v60, %v12345_v21  ;;  %17931 = vst [vmem:[#allocation73_spill] sm:$0xff] %v16541_v34 }
 0x7a9   :  { %v9662_v61 = vadd.f32 %v9534_v3, %v9038_v14  ;;  %v9291_v51 = vrot.slane %v16475_v47, %v12667_v32  ;;  %v5920_v44 = vadd.f32 %v5792_v31, %v5296_v59  ;;  %v6416_v54 = vmul.f32 %v17904_v17, %v6171_v16 }
 0x7aa   :  { %10300 = vperm.xlu1 %11702, %v9805_v0   ;;  %v7793_v35 = vadd.f32 %v7665_v23, %v7169_v42  ;;  %v8289_v19 = vmul.f32 %v17903_v30, %v8043_v62  ;;  %v7040_v27 = vmul.f32 %v17905_v28, %v6795_v22  ;;  %v5055_v14 = vrot.slane %v4805_v37, %v11970_v11 }
 0x7ab   :  { %v9804_v13 = vadd.f32 %v17648_v7, %v9662_v61  ;;  %v6544_v3 = vadd.f32 %v6416_v54, %v5920_v44  ;;  %v5551_v63 = vrot.slane %v4805_v37, %v12275_v45  ;;  %v6175_v57 = vrot.slane %v4805_v37, %v12287_v53  ;;  %v17932_v61 = vld [vmem:[#allocation195_spill] sm:$0xff] }
 0x7ac   :  { %v8417_v47 = vadd.f32 %v8289_v19, %v7793_v35  ;;  %v8913_v16 = vmul.f32 %v17908_v25, %v8667_v58  ;;  %v7664_v59 = vmul.f32 %v17909_v36, %v7419_v24  ;;  %v5299_v42 = vmul.f32 %v17893_v39, %v5055_v14  ;;  %v16559_v35 = vpop.permute.xlu1 %10183 }
 0x7ad   :  { %10297 = vperm.xlu0 %11703, %v9804_v13   ;;  %v7168_v0 = vadd.f32 %v7040_v27, %v6544_v3  ;;  %v5795_v31 = vmul.f32 %v17894_v50, %v5551_v63  ;;  %v6799_v22 = vrot.slane %v4805_v37, %v12300_v4  ;;  %v16555_v23 = vmul.f32 %v17932_v61, %v4675_v10  ;;  %v16563_v3 = vpop.permute.xlu0 %10186 }
 0x7ae   :  { %v9041_v44 = vadd.f32 %v8913_v16, %v8417_v47  ;;  %v9537_v54 = vmul.f32 %v17911_v6, %v9291_v51  ;;  %v8288_v13 = vmul.f32 %v17912_v8, %v8043_v62  ;;  %v6419_v24 = vmul.f32 %v17895_v33, %v6175_v57 }
 0x7af   :  { %v7792_v19 = vadd.f32 %v7664_v59, %v7168_v0  ;;  %v5923_v34 = vadd.f32 %v5795_v31, %v5299_v42  ;;  %v7423_v27 = vrot.slane %v4805_v37, %v12315_v20  ;;  %v8912_v9 = vmul.f32 %v17913_v43, %v8667_v58 }
 0x7b0   :  { %v9665_v2 = vadd.f32 %v9537_v54, %v9041_v44  ;;  %v5298_v10 = vmul.f32 %v17897_v26, %v5055_v14  ;;  %v5794_v47 = vmul.f32 %v17901_v15, %v5551_v63  ;;  %v7043_v62 = vmul.f32 %v17899_v55, %v6799_v22 }
 0x7b1   :  { %v8416_v16 = vadd.f32 %v8288_v13, %v7792_v19  ;;  %v6547_v61 = vadd.f32 %v6419_v24, %v5923_v34  ;;  %v8047_v59 = vrot.slane %v4805_v37, %v12330_v40  ;;  %v9536_v42 = vmul.f32 %v17916_v41, %v9291_v51  ;;  %v16577_v19 = vpop.permute.xlu1 %10189 }
 0x7b2   :  { %v9807_v0 = vadd.f32 %v17647_v46, %v9665_v2  ;;  %v5922_v31 = vadd.f32 %v5794_v47, %v5298_v10  ;;  %v6418_v48 = vmul.f32 %v17904_v17, %v6175_v57  ;;  %v7667_v58 = vmul.f32 %v17902_v38, %v7423_v27 }
 0x7b3   :  { %v9040_v44 = vadd.f32 %v8912_v9, %v8416_v16  ;;  %v7171_v54 = vadd.f32 %v7043_v62, %v6547_v61  ;;  %v8671_v14 = vrot.slane %v4805_v37, %v12345_v21  ;;  %v9295_v34 = vrot.slane %v4805_v37, %v12667_v32  ;;  %v16581_v9 = vpop.permute.xlu0 %10192 }
 0x7b4   :  { %10306 = vperm.xlu1 %11702, %v9807_v0   ;;  %v6546_v63 = vadd.f32 %v6418_v48, %v5922_v31  ;;  %v7042_v13 = vmul.f32 %v17905_v28, %v6799_v22  ;;  %v8291_v51 = vmul.f32 %v17903_v30, %v8047_v59  ;;  %v7666_v57 = vmul.f32 %v17909_v36, %v7423_v27 }
 0x7b5   :  { %v9664_v2 = vadd.f32 %v9536_v42, %v9040_v44  ;;  %v7795_v24 = vadd.f32 %v7667_v58, %v7171_v54  ;;  %v5059_v47 = vrot.slane %v16555_v23, %v11970_v11  ;;  %v5555_v37 = vrot.slane %v16555_v23, %v12275_v45 }
 0x7b6   :  { %v7170_v10 = vadd.f32 %v7042_v13, %v6546_v63  ;;  %v6179_v48 = vrot.slane %v16555_v23, %v12287_v53  ;;  %v8915_v61 = vmul.f32 %v17908_v25, %v8671_v14  ;;  %v8290_v62 = vmul.f32 %v17912_v8, %v8047_v59 }
 0x7b7   :  { %v9806_v22 = vadd.f32 %v17648_v7, %v9664_v2  ;;  %v8419_v16 = vadd.f32 %v8291_v51, %v7795_v24  ;;  %v5301_v0 = vmul.f32 %v17893_v39, %v5059_v47  ;;  %v5797_v42 = vmul.f32 %v17894_v50, %v5555_v37  ;;  %v16603_v51 = vpop.permute.xlu1 %10195 }
 0x7b8   :  { %v7794_v27 = vadd.f32 %v7666_v57, %v7170_v10  ;;  %v6803_v31 = vrot.slane %v16555_v23, %v12300_v4  ;;  %v4679_v44 = vrot.slane %v16272_v60, %v12667_v32  ;;  %v9539_v58 = vmul.f32 %v17911_v6, %v9295_v34  ;;  %v16607_v60 = vpop.permute.xlu0 %10198 }
 0x7b9   :  { %10303 = vperm.xlu0 %11703, %v9806_v22   ;;  %v9043_v54 = vadd.f32 %v8915_v61, %v8419_v16  ;;  %v8914_v63 = vmul.f32 %v17913_v43, %v8671_v14  ;;  %v5925_v2 = vadd.f32 %v5797_v42, %v5301_v0  ;;  %v6421_v59 = vmul.f32 %v17895_v33, %v6179_v48 }
 0x7ba   :  { %v8418_v13 = vadd.f32 %v8290_v62, %v7794_v27  ;;  %v7427_v24 = vrot.slane %v16555_v23, %v12315_v20  ;;  %v8051_v10 = vrot.slane %v16555_v23, %v12330_v40  ;;  %v9538_v16 = vmul.f32 %v17916_v41, %v9295_v34  ;;  %v17933_v62 = vld [vmem:[#allocation194_spill] sm:$0xff] }
 0x7bb   :  { %v9667_v57 = vadd.f32 %v9539_v58, %v9043_v54  ;;  %v6549_v61 = vadd.f32 %v6421_v59, %v5925_v2  ;;  %v7045_v14 = vmul.f32 %v17899_v55, %v6803_v31  ;;  %v4807_v27 = vmul.f32 %v17933_v62, %v4679_v44  ;;  %v16623_v62 = vpop.permute.xlu1 %10201 }
 0x7bc   :  { %v9042_v22 = vadd.f32 %v8914_v63, %v8418_v13  ;;  %v8675_v42 = vrot.slane %v16555_v23, %v12345_v21  ;;  %v5300_v54 = vmul.f32 %v17897_v26, %v5059_v47  ;;  %v7669_v12 = vmul.f32 %v17902_v38, %v7427_v24 }
 0x7bd   :  { %v9809_v0 = vadd.f32 %v17647_v46, %v9667_v57  ;;  %v7173_v1 = vadd.f32 %v7045_v14, %v6549_v61  ;;  %v5796_v63 = vmul.f32 %v17901_v15, %v5555_v37  ;;  %v8293_v34 = vmul.f32 %v17903_v30, %v8051_v10 }
 0x7be   :  { %v9666_v58 = vadd.f32 %v9538_v16, %v9042_v22  ;;  %v9299_v13 = vrot.slane %v16555_v23, %v12667_v32  ;;  %v6420_v57 = vmul.f32 %v17904_v17, %v6179_v48  ;;  %v8917_v47 = vmul.f32 %v17908_v25, %v8675_v42  ;;  %v16627_v16 = vpop.permute.xlu0 %10204 }
 0x7bf   :  { %10312 = vperm.xlu1 %11702, %v9809_v0   ;;  %v7797_v2 = vadd.f32 %v7669_v12, %v7173_v1  ;;  %v5924_v59 = vadd.f32 %v5796_v63, %v5300_v54  ;;  %v7044_v22 = vmul.f32 %v17905_v28, %v6803_v31  ;;  %v5063_v14 = vrot.slane %v4807_v27, %v11970_v11 }
 0x7c0   :  { %v9808_v44 = vadd.f32 %v17648_v7, %v9666_v58  ;;  %v5559_v23 = vrot.slane %v4807_v27, %v12275_v45  ;;  %v9541_v12 = vmul.f32 %v17911_v6, %v9299_v13  ;;  %v7668_v1 = vmul.f32 %v17909_v36, %v7427_v24  ;;  %v16640_v24 = vpop.permute.xlu1 %10207 }
 0x7c1   :  { %v8421_v37 = vadd.f32 %v8293_v34, %v7797_v2  ;;  %v6548_v61 = vadd.f32 %v6420_v57, %v5924_v59  ;;  %v6183_v48 = vrot.slane %v4807_v27, %v12287_v53  ;;  %v6807_v0 = vrot.slane %v4807_v27, %v12300_v4 }
 0x7c2   :  { %10309 = vperm.xlu0 %11703, %v9808_v44   ;;  %v5302_v31 = vmul.f32 %v17897_v26, %v5063_v14  ;;  %v5798_v63 = vmul.f32 %v17901_v15, %v5559_v23  ;;  %v8292_v34 = vmul.f32 %v17912_v8, %v8051_v10  ;;  %v7431_v11 = vrot.slane %v4807_v27, %v12315_v20  ;;  %v16646_v15 = vpop.permute.xlu0 %10210 }
 0x7c3   :  { %v9045_v54 = vadd.f32 %v8917_v47, %v8421_v37  ;;  %v7172_v58 = vadd.f32 %v7044_v22, %v6548_v61  ;;  %v6422_v59 = vmul.f32 %v17904_v17, %v6183_v48  ;;  %v8916_v53 = vmul.f32 %v17913_v43, %v8675_v42 }
 0x7c4   :  { %v5926_v2 = vadd.f32 %v5798_v63, %v5302_v31  ;;  %v7046_v4 = vmul.f32 %v17905_v28, %v6807_v0  ;;  %v5303_v57 = vmul.f32 %v17893_v39, %v5063_v14  ;;  %v5799_v26 = vmul.f32 %v17894_v50, %v5559_v23 }
 0x7c5   :  { %v9669_v44 = vadd.f32 %v9541_v12, %v9045_v54  ;;  %v7796_v45 = vadd.f32 %v7668_v1, %v7172_v58  ;;  %v8055_v22 = vrot.slane %v4807_v27, %v12330_v40  ;;  %v9540_v17 = vmul.f32 %v17916_v41, %v9299_v13  ;;  %v10214_v13 = vpop.permute.xlu1 %10213 }
 0x7c6   :  { %v6550_v47 = vadd.f32 %v6422_v59, %v5926_v2  ;;  %v5927_v37 = vadd.f32 %v5799_v26, %v5303_v57  ;;  %v6423_v61 = vmul.f32 %v17895_v33, %v6183_v48  ;;  %v7670_v39 = vmul.f32 %v17909_v36, %v7431_v11  ;;  %v10217_v48 = vpop.permute.xlu0 %10216  ;;  %v17936_v57 = vld [vmem:[#allocation176_spill] sm:$0xff] }
 0x7c7   :  { %v9811_v10 = vadd.f32 %v17647_v46, %v9669_v44  ;;  %v8420_v20 = vadd.f32 %v8292_v34, %v7796_v45  ;;  %v8679_v50 = vrot.slane %v4807_v27, %v12345_v21  ;;  %v7047_v23 = vmul.f32 %v17899_v55, %v6807_v0  ;;  %v17934_v21 = vld [vmem:[#allocation175_spill] sm:$0xff] }
 0x7c8   :  { %v7174_v28 = vadd.f32 %v7046_v4, %v6550_v47  ;;  %v6551_v14 = vadd.f32 %v6423_v61, %v5927_v37  ;;  %v8294_v54 = vmul.f32 %v17912_v8, %v8055_v22  ;;  %v9303_v40 = vrot.slane %v4807_v27, %v12667_v32 }
 0x7c9   :  { %10318 = vperm.xlu1 %11702, %v9811_v10   ;;  %v9044_v42 = vadd.f32 %v8916_v53, %v8420_v20  ;;  %v7671_v33 = vmul.f32 %v17902_v38, %v7431_v11  ;;  %v8918_v36 = vmul.f32 %v17913_v43, %v8679_v50  ;;  %v10330_v34 = vadd.s32 4294967288, %v17934_v21  ;;  %v10220_v38 = vpop.permute.xlu1 %10219  ;;  %v17935_v11 = vld [vmem:[#allocation11_spill] sm:$0xff] }
 0x7ca   :  { %v7798_v1 = vadd.f32 %v7670_v39, %v7174_v28  ;;  %v7175_v58 = vadd.f32 %v7047_v23, %v6551_v14  ;;  %v8295_v55 = vmul.f32 %v17903_v30, %v8055_v22  ;;  %v9542_v8 = vmul.f32 %v17916_v41, %v9303_v40  ;;  %v10223_v53 = vpop.permute.xlu0 %10222 }
 0x7cb   :  { %v9668_v12 = vadd.f32 %v9540_v17, %v9044_v42  ;;  %v8919_v27 = vmul.f32 %v17908_v25, %v8679_v50  ;;  %v16665_v2 = vsub.s32 %v10330_v34, %v17935_v11  ;;  %v9543_v43 = vmul.f32 %v17911_v6, %v9303_v40 }
 0x7cc   :  { %v8422_v63 = vadd.f32 %v8294_v54, %v7798_v1  ;;  %v7799_v44 = vadd.f32 %v7671_v33, %v7175_v58  ;;  %v10691_v30 = vrot.slane %v16559_v35, %v17936_v57  ;;  %v10700_v25 = vrot.slane %v16577_v19, %v17936_v57 }
 0x7cd   :  { %v9810_v31 = vadd.f32 %v17648_v7, %v9668_v12  ;;  %v10695_v41 = vrot.slane %v16563_v3, %v16665_v2  ;;  %v10704_v10 = vrot.slane %v16581_v9, %v16665_v2  ;;  %v10709_v6 = vrot.slane %v16603_v51, %v17936_v57 }
 0x7ce   :  { %v9046_v0 = vadd.f32 %v8918_v36, %v8422_v63  ;;  %v8423_v32 = vadd.f32 %v8295_v55, %v7799_v44  ;;  %v10713_v35 = vrot.slane %v16607_v60, %v16665_v2  ;;  %v10718_v3 = vrot.slane %v16623_v62, %v17936_v57  ;;  %v10229_v37 = vpop.permute.xlu0 %10228 }
 0x7cf   :  { %10315 = vperm.xlu0 %11703, %v9810_v31   ;;  %v10696_v20 = vsel %vm10335_vm10, %v10695_v41, %v10691_v30  ;;  %v10705_v47 = vsel %vm10335_vm10, %v10704_v10, %v10700_v25  ;;  %v10722_v19 = vrot.slane %v16627_v16, %v16665_v2  ;;  %v10727_v9 = vrot.slane %v16640_v24, %v17936_v57  ;;  %v17940_v25 = vld [vmem:[#allocation12_spill] sm:$0xff] }
 0x7d0   :  { %v9670_v45 = vadd.f32 %v9542_v8, %v9046_v0  ;;  %v9047_v59 = vadd.f32 %v8919_v27, %v8423_v32  ;;  %v10731_v51 = vrot.slane %v16646_v15, %v16665_v2  ;;  %v10939_v22 = vsel %vm3168_vm2, %v10705_v47, %v10696_v20 }
 0x7d1   :  { %v10714_v60 = vsel %vm10335_vm10, %v10713_v35, %v10709_v6  ;;  %v10736_v17 = vrot.slane %v10214_v13, %v17936_v57  ;;  %v10740_v62 = vrot.slane %v10217_v48, %v16665_v2  ;;  %v10723_v16 = vsel %vm10335_vm10, %v10722_v19, %v10718_v3 }
 0x7d2   :  { %v9812_v4 = vadd.f32 %v17648_v7, %v9670_v45  ;;  %v9671_v26 = vadd.f32 %v9543_v43, %v9047_v59  ;;  %v10940_v61 = vsel %vm3170_vm3, %v10714_v60, %v10939_v22  ;;  %v10732_v24 = vsel %vm10335_vm10, %v10731_v51, %v10727_v9  ;;  %v16715_v33 = vpop.permute.xlu0 %10231  ;;  %v17943_v22 = vld [vmem:[#allocation13_spill] sm:$0xff] }
 0x7d3   :  { %v10745_v42 = vrot.slane %v10220_v38, %v17936_v57  ;;  %v10941_v15 = vsel %vm3172_vm4, %v10723_v16, %v10940_v61  ;;  %v10741_v28 = vsel %vm10335_vm10, %v10740_v62, %v10736_v17  ;;  %v10749_v39 = vrot.slane %v10223_v53, %v16665_v2  ;;  %v17944_v17 = vld [vmem:[#allocation17_spill] sm:$0xff] }
 0x7d4   :  { %10321 = vperm.xlu1 %11702, %v9812_v4   ;;  %v9813_v7 = vadd.f32 %v17647_v46, %v9671_v26  ;;  %v10226_v46 = vpop.permute.xlu1 %10225  ;;  %v10942_v14 = vsel %vm3174_vm5, %v10732_v24, %v10941_v15  ;;  %v10758_v23 = vrot.slane %v10229_v37, %v16665_v2  ;;  %v10340_v32 = vrot.slane %v15646_v5, %v17936_v57  ;;  %v17937_v5 = vld [vmem:[#allocation178_spill] sm:$0xff]  ;;  %v17945_v37 = vld [vmem:[#allocation37_spill] sm:$0xff]  ;;  %v17947_v15 = vld [vmem:[#allocation24_spill] sm:$0xff] }
 0x7d5   :  { %v10754_v50 = vrot.slane %v10226_v46, %v17936_v57  ;;  %v10943_v12 = vsel %vm3176_vm6, %v10741_v28, %v10942_v14  ;;  %v10750_v1 = vsel %vm10335_vm10, %v10749_v39, %v10745_v42  ;;  %v10344_v27 = vrot.slane %v15652_v29, %v16665_v2  ;;  %v17938_v29 = vld [vmem:[#allocation41_spill] sm:$0xff]  ;;  %v17949_v14 = vld [vmem:[#allocation42_spill] sm:$0xff] }
 0x7d6   :  { %10324 = vperm.xlu0 %11703, %v9813_v7   ;;  %v10944_v54 = vsel %vm3178_vm7, %v10750_v1, %v10943_v12  ;;  %v16719_v31 = vpop.permute.xlu0 %10237  ;;  %v10349_v45 = vrot.slane %v15671_v49, %v17936_v57  ;;  %v10353_v38 = vrot.slane %v15677_v18, %v16665_v2  ;;  %v10329_v43 = vrot.slane %v15623_v52, %v17936_v57  ;;  %v17939_v18 = vld [vmem:[#allocation177_spill] sm:$0xff]  ;;  %v17941_v52 = vld [vmem:[#allocation16_spill] sm:$0xff]  ;;  %v17950_v12 = vld [vmem:[#allocation50_spill] sm:$0xff] }
 0x7d7   :  { %v10759_v40 = vsel %vm10335_vm10, %v10758_v23, %v10754_v50  ;;  %v10334_v53 = vrot.slane %v15627_v56, %v16665_v2  ;;  %v10345_v4 = vsel %vm10335_vm10, %v10344_v27, %v10340_v32  ;;  %v10358_v30 = vrot.slane %v17937_v5, %v17936_v57  ;;  %v17942_v56 = vld [vmem:[#allocation20_spill] sm:$0xff]  ;;  %v17946_v16 = vld [vmem:[#allocation25_spill] sm:$0xff]  ;;  %v17955_v5 = vld [vmem:[#allocation126_spill] sm:$0xff] }
 0x7d8   :  { %v16711_v13 = vsel %vm3180_vm8, %v10759_v40, %v10944_v54  ;;  %v16713_v58 = vpop.permute.xlu1 %10234  ;;  %v10362_v26 = vrot.slane %v17938_v29, %v16665_v2  ;;  %v10367_v41 = vrot.slane %v17939_v18, %v17936_v57  ;;  %v10371_v10 = vrot.slane %v17940_v25, %v16665_v2  ;;  %v17948_v39 = vld [vmem:[#allocation21_spill] sm:$0xff]  ;;  %v17951_v54 = vld [vmem:[#allocation28_spill] sm:$0xff] }
 0x7d9   :  { %v10376_v6 = vrot.slane %v17941_v52, %v17936_v57  ;;  %v10380_v7 = vrot.slane %v17942_v56, %v16665_v2  ;;  %v10354_v20 = vsel %vm10335_vm10, %v10353_v38, %v10349_v45  ;;  %v10336_v35 = vsel %vm10335_vm10, %v10334_v53, %v10329_v43  ;;  %v17952_v32 = vld [vmem:[#allocation32_spill] sm:$0xff]  ;;  %v17953_v45 = vld [vmem:[#allocation110_spill] sm:$0xff]  ;;  %v17954_v43 = vld [vmem:[#allocation29_spill] sm:$0xff] }
 0x7da   :  { %v16723_v36 = vpop.permute.xlu0 %10243  ;;  %v10904_v3 = vsel %vm3168_vm2, %v10345_v4, %v10336_v35  ;;  %v10363_v9 = vsel %vm10335_vm10, %v10362_v26, %v10358_v30  ;;  %v10372_v51 = vsel %vm10335_vm10, %v10371_v10, %v10367_v41  ;;  %v10385_v60 = vrot.slane %v17943_v22, %v17936_v57  ;;  %v17956_v29 = vld [vmem:[#allocation33_spill] sm:$0xff]  ;;  %v17957_v25 = vld [vmem:[#allocation36_spill] sm:$0xff]  ;;  %v17958_v52 = vld [vmem:[#allocation127_spill] sm:$0xff] }
 0x7db   :  { %v10905_v19 = vsel %vm3170_vm3, %v10354_v20, %v10904_v3  ;;  %v10381_v46 = vsel %vm10335_vm10, %v10380_v7, %v10376_v6  ;;  %v10389_v62 = vrot.slane %v17944_v17, %v16665_v2  ;;  %v10412_v61 = vrot.slane %v17945_v37, %v17936_v57  ;;  %v17959_v35 = vld [vmem:[#allocation45_spill] sm:$0xff] }
 0x7dc   :  { %v16717_v48 = vpop.permute.xlu1 %10240  ;;  %v10416_v24 = vrot.slane %v17946_v16, %v16665_v2  ;;  %v10394_v28 = vrot.slane %v17947_v15, %v17936_v57  ;;  %v10398_v50 = vrot.slane %v17948_v39, %v16665_v2  ;;  %v10421_v23 = vrot.slane %v17949_v14, %v17936_v57  ;;  %v17962_v39 = vld [vmem:[#allocation183_spill] sm:$0xff] }
 0x7dd   :  { %v10425_v1 = vrot.slane %v17950_v12, %v16665_v2  ;;  %v10403_v40 = vrot.slane %v17951_v54, %v17936_v57  ;;  %v10407_v27 = vrot.slane %v17952_v32, %v16665_v2  ;;  %v10430_v38 = vrot.slane %v17953_v45, %v17936_v57 }
 0x7de   :  { %v16727_v34 = vpop.permute.xlu0 %10249  ;;  %v10434_v53 = vrot.slane %v17954_v43, %v16665_v2  ;;  %v10906_v4 = vsel %vm3172_vm4, %v10363_v9, %v10905_v19  ;;  %v10439_v30 = vrot.slane %v17955_v5, %v17936_v57  ;;  %v10443_v26 = vrot.slane %v17956_v29, %v16665_v2  ;;  %v17960_v19 = vld [vmem:[#allocation38_spill] sm:$0xff] }
 0x7df   :  { %v10907_v18 = vsel %vm3174_vm5, %v10372_v51, %v10906_v4  ;;  %v10417_v41 = vsel %vm10335_vm10, %v10416_v24, %v10412_v61  ;;  %v10448_v10 = vrot.slane %v17957_v25, %v17936_v57  ;;  %v10452_v6 = vrot.slane %v17958_v52, %v16665_v2  ;;  %v17961_v24 = vld [vmem:[#allocation184_spill] sm:$0xff]  ;;  %v17968_v5 = vld [vmem:[#allocation46_spill] sm:$0xff] }
 0x7e0   :  { %v16721_v63 = vpop.permute.xlu1 %10246  ;;  %v10908_v7 = vsel %vm3176_vm6, %v10381_v46, %v10907_v18  ;;  %v10426_v20 = vsel %vm10335_vm10, %v10425_v1, %v10421_v23  ;;  %v10457_v3 = vrot.slane %v17959_v35, %v17936_v57  ;;  %v10461_v9 = vrot.slane %v17960_v19, %v16665_v2  ;;  %v17964_v23 = vld [vmem:[#allocation185_spill] sm:$0xff] }
 0x7e1   :  { %v10390_v51 = vsel %vm10335_vm10, %v10389_v62, %v10385_v60  ;;  %v10399_v22 = vsel %vm10335_vm10, %v10398_v50, %v10394_v28  ;;  %v10408_v17 = vsel %vm10335_vm10, %v10407_v27, %v10403_v40  ;;  %v10435_v37 = vsel %vm10335_vm10, %v10434_v53, %v10430_v38  ;;  %v17963_v28 = vld [vmem:[#allocation145_spill] sm:$0xff]  ;;  %v17965_v40 = vld [vmem:[#allocation182_spill] sm:$0xff] }
 0x7e2   :  { %v16731_v55 = vpop.permute.xlu0 %10255  ;;  %v10911_v46 = vsel %vm3168_vm2, %v10417_v41, %v10408_v17  ;;  %v10444_v16 = vsel %vm10335_vm10, %v10443_v26, %v10439_v30  ;;  %v10484_v15 = vrot.slane %v17961_v24, %v17936_v57  ;;  %v10488_v14 = vrot.slane %v17962_v39, %v16665_v2  ;;  %v17966_v27 = vld [vmem:[#allocation181_spill] sm:$0xff]  ;;  %v17969_v41 = vld [vmem:[#allocation148_spill] sm:$0xff]  ;;  %v17975_v39 = vld [vmem:[#allocation146_spill] sm:$0xff] }
 0x7e3   :  { %v10912_v60 = vsel %vm3170_vm3, %v10426_v20, %v10911_v46  ;;  %v10453_v62 = vsel %vm10335_vm10, %v10452_v6, %v10448_v10  ;;  %v10493_v50 = vrot.slane %v17963_v28, %v17936_v57  ;;  %v10497_v12 = vrot.slane %v17964_v23, %v16665_v2  ;;  %v17967_v53 = vld [vmem:[#allocation49_spill] sm:$0xff]  ;;  %v17970_v10 = vld [vmem:[#allocation86_spill] sm:$0xff]  ;;  %v17971_v20 = vld [vmem:[#allocation180_spill] sm:$0xff] }
 0x7e4   :  { %v16725_v21 = vpop.permute.xlu1 %10252  ;;  %v10913_v1 = vsel %vm3172_vm4, %v10435_v37, %v10912_v60  ;;  %v10462_v54 = vsel %vm10335_vm10, %v10461_v9, %v10457_v3  ;;  %v10475_v32 = vrot.slane %v17965_v40, %v17936_v57  ;;  %v10479_v45 = vrot.slane %v17966_v27, %v16665_v2  ;;  %v17972_v9 = vld [vmem:[#allocation179_spill] sm:$0xff]  ;;  %v17973_v37 = vld [vmem:[#allocation53_spill] sm:$0xff]  ;;  %v17977_v23 = vld [vmem:[#allocation90_spill] sm:$0xff] }
 0x7e5   :  { %v10909_v38 = vsel %vm3178_vm7, %v10390_v51, %v10908_v7  ;;  %v10914_v43 = vsel %vm3174_vm5, %v10444_v16, %v10913_v1  ;;  %v10502_v4 = vrot.slane %v17967_v53, %v17936_v57  ;;  %v10506_v30 = vrot.slane %v17968_v5, %v16665_v2  ;;  %v17976_v60 = vld [vmem:[#allocation155_spill] sm:$0xff]  ;;  %v17978_v1 = vld [vmem:[#allocation94_spill] sm:$0xff]  ;;  %v17979_v40 = vld [vmem:[#allocation89_spill] sm:$0xff] }
 0x7e6   :  { %v10915_v26 = vsel %vm3176_vm6, %v10453_v62, %v10914_v43  ;;  %v10489_v18 = vsel %vm10335_vm10, %v10488_v14, %v10484_v15  ;;  %v10556_v25 = vrot.slane %v17969_v41, %v17936_v57  ;;  %v10560_v52 = vrot.slane %v17970_v10, %v16665_v2  ;;  %v17980_v27 = vld [vmem:[#allocation93_spill] sm:$0xff] }
 0x7e7   :  { %v16859_v6 = vsel %vm3180_vm8, %v10399_v22, %v10909_v38  ;;  %v16862_v7 = vsel %vm3178_vm7, %v10462_v54, %v10915_v26  ;;  %v10466_v35 = vrot.slane %v17971_v20, %v17936_v57  ;;  %v10498_v3 = vsel %vm10335_vm10, %v10497_v12, %v10493_v50  ;;  %v17974_v22 = vld [vmem:[#allocation147_spill] sm:$0xff]  ;;  %v17981_v38 = vld [vmem:[#allocation98_spill] sm:$0xff]  ;;  %v17982_v53 = vld [vmem:[#allocation97_spill] sm:$0xff] }
 0x7e8   :  { %v16729_v44 = vpop.permute.xlu1 %10258  ;;  %v10470_v51 = vrot.slane %v17972_v9, %v16665_v2  ;;  %v10480_v17 = vsel %vm10335_vm10, %v10479_v45, %v10475_v32  ;;  %v10511_v46 = vrot.slane %v17973_v37, %v17936_v57  ;;  %v10515_v16 = vrot.slane %v17974_v22, %v16665_v2 }
 0x7e9   :  { %v16735_v8 = vpop.permute.xlu0 %10261  ;;  %v10918_v24 = vsel %vm3168_vm2, %v10489_v18, %v10480_v17  ;;  %v10507_v15 = vsel %vm10335_vm10, %v10506_v30, %v10502_v4  ;;  %v10547_v14 = vrot.slane %v17975_v39, %v17936_v57  ;;  %v10551_v62 = vrot.slane %v17976_v60, %v16665_v2  ;;  %v17983_v18 = vld [vmem:[#allocation142_spill] sm:$0xff]  ;;  %v17987_v17 = vld [vmem:[#allocation144_spill] sm:$0xff] }
 0x7ea   :  { %v10919_v28 = vsel %vm3170_vm3, %v10498_v3, %v10918_v24  ;;  %v10561_v50 = vsel %vm10335_vm10, %v10560_v52, %v10556_v25  ;;  %v10565_v12 = vrot.slane %v17977_v23, %v17936_v57  ;;  %v10569_v54 = vrot.slane %v17978_v1, %v16665_v2  ;;  %v17984_v25 = vld [vmem:[#allocation149_spill] sm:$0xff]  ;;  %v17985_v52 = vld [vmem:[#allocation143_spill] sm:$0xff]  ;;  %v17989_v23 = vld [vmem:[#allocation102_spill] sm:$0xff] }
 0x7eb   :  { %v10574_v32 = vrot.slane %v17979_v40, %v17936_v57  ;;  %v10578_v45 = vrot.slane %v17980_v27, %v16665_v2  ;;  %v10583_v43 = vrot.slane %v17981_v38, %v17936_v57  ;;  %v10587_v4 = vrot.slane %v17982_v53, %v16665_v2  ;;  %v17986_v3 = vld [vmem:[#allocation151_spill] sm:$0xff]  ;;  %v17990_v40 = vld [vmem:[#allocation106_spill] sm:$0xff]  ;;  %v17992_v38 = vld [vmem:[#allocation112_spill] sm:$0xff] }
 0x7ec   :  { %v16733_v0 = vpop.permute.xlu1 %10264  ;;  %v10920_v30 = vsel %vm3172_vm4, %v10507_v15, %v10919_v28  ;;  %v10516_v26 = vsel %vm10335_vm10, %v10515_v16, %v10511_v46  ;;  %v10520_v41 = vrot.slane %v17983_v18, %v17936_v57  ;;  %v10524_v10 = vrot.slane %v17984_v25, %v16665_v2  ;;  %v17988_v46 = vld [vmem:[#allocation153_spill] sm:$0xff] }
 0x7ed   :  { %v10529_v20 = vrot.slane %v17985_v52, %v17936_v57  ;;  %v10533_v9 = vrot.slane %v17986_v3, %v16665_v2  ;;  %v10538_v37 = vrot.slane %v17987_v17, %v17936_v57  ;;  %v10552_v22 = vsel %vm10335_vm10, %v10551_v62, %v10547_v14  ;;  %v17991_v14 = vld [vmem:[#allocation101_spill] sm:$0xff] }
 0x7ee   :  { %v10542_v16 = vrot.slane %v17988_v46, %v16665_v2  ;;  %v10925_v15 = vsel %vm3168_vm2, %v10561_v50, %v10552_v22  ;;  %v10570_v39 = vsel %vm10335_vm10, %v10569_v54, %v10565_v12  ;;  %v10579_v60 = vsel %vm10335_vm10, %v10578_v45, %v10574_v32  ;;  %v17993_v50 = vld [vmem:[#allocation105_spill] sm:$0xff]  ;;  %v17994_v12 = vld [vmem:[#allocation128_spill] sm:$0xff] }
 0x7ef   :  { %v10588_v28 = vsel %vm10335_vm10, %v10587_v4, %v10583_v43  ;;  %v10592_v1 = vrot.slane %v17989_v23, %v17936_v57  ;;  %v10596_v27 = vrot.slane %v17990_v40, %v16665_v2  ;;  %v10601_v62 = vrot.slane %v17991_v14, %v17936_v57  ;;  %v17995_v17 = vld [vmem:[#allocation129_spill] sm:$0xff]  ;;  %v17999_v14 = vld [vmem:[#allocation54_spill] sm:$0xff] }
 0x7f0   :  { %v16745_v59 = vpop.permute.xlu1 %10270  ;;  %v10605_v53 = vrot.slane %v17992_v38, %v16665_v2  ;;  %v10610_v18 = vrot.slane %v17993_v50, %v17936_v57  ;;  %v10614_v54 = vrot.slane %v17994_v12, %v16665_v2  ;;  %v10471_v32 = vsel %vm10335_vm10, %v10470_v51, %v10466_v35  ;;  %v17996_v46 = vld [vmem:[#allocation57_spill] sm:$0xff] }
 0x7f1   :  { %v10921_v45 = vsel %vm3174_vm5, %v10516_v26, %v10920_v30  ;;  %v10525_v43 = vsel %vm10335_vm10, %v10524_v10, %v10520_v41  ;;  %v10926_v4 = vsel %vm3170_vm3, %v10570_v39, %v10925_v15  ;;  %v10534_v52 = vsel %vm10335_vm10, %v10533_v9, %v10529_v20  ;;  %v17997_v9 = vld [vmem:[#allocation109_spill] sm:$0xff] }
 0x7f2   :  { %v10927_v3 = vsel %vm3172_vm4, %v10579_v60, %v10926_v4  ;;  %v10628_v22 = vrot.slane %v17995_v17, %v17936_v57  ;;  %v10632_v23 = vrot.slane %v17996_v46, %v16665_v2  ;;  %v11928_v40 = vmov 1983009808   ;;  %v17998_v39 = vld [vmem:[#allocation113_spill] sm:$0xff]  ;;  %v18004_v46 = vld [vmem:[#allocation63_spill] sm:$0xff] }
 0x7f3   :  { %v10971_v35 = vunpack.c.l.s4 %v11928_v40  ;;  %v10543_v51 = vsel %vm10335_vm10, %v10542_v16, %v10538_v37  ;;  %v10928_v30 = vsel %vm3174_vm5, %v10588_v28, %v10927_v3  ;;  %v10597_v26 = vsel %vm10335_vm10, %v10596_v27, %v10592_v1  ;;  %v18000_v37 = vld [vmem:[#allocation61_spill] sm:$0xff]  ;;  %v18001_v28 = vld [vmem:[#allocation58_spill] sm:$0xff]  ;;  %v18002_v27 = vld [vmem:[#allocation124_spill] sm:$0xff] }
 0x7f4   :  { %v10606_v10 = vsel %vm10335_vm10, %v10605_v53, %v10601_v62  ;;  %v10615_v20 = vsel %vm10335_vm10, %v10614_v54, %v10610_v18  ;;  %v10619_v15 = vrot.slane %v17997_v9, %v17936_v57  ;;  %v10623_v60 = vrot.slane %v17998_v39, %v16665_v2  ;;  %v18003_v3 = vld [vmem:[#allocation62_spill] sm:$0xff]  ;;  %v18007_v39 = vld [vmem:[#allocation65_spill] sm:$0xff] }
 0x7f5   :  { %v10637_v38 = vrot.slane %v17999_v14, %v17936_v57  ;;  %v10641_v16 = vrot.slane %v18000_v37, %v16665_v2  ;;  %v10646_v1 = vrot.slane %v18001_v28, %v17936_v57  ;;  %v10650_v62 = vrot.slane %v18002_v27, %v16665_v2 }
 0x7f6   :  { %v16756_v49 = vpop.permute.xlu0 %10267  ;;  %v16964_v53 = vsel %vm3180_vm8, %v10471_v32, %v16862_v7  ;;  %v10922_v50 = vsel %vm3176_vm6, %v10525_v43, %v10921_v45  ;;  %v10929_v18 = vsel %vm3176_vm6, %v10597_v26, %v10928_v30  ;;  %v10633_v12 = vsel %vm10335_vm10, %v10632_v23, %v10628_v22  ;;  %v18005_v30 = vld [vmem:[#allocation66_spill] sm:$0xff] }
 0x7f7   :  { %v10923_v54 = vsel %vm3178_vm7, %v10534_v52, %v10922_v50  ;;  %v10930_v4 = vsel %vm3178_vm7, %v10606_v10, %v10929_v18  ;;  %v10655_v17 = vrot.slane %v18003_v3, %v17936_v57  ;;  %v10659_v40 = vrot.slane %v18004_v46, %v16665_v2 }
 0x7f8   :  { %v10972_v7 = vunpack.c.0.s8 %v10971_v35  ;;  %v16978_v32 = vsel %vm3180_vm8, %v10543_v51, %v10923_v54  ;;  %v16981_v45 = vsel %vm3180_vm8, %v10615_v20, %v10930_v4  ;;  %v10624_v43 = vsel %vm10335_vm10, %v10623_v60, %v10619_v15  ;;  %v18006_v35 = vld [vmem:[#allocation70_spill] sm:$0xff] }
 0x7f9   :  { %v10932_v52 = vsel %vm3168_vm2, %v10633_v12, %v10624_v43  ;;  %v10642_v22 = vsel %vm10335_vm10, %v10641_v16, %v10637_v38  ;;  %v10651_v23 = vsel %vm10335_vm10, %v10650_v62, %v10646_v1  ;;  %v10664_v26 = vrot.slane %v18005_v30, %v17936_v57  ;;  %v18008_v38 = vld [vmem:[#allocation69_spill] sm:$0xff]  ;;  %v18009_v1 = vld [vmem:[#allocation74_spill] sm:$0xff] }
 0x7fa   :  { %v10668_v51 = vrot.slane %v18006_v35, %v16665_v2  ;;  %v10673_v20 = vrot.slane %v18007_v39, %v17936_v57  ;;  %v10776_v15 = vrot.slane %v16717_v48, %v16665_v2  ;;  %v10772_v60 = vrot.slane %v16719_v31, %v17936_v57  ;;  %v18010_v62 = vld [vmem:[#allocation73_spill] sm:$0xff] }
 0x7fb   :  { %v16769_v47 = vpop.permute.xlu1 %10273  ;;  %v10660_v14 = vsel %vm10335_vm10, %v10659_v40, %v10655_v17  ;;  %v10677_v37 = vrot.slane %v18008_v38, %v16665_v2  ;;  %v10785_v16 = vrot.slane %v16721_v63, %v16665_v2  ;;  %v10781_v28 = vrot.slane %v16723_v36, %v17936_v57 }
 0x7fc   :  { %v10682_v27 = vrot.slane %v18009_v1, %v17936_v57  ;;  %v10686_v48 = vrot.slane %v18010_v62, %v16665_v2  ;;  %v10767_v31 = vrot.slane %v16713_v58, %v16665_v2  ;;  %v10763_v50 = vrot.slane %v16715_v33, %v17936_v57 }
 0x7fd   :  { %v17015_v18 = vsub.s32 %v10972_v7, %v17935_v11  ;;  %v10968_v63 = vcombine.low %v16859_v6, %v16978_v32  ;;  %v10969_v36 = vcombine.high %v16859_v6, %v16978_v32  ;;  %v10933_v12 = vsel %vm3170_vm3, %v10642_v22, %v10932_v52 }
 0x7fe   :  { %v16783_v42 = vpop.permute.xlu0 %10276  ;;  %v10934_v4 = vsel %vm3172_vm4, %v10651_v23, %v10933_v12  ;;  %v10777_v3 = vsel %vm10335_vm10, %v10776_v15, %v10772_v60  ;;  %v10794_v58 = vrot.slane %v16725_v21, %v16665_v2  ;;  %v10790_v33 = vrot.slane %v16727_v34, %v17936_v57 }
 0x7ff   :  { %v10984_v17 = vcombine.low %v16964_v53, %v16981_v45  ;;  %v10985_v46 = vcombine.high %v16964_v53, %v16981_v45  ;;  %v10935_v40 = vsel %vm3174_vm5, %v10660_v14, %v10934_v4  ;;  %v10786_v7 = vsel %vm10335_vm10, %v10785_v16, %v10781_v28 }
 0x800   :  { %v10669_v52 = vsel %vm10335_vm10, %v10668_v51, %v10664_v26  ;;  %v10678_v22 = vsel %vm10335_vm10, %v10677_v37, %v10673_v20  ;;  %v10687_v21 = vsel %vm10335_vm10, %v10686_v48, %v10682_v27  ;;  %v10768_v23 = vsel %vm10335_vm10, %v10767_v31, %v10763_v50 }
 0x801   :  { %v10946_v34 = vsel %vm3168_vm2, %v10777_v3, %v10768_v23  ;;  %v10803_v30 = vrot.slane %v16729_v44, %v16665_v2  ;;  %v10799_v35 = vrot.slane %v16731_v55, %v17936_v57  ;;  %v10812_v39 = vrot.slane %v16733_v0, %v16665_v2 }
 0x802   :  { %v10947_v15 = vsel %vm3170_vm3, %v10786_v7, %v10946_v34  ;;  %v10795_v26 = vsel %vm10335_vm10, %v10794_v58, %v10790_v33  ;;  %v10808_v51 = vrot.slane %v16735_v8, %v17936_v57  ;;  %v10821_v20 = vrot.slane %v16745_v59, %v16665_v2 }
 0x803   :  { %v10817_v60 = vrot.slane %v16756_v49, %v17936_v57  ;;  %v10826_v14 = vrot.slane %v16769_v47, %v17936_v57  ;;  %v10830_v38 = vrot.slane %v16783_v42, %v16665_v2  ;;  %v10948_v42 = vsel %vm3172_vm4, %v10795_v26, %v10947_v15 }
 0x804   :  { %v10813_v16 = vsel %vm10335_vm10, %v10812_v39, %v10808_v51  ;;  %v11929_v3 = vmov 1934713408   ;;  %v10936_v34 = vsel %vm3176_vm6, %v10669_v52, %v10935_v40  ;;  %v10992_v26 = vrot.slane %v10984_v17, %v17015_v18 }
 0x805   :  { %v16812_v56 = vpop.permute.xlu1 %10282  ;;  %v11035_v58 = vunpack.c.l.s4 %v11929_v3  ;;  %v10937_v51 = vsel %vm3178_vm7, %v10678_v22, %v10936_v34  ;;  %v10983_v53 = vrot.slane %v10969_v36, %v17015_v18 }
 0x806   :  { %v10839_v49 = vrot.slane %v16812_v56, %v16665_v2  ;;  %v10938_v40 = vsel %vm3180_vm8, %v10687_v21, %v10937_v51 }
 0x80a   :  { %v16824_v61 = vpop.permute.xlu0 %10279 }
 0x810   :  { %v16850_v29 = vpop.permute.xlu1 %10288 }
 0x811   :  { %v10848_v44 = vrot.slane %v16850_v29, %v16665_v2  ;;  %v10835_v29 = vrot.slane %v16824_v61, %v17936_v57 }
 0x813   :  { %v16867_v19 = vpop.permute.xlu0 %10285  ;;  %v10840_v48 = vsel %vm10335_vm10, %v10839_v49, %v10835_v29 }
 0x814   :  { %v10844_v55 = vrot.slane %v16867_v19, %v17936_v57 }
 0x816   :  { %v10849_v61 = vsel %vm10335_vm10, %v10848_v44, %v10844_v55  ;;  %v11036_v44 = vunpack.c.0.s8 %v11035_v58 }
 0x81a   :  { %v16896_v5 = vpop.permute.xlu1 %10294 }
 0x81b   :  { %v10857_v8 = vrot.slane %v16896_v5, %v16665_v2  ;;  %v10804_v5 = vsel %vm10335_vm10, %v10803_v30, %v10799_v35 }
 0x81f   :  { %v16911_v24 = vpop.permute.xlu0 %10291 }
 0x820   :  { %v10853_v59 = vrot.slane %v16911_v24, %v17936_v57 }
 0x822   :  { %v10858_v1 = vsel %vm10335_vm10, %v10857_v8, %v10853_v59 }
 0x825   :  { %v16935_v25 = vpop.permute.xlu1 %10300 }
 0x826   :  { %v10866_v19 = vrot.slane %v16935_v25, %v16665_v2 }
 0x828   :  { %v16946_v41 = vpop.permute.xlu0 %10297 }
 0x829   :  { %v10862_v47 = vrot.slane %v16946_v41, %v17936_v57  ;;  %v10822_v41 = vsel %vm10335_vm10, %v10821_v20, %v10817_v60 }
 0x82b   :  { %v10867_v31 = vsel %vm10335_vm10, %v10866_v19, %v10862_v47 }
 0x82f   :  { %v16975_v9 = vpop.permute.xlu1 %10306 }
 0x830   :  { %v10875_v24 = vrot.slane %v16975_v9, %v16665_v2  ;;  %v10949_v9 = vsel %vm3174_vm5, %v10804_v5, %v10948_v42 }
 0x831   :  { %v10950_v12 = vsel %vm3176_vm6, %v10813_v16, %v10949_v9 }
 0x832   :  { %v10951_v33 = vsel %vm3178_vm7, %v10822_v41, %v10950_v12 }
 0x834   :  { %v16989_v10 = vpop.permute.xlu0 %10303 }
 0x835   :  { %v10871_v56 = vrot.slane %v16989_v10, %v17936_v57  ;;  %v10831_v10 = vsel %vm10335_vm10, %v10830_v38, %v10826_v14  ;;  %v11039_v38 = vsub.s32 %v11036_v44, %v17935_v11 }
 0x836   :  { %v10952_v30 = vsel %vm3180_vm8, %v10831_v10, %v10951_v33 }
 0x837   :  { %v10876_v4 = vsel %vm10335_vm10, %v10875_v24, %v10871_v56  ;;  %v11000_v55 = vcombine.low %v10938_v40, %v10952_v30 }
 0x839   :  { %v11008_v49 = vrot.slane %v11000_v55, %v17015_v18 }
 0x83a   :  { %v10313_v54 = vpop.permute.xlu1 %10312 }
 0x83b   :  { %v10884_v25 = vrot.slane %v10313_v54, %v16665_v2  ;;  %v10953_v54 = vsel %vm3168_vm2, %v10849_v61, %v10840_v48 }
 0x83c   :  { %v10954_v7 = vsel %vm3170_vm3, %v10858_v1, %v10953_v54 }
 0x83d   :  { %v10310_v43 = vpop.permute.xlu0 %10309  ;;  %v10955_v35 = vsel %vm3172_vm4, %v10867_v31, %v10954_v7 }
 0x83e   :  { %v10880_v28 = vrot.slane %v10310_v43, %v17936_v57  ;;  %v10956_v20 = vsel %vm3174_vm5, %v10876_v4, %v10955_v35 }
 0x840   :  { %v10885_v43 = vsel %vm10335_vm10, %v10884_v25, %v10880_v28 }
 0x841   :  { %v10957_v52 = vsel %vm3176_vm6, %v10885_v43, %v10956_v20 }
 0x844   :  { %v10319_v0 = vpop.permute.xlu1 %10318 }
 0x845   :  { %v10893_v27 = vrot.slane %v10319_v0, %v16665_v2  ;;  %v11001_v0 = vcombine.high %v10938_v40, %v10952_v30 }
 0x84a   :  { %v10316_v37 = vpop.permute.xlu0 %10315 }
 0x84b   :  { %v10889_v62 = vrot.slane %v10316_v37, %v17936_v57 }
 0x84d   :  { %v10894_v39 = vsel %vm10335_vm10, %v10893_v27, %v10889_v62 }
 0x84e   :  { %v10958_v17 = vsel %vm3178_vm7, %v10894_v39, %v10957_v52 }
 0x84f   :  { %v10322_v50 = vpop.permute.xlu1 %10321 }
 0x850   :  { %v10898_v23 = vrot.slane %v10322_v50, %v17936_v57  ;;  %v10999_v57 = vrot.slane %v10985_v46, %v17015_v18 }
 0x851   :  { %v10325_v15 = vpop.permute.xlu0 %10324 }
 0x852   :  { %v10902_v60 = vrot.slane %v10325_v15, %v16665_v2  ;;  %v10976_v2 = vrot.slane %v10968_v63, %v17015_v18  ;;  %v11048_v59 = vcombine.low %v10983_v53, %v10999_v57  ;;  %v11015_v63 = vrot.slane %v11001_v0, %v17015_v18 }
 0x853   :  { %v11049_v32 = vcombine.high %v10983_v53, %v10999_v57 }
 0x854   :  { %v10903_v22 = vsel %vm10335_vm10, %v10902_v60, %v10898_v23  ;;  %v11033_v14 = vcombine.high %v10976_v2, %v10992_v26  ;;  %v11032_v8 = vcombine.low %v10976_v2, %v10992_v26  ;;  %v11056_v5 = vrot.slane %v11048_v59, %v11039_v38 }
 0x855   :  { %v10959_v45 = vsel %vm3180_vm8, %v10903_v22, %v10958_v17  ;;  %v11063_v61 = vrot.slane %v11049_v32, %v11039_v38 }
 0x856   :  { %v11016_v46 = vcombine.low %v16711_v13, %v10959_v45  ;;  %v11017_v21 = vcombine.high %v16711_v13, %v10959_v45  ;;  %v11047_v42 = vrot.slane %v11033_v14, %v11039_v38  ;;  %v11040_v13 = vrot.slane %v11032_v8, %v11039_v38 }
 0x858   :  { %v11024_v29 = vrot.slane %v11016_v46, %v17015_v18  ;;  %v11031_v6 = vrot.slane %v11017_v21, %v17015_v18 }
 0x85a   :  { %v11065_v36 = vcombine.high %v11008_v49, %v11024_v29  ;;  %v11064_v19 = vcombine.low %v11008_v49, %v11024_v29  ;;  %v11080_v47 = vcombine.low %v11015_v63, %v11031_v6  ;;  %v11081_v37 = vcombine.high %v11015_v63, %v11031_v6 }
 0x85c   :  { %v11079_v24 = vrot.slane %v11065_v36, %v11039_v38  ;;  %v11072_v11 = vrot.slane %v11064_v19, %v11039_v38  ;;  %v11088_v56 = vrot.slane %v11080_v47, %v11039_v38  ;;  %v11095_v16 = vrot.slane %v11081_v37, %v11039_v38 }
 0x85e   :  { %v11098_v25 = vcombine.low %v11047_v42, %v11079_v24  ;;  %v11097_v28 = vcombine.high %v11040_v13, %v11072_v11  ;;  %v11100_v41 = vcombine.low %v11056_v5, %v11088_v56  ;;  %v11099_v1 = vcombine.high %v11047_v42, %v11079_v24 }
 0x85f   :  { %v11102_v27 = vcombine.low %v11063_v61, %v11095_v16  ;;  %v11101_v62 = vcombine.high %v11056_v5, %v11088_v56  ;;  %v11103_v18 = vcombine.high %v11063_v61, %v11095_v16  ;;  %v11096_v9 = vcombine.low %v11040_v13, %v11072_v11 }
 0x860   :  { %11109 = vrot.lane.b32.xlu0 %v11098_v25, %s11930_s0  ;;  %11105 = vrot.lane.b32.xlu1 %v11097_v28, %s11931_s1 }
 0x864   :  { %11117 = vrot.lane.b32.xlu0 %v11100_v41, %s11932_s21  ;;  %11113 = vrot.lane.b32.xlu1 %v11099_v1, %s11933_s22 }
 0x868   :  { %11125 = vrot.lane.b32.xlu0 %v11102_v27, %s11934_s23  ;;  %11121 = vrot.lane.b32.xlu1 %v11101_v62, %s11935_s24 }
 0x86c   :  { %11129 = vrot.lane.b32.xlu1 %v11103_v18, %s11936_s25 }
 0x8d2   :  { %v11110_v10 = vpop.permute.xlu0 %11109  ;;  %v11106_v48 = vpop.permute.xlu1 %11105 }
 0x8d3   :  { %v11132_v31 = vsel %vm2393_vm1, %v11096_v9, %v11106_v48 }
 0x8d4   :  { %v11133_v54 = vsel %vm53_vm0, %v11132_v31, %v11110_v10 }
 0x8d6   :  { %v11118_v50 = vpop.permute.xlu0 %11117  ;;  %v11114_v12 = vpop.permute.xlu1 %11113 }
 0x8d7   :  { %v11135_v4 = vsel %vm11134_vm11, %v11133_v54, %v11114_v12 }
 0x8d8   :  { %v11137_v58 = vsel %vm11136_vm12, %v11135_v4, %v11118_v50 }
 0x8da   :  { %v11122_v3 = vpop.permute.xlu1 %11121  ;;  %v11126_v33 = vpop.permute.xlu0 %11125 }
 0x8db   :  { %v11139_v7 = vsel %vm11138_vm13, %v11137_v58, %v11122_v3 }
 0x8dc   :  { %v11141_v23 = vsel %vm11140_vm14, %v11139_v7, %v11126_v33 }
 0x8de   :  { %v11130_v43 = vpop.permute.xlu1 %11129 }
 0x8df   :  { %v11143_v34 = vsel %vm11142_vm15, %v11141_v23, %v11130_v43 }
 0x8e0   :  { %11144 = vst [vmem:[#allocation7] sm:$0xff] %v11143_v34 }
 0x8e1   :  { %11907 = shalt.err (!%p11904_p0)
}
 0x8e2   :  { %11154 = dma.vmem_to_hbm [thread:$0]  %s11152_s27, 128, %s17137_s2, [#allocation4]  }
 0x8e3   :  { %11920 = dma.done.wait [#allocation4], 128  }
 0x8e4   :  { %11921 = vsyncadd [#allocation4], 4294967168 }
 0x8e5   :  { %11158 = vsyncpa [#allocation3], 1 }
 0x8e6   :  { %11159 = vsyncpa [#allocation6], 1 }
 0x8e7   :  { %11160 = vsyncpa [#allocation4], 1 }

</bundles_post_ra>
